<compile_context>
chip_gen: v5e
topology: v5e:2x2
jax: 0.10.0
libtpu: 0.0.40
codegen_flags: <defaults>
</compile_context>

<pallas_src>
import math

import numpy as np
import jax
import jax.numpy as jnp
from jax import lax
from jax.experimental import pallas as pl
from jax.experimental.pallas import tpu as pltpu


# --------------------------- layout-aware budgeting -------------------------- #

def _itemsize(dt):
    return jnp.dtype(dt).itemsize


def _sublane(dt):
    # sublane packing: 8 rows (f32), 16 (bf16), 32 (int8)
    return max(8, 32 // _itemsize(dt))


def _round_up(a, m):
    return ((a + m - 1) // m) * m


def _padded_bytes(shape, dt):
    """VMEM footprint of `shape` including (sublane, 128-lane) layout padding."""
    shape = tuple(int(d) for d in shape)
    if len(shape) < 2:
        shape = (1,) * (2 - len(shape)) + shape
    lead = 1
    for d in shape[:-2]:
        lead *= d
    rows = _round_up(shape[-2], _sublane(dt))
    cols = _round_up(shape[-1], 128)
    return lead * rows * cols * _itemsize(dt)


def _vmem_capacity():
    # Generation-aware: 128 MiB on v5e/v6e, 64 MiB per TC on v7x.
    try:
        return int(pltpu.get_tpu_info().vmem_capacity_bytes)
    except Exception:
        return 64 << 20


def _compiler_params(dim_sem, est_vmem_bytes, cap=None):
    cap = _vmem_capacity() if cap is None else cap
    ceiling = int(cap * 0.55)                 # headroom for Mosaic-internal scratch
    limit = int(min(max(int(1.5 * est_vmem_bytes) + (2 << 20), 16 << 20), ceiling))
    return pltpu.CompilerParams(dimension_semantics=dim_sem,
                                vmem_limit_bytes=limit)


def _silu(y, exact=False):
    """y * sigmoid(y) in f32.  Approximate EUP reciprocal for intermediate
    layers (free under the MXU); exact divide for the final f32 epilogue."""
    den = 1.0 + jnp.exp(-y)
    if exact:
        return y / den
    return y * pl.reciprocal(den, approx=True)


# ------------------------------- tile selection ------------------------------ #

def _pick_tm(M, k_list, cout, out_dtype, cap):
    """Row tile for the flattened-spatial 1x1 GEMMs (layout-padded budget,
    cdiv grid so no exact-divisor requirement)."""
    budget = (12 << 20) if cap >= (96 << 20) else (6 << 20)

    def foot(tm):
        b = 0
        for k in k_list:                                     # double-buffered inputs
            b += 2 * _padded_bytes((tm, k), jnp.bfloat16)
        b += 2 * _padded_bytes((tm, cout), out_dtype)        # double-buffered output
        b += _padded_bytes((tm, cout), jnp.float32)          # live f32 accumulator
        for k in k_list:                                     # (double-buffered) weights
            b += 2 * _padded_bytes((k, cout), jnp.bfloat16)
        return b

    tm, t = 8, 8
    while t <= min(2048, max(M, 8)):
        if foot(t) <= budget:
            tm = t
        t *= 2
    if tm >= M:
        tm = M                        # full-extent block (always legal)
    return tm, foot(tm)


def _pick_th(N, H, W, cin, cout, cap):
    """Output-row tile for the 3x3 convs.  The whole unpadded image stays
    resident in VMEM per batch element; the per-program working set adds the
    halo-band scratch, the im2col patch and the f32 accumulator."""
    budget = (10 << 20) if cap >= (96 << 20) else (5 << 20)
    img = 2 * _padded_bytes((H, W, cin), jnp.bfloat16)       # double-buffered x block

    def foot(th):
        b = img
        b += _padded_bytes((th + 2, W + 2, cin), jnp.bfloat16)   # halo band scratch
        b += _padded_bytes((th * W, 9 * cin), jnp.bfloat16)      # im2col patch
        b += _padded_bytes((th * W, cout), jnp.float32)          # f32 accumulator
        b += 2 * _padded_bytes((th * W, cout), jnp.bfloat16)     # dbl-buffered out
        b += 2 * _padded_bytes((9 * cin, cout), jnp.bfloat16)    # weights
        b += 2 * _padded_bytes((th * W, cout), jnp.bfloat16)     # optional residual
        return b

    divs = [d for d in range(1, H + 1) if H % d == 0]
    fitting = [d for d in divs if foot(d) <= budget]
    if not fitting:
        # TODO(synk): switch the x BlockSpec to overlapping halo row-blocks
        # (element-offset index map / manual halo DMA) instead of the full
        # resident image when even th=1 overflows the budget (very large H*W
        # with small Cin on v7x's 64 MiB VMEM).
        return 1, foot(1)
    th = max(fitting)
    if N * (H // th) < 2:             # prefer >=2 programs for megacore / 2 TCs
        multi = [d for d in fitting if N * (H // d) >= 2]
        if multi:
            th = max(multi)
    return th, foot(th)


# ------------------- fused cv0|cv1 1x1 Conv+BN+SiLU (dual output) ------------ #

def _cv01_kernel(x_ref, w0_ref, b0_ref, w1_ref, b1_ref, o0_ref, o1_ref):
    x = x_ref[...]
    a0 = jnp.dot(x, w0_ref[...], preferred_element_type=jnp.float32) + b0_ref[...]
    a1 = jnp.dot(x, w1_ref[...], preferred_element_type=jnp.float32) + b1_ref[...]
    o0_ref[...] = _silu(a0).astype(o0_ref.dtype)
    o1_ref[...] = _silu(a1).astype(o1_ref.dtype)


def conv1x1_dual(x2d, w0, b0, w1, b1, out_dtype=jnp.bfloat16):
    """cv0(x) and cv1(x) in one kernel: x streamed from HBM once, the two
    branches emitted as separate outputs (no wrapper-side channel slice)."""
    M, K = x2d.shape
    c = w0.shape[1]
    cap = _vmem_capacity()
    tm, est = _pick_tm(M, [K], 2 * c, out_dtype, cap)
    grid = (pl.cdiv(M, tm),)

    flops = 2 * M * K * 2 * c
    bytes_acc = 2 * M * K + 4 * K * c + 8 * c + 2 * _itemsize(out_dtype) * M * c

    y0, y1 = pl.pallas_call(
        _cv01_kernel,
        out_shape=(jax.ShapeDtypeStruct((M, c), out_dtype),
                   jax.ShapeDtypeStruct((M, c), out_dtype)),
        grid=grid,
        in_specs=[pl.BlockSpec((tm, K), lambda i: (i, 0)),
                  pl.BlockSpec((K, c), lambda i: (0, 0)),
                  pl.BlockSpec((1, c), lambda i: (0, 0)),
                  pl.BlockSpec((K, c), lambda i: (0, 0)),
                  pl.BlockSpec((1, c), lambda i: (0, 0))],
        out_specs=(pl.BlockSpec((tm, c), lambda i: (i, 0)),
                   pl.BlockSpec((tm, c), lambda i: (i, 0))),
        compiler_params=_compiler_params(("parallel",), est, cap),
        cost_estimate=pl.CostEstimate(flops=flops, transcendentals=4 * M * c,
                                      bytes_accessed=bytes_acc),
    )(x2d, w0, b0, w1, b1)
    return y0, y1


# ------------------- fused cv2 (multi-segment) 1x1 Conv+BN+SiLU --------------- #

def _make_multiseg_kernel(n_seg, exact):
    def kernel(*refs):
        x_refs = refs[:n_seg]
        w_refs = refs[n_seg:2 * n_seg]
        b_ref = refs[2 * n_seg]
        o_ref = refs[2 * n_seg + 1]
        acc = jnp.dot(x_refs[0][...], w_refs[0][...],
                      preferred_element_type=jnp.float32)
        for xr, wr in zip(x_refs[1:], w_refs[1:]):
            acc = acc + jnp.dot(xr[...], wr[...],
                                preferred_element_type=jnp.float32)
        o_ref[...] = _silu(acc + b_ref[...], exact).astype(o_ref.dtype)
    return kernel


def conv1x1_multi(xs2d, ws, b, out_dtype=jnp.float32, exact=True):
    """cv2: fused 1x1 Conv+BN+SiLU over the (2+n) branch segments, accumulated
    in-kernel so the torch.cat of the branches never materializes in HBM."""
    M = xs2d[0].shape[0]
    Ks = [w.shape[0] for w in ws]
    Cout = ws[0].shape[1]
    cap = _vmem_capacity()
    tm, est = _pick_tm(M, Ks, Cout, out_dtype, cap)
    grid = (pl.cdiv(M, tm),)

    in_specs = ([pl.BlockSpec((tm, k), lambda i: (i, 0)) for k in Ks]
                + [pl.BlockSpec((k, Cout), lambda i: (0, 0)) for k in Ks]
                + [pl.BlockSpec((1, Cout), lambda i: (0, 0))])

    flops = 2 * M * sum(Ks) * Cout
    bytes_acc = (2 * M * sum(Ks) + 2 * sum(Ks) * Cout + 4 * Cout
                 + _itemsize(out_dtype) * M * Cout)

    y = pl.pallas_call(
        _make_multiseg_kernel(len(xs2d), exact),
        out_shape=jax.ShapeDtypeStruct((M, Cout), out_dtype),
        grid=grid,
        in_specs=in_specs,
        out_specs=pl.BlockSpec((tm, Cout), lambda i: (i, 0)),
        compiler_params=_compiler_params(("parallel",), est, cap),
        cost_estimate=pl.CostEstimate(flops=flops, transcendentals=2 * M * Cout,
                                      bytes_accessed=bytes_acc),
    )(*xs2d, *ws, b)
    return y


# ----------------------- fused 3x3 Conv+BN+SiLU (+residual) ------------------ #

def _make_conv3x3_kernel(th, n_rt, W, Cin, Cout, with_residual, deep_k):
    def kernel(*refs):
        if with_residual:
            x_ref, w_ref, b_ref, r_ref, o_ref, band_ref = refs
        else:
            x_ref, w_ref, b_ref, o_ref, band_ref = refs
            r_ref = None

        rr = pl.program_id(1)
        row0 = pl.multiple_of(rr * th, th)

        # Zero-padded (th+2, W+2, Cin) halo band, rebuilt per program in VMEM.
        # Replaces the XLA jnp.pad HBM round trip and keeps every program
        # self-contained (no cross-iteration state -> both axes parallel).
        band_ref[...] = jnp.zeros((th + 2, W + 2, Cin), jnp.bfloat16)
        band_ref[pl.ds(1, th), pl.ds(1, W), :] = x_ref[pl.ds(row0, th), :, :]
        if n_rt > 1:
            @pl.when(rr > 0)
            def _():
                band_ref[pl.ds(0, 1), pl.ds(1, W), :] = \
                    x_ref[pl.ds(row0 - 1, 1), :, :]

            @pl.when(rr < n_rt - 1)
            def _():
                band_ref[pl.ds(th + 1, 1), pl.ds(1, W), :] = \
                    x_ref[pl.ds(row0 + th, 1), :, :]

        taps = [band_ref[pl.ds(dy, th), pl.ds(dx, W), :].reshape(th * W, Cin)
                for dy in range(3) for dx in range(3)]

        if deep_k:
            # Single deep-K contraction: build the (th*W, 9*Cin) im2col patch
            # once (lane-aligned concat, Cin % 128 == 0) and do one matmul.
            patch = jnp.concatenate(taps, axis=-1)
            acc = jnp.dot(patch, w_ref[...], preferred_element_type=jnp.float32)
        else:
            # Safe fallback for small / unaligned Cin: nine tap matmuls.
            acc = None
            for k, t in enumerate(taps):
                part = jnp.dot(t, w_ref[k], preferred_element_type=jnp.float32)
                acc = part if acc is None else acc + part

        y = _silu(acc + b_ref[...])
        if with_residual:                       # Bottleneck shortcut, fused
            y = y + r_ref[...].astype(jnp.float32)
        o_ref[...] = y.astype(o_ref.dtype)
    return kernel


def conv3x3_bn_silu(x, w_hwio, b, residual=None, out_dtype=jnp.bfloat16):
    """Fused Conv2d(3x3, stride 1, pad 1) + BN + SiLU (+ optional residual).

    x: (N, H, W, Cin) bf16     w_hwio: (3, 3, Cin, Cout) bf16    b: (1, Cout) f32
    No im2col tensor and no padded image are ever written to HBM.
    """
    N, H, W, Cin = x.shape
    Cout = w_hwio.shape[-1]
    cap = _vmem_capacity()
    th, est = _pick_th(N, H, W, Cin, Cout, cap)
    n_rt = H // th

    deep_k = (Cin % 128 == 0) and (W % 8 == 0)
    w = (jnp.reshape(w_hwio, (9 * Cin, Cout)) if deep_k
         else jnp.reshape(w_hwio, (9, Cin, Cout)))
    wzero = (0,) * w.ndim

    in_specs = [
        pl.BlockSpec((None, H, W, Cin), lambda bb, rr: (bb, 0, 0, 0)),
        pl.BlockSpec(w.shape, lambda bb, rr: wzero),
        pl.BlockSpec((1, Cout), lambda bb, rr: (0, 0)),
    ]
    args = [x, w, b]
    if residual is not None:
        in_specs.append(pl.BlockSpec((None, th * W, Cout),
                                     lambda bb, rr: (bb, rr, 0)))
        args.append(residual.reshape(N, H * W, Cout).astype(jnp.bfloat16))

    out_b = _itemsize(out_dtype)
    flops = 2 * N * H * W * 9 * Cin * Cout
    bytes_acc = (2 * N * H * W * Cin + 2 * 9 * Cin * Cout + 4 * Cout
                 + out_b * N * H * W * Cout
                 + (2 * N * H * W * Cout if residual is not None else 0))

    y = pl.pallas_call(
        _make_conv3x3_kernel(th, n_rt, W, Cin, Cout, residual is not None, deep_k),
        out_shape=jax.ShapeDtypeStruct((N, H * W, Cout), out_dtype),
        grid=(N, n_rt),
        in_specs=in_specs,
        out_specs=pl.BlockSpec((None, th * W, Cout), lambda bb, rr: (bb, rr, 0)),
        scratch_shapes=[pltpu.VMEM((th + 2, W + 2, Cin), jnp.bfloat16)],
        compiler_params=_compiler_params(("parallel", "parallel"), est, cap),
        cost_estimate=pl.CostEstimate(flops=flops,
                                      transcendentals=2 * N * H * W * Cout,
                                      bytes_accessed=bytes_acc),
    )(*args)
    return y.reshape(N, H, W, Cout)


# ----------------------------- parameter creation ---------------------------- #

def _fold_bn(w_oihw, gamma, beta, mean, var, eps=1e-3):
    """Fold eval-mode BatchNorm into the (bias-free) conv that precedes it."""
    scale = gamma / jnp.sqrt(var + eps)
    w = w_oihw * scale[:, None, None, None]
    b = beta - mean * scale
    return jnp.transpose(w, (2, 3, 1, 0)), b          # OIHW -> HWIO (f32)


def _make_conv_params(key, cin, cout, k):
    kw, kg, kb, km, kv = jax.random.split(key, 5)
    w = jax.random.normal(kw, (cout, cin, k, k), jnp.float32) / math.sqrt(cin * k * k)
    gamma = 1.0 + 0.1 * jax.random.normal(kg, (cout,), jnp.float32)
    beta = 0.1 * jax.random.normal(kb, (cout,), jnp.float32)
    mean = 0.1 * jax.random.normal(km, (cout,), jnp.float32)
    var = 0.5 + jax.random.uniform(kv, (cout,), jnp.float32)
    return _fold_bn(w, gamma, beta, mean, var)


def init_c2f_v2_params(key, c1, c2, n=1, e=0.5):
    c = int(c2 * e)
    keys = jax.random.split(key, 3 + 2 * n)
    return {
        "c": c, "n": n,
        "cv0": _make_conv_params(keys[0], c1, c, 1),
        "cv1": _make_conv_params(keys[1], c1, c, 1),
        "cv2": _make_conv_params(keys[2], (2 + n) * c, c2, 1),
        "m": [(_make_conv_params(keys[3 + 2 * i], c, c, 3),
               _make_conv_params(keys[4 + 2 * i], c, c, 3)) for i in range(n)],
    }


def prepare_kernel_params(params):
    """Kernel-ready folded parameters: bf16 weights for the MXU, per-branch
    cv2 segments (so the channel concat never hits HBM), HWIO 3x3 taps."""
    c, n = params["c"], params["n"]
    (w0, b0), (w1, b1), (w2, b2) = params["cv0"], params["cv1"], params["cv2"]
    w2_full = w2[0, 0]                                   # ((2+n)c, c2) f32
    w2_segs, off = [], 0
    for _ in range(2 + n):
        w2_segs.append(w2_full[off:off + c, :].astype(jnp.bfloat16))
        off += c
    m = []
    for (wa, ba), (wb, bb) in params["m"]:
        m.append(((wa.astype(jnp.bfloat16), ba.reshape(1, -1).astype(jnp.float32)),
                  (wb.astype(jnp.bfloat16), bb.reshape(1, -1).astype(jnp.float32))))
    return {
        "c": c,
        "w0": w0[0, 0].astype(jnp.bfloat16), "b0": b0.reshape(1, -1).astype(jnp.float32),
        "w1": w1[0, 0].astype(jnp.bfloat16), "b1": b1.reshape(1, -1).astype(jnp.float32),
        "w2_segs": w2_segs, "b2": b2.reshape(1, -1).astype(jnp.float32),
        "m": m,
    }


# ------------------------------- C2f_v2 forward ------------------------------ #

def c2f_v2_forward(x_nchw, kp, shortcut=False):
    N, C1, H, W = x_nchw.shape
    c = kp["c"]
    # NCHW -> NHWC + bf16 cast: one XLA copy at the module boundary.
    # TODO(synk): keep the surrounding graph NHWC (or fold these boundary
    # transposes into the first/last kernels) to avoid the HBM round trips.
    x = jnp.transpose(x_nchw, (0, 2, 3, 1)).astype(jnp.bfloat16)
    M = N * H * W

    # cv0(x), cv1(x): one fused kernel, two outputs (no HBM channel slice).
    y0, y1 = conv1x1_dual(x.reshape(M, C1), kp["w0"], kp["b0"], kp["w1"], kp["b1"])
    segments = [y0, y1]

    prev = y1.reshape(N, H, W, c)                       # cv1(x) feeds the chain
    for (wa, ba), (wb, bb) in kp["m"]:                  # Bottleneck chain
        t = conv3x3_bn_silu(prev, wa, ba)
        t = conv3x3_bn_silu(t, wb, bb,
                            residual=prev if shortcut else None)
        segments.append(t.reshape(M, c))
        prev = t

    # cv2: per-segment accumulation in-kernel (no HBM concat); exact sigmoid
    # in the final f32 epilogue.
    out2d = conv1x1_multi(segments, kp["w2_segs"], kp["b2"],
                          out_dtype=jnp.float32, exact=True)
    out = out2d.reshape(N, H, W, out2d.shape[-1])
    return jnp.transpose(out, (0, 3, 1, 2))             # NHWC -> NCHW


# ------------------------------ pure-JAX reference --------------------------- #

def _ref_conv_bn_silu(x, w_hwio, b, padding):
    y = lax.conv_general_dilated(x, w_hwio, (1, 1), padding,
                                 dimension_numbers=("NHWC", "HWIO", "NHWC"))
    y = y + b
    return y * jax.nn.sigmoid(y)


def c2f_v2_reference(x_nchw, params, shortcut=False):
    x = jnp.transpose(x_nchw, (0, 2, 3, 1))
    (w0, b0), (w1, b1), (w2, b2) = params["cv0"], params["cv1"], params["cv2"]
    ys = [_ref_conv_bn_silu(x, w0, b0, "VALID"),
          _ref_conv_bn_silu(x, w1, b1, "VALID")]
    for (wa, ba), (wb, bb) in params["m"]:
        t = _ref_conv_bn_silu(ys[-1], wa, ba, [(1, 1), (1, 1)])
        t = _ref_conv_bn_silu(t, wb, bb, [(1, 1), (1, 1)])
        if shortcut:
            t = ys[-1] + t
        ys.append(t)
    out = _ref_conv_bn_silu(jnp.concatenate(ys, axis=-1), w2, b2, "VALID")
    return jnp.transpose(out, (0, 3, 1, 2))


# ------------------------------------ main ----------------------------------- #

if __name__ == "__main__":
    N, C1, H, W = 2, 4, 16, 16
    C2, n_blocks, shortcut = 8, 1, False                 # module defaults

    key = jax.random.PRNGKey(0)
    kx, kparam = jax.random.split(key)
    x = jax.random.normal(kx, (N, C1, H, W), jnp.float32)
    params = init_c2f_v2_params(kparam, C1, C2, n=n_blocks, e=0.5)
    kparams = prepare_kernel_params(params)

    fwd = jax.jit(lambda xx: c2f_v2_forward(xx, kparams, shortcut=shortcut))
    out = jax.block_until_ready(fwd(x))

    ref = c2f_v2_reference(x, params, shortcut=shortcut)
    # Tolerance covers the bf16 activations/weights feeding the MXU and the
    # approximate-reciprocal SiLU in the intermediate layers (f32 reference).
    np.testing.assert_allclose(np.asarray(out), np.asarray(ref),
                               rtol=3e-2, atol=3e-2)
    assert out.shape == (N, C2, H, W)
    print("KERNEL_OK")
</pallas_src>

<mosaic_0001>
module attributes {stable_mosaic.version = 11 : i64} {
  func.func @kernel(%arg0: i32, %arg1: i32, %arg2: memref<1x16x16x4xbf16, #tpu.memory_space<vmem>>, %arg3: memref<9x4x4xbf16, #tpu.memory_space<vmem>>, %arg4: memref<1x4xf32, #tpu.memory_space<vmem>>, %arg5: memref<1x256x4xbf16, #tpu.memory_space<vmem>>, %arg6: memref<18x18x4xbf16, #tpu.memory_space<vmem>>) attributes {dimension_semantics = [#tpu.dimension_semantics<parallel>, #tpu.dimension_semantics<parallel>], iteration_bounds = array<i64: 2, 1>, scalar_prefetch = 0 : i64, scratch_operands = 1 : i64, tpu.core_type = #tpu.core_type<tc>, window_params = [{transform_indices = @transform_0, window_bounds = array<i64: 1, 16, 16, 4>}, {pipeline_mode = #tpu.pipeline_mode<synchronous>, transform_indices = @transform_1, window_bounds = array<i64: 9, 4, 4>}, {pipeline_mode = #tpu.pipeline_mode<synchronous>, transform_indices = @transform_2, window_bounds = array<i64: 1, 4>}, {transform_indices = @transform_3, window_bounds = array<i64: 1, 256, 4>}]} {
    %c16_i32 = arith.constant 16 : i32
    %0 = arith.muli %arg1, %c16_i32 : i32
    %1 = tpu.assume_multiple %0, 16 : i32
    %cst = arith.constant 0.000000e+00 : bf16
    %2 = vector.broadcast %cst : bf16 to vector<18x18x4xbf16>
    %c0 = arith.constant 0 : index
    %c0_0 = arith.constant 0 : index
    %c0_1 = arith.constant 0 : index
    %3 = vector.load %arg6[%c0, %c0_0, %c0_1] : memref<18x18x4xbf16, #tpu.memory_space<vmem>>, vector<18x18x4xbf16>
    tpu.vector_store %arg6[%c0, %c0_0, %c0_1], %2 {strides = array<i32>} : memref<18x18x4xbf16, #tpu.memory_space<vmem>>, vector<18x18x4xbf16>,
    %c0_2 = arith.constant 0 : index
    %4 = arith.index_cast %1 : i32 to index
    %c0_3 = arith.constant 0 : index
    %c0_4 = arith.constant 0 : index
    %5 = vector.load %arg2[%c0_2, %4, %c0_3, %c0_4] : memref<1x16x16x4xbf16, #tpu.memory_space<vmem>>, vector<1x16x16x4xbf16>
    %6 = vector.shape_cast %5 : vector<1x16x16x4xbf16> to vector<16x16x4xbf16>
    %c1 = arith.constant 1 : index
    %c1_5 = arith.constant 1 : index
    %c0_6 = arith.constant 0 : index
    %7 = vector.load %arg6[%c1, %c1_5, %c0_6] : memref<18x18x4xbf16, #tpu.memory_space<vmem>>, vector<16x16x4xbf16>
    tpu.vector_store %arg6[%c1, %c1_5, %c0_6], %6 {strides = array<i32>} : memref<18x18x4xbf16, #tpu.memory_space<vmem>>, vector<16x16x4xbf16>,
    %c0_7 = arith.constant 0 : index
    %c0_8 = arith.constant 0 : index
    %c0_9 = arith.constant 0 : index
    %8 = vector.load %arg6[%c0_7, %c0_8, %c0_9] : memref<18x18x4xbf16, #tpu.memory_space<vmem>>, vector<16x16x4xbf16>
    %9 = vector.shape_cast %8 : vector<16x16x4xbf16> to vector<256x4xbf16>
    %c0_10 = arith.constant 0 : index
    %c1_11 = arith.constant 1 : index
    %c0_12 = arith.constant 0 : index
    %10 = vector.load %arg6[%c0_10, %c1_11, %c0_12] : memref<18x18x4xbf16, #tpu.memory_space<vmem>>, vector<16x16x4xbf16>
    %11 = vector.shape_cast %10 : vector<16x16x4xbf16> to vector<256x4xbf16>
    %c0_13 = arith.constant 0 : index
    %c2 = arith.constant 2 : index
    %c0_14 = arith.constant 0 : index
    %12 = vector.load %arg6[%c0_13, %c2, %c0_14] : memref<18x18x4xbf16, #tpu.memory_space<vmem>>, vector<16x16x4xbf16>
    %13 = vector.shape_cast %12 : vector<16x16x4xbf16> to vector<256x4xbf16>
    %c1_15 = arith.constant 1 : index
    %c0_16 = arith.constant 0 : index
    %c0_17 = arith.constant 0 : index
    %14 = vector.load %arg6[%c1_15, %c0_16, %c0_17] : memref<18x18x4xbf16, #tpu.memory_space<vmem>>, vector<16x16x4xbf16>
    %15 = vector.shape_cast %14 : vector<16x16x4xbf16> to vector<256x4xbf16>
    %c1_18 = arith.constant 1 : index
    %c1_19 = arith.constant 1 : index
    %c0_20 = arith.constant 0 : index
    %16 = vector.load %arg6[%c1_18, %c1_19, %c0_20] : memref<18x18x4xbf16, #tpu.memory_space<vmem>>, vector<16x16x4xbf16>
    %17 = vector.shape_cast %16 : vector<16x16x4xbf16> to vector<256x4xbf16>
    %c1_21 = arith.constant 1 : index
    %c2_22 = arith.constant 2 : index
    %c0_23 = arith.constant 0 : index
    %18 = vector.load %arg6[%c1_21, %c2_22, %c0_23] : memref<18x18x4xbf16, #tpu.memory_space<vmem>>, vector<16x16x4xbf16>
    %19 = vector.shape_cast %18 : vector<16x16x4xbf16> to vector<256x4xbf16>
    %c2_24 = arith.constant 2 : index
    %c0_25 = arith.constant 0 : index
    %c0_26 = arith.constant 0 : index
    %20 = vector.load %arg6[%c2_24, %c0_25, %c0_26] : memref<18x18x4xbf16, #tpu.memory_space<vmem>>, vector<16x16x4xbf16>
    %21 = vector.shape_cast %20 : vector<16x16x4xbf16> to vector<256x4xbf16>
    %c2_27 = arith.constant 2 : index
    %c1_28 = arith.constant 1 : index
    %c0_29 = arith.constant 0 : index
    %22 = vector.load %arg6[%c2_27, %c1_28, %c0_29] : memref<18x18x4xbf16, #tpu.memory_space<vmem>>, vector<16x16x4xbf16>
    %23 = vector.shape_cast %22 : vector<16x16x4xbf16> to vector<256x4xbf16>
    %c2_30 = arith.constant 2 : index
    %c2_31 = arith.constant 2 : index
    %c0_32 = arith.constant 0 : index
    %24 = vector.load %arg6[%c2_30, %c2_31, %c0_32] : memref<18x18x4xbf16, #tpu.memory_space<vmem>>, vector<16x16x4xbf16>
    %25 = vector.shape_cast %24 : vector<16x16x4xbf16> to vector<256x4xbf16>
    %c0_33 = arith.constant 0 : index
    %c0_34 = arith.constant 0 : index
    %c0_35 = arith.constant 0 : index
    %26 = vector.load %arg3[%c0_33, %c0_34, %c0_35] : memref<9x4x4xbf16, #tpu.memory_space<vmem>>, vector<1x4x4xbf16>
    %27 = vector.shape_cast %26 : vector<1x4x4xbf16> to vector<4x4xbf16>
    %cst_36 = arith.constant dense<0.000000e+00> : vector<256x4xf32>
    %28 = tpu.matmul %9, %27, %cst_36 {dimension_numbers = #tpu.dot_dimension_numbers<[1], [0], [0], [1], [0, 0, 1, 1], [], []>} : vector<256x4xbf16>, vector<4x4xbf16>, vector<256x4xf32> -> vector<256x4xf32>
    %c1_37 = arith.constant 1 : index
    %c0_38 = arith.constant 0 : index
    %c0_39 = arith.constant 0 : index
    %29 = vector.load %arg3[%c1_37, %c0_38, %c0_39] : memref<9x4x4xbf16, #tpu.memory_space<vmem>>, vector<1x4x4xbf16>
    %30 = vector.shape_cast %29 : vector<1x4x4xbf16> to vector<4x4xbf16>
    %cst_40 = arith.constant dense<0.000000e+00> : vector<256x4xf32>
    %31 = tpu.matmul %11, %30, %cst_40 {dimension_numbers = #tpu.dot_dimension_numbers<[1], [0], [0], [1], [0, 0, 1, 1], [], []>} : vector<256x4xbf16>, vector<4x4xbf16>, vector<256x4xf32> -> vector<256x4xf32>
    %32 = arith.addf %28, %31 : vector<256x4xf32>
    %c2_41 = arith.constant 2 : index
    %c0_42 = arith.constant 0 : index
    %c0_43 = arith.constant 0 : index
    %33 = vector.load %arg3[%c2_41, %c0_42, %c0_43] : memref<9x4x4xbf16, #tpu.memory_space<vmem>>, vector<1x4x4xbf16>
    %34 = vector.shape_cast %33 : vector<1x4x4xbf16> to vector<4x4xbf16>
    %cst_44 = arith.constant dense<0.000000e+00> : vector<256x4xf32>
    %35 = tpu.matmul %13, %34, %cst_44 {dimension_numbers = #tpu.dot_dimension_numbers<[1], [0], [0], [1], [0, 0, 1, 1], [], []>} : vector<256x4xbf16>, vector<4x4xbf16>, vector<256x4xf32> -> vector<256x4xf32>
    %36 = arith.addf %32, %35 : vector<256x4xf32>
    %c3 = arith.constant 3 : index
    %c0_45 = arith.constant 0 : index
    %c0_46 = arith.constant 0 : index
    %37 = vector.load %arg3[%c3, %c0_45, %c0_46] : memref<9x4x4xbf16, #tpu.memory_space<vmem>>, vector<1x4x4xbf16>
    %38 = vector.shape_cast %37 : vector<1x4x4xbf16> to vector<4x4xbf16>
    %cst_47 = arith.constant dense<0.000000e+00> : vector<256x4xf32>
    %39 = tpu.matmul %15, %38, %cst_47 {dimension_numbers = #tpu.dot_dimension_numbers<[1], [0], [0], [1], [0, 0, 1, 1], [], []>} : vector<256x4xbf16>, vector<4x4xbf16>, vector<256x4xf32> -> vector<256x4xf32>
    %40 = arith.addf %36, %39 : vector<256x4xf32>
    %c4 = arith.constant 4 : index
    %c0_48 = arith.constant 0 : index
    %c0_49 = arith.constant 0 : index
    %41 = vector.load %arg3[%c4, %c0_48, %c0_49] : memref<9x4x4xbf16, #tpu.memory_space<vmem>>, vector<1x4x4xbf16>
    %42 = vector.shape_cast %41 : vector<1x4x4xbf16> to vector<4x4xbf16>
    %cst_50 = arith.constant dense<0.000000e+00> : vector<256x4xf32>
    %43 = tpu.matmul %17, %42, %cst_50 {dimension_numbers = #tpu.dot_dimension_numbers<[1], [0], [0], [1], [0, 0, 1, 1], [], []>} : vector<256x4xbf16>, vector<4x4xbf16>, vector<256x4xf32> -> vector<256x4xf32>
    %44 = arith.addf %40, %43 : vector<256x4xf32>
    %c5 = arith.constant 5 : index
    %c0_51 = arith.constant 0 : index
    %c0_52 = arith.constant 0 : index
    %45 = vector.load %arg3[%c5, %c0_51, %c0_52] : memref<9x4x4xbf16, #tpu.memory_space<vmem>>, vector<1x4x4xbf16>
    %46 = vector.shape_cast %45 : vector<1x4x4xbf16> to vector<4x4xbf16>
    %cst_53 = arith.constant dense<0.000000e+00> : vector<256x4xf32>
    %47 = tpu.matmul %19, %46, %cst_53 {dimension_numbers = #tpu.dot_dimension_numbers<[1], [0], [0], [1], [0, 0, 1, 1], [], []>} : vector<256x4xbf16>, vector<4x4xbf16>, vector<256x4xf32> -> vector<256x4xf32>
    %48 = arith.addf %44, %47 : vector<256x4xf32>
    %c6 = arith.constant 6 : index
    %c0_54 = arith.constant 0 : index
    %c0_55 = arith.constant 0 : index
    %49 = vector.load %arg3[%c6, %c0_54, %c0_55] : memref<9x4x4xbf16, #tpu.memory_space<vmem>>, vector<1x4x4xbf16>
    %50 = vector.shape_cast %49 : vector<1x4x4xbf16> to vector<4x4xbf16>
    %cst_56 = arith.constant dense<0.000000e+00> : vector<256x4xf32>
    %51 = tpu.matmul %21, %50, %cst_56 {dimension_numbers = #tpu.dot_dimension_numbers<[1], [0], [0], [1], [0, 0, 1, 1], [], []>} : vector<256x4xbf16>, vector<4x4xbf16>, vector<256x4xf32> -> vector<256x4xf32>
    %52 = arith.addf %48, %51 : vector<256x4xf32>
    %c7 = arith.constant 7 : index
    %c0_57 = arith.constant 0 : index
    %c0_58 = arith.constant 0 : index
    %53 = vector.load %arg3[%c7, %c0_57, %c0_58] : memref<9x4x4xbf16, #tpu.memory_space<vmem>>, vector<1x4x4xbf16>
    %54 = vector.shape_cast %53 : vector<1x4x4xbf16> to vector<4x4xbf16>
    %cst_59 = arith.constant dense<0.000000e+00> : vector<256x4xf32>
    %55 = tpu.matmul %23, %54, %cst_59 {dimension_numbers = #tpu.dot_dimension_numbers<[1], [0], [0], [1], [0, 0, 1, 1], [], []>} : vector<256x4xbf16>, vector<4x4xbf16>, vector<256x4xf32> -> vector<256x4xf32>
    %56 = arith.addf %52, %55 : vector<256x4xf32>
    %c8 = arith.constant 8 : index
    %c0_60 = arith.constant 0 : index
    %c0_61 = arith.constant 0 : index
    %57 = vector.load %arg3[%c8, %c0_60, %c0_61] : memref<9x4x4xbf16, #tpu.memory_space<vmem>>, vector<1x4x4xbf16>
    %58 = vector.shape_cast %57 : vector<1x4x4xbf16> to vector<4x4xbf16>
    %cst_62 = arith.constant dense<0.000000e+00> : vector<256x4xf32>
    %59 = tpu.matmul %25, %58, %cst_62 {dimension_numbers = #tpu.dot_dimension_numbers<[1], [0], [0], [1], [0, 0, 1, 1], [], []>} : vector<256x4xbf16>, vector<4x4xbf16>, vector<256x4xf32> -> vector<256x4xf32>
    %60 = arith.addf %56, %59 : vector<256x4xf32>
    %c0_63 = arith.constant 0 : index
    %c0_64 = arith.constant 0 : index
    %61 = vector.load %arg4[%c0_63, %c0_64] : memref<1x4xf32, #tpu.memory_space<vmem>>, vector<1x4xf32>
    %62 = vector.broadcast %61 : vector<1x4xf32> to vector<256x4xf32>
    %63 = arith.addf %60, %62 : vector<256x4xf32>
    %cst_65 = arith.constant 0.000000e+00 : f32
    %64 = vector.broadcast %cst_65 : f32 to vector<256x4xf32>
    %65 = arith.subf %64, %63 : vector<256x4xf32>
    %66 = math.exp %65 : vector<256x4xf32>
    %cst_66 = arith.constant 1.000000e+00 : f32
    %67 = vector.broadcast %cst_66 : f32 to vector<256x4xf32>
    %68 = arith.addf %67, %66 : vector<256x4xf32>
    %69 = tpu.reciprocal %68 {approx = true} : vector<256x4xf32> -> vector<256x4xf32>
    %70 = arith.mulf %63, %69 : vector<256x4xf32>
    %71 = arith.truncf %70 : vector<256x4xf32> to vector<256x4xbf16>
    %c0_67 = arith.constant 0 : index
    %c0_68 = arith.constant 0 : index
    %c0_69 = arith.constant 0 : index
    %72 = vector.load %arg5[%c0_67, %c0_68, %c0_69] : memref<1x256x4xbf16, #tpu.memory_space<vmem>>, vector<1x256x4xbf16>
    %73 = vector.shape_cast %72 : vector<1x256x4xbf16> to vector<256x4xbf16>
    %74 = vector.shape_cast %71 : vector<256x4xbf16> to vector<1x256x4xbf16>
    tpu.vector_store %arg5[%c0_67, %c0_68, %c0_69], %74 {strides = array<i32>} : memref<1x256x4xbf16, #tpu.memory_space<vmem>>, vector<1x256x4xbf16>,
    return
  }
  func.func @transform_0(%arg0: i32, %arg1: i32) -> (i32, i32, i32, i32) {
    %c0_i32 = arith.constant 0 : i32
    %c0_i32_0 = arith.constant 0 : i32
    %c0_i32_1 = arith.constant 0 : i32
    %c0_i32_2 = arith.constant 0 : i32
    return %arg0, %c0_i32, %c0_i32_0, %c0_i32_1 : i32, i32, i32, i32
  }
  func.func @transform_1(%arg0: i32, %arg1: i32) -> (i32, i32, i32) {
    %c0_i32 = arith.constant 0 : i32
    %c0_i32_0 = arith.constant 0 : i32
    %c0_i32_1 = arith.constant 0 : i32
    %c0_i32_2 = arith.constant 0 : i32
    return %c0_i32, %c0_i32_0, %c0_i32_1 : i32, i32, i32
  }
  func.func @transform_2(%arg0: i32, %arg1: i32) -> (i32, i32) {
    %c0_i32 = arith.constant 0 : i32
    %c0_i32_0 = arith.constant 0 : i32
    %c0_i32_1 = arith.constant 0 : i32
    return %c0_i32, %c0_i32_0 : i32, i32
  }
  func.func @transform_3(%arg0: i32, %arg1: i32) -> (i32, i32, i32) {
    %c0_i32 = arith.constant 0 : i32
    %c0_i32_0 = arith.constant 0 : i32
    return %arg0, %arg1, %c0_i32 : i32, i32, i32
  }
}

module attributes {stable_mosaic.version = 11 : i64} {
  func.func @_cv01_kernel(%arg0: i32, %arg1: memref<512x4xbf16, #tpu.memory_space<vmem>>, %arg2: memref<4x4xbf16, #tpu.memory_space<vmem>>, %arg3: memref<1x4xf32, #tpu.memory_space<vmem>>, %arg4: memref<4x4xbf16, #tpu.memory_space<vmem>>, %arg5: memref<1x4xf32, #tpu.memory_space<vmem>>, %arg6: memref<512x4xbf16, #tpu.memory_space<vmem>>, %arg7: memref<512x4xbf16, #tpu.memory_space<vmem>>) attributes {dimension_semantics = [#tpu.dimension_semantics<parallel>], iteration_bounds = array<i64: 1>, scalar_prefetch = 0 : i64, scratch_operands = 0 : i64, tpu.core_type = #tpu.core_type<tc>, window_params = [{transform_indices = @transform_0, window_bounds = array<i64: 512, 4>}, {pipeline_mode = #tpu.pipeline_mode<synchronous>, transform_indices = @transform_1, window_bounds = array<i64: 4, 4>}, {pipeline_mode = #tpu.pipeline_mode<synchronous>, transform_indices = @transform_2, window_bounds = array<i64: 1, 4>}, {pipeline_mode = #tpu.pipeline_mode<synchronous>, transform_indices = @transform_3, window_bounds = array<i64: 4, 4>}, {pipeline_mode = #tpu.pipeline_mode<synchronous>, transform_indices = @transform_4, window_bounds = array<i64: 1, 4>}, {transform_indices = @transform_5, window_bounds = array<i64: 512, 4>}, {transform_indices = @transform_6, window_bounds = array<i64: 512, 4>}]} {
    %c0 = arith.constant 0 : index
    %c0_0 = arith.constant 0 : index
    %0 = vector.load %arg1[%c0, %c0_0] : memref<512x4xbf16, #tpu.memory_space<vmem>>, vector<512x4xbf16>
    %c0_1 = arith.constant 0 : index
    %c0_2 = arith.constant 0 : index
    %1 = vector.load %arg2[%c0_1, %c0_2] : memref<4x4xbf16, #tpu.memory_space<vmem>>, vector<4x4xbf16>
    %cst = arith.constant dense<0.000000e+00> : vector<512x4xf32>
    %2 = tpu.matmul %0, %1, %cst {dimension_numbers = #tpu.dot_dimension_numbers<[1], [0], [0], [1], [0, 0, 1, 1], [], []>} : vector<512x4xbf16>, vector<4x4xbf16>, vector<512x4xf32> -> vector<512x4xf32>
    %c0_3 = arith.constant 0 : index
    %c0_4 = arith.constant 0 : index
    %3 = vector.load %arg3[%c0_3, %c0_4] : memref<1x4xf32, #tpu.memory_space<vmem>>, vector<1x4xf32>
    %4 = vector.broadcast %3 : vector<1x4xf32> to vector<512x4xf32>
    %5 = arith.addf %2, %4 : vector<512x4xf32>
    %c0_5 = arith.constant 0 : index
    %c0_6 = arith.constant 0 : index
    %6 = vector.load %arg4[%c0_5, %c0_6] : memref<4x4xbf16, #tpu.memory_space<vmem>>, vector<4x4xbf16>
    %cst_7 = arith.constant dense<0.000000e+00> : vector<512x4xf32>
    %7 = tpu.matmul %0, %6, %cst_7 {dimension_numbers = #tpu.dot_dimension_numbers<[1], [0], [0], [1], [0, 0, 1, 1], [], []>} : vector<512x4xbf16>, vector<4x4xbf16>, vector<512x4xf32> -> vector<512x4xf32>
    %c0_8 = arith.constant 0 : index
    %c0_9 = arith.constant 0 : index
    %8 = vector.load %arg5[%c0_8, %c0_9] : memref<1x4xf32, #tpu.memory_space<vmem>>, vector<1x4xf32>
    %9 = vector.broadcast %8 : vector<1x4xf32> to vector<512x4xf32>
    %10 = arith.addf %7, %9 : vector<512x4xf32>
    %cst_10 = arith.constant 0.000000e+00 : f32
    %11 = vector.broadcast %cst_10 : f32 to vector<512x4xf32>
    %12 = arith.subf %11, %5 : vector<512x4xf32>
    %13 = math.exp %12 : vector<512x4xf32>
    %cst_11 = arith.constant 1.000000e+00 : f32
    %14 = vector.broadcast %cst_11 : f32 to vector<512x4xf32>
    %15 = arith.addf %14, %13 : vector<512x4xf32>
    %16 = tpu.reciprocal %15 {approx = true} : vector<512x4xf32> -> vector<512x4xf32>
    %17 = arith.mulf %5, %16 : vector<512x4xf32>
    %18 = arith.truncf %17 : vector<512x4xf32> to vector<512x4xbf16>
    %c0_12 = arith.constant 0 : index
    %c0_13 = arith.constant 0 : index
    %19 = vector.load %arg6[%c0_12, %c0_13] : memref<512x4xbf16, #tpu.memory_space<vmem>>, vector<512x4xbf16>
    tpu.vector_store %arg6[%c0_12, %c0_13], %18 {strides = array<i32>} : memref<512x4xbf16, #tpu.memory_space<vmem>>, vector<512x4xbf16>,
    %cst_14 = arith.constant 0.000000e+00 : f32
    %20 = vector.broadcast %cst_14 : f32 to vector<512x4xf32>
    %21 = arith.subf %20, %10 : vector<512x4xf32>
    %22 = math.exp %21 : vector<512x4xf32>
    %cst_15 = arith.constant 1.000000e+00 : f32
    %23 = vector.broadcast %cst_15 : f32 to vector<512x4xf32>
    %24 = arith.addf %23, %22 : vector<512x4xf32>
    %25 = tpu.reciprocal %24 {approx = true} : vector<512x4xf32> -> vector<512x4xf32>
    %26 = arith.mulf %10, %25 : vector<512x4xf32>
    %27 = arith.truncf %26 : vector<512x4xf32> to vector<512x4xbf16>
    %c0_16 = arith.constant 0 : index
    %c0_17 = arith.constant 0 : index
    %28 = vector.load %arg7[%c0_16, %c0_17] : memref<512x4xbf16, #tpu.memory_space<vmem>>, vector<512x4xbf16>
    tpu.vector_store %arg7[%c0_16, %c0_17], %27 {strides = array<i32>} : memref<512x4xbf16, #tpu.memory_space<vmem>>, vector<512x4xbf16>,
    return
  }
  func.func @transform_0(%arg0: i32) -> (i32, i32) {
    %c0_i32 = arith.constant 0 : i32
    %c0_i32_0 = arith.constant 0 : i32
    return %arg0, %c0_i32 : i32, i32
  }
  func.func @transform_1(%arg0: i32) -> (i32, i32) {
    %c0_i32 = arith.constant 0 : i32
    %c0_i32_0 = arith.constant 0 : i32
    %c0_i32_1 = arith.constant 0 : i32
    return %c0_i32, %c0_i32_0 : i32, i32
  }
  func.func @transform_2(%arg0: i32) -> (i32, i32) {
    %c0_i32 = arith.constant 0 : i32
    %c0_i32_0 = arith.constant 0 : i32
    %c0_i32_1 = arith.constant 0 : i32
    return %c0_i32, %c0_i32_0 : i32, i32
  }
  func.func @transform_3(%arg0: i32) -> (i32, i32) {
    %c0_i32 = arith.constant 0 : i32
    %c0_i32_0 = arith.constant 0 : i32
    %c0_i32_1 = arith.constant 0 : i32
    return %c0_i32, %c0_i32_0 : i32, i32
  }
  func.func @transform_4(%arg0: i32) -> (i32, i32) {
    %c0_i32 = arith.constant 0 : i32
    %c0_i32_0 = arith.constant 0 : i32
    %c0_i32_1 = arith.constant 0 : i32
    return %c0_i32, %c0_i32_0 : i32, i32
  }
  func.func @transform_5(%arg0: i32) -> (i32, i32) {
    %c0_i32 = arith.constant 0 : i32
    %c0_i32_0 = arith.constant 0 : i32
    return %arg0, %c0_i32 : i32, i32
  }
  func.func @transform_6(%arg0: i32) -> (i32, i32) {
    %c0_i32 = arith.constant 0 : i32
    %c0_i32_0 = arith.constant 0 : i32
    return %arg0, %c0_i32 : i32, i32
  }
}

module attributes {stable_mosaic.version = 11 : i64} {
  func.func @kernel(%arg0: i32, %arg1: memref<512x4xbf16, #tpu.memory_space<vmem>>, %arg2: memref<512x4xbf16, #tpu.memory_space<vmem>>, %arg3: memref<512x4xbf16, #tpu.memory_space<vmem>>, %arg4: memref<4x8xbf16, #tpu.memory_space<vmem>>, %arg5: memref<4x8xbf16, #tpu.memory_space<vmem>>, %arg6: memref<4x8xbf16, #tpu.memory_space<vmem>>, %arg7: memref<1x8xf32, #tpu.memory_space<vmem>>, %arg8: memref<512x8xf32, #tpu.memory_space<vmem>>) attributes {dimension_semantics = [#tpu.dimension_semantics<parallel>], iteration_bounds = array<i64: 1>, scalar_prefetch = 0 : i64, scratch_operands = 0 : i64, tpu.core_type = #tpu.core_type<tc>, window_params = [{transform_indices = @transform_0, window_bounds = array<i64: 512, 4>}, {transform_indices = @transform_1, window_bounds = array<i64: 512, 4>}, {transform_indices = @transform_2, window_bounds = array<i64: 512, 4>}, {pipeline_mode = #tpu.pipeline_mode<synchronous>, transform_indices = @transform_3, window_bounds = array<i64: 4, 8>}, {pipeline_mode = #tpu.pipeline_mode<synchronous>, transform_indices = @transform_4, window_bounds = array<i64: 4, 8>}, {pipeline_mode = #tpu.pipeline_mode<synchronous>, transform_indices = @transform_5, window_bounds = array<i64: 4, 8>}, {pipeline_mode = #tpu.pipeline_mode<synchronous>, transform_indices = @transform_6, window_bounds = array<i64: 1, 8>}, {transform_indices = @transform_7, window_bounds = array<i64: 512, 8>}]} {
    %c0 = arith.constant 0 : index
    %c0_0 = arith.constant 0 : index
    %0 = vector.load %arg1[%c0, %c0_0] : memref<512x4xbf16, #tpu.memory_space<vmem>>, vector<512x4xbf16>
    %c0_1 = arith.constant 0 : index
    %c0_2 = arith.constant 0 : index
    %1 = vector.load %arg4[%c0_1, %c0_2] : memref<4x8xbf16, #tpu.memory_space<vmem>>, vector<4x8xbf16>
    %cst = arith.constant dense<0.000000e+00> : vector<512x8xf32>
    %2 = tpu.matmul %0, %1, %cst {dimension_numbers = #tpu.dot_dimension_numbers<[1], [0], [0], [1], [0, 0, 1, 1], [], []>} : vector<512x4xbf16>, vector<4x8xbf16>, vector<512x8xf32> -> vector<512x8xf32>
    %c0_3 = arith.constant 0 : index
    %c0_4 = arith.constant 0 : index
    %3 = vector.load %arg2[%c0_3, %c0_4] : memref<512x4xbf16, #tpu.memory_space<vmem>>, vector<512x4xbf16>
    %c0_5 = arith.constant 0 : index
    %c0_6 = arith.constant 0 : index
    %4 = vector.load %arg5[%c0_5, %c0_6] : memref<4x8xbf16, #tpu.memory_space<vmem>>, vector<4x8xbf16>
    %cst_7 = arith.constant dense<0.000000e+00> : vector<512x8xf32>
    %5 = tpu.matmul %3, %4, %cst_7 {dimension_numbers = #tpu.dot_dimension_numbers<[1], [0], [0], [1], [0, 0, 1, 1], [], []>} : vector<512x4xbf16>, vector<4x8xbf16>, vector<512x8xf32> -> vector<512x8xf32>
    %6 = arith.addf %2, %5 : vector<512x8xf32>
    %c0_8 = arith.constant 0 : index
    %c0_9 = arith.constant 0 : index
    %7 = vector.load %arg3[%c0_8, %c0_9] : memref<512x4xbf16, #tpu.memory_space<vmem>>, vector<512x4xbf16>
    %c0_10 = arith.constant 0 : index
    %c0_11 = arith.constant 0 : index
    %8 = vector.load %arg6[%c0_10, %c0_11] : memref<4x8xbf16, #tpu.memory_space<vmem>>, vector<4x8xbf16>
    %cst_12 = arith.constant dense<0.000000e+00> : vector<512x8xf32>
    %9 = tpu.matmul %7, %8, %cst_12 {dimension_numbers = #tpu.dot_dimension_numbers<[1], [0], [0], [1], [0, 0, 1, 1], [], []>} : vector<512x4xbf16>, vector<4x8xbf16>, vector<512x8xf32> -> vector<512x8xf32>
    %10 = arith.addf %6, %9 : vector<512x8xf32>
    %c0_13 = arith.constant 0 : index
    %c0_14 = arith.constant 0 : index
    %11 = vector.load %arg7[%c0_13, %c0_14] : memref<1x8xf32, #tpu.memory_space<vmem>>, vector<1x8xf32>
    %12 = vector.broadcast %11 : vector<1x8xf32> to vector<512x8xf32>
    %13 = arith.addf %10, %12 : vector<512x8xf32>
    %cst_15 = arith.constant 0.000000e+00 : f32
    %14 = vector.broadcast %cst_15 : f32 to vector<512x8xf32>
    %15 = arith.subf %14, %13 : vector<512x8xf32>
    %16 = math.exp %15 : vector<512x8xf32>
    %cst_16 = arith.constant 1.000000e+00 : f32
    %17 = vector.broadcast %cst_16 : f32 to vector<512x8xf32>
    %18 = arith.addf %17, %16 : vector<512x8xf32>
    %19 = arith.divf %13, %18 : vector<512x8xf32>
    %c0_17 = arith.constant 0 : index
    %c0_18 = arith.constant 0 : index
    %20 = vector.load %arg8[%c0_17, %c0_18] : memref<512x8xf32, #tpu.memory_space<vmem>>, vector<512x8xf32>
    tpu.vector_store %arg8[%c0_17, %c0_18], %19 {strides = array<i32>} : memref<512x8xf32, #tpu.memory_space<vmem>>, vector<512x8xf32>,
    return
  }
  func.func @transform_0(%arg0: i32) -> (i32, i32) {
    %c0_i32 = arith.constant 0 : i32
    %c0_i32_0 = arith.constant 0 : i32
    return %arg0, %c0_i32 : i32, i32
  }
  func.func @transform_1(%arg0: i32) -> (i32, i32) {
    %c0_i32 = arith.constant 0 : i32
    %c0_i32_0 = arith.constant 0 : i32
    return %arg0, %c0_i32 : i32, i32
  }
  func.func @transform_2(%arg0: i32) -> (i32, i32) {
    %c0_i32 = arith.constant 0 : i32
    %c0_i32_0 = arith.constant 0 : i32
    return %arg0, %c0_i32 : i32, i32
  }
  func.func @transform_3(%arg0: i32) -> (i32, i32) {
    %c0_i32 = arith.constant 0 : i32
    %c0_i32_0 = arith.constant 0 : i32
    %c0_i32_1 = arith.constant 0 : i32
    return %c0_i32, %c0_i32_0 : i32, i32
  }
  func.func @transform_4(%arg0: i32) -> (i32, i32) {
    %c0_i32 = arith.constant 0 : i32
    %c0_i32_0 = arith.constant 0 : i32
    %c0_i32_1 = arith.constant 0 : i32
    return %c0_i32, %c0_i32_0 : i32, i32
  }
  func.func @transform_5(%arg0: i32) -> (i32, i32) {
    %c0_i32 = arith.constant 0 : i32
    %c0_i32_0 = arith.constant 0 : i32
    %c0_i32_1 = arith.constant 0 : i32
    return %c0_i32, %c0_i32_0 : i32, i32
  }
  func.func @transform_6(%arg0: i32) -> (i32, i32) {
    %c0_i32 = arith.constant 0 : i32
    %c0_i32_0 = arith.constant 0 : i32
    %c0_i32_1 = arith.constant 0 : i32
    return %c0_i32, %c0_i32_0 : i32, i32
  }
  func.func @transform_7(%arg0: i32) -> (i32, i32) {
    %c0_i32 = arith.constant 0 : i32
    %c0_i32_0 = arith.constant 0 : i32
    return %arg0, %c0_i32 : i32, i32
  }
}

</mosaic_0001>

<bundles_post_ra>
// kernel: _lambda_.4
= control target key start
LH: loop header
LB: loop body
LE: loop exit
PB: predicated region body
PF: predicated region fallthrough
CT: control target
= control target key end

     0   :  { %vm349_vm0 = vcmask 1041408   ;;  %vm252_vm1 = vcmask 31744   ;;  %vm1147_vm2 = vcmask 27648   ;;  %s3865_s1 = inlined_call_operand.vmem [shape: bf16[4,4], index: 1, kind: input, shape index: {}]   ;;  %s3866_s3 = inlined_call_operand.vmem [shape: bf16[4,4], index: 3, kind: input, shape index: {}]   ;;  %s3867_s0 = inlined_call_operand.vmem [shape: bf16[512,4], index: 0, kind: input, shape index: {}]   ;;  %s3868_s2 = inlined_call_operand.vmem [shape: f32[1,4], index: 2, kind: input, shape index: {}]   ;;  %s3869_s4 = inlined_call_operand.vmem [shape: f32[1,4], index: 4, kind: input, shape index: {}]   ;;  %s3870_s5 = inlined_call_operand.vmem [shape: bf16[512,4], index: 5, kind: output, shape index: {0}]   ;;  %s3871_s6 = inlined_call_operand.vmem [shape: bf16[512,4], index: 6, kind: output, shape index: {1}]  }
   0x1   :  { %v87_v0 = vld [vmem:[%s3865_s1] sm:$0x3]  ;;  %v1925_v6 = vld [vmem:[%s3867_s0 + $0x8] sm:$0xff]  ;;  %v1926_v8 = vld [vmem:[%s3867_s0 + $0x10] sm:$0xff] }
   0x2   :  { %v522_v1 = vld [vmem:[%s3866_s3] sm:$0x3]  ;;  %v351_v2 = vsel %vm349_vm0, %v87_v0, 0  ;;  %v1941_v7 = vld [vmem:[%s3867_s0 + $0x88] sm:$0xff]  ;;  %v1942_v9 = vld [vmem:[%s3867_s0 + $0x90] sm:$0xff] }
   0x3   :  { %v528_v3 = vsel %vm349_vm0, %v522_v1, 0  ;;  %v1924_v4 = vld [vmem:[%s3867_s0] sm:$0xff]  ;;  %360 = vmatpush.bf16.msra.mxu0 %v351_v2  ;;  %1956 = vmatpush.bf16.msra.mxu2 %v351_v2  ;;  %v1927_v10 = vld [vmem:[%s3867_s0 + $0x18] sm:$0xff]  ;;  %v1929_v14 = vld [vmem:[%s3867_s0 + $0x28] sm:$0xff] }
   0x4   :  { %v1940_v5 = vld [vmem:[%s3867_s0 + $0x80] sm:$0xff]  ;;  %537 = vmatpush.bf16.msra.mxu1 %v528_v3  ;;  %1957 = vmatpush.bf16.msra.mxu3 %v528_v3  ;;  %v1943_v11 = vld [vmem:[%s3867_s0 + $0x98] sm:$0xff]  ;;  %v1945_v15 = vld [vmem:[%s3867_s0 + $0xa8] sm:$0xff] }
   0x5   :  { %v1928_v12 = vld [vmem:[%s3867_s0 + $0x20] sm:$0xff]  ;;  %v1930_v16 = vld [vmem:[%s3867_s0 + $0x30] sm:$0xff]  ;;  %v1931_v18 = vld [vmem:[%s3867_s0 + $0x38] sm:$0xff] }
   0x6   :  { %1860 = vmatmul.msk.bf16.vlgmr.msra.gmra.mxu0 %vm252_vm1, %v1924_v4  ;;  %1876 = vmatmul.msk.bf16.vlgmr.msra.gmra.mxu2 %vm252_vm1, %v1940_v5  ;;  %v1944_v13 = vld [vmem:[%s3867_s0 + $0xa0] sm:$0xff]  ;;  %v1946_v17 = vld [vmem:[%s3867_s0 + $0xb0] sm:$0xff]  ;;  %v1947_v19 = vld [vmem:[%s3867_s0 + $0xb8] sm:$0xff] }
   0x7   :  { %1892 = vmatmul.msk.bf16.vlgmr.msra.gmra.mxu1 %vm252_vm1, %v1924_v4  ;;  %1908 = vmatmul.msk.bf16.vlgmr.msra.gmra.mxu3 %vm252_vm1, %v1940_v5  ;;  %v2600_v20 = vld [vmem:[%s3868_s2] ss:$0 sm:$0xff]  ;;  %v1933_v55 = vld [vmem:[%s3867_s0 + $0x48] sm:$0xff] }
   0x8   :  { %v2605_v21 = vld [vmem:[%s3869_s4] ss:$0 sm:$0xff]  ;;  %v1949_v56 = vld [vmem:[%s3867_s0 + $0xc8] sm:$0xff] }
   0x9   :  { %v1932_v22 = vld [vmem:[%s3867_s0 + $0x40] sm:$0xff] }
   0xa   :  { %v1948_v23 = vld [vmem:[%s3867_s0 + $0xc0] sm:$0xff] }
  0x16   :  { %1861 = vmatmul.msk.bf16.gmra.mxu0 %vm252_vm1, %v1925_v6  ;;  %1877 = vmatmul.msk.bf16.gmra.mxu2 %vm252_vm1, %v1941_v7 }
  0x17   :  { %1893 = vmatmul.msk.bf16.gmra.mxu1 %vm252_vm1, %v1925_v6  ;;  %1909 = vmatmul.msk.bf16.gmra.mxu3 %vm252_vm1, %v1941_v7 }
  0x26   :  { %1862 = vmatmul.msk.bf16.gmra.mxu0 %vm252_vm1, %v1926_v8  ;;  %1878 = vmatmul.msk.bf16.gmra.mxu2 %vm252_vm1, %v1942_v9 }
  0x27   :  { %1894 = vmatmul.msk.bf16.gmra.mxu1 %vm252_vm1, %v1926_v8  ;;  %1910 = vmatmul.msk.bf16.gmra.mxu3 %vm252_vm1, %v1942_v9 }
  0x36   :  { %1863 = vmatmul.msk.bf16.gmra.mxu0 %vm252_vm1, %v1927_v10  ;;  %1879 = vmatmul.msk.bf16.gmra.mxu2 %vm252_vm1, %v1943_v11 }
  0x37   :  { %1895 = vmatmul.msk.bf16.gmra.mxu1 %vm252_vm1, %v1927_v10  ;;  %1911 = vmatmul.msk.bf16.gmra.mxu3 %vm252_vm1, %v1943_v11 }
  0x46   :  { %1864 = vmatmul.msk.bf16.gmra.mxu0 %vm252_vm1, %v1928_v12  ;;  %1880 = vmatmul.msk.bf16.gmra.mxu2 %vm252_vm1, %v1944_v13 }
  0x47   :  { %1896 = vmatmul.msk.bf16.gmra.mxu1 %vm252_vm1, %v1928_v12  ;;  %1912 = vmatmul.msk.bf16.gmra.mxu3 %vm252_vm1, %v1944_v13 }
  0x56   :  { %1865 = vmatmul.msk.bf16.gmra.mxu0 %vm252_vm1, %v1929_v14  ;;  %1881 = vmatmul.msk.bf16.gmra.mxu2 %vm252_vm1, %v1945_v15 }
  0x57   :  { %1897 = vmatmul.msk.bf16.gmra.mxu1 %vm252_vm1, %v1929_v14  ;;  %1913 = vmatmul.msk.bf16.gmra.mxu3 %vm252_vm1, %v1945_v15 }
  0x66   :  { %1866 = vmatmul.msk.bf16.gmra.mxu0 %vm252_vm1, %v1930_v16  ;;  %1882 = vmatmul.msk.bf16.gmra.mxu2 %vm252_vm1, %v1946_v17 }
  0x67   :  { %1898 = vmatmul.msk.bf16.gmra.mxu1 %vm252_vm1, %v1930_v16  ;;  %1914 = vmatmul.msk.bf16.gmra.mxu3 %vm252_vm1, %v1946_v17 }
  0x76   :  { %1867 = vmatmul.msk.bf16.gmra.mxu0 %vm252_vm1, %v1931_v18  ;;  %1883 = vmatmul.msk.bf16.gmra.mxu2 %vm252_vm1, %v1947_v19 }
  0x77   :  { %1899 = vmatmul.msk.bf16.gmra.mxu1 %vm252_vm1, %v1931_v18  ;;  %1915 = vmatmul.msk.bf16.gmra.mxu3 %vm252_vm1, %v1947_v19 }
  0x83   :  { %v362_v24 = vpop.f32.mrf.mxu0 }
  0x84   :  { %v2614_v25 = vadd.f32 %v2600_v20, %v362_v24  ;;  %v539_v26 = vpop.f32.mrf.mxu1 }
  0x85   :  { %v2617_v27 = vadd.f32 %v2605_v21, %v539_v26 }
  0x86   :  { %v699_v28 = vsub.f32 0.0, %v2614_v25  ;;  %1868 = vmatmul.msk.bf16.gmra.mxu0 %vm252_vm1, %v1932_v22  ;;  %1884 = vmatmul.msk.bf16.gmra.mxu2 %vm252_vm1, %v1948_v23 }
  0x87   :  { %v1212_v29 = vsub.f32 0.0, %v2617_v27  ;;  %1900 = vmatmul.msk.bf16.gmra.mxu1 %vm252_vm1, %v1932_v22  ;;  %1916 = vmatmul.msk.bf16.gmra.mxu3 %vm252_vm1, %v1948_v23 }
  0x88   :  { %v763_v30 = vmul.f32 1.442695, %v699_v28 }
  0x89   :  { %v1276_v31 = vmul.f32 1.442695, %v1212_v29  ;;  %v442_v32 = vpop.f32.mrf.mxu2 }
  0x8a   :  { %1960 = vpow2.f32 %v763_v30  ;;  %v2626_v33 = vadd.f32 %v2600_v20, %v442_v32  ;;  %v619_v34 = vpop.f32.mrf.mxu3 }
  0x8b   :  { %1962 = vpow2.f32 %v1276_v31  ;;  %v2629_v35 = vadd.f32 %v2605_v21, %v619_v34  ;;  %v364_v36 = vpop.f32.mrf.mxu0 }
  0x8c   :  { %v731_v37 = vsub.f32 0.0, %v2626_v33  ;;  %v2633_v38 = vadd.f32 %v2600_v20, %v364_v36  ;;  %v541_v39 = vpop.f32.mrf.mxu1 }
  0x8d   :  { %v1244_v40 = vsub.f32 0.0, %v2629_v35  ;;  %v2637_v41 = vadd.f32 %v2605_v21, %v541_v39 }
  0x8e   :  { %v827_v42 = vmul.f32 1.442695, %v731_v37  ;;  %v700_v43 = vsub.f32 0.0, %v2633_v38 }
  0x8f   :  { %v1340_v44 = vmul.f32 1.442695, %v1244_v40  ;;  %v1213_v45 = vsub.f32 0.0, %v2637_v41 }
  0x90   :  { %v1961_v46 = vpop.eup %1960  ;;  %1964 = vpow2.f32 %v827_v42  ;;  %v765_v47 = vmul.f32 1.442695, %v700_v43 }
  0x91   :  { %v1963_v48 = vpop.eup %1962  ;;  %v891_v49 = vadd.f32 1.0, %v1961_v46  ;;  %1966 = vpow2.f32 %v1340_v44  ;;  %v1278_v50 = vmul.f32 1.442695, %v1213_v45  ;;  %v444_v51 = vpop.f32.mrf.mxu2 }
  0x92   :  { %v1404_v52 = vadd.f32 1.0, %v1963_v48  ;;  %1968 = vpow2.f32 %v765_v47  ;;  %v2642_v53 = vadd.f32 %v2600_v20, %v444_v51  ;;  %v621_v54 = vpop.f32.mrf.mxu3 }
  0x93   :  { %1970 = vrcp.f32 %v891_v49  ;;  %v2651_v57 = vadd.f32 %v2605_v21, %v621_v54  ;;  %v367_v58 = vpop.f32.mrf.mxu0 }
  0x94   :  { %1972 = vrcp.f32 %v1404_v52  ;;  %v732_v59 = vsub.f32 0.0, %v2642_v53  ;;  %v2655_v60 = vadd.f32 %v2600_v20, %v367_v58  ;;  %v544_v61 = vpop.f32.mrf.mxu1 }
  0x95   :  { %1974 = vpow2.f32 %v1278_v50  ;;  %v1245_v62 = vsub.f32 0.0, %v2651_v57  ;;  %v2659_v63 = vadd.f32 %v2605_v21, %v544_v61 }
  0x96   :  { %v1965_v0 = vpop.eup %1964  ;;  %v829_v1 = vmul.f32 1.442695, %v732_v59  ;;  %v701_v2 = vsub.f32 0.0, %v2655_v60  ;;  %1869 = vmatmul.msk.bf16.gmra.mxu0 %vm252_vm1, %v1933_v55  ;;  %1885 = vmatmul.msk.bf16.gmra.mxu2 %vm252_vm1, %v1949_v56 }
  0x97   :  { %v1967_v3 = vpop.eup %1966  ;;  %v923_v4 = vadd.f32 1.0, %v1965_v0  ;;  %v1214_v5 = vsub.f32 0.0, %v2659_v63  ;;  %1901 = vmatmul.msk.bf16.gmra.mxu1 %vm252_vm1, %v1933_v55  ;;  %1917 = vmatmul.msk.bf16.gmra.mxu3 %vm252_vm1, %v1949_v56  ;;  %v1342_v8 = vmul.f32 1.442695, %v1245_v62  ;;  %v1950_v55 = vld [vmem:[%s3867_s0 + $0xd0] sm:$0xff] }
  0x98   :  { %v1969_v6 = vpop.eup %1968  ;;  %v1436_v7 = vadd.f32 1.0, %v1967_v3  ;;  %1976 = vpow2.f32 %v829_v1  ;;  %v767_v11 = vmul.f32 1.442695, %v701_v2 }
  0x99   :  { %v1971_v9 = vpop.eup %1970  ;;  %1978 = vrcp.f32 %v923_v4  ;;  %v892_v10 = vadd.f32 1.0, %v1969_v6  ;;  %v447_v12 = vpop.f32.mrf.mxu2  ;;  %v1280_v19 = vmul.f32 1.442695, %v1214_v5 }
  0x9a   :  { %v1973_v13 = vpop.eup %1972  ;;  %v1019_v14 = vmul.f32 %v1971_v9, %v2614_v25  ;;  %1980 = vrcp.f32 %v1436_v7  ;;  %v2669_v15 = vadd.f32 %v2600_v20, %v447_v12  ;;  %v624_v16 = vpop.f32.mrf.mxu3 }
  0x9b   :  { %v1975_v17 = vpop.eup %1974  ;;  %v1532_v18 = vmul.f32 %v1973_v13, %v2617_v27  ;;  %1982 = vrcp.f32 %v892_v10  ;;  %v2673_v22 = vadd.f32 %v2605_v21, %v624_v16  ;;  %v369_v23 = vpop.f32.mrf.mxu0 }
  0x9c   :  { %v1083_v24 = vpack.c.bf16 %v1019_v14, %v1019_v14  ;;  %v1405_v26 = vadd.f32 1.0, %v1975_v17  ;;  %1984 = vpow2.f32 %v1342_v8  ;;  %v733_v25 = vsub.f32 0.0, %v2669_v15  ;;  %v546_v28 = vpop.f32.mrf.mxu1 }
  0x9d   :  { %v1596_v29 = vpack.c.bf16 %v1532_v18, %v1532_v18  ;;  %1986 = vpow2.f32 %v767_v11  ;;  %v1246_v30 = vsub.f32 0.0, %v2673_v22  ;;  %v2678_v31 = vadd.f32 %v2600_v20, %v369_v23 }
  0x9e   :  { %v1977_v27 = vpop.eup %1976  ;;  %1148 = vst.msk [vmem:[%s3870_s5] sm:$0xf] %vm1147_vm2, %v1083_v24  ;;  %1988 = vrcp.f32 %v1405_v26  ;;  %v831_v32 = vmul.f32 1.442695, %v733_v25  ;;  %v2685_v34 = vadd.f32 %v2605_v21, %v546_v28 }
  0x9f   :  { %v1979_v36 = vpop.eup %1978  ;;  %1660 = vst.msk [vmem:[%s3871_s6] sm:$0xf] %vm1147_vm2, %v1596_v29  ;;  %v924_v37 = vadd.f32 1.0, %v1977_v27  ;;  %1990 = vpow2.f32 %v1280_v19  ;;  %v1344_v39 = vmul.f32 1.442695, %v1246_v30  ;;  %v702_v40 = vsub.f32 0.0, %v2678_v31 }
  0xa0   :  { %v1981_v42 = vpop.eup %1980  ;;  %v1051_v43 = vmul.f32 %v1979_v36, %v2626_v33  ;;  %1992 = vpow2.f32 %v831_v32  ;;  %v1215_v44 = vsub.f32 0.0, %v2685_v34  ;;  %v1934_v33 = vld [vmem:[%s3867_s0 + $0x50] sm:$0xff] }
  0xa1   :  { %v1983_v45 = vpop.eup %1982  ;;  %v1564_v46 = vmul.f32 %v1981_v42, %v2629_v35  ;;  %1994 = vrcp.f32 %v924_v37  ;;  %v769_v47 = vmul.f32 1.442695, %v702_v40  ;;  %v449_v48 = vpop.f32.mrf.mxu2 }
  0xa2   :  { %v1985_v49 = vpop.eup %1984  ;;  %v1115_v50 = vpack.c.bf16 %v1051_v43, %v1051_v43  ;;  %v1020_v51 = vmul.f32 %v1983_v45, %v2633_v38  ;;  %1996 = vpow2.f32 %v1344_v39  ;;  %v1282_v52 = vmul.f32 1.442695, %v1215_v44  ;;  %v626_v54 = vpop.f32.mrf.mxu3 }
  0xa3   :  { %v1987_v56 = vpop.eup %1986  ;;  %v1628_v35 = vpack.c.bf16 %v1564_v46, %v1564_v46  ;;  %v1437_v58 = vadd.f32 1.0, %v1985_v49  ;;  %1998 = vpow2.f32 %v769_v47  ;;  %v2703_v59 = vadd.f32 %v2600_v20, %v449_v48  ;;  %v372_v61 = vpop.f32.mrf.mxu0 }
  0xa4   :  { %v1989_v38 = vpop.eup %1988  ;;  %1180 = vst.msk [vmem:[%s3870_s5 + $0x80] sm:$0xf] %vm1147_vm2, %v1115_v50  ;;  %v1084_v62 = vpack.c.bf16 %v1020_v51, %v1020_v51  ;;  %v893_v0 = vadd.f32 1.0, %v1987_v56  ;;  %2000 = vpow2.f32 %v1282_v52  ;;  %v2710_v1 = vadd.f32 %v2605_v21, %v626_v54  ;;  %v549_v2 = vpop.f32.mrf.mxu1 }
  0xa5   :  { %v1991_v3 = vpop.eup %1990  ;;  %1692 = vst.msk [vmem:[%s3871_s6 + $0x80] sm:$0xf] %vm1147_vm2, %v1628_v35  ;;  %v1533_v4 = vmul.f32 %v1989_v38, %v2637_v41  ;;  %2002 = vrcp.f32 %v1437_v58  ;;  %v734_v5 = vsub.f32 0.0, %v2703_v59  ;;  %v2719_v6 = vadd.f32 %v2600_v20, %v372_v61 }
  0xa6   :  { %v1993_v7 = vpop.eup %1992  ;;  %1149 = vst.msk [vmem:[%s3870_s5 + $0x4] sm:$0xf] %vm1147_vm2, %v1084_v62  ;;  %2004 = vrcp.f32 %v893_v0  ;;  %v1406_v8 = vadd.f32 1.0, %v1991_v3  ;;  %v1247_v9 = vsub.f32 0.0, %v2710_v1  ;;  %v2727_v10 = vadd.f32 %v2605_v21, %v549_v2  ;;  %1870 = vmatmul.msk.bf16.gmra.mxu0 %vm252_vm1, %v1934_v33  ;;  %1886 = vmatmul.msk.bf16.gmra.mxu2 %vm252_vm1, %v1950_v55 }
  0xa7   :  { %v1995_v41 = vpop.eup %1994  ;;  %v1597_v11 = vpack.c.bf16 %v1533_v4, %v1533_v4  ;;  %v925_v12 = vadd.f32 1.0, %v1993_v7  ;;  %v833_v13 = vmul.f32 1.442695, %v734_v5  ;;  %v703_v14 = vsub.f32 0.0, %v2719_v6  ;;  %1902 = vmatmul.msk.bf16.gmra.mxu1 %vm252_vm1, %v1934_v33  ;;  %1918 = vmatmul.msk.bf16.gmra.mxu3 %vm252_vm1, %v1950_v55  ;;  %v1935_v7 = vld [vmem:[%s3867_s0 + $0x58] sm:$0xff] }
  0xa8   :  { %v1997_v16 = vpop.eup %1996  ;;  %v1052_v17 = vmul.f32 %v1995_v41, %v2642_v53  ;;  %2006 = vrcp.f32 %v1406_v8  ;;  %v1216_v18 = vsub.f32 0.0, %v2727_v10  ;;  %v1346_v24 = vmul.f32 1.442695, %v1247_v9  ;;  %v1951_v8 = vld [vmem:[%s3867_s0 + $0xd8] sm:$0xff] }
  0xa9   :  { %v1999_v19 = vpop.eup %1998  ;;  %1661 = vst.msk [vmem:[%s3871_s6 + $0x4] sm:$0xf] %vm1147_vm2, %v1597_v11  ;;  %2008 = vrcp.f32 %v925_v12  ;;  %v1438_v23 = vadd.f32 1.0, %v1997_v16  ;;  %v452_v26 = vpop.f32.mrf.mxu2  ;;  %v771_v30 = vmul.f32 1.442695, %v703_v14 }
  0xaa   :  { %v2001_v25 = vpop.eup %2000  ;;  %v1116_v28 = vpack.c.bf16 %v1052_v17, %v1052_v17  ;;  %v894_v29 = vadd.f32 1.0, %v1999_v19  ;;  %2010 = vpow2.f32 %v833_v13  ;;  %v629_v27 = vpop.f32.mrf.mxu3  ;;  %v2741_v36 = vadd.f32 %v2600_v20, %v452_v26 }
  0xab   :  { %v2003_v53 = vpop.eup %2002  ;;  %2012 = vrcp.f32 %v1438_v23  ;;  %v1407_v32 = vadd.f32 1.0, %v2001_v25  ;;  %v2744_v37 = vadd.f32 %v2605_v21, %v629_v27  ;;  %v374_v39 = vpop.f32.mrf.mxu0  ;;  %v1284_v43 = vmul.f32 1.442695, %v1216_v18 }
  0xac   :  { %v2005_v40 = vpop.eup %2004  ;;  %1181 = vst.msk [vmem:[%s3870_s5 + $0x84] sm:$0xf] %vm1147_vm2, %v1116_v28  ;;  %v1565_v42 = vmul.f32 %v2003_v53, %v2651_v57  ;;  %2014 = vrcp.f32 %v894_v29  ;;  %v2752_v44 = vadd.f32 %v2600_v20, %v374_v39  ;;  %v551_v45 = vpop.f32.mrf.mxu1  ;;  %v735_v47 = vsub.f32 0.0, %v2741_v36 }
  0xad   :  { %v1021_v46 = vmul.f32 %v2005_v40, %v2655_v60  ;;  %2016 = vrcp.f32 %v1407_v32  ;;  %v1248_v48 = vsub.f32 0.0, %v2744_v37  ;;  %v2759_v57 = vadd.f32 %v2605_v21, %v551_v45 }
  0xae   :  { %v2007_v49 = vpop.eup %2006  ;;  %v1629_v50 = vpack.c.bf16 %v1565_v42, %v1565_v42  ;;  %2018 = vpow2.f32 %v1346_v24  ;;  %v704_v51 = vsub.f32 0.0, %v2752_v44  ;;  %v835_v55 = vmul.f32 1.442695, %v735_v47 }
  0xaf   :  { %v2009_v52 = vpop.eup %2008  ;;  %v1085_v54 = vpack.c.bf16 %v1021_v46, %v1021_v46  ;;  %v1534_v33 = vmul.f32 %v2007_v49, %v2659_v63  ;;  %2020 = vpow2.f32 %v771_v30  ;;  %v1348_v35 = vmul.f32 1.442695, %v1248_v48 }
  0xb0   :  { %v2011_v60 = vpop.eup %2010  ;;  %1693 = vst.msk [vmem:[%s3871_s6 + $0x84] sm:$0xf] %vm1147_vm2, %v1629_v50  ;;  %v1053_v56 = vmul.f32 %v2009_v52, %v2669_v15  ;;  %2022 = vpow2.f32 %v1284_v43  ;;  %v773_v58 = vmul.f32 1.442695, %v704_v51  ;;  %v1217_v62 = vsub.f32 0.0, %v2759_v57 }
  0xb1   :  { %v2013_v61 = vpop.eup %2012  ;;  %1150 = vst.msk [vmem:[%s3870_s5 + $0x8] sm:$0xf] %vm1147_vm2, %v1085_v54  ;;  %v1598_v63 = vpack.c.bf16 %v1534_v33, %v1534_v33  ;;  %v926_v38 = vadd.f32 1.0, %v2011_v60  ;;  %2024 = vpow2.f32 %v835_v55  ;;  %v454_v0 = vpop.f32.mrf.mxu2 }
  0xb2   :  { %v2015_v2 = vpop.eup %2014  ;;  %v1117_v3 = vpack.c.bf16 %v1053_v56, %v1053_v56  ;;  %v1566_v4 = vmul.f32 %v2013_v61, %v2673_v22  ;;  %2026 = vpow2.f32 %v1348_v35  ;;  %v2774_v15 = vadd.f32 %v2600_v20, %v454_v0  ;;  %v631_v5 = vpop.f32.mrf.mxu3 }
  0xb3   :  { %v2017_v9 = vpop.eup %2016  ;;  %1662 = vst.msk [vmem:[%s3871_s6 + $0x8] sm:$0xf] %vm1147_vm2, %v1598_v63  ;;  %v1022_v22 = vmul.f32 %v2015_v2, %v2678_v31  ;;  %2028 = vrcp.f32 %v926_v38  ;;  %v1286_v41 = vmul.f32 1.442695, %v1217_v62  ;;  %v2788_v11 = vadd.f32 %v2605_v21, %v631_v5  ;;  %v377_v12 = vpop.f32.mrf.mxu0 }
  0xb4   :  { %v2019_v13 = vpop.eup %2018  ;;  %1182 = vst.msk [vmem:[%s3870_s5 + $0x88] sm:$0xf] %vm1147_vm2, %v1117_v3  ;;  %v1630_v14 = vpack.c.bf16 %v1566_v4, %v1566_v4  ;;  %v1535_v16 = vmul.f32 %v2017_v9, %v2685_v34  ;;  %2030 = vpow2.f32 %v773_v58  ;;  %v736_v17 = vsub.f32 0.0, %v2774_v15  ;;  %v554_v18 = vpop.f32.mrf.mxu1 }
  0xb5   :  { %v2021_v31 = vpop.eup %2020  ;;  %v1086_v19 = vpack.c.bf16 %v1022_v22, %v1022_v22  ;;  %v1439_v23 = vadd.f32 1.0, %v2019_v13  ;;  %2032 = vpow2.f32 %v1286_v41  ;;  %v1249_v24 = vsub.f32 0.0, %v2788_v11 }
  0xb6   :  { %v2023_v26 = vpop.eup %2022  ;;  %1694 = vst.msk [vmem:[%s3871_s6 + $0x88] sm:$0xf] %vm1147_vm2, %v1630_v14  ;;  %v1599_v25 = vpack.c.bf16 %v1535_v16, %v1535_v16  ;;  %v895_v28 = vadd.f32 1.0, %v2021_v31  ;;  %v2802_v34 = vadd.f32 %v2600_v20, %v377_v12  ;;  %1871 = vmatmul.msk.bf16.gmra.mxu0 %vm252_vm1, %v1935_v7  ;;  %1887 = vmatmul.msk.bf16.gmra.mxu2 %vm252_vm1, %v1951_v8  ;;  %v837_v39 = vmul.f32 1.442695, %v736_v17 }
  0xb7   :  { %v2025_v29 = vpop.eup %2024  ;;  %1151 = vst.msk [vmem:[%s3870_s5 + $0xc] sm:$0xf] %vm1147_vm2, %v1086_v19  ;;  %2034 = vrcp.f32 %v1439_v23  ;;  %v1408_v30 = vadd.f32 1.0, %v2023_v26  ;;  %v2811_v27 = vadd.f32 %v2605_v21, %v554_v18  ;;  %1903 = vmatmul.msk.bf16.gmra.mxu1 %vm252_vm1, %v1935_v7  ;;  %1919 = vmatmul.msk.bf16.gmra.mxu3 %vm252_vm1, %v1951_v8  ;;  %v1350_v45 = vmul.f32 1.442695, %v1249_v24  ;;  %v1936_v24 = vld [vmem:[%s3867_s0 + $0x60] sm:$0xff] }
  0xb8   :  { %v2027_v53 = vpop.eup %2026  ;;  %1663 = vst.msk [vmem:[%s3871_s6 + $0xc] sm:$0xf] %vm1147_vm2, %v1599_v25  ;;  %2036 = vrcp.f32 %v895_v28  ;;  %v927_v32 = vadd.f32 1.0, %v2025_v29  ;;  %v705_v40 = vsub.f32 0.0, %v2802_v34 }
  0xb9   :  { %v2029_v42 = vpop.eup %2028  ;;  %2038 = vrcp.f32 %v1408_v30  ;;  %v1440_v43 = vadd.f32 1.0, %v2027_v53  ;;  %v1218_v46 = vsub.f32 0.0, %v2811_v27  ;;  %v457_v47 = vpop.f32.mrf.mxu2 }
  0xba   :  { %v2031_v48 = vpop.eup %2030  ;;  %v1054_v49 = vmul.f32 %v2029_v42, %v2703_v59  ;;  %2040 = vrcp.f32 %v927_v32  ;;  %v775_v50 = vmul.f32 1.442695, %v705_v40  ;;  %v2823_v51 = vadd.f32 %v2600_v20, %v457_v47  ;;  %v634_v52 = vpop.f32.mrf.mxu3 }
  0xbb   :  { %v2033_v54 = vpop.eup %2032  ;;  %2042 = vrcp.f32 %v1440_v43  ;;  %v896_v33 = vadd.f32 1.0, %v2031_v48  ;;  %v1288_v55 = vmul.f32 1.442695, %v1218_v46  ;;  %v2826_v60 = vadd.f32 %v2605_v21, %v634_v52  ;;  %v379_v56 = vpop.f32.mrf.mxu0 }
  0xbc   :  { %v1118_v35 = vpack.c.bf16 %v1054_v49, %v1054_v49  ;;  %v1409_v58 = vadd.f32 1.0, %v2033_v54  ;;  %2044 = vpow2.f32 %v837_v39  ;;  %v737_v61 = vsub.f32 0.0, %v2823_v51  ;;  %v556_v59 = vpop.f32.mrf.mxu1 }
  0xbd   :  { %v2035_v63 = vpop.eup %2034  ;;  %2046 = vrcp.f32 %v896_v33  ;;  %v1250_v38 = vsub.f32 0.0, %v2826_v60  ;;  %v2831_v62 = vadd.f32 %v2600_v20, %v379_v56  ;;  %v2834_v0 = vadd.f32 %v2605_v21, %v556_v59 }
  0xbe   :  { %v2037_v2 = vpop.eup %2036  ;;  %1183 = vst.msk [vmem:[%s3870_s5 + $0x8c] sm:$0xf] %vm1147_vm2, %v1118_v35  ;;  %v1567_v3 = vmul.f32 %v2035_v63, %v2710_v1  ;;  %2048 = vrcp.f32 %v1409_v58  ;;  %v839_v4 = vmul.f32 1.442695, %v737_v61 }
  0xbf   :  { %v2039_v5 = vpop.eup %2038  ;;  %v1023_v7 = vmul.f32 %v2037_v2, %v2719_v6  ;;  %2050 = vpow2.f32 %v1350_v45  ;;  %v1352_v8 = vmul.f32 1.442695, %v1250_v38  ;;  %v706_v9 = vsub.f32 0.0, %v2831_v62 }
  0xc0   :  { %v2041_v22 = vpop.eup %2040  ;;  %v1631_v41 = vpack.c.bf16 %v1567_v3, %v1567_v3  ;;  %v1536_v12 = vmul.f32 %v2039_v5, %v2727_v10  ;;  %2052 = vpow2.f32 %v775_v50  ;;  %v1219_v13 = vsub.f32 0.0, %v2834_v0 }
  0xc1   :  { %v2043_v14 = vpop.eup %2042  ;;  %v1087_v16 = vpack.c.bf16 %v1023_v7, %v1023_v7  ;;  %v1055_v1 = vmul.f32 %v2041_v22, %v2741_v36  ;;  %2054 = vpow2.f32 %v1288_v55  ;;  %v777_v17 = vmul.f32 1.442695, %v706_v9  ;;  %v459_v18 = vpop.f32.mrf.mxu2  ;;  %v1952_v36 = vld [vmem:[%s3867_s0 + $0xe0] sm:$0xff] }
  0xc2   :  { %v2045_v31 = vpop.eup %2044  ;;  %1695 = vst.msk [vmem:[%s3871_s6 + $0x8c] sm:$0xf] %vm1147_vm2, %v1631_v41  ;;  %v1600_v6 = vpack.c.bf16 %v1536_v12, %v1536_v12  ;;  %v1568_v19 = vmul.f32 %v2043_v14, %v2744_v37  ;;  %2056 = vpow2.f32 %v839_v4  ;;  %v1290_v10 = vmul.f32 1.442695, %v1219_v13  ;;  %v636_v23 = vpop.f32.mrf.mxu3 }
  0xc3   :  { %v2047_v26 = vpop.eup %2046  ;;  %1152 = vst.msk [vmem:[%s3870_s5 + $0x10] sm:$0xf] %vm1147_vm2, %v1087_v16  ;;  %v1119_v25 = vpack.c.bf16 %v1055_v1, %v1055_v1  ;;  %v928_v28 = vadd.f32 1.0, %v2045_v31  ;;  %2058 = vpow2.f32 %v1352_v8  ;;  %v2862_v37 = vadd.f32 %v2600_v20, %v459_v18  ;;  %v382_v29 = vpop.f32.mrf.mxu0 }
  0xc4   :  { %v2049_v30 = vpop.eup %2048  ;;  %1664 = vst.msk [vmem:[%s3871_s6 + $0x10] sm:$0xf] %vm1147_vm2, %v1600_v6  ;;  %v1632_v53 = vpack.c.bf16 %v1568_v19, %v1568_v19  ;;  %v1024_v32 = vmul.f32 %v2047_v26, %v2752_v44  ;;  %2060 = vpow2.f32 %v777_v17  ;;  %v2870_v39 = vadd.f32 %v2605_v21, %v636_v23  ;;  %v559_v40 = vpop.f32.mrf.mxu1 }
  0xc5   :  { %v2051_v42 = vpop.eup %2050  ;;  %1184 = vst.msk [vmem:[%s3870_s5 + $0x90] sm:$0xf] %vm1147_vm2, %v1119_v25  ;;  %v1537_v43 = vmul.f32 %v2049_v30, %v2759_v57  ;;  %2062 = vrcp.f32 %v928_v28  ;;  %v738_v45 = vsub.f32 0.0, %v2862_v37  ;;  %v2879_v46 = vadd.f32 %v2600_v20, %v382_v29 }
  0xc6   :  { %v2053_v44 = vpop.eup %2052  ;;  %1696 = vst.msk [vmem:[%s3871_s6 + $0x90] sm:$0xf] %vm1147_vm2, %v1632_v53  ;;  %v1088_v47 = vpack.c.bf16 %v1024_v32, %v1024_v32  ;;  %v1441_v48 = vadd.f32 1.0, %v2051_v42  ;;  %2064 = vpow2.f32 %v1290_v10  ;;  %1872 = vmatmul.msk.bf16.gmra.mxu0 %vm252_vm1, %v1936_v24  ;;  %1888 = vmatmul.msk.bf16.gmra.mxu2 %vm252_vm1, %v1952_v36  ;;  %v1251_v52 = vsub.f32 0.0, %v2870_v39 }
  0xc7   :  { %v2055_v57 = vpop.eup %2054  ;;  %v1601_v49 = vpack.c.bf16 %v1537_v43, %v1537_v43  ;;  %v897_v50 = vadd.f32 1.0, %v2053_v44  ;;  %1904 = vmatmul.msk.bf16.gmra.mxu1 %vm252_vm1, %v1936_v24  ;;  %1920 = vmatmul.msk.bf16.gmra.mxu3 %vm252_vm1, %v1952_v36  ;;  %v707_v55 = vsub.f32 0.0, %v2879_v46  ;;  %v2896_v56 = vadd.f32 %v2605_v21, %v559_v40 }
  0xc8   :  { %v2057_v54 = vpop.eup %2056  ;;  %1153 = vst.msk [vmem:[%s3870_s5 + $0x14] sm:$0xf] %vm1147_vm2, %v1088_v47  ;;  %2066 = vrcp.f32 %v1441_v48  ;;  %v1410_v33 = vadd.f32 1.0, %v2055_v57  ;;  %v841_v61 = vmul.f32 1.442695, %v738_v45  ;;  %v1953_v48 = vld [vmem:[%s3867_s0 + $0xe8] sm:$0xff] }
  0xc9   :  { %v2059_v35 = vpop.eup %2058  ;;  %1665 = vst.msk [vmem:[%s3871_s6 + $0x14] sm:$0xf] %vm1147_vm2, %v1601_v49  ;;  %2068 = vrcp.f32 %v897_v50  ;;  %v929_v58 = vadd.f32 1.0, %v2057_v54  ;;  %v462_v59 = vpop.f32.mrf.mxu2  ;;  %v1220_v2 = vsub.f32 0.0, %v2896_v56  ;;  %v1354_v8 = vmul.f32 1.442695, %v1251_v52 }
  0xca   :  { %v2061_v63 = vpop.eup %2060  ;;  %2070 = vrcp.f32 %v1410_v33  ;;  %v1442_v38 = vadd.f32 1.0, %v2059_v35  ;;  %v2904_v3 = vadd.f32 %v2600_v20, %v462_v59  ;;  %v639_v4 = vpop.f32.mrf.mxu3  ;;  %v779_v13 = vmul.f32 1.442695, %v707_v55 }
  0xcb   :  { %v2063_v5 = vpop.eup %2062  ;;  %2072 = vrcp.f32 %v929_v58  ;;  %v898_v7 = vadd.f32 1.0, %v2061_v63  ;;  %v2907_v9 = vadd.f32 %v2605_v21, %v639_v4  ;;  %v384_v22 = vpop.f32.mrf.mxu0  ;;  %v1292_v19 = vmul.f32 1.442695, %v1220_v2 }
  0xcc   :  { %v2065_v41 = vpop.eup %2064  ;;  %v1056_v12 = vmul.f32 %v2063_v5, %v2774_v15  ;;  %2074 = vrcp.f32 %v1442_v38  ;;  %v739_v14 = vsub.f32 0.0, %v2904_v3  ;;  %v561_v16 = vpop.f32.mrf.mxu1  ;;  %v2913_v18 = vadd.f32 %v2600_v20, %v384_v22 }
  0xcd   :  { %2076 = vrcp.f32 %v898_v7  ;;  %v1411_v1 = vadd.f32 1.0, %v2065_v41  ;;  %v1252_v17 = vsub.f32 0.0, %v2907_v9  ;;  %v2916_v10 = vadd.f32 %v2605_v21, %v561_v16 }
  0xce   :  { %v2067_v31 = vpop.eup %2066  ;;  %v1120_v6 = vpack.c.bf16 %v1056_v12, %v1056_v12  ;;  %2078 = vpow2.f32 %v841_v61  ;;  %v843_v24 = vmul.f32 1.442695, %v739_v14  ;;  %v708_v36 = vsub.f32 0.0, %v2913_v18 }
  0xcf   :  { %v2069_v15 = vpop.eup %2068  ;;  %v1569_v23 = vmul.f32 %v2067_v31, %v2788_v11  ;;  %2080 = vrcp.f32 %v1411_v1  ;;  %v1356_v28 = vmul.f32 1.442695, %v1252_v17  ;;  %v1221_v29 = vsub.f32 0.0, %v2916_v10 }
  0xd0   :  { %v2071_v26 = vpop.eup %2070  ;;  %1185 = vst.msk [vmem:[%s3870_s5 + $0x94] sm:$0xf] %vm1147_vm2, %v1120_v6  ;;  %v1025_v25 = vmul.f32 %v2069_v15, %v2802_v34  ;;  %2082 = vpow2.f32 %v1354_v8  ;;  %v781_v32 = vmul.f32 1.442695, %v708_v36  ;;  %v1937_v34 = vld [vmem:[%s3867_s0 + $0x68] sm:$0xff] }
  0xd1   :  { %v2073_v30 = vpop.eup %2072  ;;  %v1633_v53 = vpack.c.bf16 %v1569_v23, %v1569_v23  ;;  %v1538_v11 = vmul.f32 %v2071_v26, %v2811_v27  ;;  %2084 = vpow2.f32 %v779_v13  ;;  %v464_v40 = vpop.f32.mrf.mxu2  ;;  %v1294_v44 = vmul.f32 1.442695, %v1221_v29 }
  0xd2   :  { %v2075_v42 = vpop.eup %2074  ;;  %v1089_v43 = vpack.c.bf16 %v1025_v25, %v1025_v25  ;;  %v1057_v45 = vmul.f32 %v2073_v30, %v2823_v51  ;;  %2086 = vpow2.f32 %v1292_v19  ;;  %v641_v47 = vpop.f32.mrf.mxu3  ;;  %v2940_v49 = vadd.f32 %v2600_v20, %v464_v40 }
  0xd3   :  { %v2077_v57 = vpop.eup %2076  ;;  %1697 = vst.msk [vmem:[%s3871_s6 + $0x94] sm:$0xf] %vm1147_vm2, %v1633_v53  ;;  %v1602_v27 = vpack.c.bf16 %v1538_v11, %v1538_v11  ;;  %v1570_v51 = vmul.f32 %v2075_v42, %v2826_v60  ;;  %2088 = vpow2.f32 %v843_v24  ;;  %v387_v50 = vpop.f32.mrf.mxu0  ;;  %v2948_v55 = vadd.f32 %v2605_v21, %v641_v47 }
  0xd4   :  { %v2079_v52 = vpop.eup %2078  ;;  %1154 = vst.msk [vmem:[%s3870_s5 + $0x18] sm:$0xf] %vm1147_vm2, %v1089_v43  ;;  %v1121_v54 = vpack.c.bf16 %v1057_v45, %v1057_v45  ;;  %v1026_v33 = vmul.f32 %v2077_v57, %v2831_v62  ;;  %2090 = vpow2.f32 %v1356_v28  ;;  %v564_v35 = vpop.f32.mrf.mxu1  ;;  %v740_v59 = vsub.f32 0.0, %v2940_v49 }
  0xd5   :  { %v2081_v60 = vpop.eup %2080  ;;  %1666 = vst.msk [vmem:[%s3871_s6 + $0x18] sm:$0xf] %vm1147_vm2, %v1602_v27  ;;  %v1634_v58 = vpack.c.bf16 %v1570_v51, %v1570_v51  ;;  %v930_v61 = vadd.f32 1.0, %v2079_v52  ;;  %2092 = vpow2.f32 %v781_v32  ;;  %v2967_v5 = vadd.f32 %v2600_v20, %v387_v50 }
  0xd6   :  { %v2083_v63 = vpop.eup %2082  ;;  %1186 = vst.msk [vmem:[%s3870_s5 + $0x98] sm:$0xf] %vm1147_vm2, %v1121_v54  ;;  %v1090_v62 = vpack.c.bf16 %v1026_v33, %v1026_v33  ;;  %v1539_v38 = vmul.f32 %v2081_v60, %v2834_v0  ;;  %2094 = vpow2.f32 %v1294_v44  ;;  %1873 = vmatmul.msk.bf16.gmra.mxu0 %vm252_vm1, %v1937_v34  ;;  %1889 = vmatmul.msk.bf16.gmra.mxu2 %vm252_vm1, %v1953_v48  ;;  %v1253_v22 = vsub.f32 0.0, %v2948_v55 }
  0xd7   :  { %v2085_v2 = vpop.eup %2084  ;;  %1698 = vst.msk [vmem:[%s3871_s6 + $0x98] sm:$0xf] %vm1147_vm2, %v1634_v58  ;;  %2096 = vrcp.f32 %v930_v61  ;;  %v1443_v4 = vadd.f32 1.0, %v2083_v63  ;;  %1905 = vmatmul.msk.bf16.gmra.mxu1 %vm252_vm1, %v1937_v34  ;;  %1921 = vmatmul.msk.bf16.gmra.mxu3 %vm252_vm1, %v1953_v48  ;;  %v2977_v41 = vadd.f32 %v2605_v21, %v564_v35  ;;  %v845_v14 = vmul.f32 1.442695, %v740_v59  ;;  %v1938_v61 = vld [vmem:[%s3867_s0 + $0x70] sm:$0xff] }
  0xd8   :  { %v2087_v0 = vpop.eup %2086  ;;  %1155 = vst.msk [vmem:[%s3870_s5 + $0x1c] sm:$0xf] %vm1147_vm2, %v1090_v62  ;;  %v1603_v7 = vpack.c.bf16 %v1539_v38, %v1539_v38  ;;  %v899_v8 = vadd.f32 1.0, %v2085_v2  ;;  %v709_v31 = vsub.f32 0.0, %v2967_v5  ;;  %v1358_v29 = vmul.f32 1.442695, %v1253_v22 }
  0xd9   :  { %v2089_v12 = vpop.eup %2088  ;;  %2098 = vrcp.f32 %v1443_v4  ;;  %v1412_v13 = vadd.f32 1.0, %v2087_v0  ;;  %v467_v16 = vpop.f32.mrf.mxu2  ;;  %v1222_v24 = vsub.f32 0.0, %v2977_v41 }
  0xda   :  { %v2091_v1 = vpop.eup %2090  ;;  %1667 = vst.msk [vmem:[%s3871_s6 + $0x1c] sm:$0xf] %vm1147_vm2, %v1603_v7  ;;  %2100 = vrcp.f32 %v899_v8  ;;  %v931_v17 = vadd.f32 1.0, %v2089_v12  ;;  %v2985_v6 = vadd.f32 %v2600_v20, %v467_v16  ;;  %v644_v19 = vpop.f32.mrf.mxu3  ;;  %v783_v45 = vmul.f32 1.442695, %v709_v31 }
  0xdb   :  { %v2093_v15 = vpop.eup %2092  ;;  %2102 = vrcp.f32 %v1412_v13  ;;  %v1444_v23 = vadd.f32 1.0, %v2091_v1  ;;  %v2989_v36 = vadd.f32 %v2605_v21, %v644_v19  ;;  %v389_v26 = vpop.f32.mrf.mxu0  ;;  %v1296_v34 = vmul.f32 1.442695, %v1222_v24  ;;  %v3024_v7 = vld [vmem:[%s3868_s2] ss:$0 sm:$0xff] }
  0xdc   :  { %v2095_v25 = vpop.eup %2094  ;;  %2104 = vrcp.f32 %v931_v17  ;;  %v900_v28 = vadd.f32 1.0, %v2093_v15  ;;  %v741_v30 = vsub.f32 0.0, %v2985_v6  ;;  %v566_v53 = vpop.f32.mrf.mxu1  ;;  %v2994_v42 = vadd.f32 %v2600_v20, %v389_v26 }
  0xdd   :  { %v2097_v11 = vpop.eup %2096  ;;  %2106 = vrcp.f32 %v1444_v23  ;;  %v1413_v32 = vadd.f32 1.0, %v2095_v25  ;;  %v1254_v40 = vsub.f32 0.0, %v2989_v36  ;;  %v2998_v44 = vadd.f32 %v2605_v21, %v566_v53 }
  0xde   :  { %v1058_v43 = vmul.f32 %v2097_v11, %v2862_v37  ;;  %2108 = vrcp.f32 %v900_v28  ;;  %v847_v48 = vmul.f32 1.442695, %v741_v30  ;;  %v710_v57 = vsub.f32 0.0, %v2994_v42 }
  0xdf   :  { %v2099_v47 = vpop.eup %2098  ;;  %2110 = vrcp.f32 %v1413_v32  ;;  %v1223_v20 = vsub.f32 0.0, %v2998_v44  ;;  %v1360_v54 = vmul.f32 1.442695, %v1254_v40 }
  0xe0   :  { %v2101_v27 = vpop.eup %2100  ;;  %v1122_v51 = vpack.c.bf16 %v1058_v43, %v1058_v43  ;;  %v1571_v50 = vmul.f32 %v2099_v47, %v2870_v39  ;;  %2112 = vpow2.f32 %v845_v14  ;;  %v785_v39 = vmul.f32 1.442695, %v710_v57 }
  0xe1   :  { %v2103_v52 = vpop.eup %2102  ;;  %v1027_v37 = vmul.f32 %v2101_v27, %v2879_v46  ;;  %2114 = vpow2.f32 %v1358_v29  ;;  %v469_v21 = vpop.f32.mrf.mxu2  ;;  %v1954_v46 = vld [vmem:[%s3867_s0 + $0xf0] sm:$0xff]  ;;  %v1298_v38 = vmul.f32 1.442695, %v1223_v20 }
  0xe2   :  { %v2105_v33 = vpop.eup %2104  ;;  %1187 = vst.msk [vmem:[%s3870_s5 + $0x9c] sm:$0xf] %vm1147_vm2, %v1122_v51  ;;  %v1635_v35 = vpack.c.bf16 %v1571_v50, %v1571_v50  ;;  %v1540_v60 = vmul.f32 %v2103_v52, %v2896_v56  ;;  %2116 = vpow2.f32 %v783_v45  ;;  %v646_v58 = vpop.f32.mrf.mxu3 }
  0xe3   :  { %v2107_v59 = vpop.eup %2106  ;;  %v1091_v63 = vpack.c.bf16 %v1027_v37, %v1027_v37  ;;  %v1059_v62 = vmul.f32 %v2105_v33, %v2904_v3  ;;  %2118 = vpow2.f32 %v1296_v34  ;;  %v392_v2 = vpop.f32.mrf.mxu0  ;;  %v3027_v3 = vadd.f32 %v3024_v7, %v469_v21 }
  0xe4   :  { %v2109_v4 = vpop.eup %2108  ;;  %1699 = vst.msk [vmem:[%s3871_s6 + $0x9c] sm:$0xf] %vm1147_vm2, %v1635_v35  ;;  %v1604_v56 = vpack.c.bf16 %v1540_v60, %v1540_v60  ;;  %v1572_v0 = vmul.f32 %v2107_v59, %v2907_v9  ;;  %2120 = vpow2.f32 %v847_v48  ;;  %v569_v8 = vpop.f32.mrf.mxu1  ;;  %v3037_v9 = vld [vmem:[%s3869_s4] ss:$0 sm:$0xff]  ;;  %v3061_v26 = vadd.f32 %v3024_v7, %v392_v2 }
  0xe5   :  { %v2111_v22 = vpop.eup %2110  ;;  %1156 = vst.msk [vmem:[%s3870_s5 + $0x20] sm:$0xf] %vm1147_vm2, %v1091_v63  ;;  %v1123_v12 = vpack.c.bf16 %v1059_v62, %v1059_v62  ;;  %v1028_v13 = vmul.f32 %v2109_v4, %v2913_v18  ;;  %2122 = vpow2.f32 %v1360_v54  ;;  %v3040_v14 = vadd.f32 %v3037_v9, %v646_v58 }
  0xe6   :  { %v2113_v16 = vpop.eup %2112  ;;  %1668 = vst.msk [vmem:[%s3871_s6 + $0x20] sm:$0xf] %vm1147_vm2, %v1604_v56  ;;  %v1636_v1 = vpack.c.bf16 %v1572_v0, %v1572_v0  ;;  %v1541_v17 = vmul.f32 %v2111_v22, %v2916_v10  ;;  %2124 = vpow2.f32 %v785_v39  ;;  %1874 = vmatmul.msk.bf16.gmra.mxu0 %vm252_vm1, %v1938_v61  ;;  %1890 = vmatmul.msk.bf16.gmra.mxu2 %vm252_vm1, %v1954_v46  ;;  %v742_v24 = vsub.f32 0.0, %v3027_v3 }
  0xe7   :  { %v2115_v18 = vpop.eup %2114  ;;  %1188 = vst.msk [vmem:[%s3870_s5 + $0xa0] sm:$0xf] %vm1147_vm2, %v1123_v12  ;;  %v1092_v31 = vpack.c.bf16 %v1028_v13, %v1028_v13  ;;  %v932_v19 = vadd.f32 1.0, %v2113_v16  ;;  %2126 = vpow2.f32 %v1298_v38  ;;  %1906 = vmatmul.msk.bf16.gmra.mxu1 %vm252_vm1, %v1938_v61  ;;  %1922 = vmatmul.msk.bf16.gmra.mxu3 %vm252_vm1, %v1954_v46  ;;  %v1255_v29 = vsub.f32 0.0, %v3040_v14 }
  0xe8   :  { %v2117_v15 = vpop.eup %2116  ;;  %1700 = vst.msk [vmem:[%s3871_s6 + $0xa0] sm:$0xf] %vm1147_vm2, %v1636_v1  ;;  %v1605_v10 = vpack.c.bf16 %v1541_v17, %v1541_v17  ;;  %v1445_v23 = vadd.f32 1.0, %v2115_v18  ;;  %v3069_v30 = vadd.f32 %v3037_v9, %v569_v8  ;;  %v711_v40 = vsub.f32 0.0, %v3061_v26 }
  0xe9   :  { %v2119_v25 = vpop.eup %2118  ;;  %1157 = vst.msk [vmem:[%s3870_s5 + $0x24] sm:$0xf] %vm1147_vm2, %v1092_v31  ;;  %2128 = vrcp.f32 %v932_v19  ;;  %v901_v28 = vadd.f32 1.0, %v2117_v15  ;;  %v472_v53 = vpop.f32.mrf.mxu2  ;;  %v849_v21 = vmul.f32 1.442695, %v742_v24 }
  0xea   :  { %v2121_v11 = vpop.eup %2120  ;;  %1669 = vst.msk [vmem:[%s3871_s6 + $0x24] sm:$0xf] %vm1147_vm2, %v1605_v10  ;;  %2130 = vrcp.f32 %v1445_v23  ;;  %v1414_v32 = vadd.f32 1.0, %v2119_v25  ;;  %v3077_v43 = vadd.f32 %v3024_v7, %v472_v53  ;;  %v649_v45 = vpop.f32.mrf.mxu3  ;;  %v1224_v48 = vsub.f32 0.0, %v3069_v30 }
  0xeb   :  { %v2123_v47 = vpop.eup %2122  ;;  %2132 = vrcp.f32 %v901_v28  ;;  %v933_v34 = vadd.f32 1.0, %v2121_v11  ;;  %v3081_v57 = vadd.f32 %v3037_v9, %v649_v45  ;;  %v394_v27 = vpop.f32.mrf.mxu0  ;;  %v1362_v60 = vmul.f32 1.442695, %v1255_v29 }
  0xec   :  { %v2125_v51 = vpop.eup %2124  ;;  %2134 = vrcp.f32 %v1414_v32  ;;  %v1446_v50 = vadd.f32 1.0, %v2123_v47  ;;  %v743_v20 = vsub.f32 0.0, %v3077_v43  ;;  %v571_v52 = vpop.f32.mrf.mxu1  ;;  %v3086_v39 = vadd.f32 %v3024_v7, %v394_v27 }
  0xed   :  { %v2127_v37 = vpop.eup %2126  ;;  %2136 = vrcp.f32 %v933_v34  ;;  %v902_v54 = vadd.f32 1.0, %v2125_v51  ;;  %v1256_v33 = vsub.f32 0.0, %v3081_v57  ;;  %v787_v61 = vmul.f32 1.442695, %v711_v40 }
  0xee   :  { %2138 = vrcp.f32 %v1446_v50  ;;  %v1415_v35 = vadd.f32 1.0, %v2127_v37  ;;  %v1300_v46 = vmul.f32 1.442695, %v1224_v48  ;;  %v3089_v59 = vadd.f32 %v3037_v9, %v571_v52 }
  0xef   :  { %v2129_v58 = vpop.eup %2128  ;;  %2140 = vrcp.f32 %v902_v54  ;;  %v851_v38 = vmul.f32 1.442695, %v743_v20  ;;  %v712_v2 = vsub.f32 0.0, %v3086_v39  ;;  %v1364_v0 = vmul.f32 1.442695, %v1256_v33 }
  0xf0   :  { %v2131_v63 = vpop.eup %2130  ;;  %v1060_v62 = vmul.f32 %v2129_v58, %v2940_v49  ;;  %2142 = vrcp.f32 %v1415_v35  ;;  %v1225_v8 = vsub.f32 0.0, %v3089_v59  ;;  %v1939_v49 = vld [vmem:[%s3867_s0 + $0x78] sm:$0xff] }
  0xf1   :  { %v2133_v4 = vpop.eup %2132  ;;  %v1573_v56 = vmul.f32 %v2131_v63, %v2948_v55  ;;  %2144 = vpow2.f32 %v849_v21  ;;  %v474_v22 = vpop.f32.mrf.mxu2  ;;  %v789_v1 = vmul.f32 1.442695, %v712_v2  ;;  %v1955_v55 = vld [vmem:[%s3867_s0 + $0xf8] sm:$0xff] }
  0xf2   :  { %v2135_v12 = vpop.eup %2134  ;;  %v1124_v13 = vpack.c.bf16 %v1060_v62, %v1060_v62  ;;  %v1029_v16 = vmul.f32 %v2133_v4, %v2967_v5  ;;  %2146 = vpow2.f32 %v1362_v60  ;;  %v651_v17 = vpop.f32.mrf.mxu3  ;;  %v1302_v15 = vmul.f32 1.442695, %v1225_v8 }
  0xf3   :  { %v2137_v18 = vpop.eup %2136  ;;  %v1637_v31 = vpack.c.bf16 %v1573_v56, %v1573_v56  ;;  %v1542_v19 = vmul.f32 %v2135_v12, %v2977_v41  ;;  %2148 = vpow2.f32 %v787_v61  ;;  %v397_v10 = vpop.f32.mrf.mxu0  ;;  %v3109_v25 = vadd.f32 %v3024_v7, %v474_v22 }
  0xf4   :  { %v2139_v23 = vpop.eup %2138  ;;  %1189 = vst.msk [vmem:[%s3870_s5 + $0xa4] sm:$0xf] %vm1147_vm2, %v1124_v13  ;;  %v1093_v5 = vpack.c.bf16 %v1029_v16, %v1029_v16  ;;  %v1061_v24 = vmul.f32 %v2137_v18, %v2985_v6  ;;  %2150 = vpow2.f32 %v1300_v46  ;;  %v574_v28 = vpop.f32.mrf.mxu1  ;;  %v3117_v11 = vadd.f32 %v3037_v9, %v651_v17 }
  0xf5   :  { %v2141_v29 = vpop.eup %2140  ;;  %1701 = vst.msk [vmem:[%s3871_s6 + $0xa4] sm:$0xf] %vm1147_vm2, %v1637_v31  ;;  %v1606_v41 = vpack.c.bf16 %v1542_v19, %v1542_v19  ;;  %v1574_v53 = vmul.f32 %v2139_v23, %v2989_v36  ;;  %2152 = vpow2.f32 %v851_v38  ;;  %v744_v27 = vsub.f32 0.0, %v3109_v25 }
  0xf6   :  { %v2143_v32 = vpop.eup %2142  ;;  %1158 = vst.msk [vmem:[%s3870_s5 + $0x28] sm:$0xf] %vm1147_vm2, %v1093_v5  ;;  %v1125_v6 = vpack.c.bf16 %v1061_v24, %v1061_v24  ;;  %v1030_v40 = vmul.f32 %v2141_v29, %v2994_v42  ;;  %2154 = vpow2.f32 %v1364_v0  ;;  %1875 = vmatmul.msk.bf16.gmra.mxu0 %vm252_vm1, %v1939_v49  ;;  %1891 = vmatmul.msk.bf16.gmra.mxu2 %vm252_vm1, %v1955_v55  ;;  %v1257_v20 = vsub.f32 0.0, %v3117_v11 }
  0xf7   :  { %v2145_v45 = vpop.eup %2144  ;;  %1670 = vst.msk [vmem:[%s3871_s6 + $0x28] sm:$0xf] %vm1147_vm2, %v1606_v41  ;;  %v1638_v36 = vpack.c.bf16 %v1574_v53, %v1574_v53  ;;  %v1543_v47 = vmul.f32 %v2143_v32, %v2998_v44  ;;  %2156 = vpow2.f32 %v789_v1  ;;  %1907 = vmatmul.msk.bf16.gmra.mxu1 %vm252_vm1, %v1939_v49  ;;  %1923 = vmatmul.msk.bf16.gmra.mxu3 %vm252_vm1, %v1955_v55  ;;  %v853_v1 = vmul.f32 1.442695, %v744_v27 }
  0xf8   :  { %v2147_v42 = vpop.eup %2146  ;;  %1190 = vst.msk [vmem:[%s3870_s5 + $0xa8] sm:$0xf] %vm1147_vm2, %v1125_v6  ;;  %v1094_v34 = vpack.c.bf16 %v1030_v40, %v1030_v40  ;;  %v934_v48 = vadd.f32 1.0, %v2145_v45  ;;  %2158 = vpow2.f32 %v1302_v15  ;;  %v3144_v52 = vadd.f32 %v3024_v7, %v397_v10 }
  0xf9   :  { %v2149_v51 = vpop.eup %2148  ;;  %1702 = vst.msk [vmem:[%s3871_s6 + $0xa8] sm:$0xf] %vm1147_vm2, %v1638_v36  ;;  %v1607_v44 = vpack.c.bf16 %v1543_v47, %v1543_v47  ;;  %v1447_v50 = vadd.f32 1.0, %v2147_v42  ;;  %v477_v37 = vpop.f32.mrf.mxu2  ;;  %v3151_v33 = vadd.f32 %v3037_v9, %v574_v28  ;;  %v1366_v17 = vmul.f32 1.442695, %v1257_v20 }
  0xfa   :  { %v2151_v54 = vpop.eup %2150  ;;  %1159 = vst.msk [vmem:[%s3870_s5 + $0x2c] sm:$0xf] %vm1147_vm2, %v1094_v34  ;;  %2160 = vrcp.f32 %v934_v48  ;;  %v903_v21 = vadd.f32 1.0, %v2149_v51  ;;  %v3154_v35 = vadd.f32 %v3024_v7, %v477_v37  ;;  %v654_v60 = vpop.f32.mrf.mxu3  ;;  %v713_v46 = vsub.f32 0.0, %v3144_v52 }
  0xfb   :  { %v2153_v58 = vpop.eup %2152  ;;  %1671 = vst.msk [vmem:[%s3871_s6 + $0x2c] sm:$0xf] %vm1147_vm2, %v1607_v44  ;;  %2162 = vrcp.f32 %v1447_v50  ;;  %v1416_v61 = vadd.f32 1.0, %v2151_v54  ;;  %v3162_v63 = vadd.f32 %v3037_v9, %v654_v60  ;;  %v399_v62 = vpop.f32.mrf.mxu0  ;;  %v1226_v4 = vsub.f32 0.0, %v3151_v33 }
  0xfc   :  { %v2155_v38 = vpop.eup %2154  ;;  %2164 = vrcp.f32 %v903_v21  ;;  %v935_v2 = vadd.f32 1.0, %v2153_v58  ;;  %v745_v56 = vsub.f32 0.0, %v3154_v35  ;;  %v576_v0 = vpop.f32.mrf.mxu1  ;;  %v791_v55 = vmul.f32 1.442695, %v713_v46 }
  0xfd   :  { %v2157_v8 = vpop.eup %2156  ;;  %2166 = vrcp.f32 %v1416_v61  ;;  %v1448_v22 = vadd.f32 1.0, %v2155_v38  ;;  %v1258_v12 = vsub.f32 0.0, %v3162_v63  ;;  %v3168_v18 = vadd.f32 %v3024_v7, %v399_v62 }
  0xfe   :  { %v2159_v13 = vpop.eup %2158  ;;  %2168 = vrcp.f32 %v935_v2  ;;  %v904_v16 = vadd.f32 1.0, %v2157_v8  ;;  %v1304_v19 = vmul.f32 1.442695, %v1226_v4  ;;  %v855_v15 = vmul.f32 1.442695, %v745_v56 }
  0xff   :  { %2170 = vrcp.f32 %v1448_v22  ;;  %v1417_v49 = vadd.f32 1.0, %v2159_v13  ;;  %v3171_v10 = vadd.f32 %v3037_v9, %v576_v0  ;;  %v1368_v24 = vmul.f32 1.442695, %v1258_v12 }
 0x100   :  { %v2161_v31 = vpop.eup %2160  ;;  %2172 = vrcp.f32 %v904_v16  ;;  %v714_v28 = vsub.f32 0.0, %v3168_v18 }
 0x101   :  { %v2163_v23 = vpop.eup %2162  ;;  %v1062_v5 = vmul.f32 %v2161_v31, %v3027_v3  ;;  %2174 = vrcp.f32 %v1417_v49  ;;  %v479_v29 = vpop.f32.mrf.mxu2  ;;  %v1227_v32 = vsub.f32 0.0, %v3171_v10 }
 0x102   :  { %v2165_v41 = vpop.eup %2164  ;;  %v1575_v53 = vmul.f32 %v2163_v23, %v3040_v14  ;;  %2176 = vpow2.f32 %v853_v1  ;;  %v3178_v6 = vadd.f32 %v3024_v7, %v479_v29  ;;  %v656_v40 = vpop.f32.mrf.mxu3  ;;  %v793_v3 = vmul.f32 1.442695, %v714_v28 }
 0x103   :  { %v2167_v45 = vpop.eup %2166  ;;  %v1126_v36 = vpack.c.bf16 %v1062_v5, %v1062_v5  ;;  %v1031_v47 = vmul.f32 %v2165_v41, %v3061_v26  ;;  %2178 = vpow2.f32 %v1366_v17  ;;  %v402_v42 = vpop.f32.mrf.mxu0  ;;  %v1306_v14 = vmul.f32 1.442695, %v1227_v32 }
 0x104   :  { %v2169_v34 = vpop.eup %2168  ;;  %v1639_v48 = vpack.c.bf16 %v1575_v53, %v1575_v53  ;;  %v1544_v27 = vmul.f32 %v2167_v45, %v3069_v30  ;;  %2180 = vpow2.f32 %v791_v55  ;;  %v579_v51 = vpop.f32.mrf.mxu1  ;;  %v746_v26 = vsub.f32 0.0, %v3178_v6 }
 0x105   :  { %v2171_v44 = vpop.eup %2170  ;;  %1191 = vst.msk [vmem:[%s3870_s5 + $0xac] sm:$0xf] %vm1147_vm2, %v1126_v36  ;;  %v1095_v50 = vpack.c.bf16 %v1031_v47, %v1031_v47  ;;  %v1063_v20 = vmul.f32 %v2169_v34, %v3077_v43  ;;  %2182 = vpow2.f32 %v1304_v19  ;;  %v3194_v21 = vadd.f32 %v3037_v9, %v656_v40 }
 0x106   :  { %v2173_v37 = vpop.eup %2172  ;;  %1703 = vst.msk [vmem:[%s3871_s6 + $0xac] sm:$0xf] %vm1147_vm2, %v1639_v48  ;;  %v1608_v30 = vpack.c.bf16 %v1544_v27, %v1544_v27  ;;  %v1576_v54 = vmul.f32 %v2171_v44, %v3081_v57  ;;  %2184 = vpow2.f32 %v855_v15  ;;  %v857_v61 = vmul.f32 1.442695, %v746_v26 }
 0x107   :  { %v2175_v60 = vpop.eup %2174  ;;  %1160 = vst.msk [vmem:[%s3870_s5 + $0x30] sm:$0xf] %vm1147_vm2, %v1095_v50  ;;  %v1127_v43 = vpack.c.bf16 %v1063_v20, %v1063_v20  ;;  %v1032_v58 = vmul.f32 %v2173_v37, %v3086_v39  ;;  %2186 = vpow2.f32 %v1368_v24  ;;  %v1259_v38 = vsub.f32 0.0, %v3194_v21 }
 0x108   :  { %v2177_v46 = vpop.eup %2176  ;;  %1672 = vst.msk [vmem:[%s3871_s6 + $0x30] sm:$0xf] %vm1147_vm2, %v1608_v30  ;;  %v1640_v57 = vpack.c.bf16 %v1576_v54, %v1576_v54  ;;  %v1545_v62 = vmul.f32 %v2175_v60, %v3089_v59  ;;  %2188 = vpow2.f32 %v793_v3  ;;  %v3212_v56 = vadd.f32 %v3024_v7, %v402_v42 }
 0x109   :  { %v2179_v2 = vpop.eup %2178  ;;  %1192 = vst.msk [vmem:[%s3870_s5 + $0xb0] sm:$0xf] %vm1147_vm2, %v1127_v43  ;;  %v1096_v39 = vpack.c.bf16 %v1032_v58, %v1032_v58  ;;  %v936_v4 = vadd.f32 1.0, %v2177_v46  ;;  %2190 = vpow2.f32 %v1306_v14  ;;  %v482_v0 = vpop.f32.mrf.mxu2  ;;  %v3224_v17 = vadd.f32 %v3037_v9, %v579_v51 }
 0x10a   :  { %v2181_v8 = vpop.eup %2180  ;;  %1704 = vst.msk [vmem:[%s3871_s6 + $0xb0] sm:$0xf] %vm1147_vm2, %v1640_v57  ;;  %v1609_v59 = vpack.c.bf16 %v1545_v62, %v1545_v62  ;;  %v1449_v22 = vadd.f32 1.0, %v2179_v2  ;;  %2192 = vpow2.f32 %v857_v61  ;;  %v659_v12 = vpop.f32.mrf.mxu3  ;;  %v715_v1 = vsub.f32 0.0, %v3212_v56 }
 0x10b   :  { %v2183_v13 = vpop.eup %2182  ;;  %1161 = vst.msk [vmem:[%s3870_s5 + $0x34] sm:$0xf] %vm1147_vm2, %v1096_v39  ;;  %2194 = vrcp.f32 %v936_v4  ;;  %v905_v16 = vadd.f32 1.0, %v2181_v8  ;;  %v404_v49 = vpop.f32.mrf.mxu0  ;;  %v3231_v19 = vadd.f32 %v3024_v7, %v482_v0  ;;  %v3234_v15 = vadd.f32 %v3037_v9, %v659_v12 }
 0x10c   :  { %v2185_v55 = vpop.eup %2184  ;;  %1673 = vst.msk [vmem:[%s3871_s6 + $0x34] sm:$0xf] %vm1147_vm2, %v1609_v59  ;;  %2196 = vrcp.f32 %v1449_v22  ;;  %v1418_v31 = vadd.f32 1.0, %v2183_v13  ;;  %v581_v23 = vpop.f32.mrf.mxu1  ;;  %v1370_v28 = vmul.f32 1.442695, %v1259_v38  ;;  %v1228_v29 = vsub.f32 0.0, %v3224_v17 }
 0x10d   :  { %v2187_v5 = vpop.eup %2186  ;;  %2198 = vrcp.f32 %v905_v16  ;;  %v937_v24 = vadd.f32 1.0, %v2185_v55  ;;  %v747_v32 = vsub.f32 0.0, %v3231_v19  ;;  %v1260_v40 = vsub.f32 0.0, %v3234_v15 }
 0x10e   :  { %v2189_v41 = vpop.eup %2188  ;;  %2200 = vrcp.f32 %v1418_v31  ;;  %v1450_v53 = vadd.f32 1.0, %v2187_v5  ;;  %v795_v47 = vmul.f32 1.442695, %v715_v1  ;;  %v3240_v3 = vadd.f32 %v3024_v7, %v404_v49 }
 0x10f   :  { %v2191_v45 = vpop.eup %2190  ;;  %2202 = vrcp.f32 %v937_v24  ;;  %v906_v36 = vadd.f32 1.0, %v2189_v41  ;;  %v1308_v48 = vmul.f32 1.442695, %v1228_v29  ;;  %v859_v27 = vmul.f32 1.442695, %v747_v32 }
 0x110   :  { %v2193_v42 = vpop.eup %2192  ;;  %2204 = vrcp.f32 %v1450_v53  ;;  %v1419_v34 = vadd.f32 1.0, %v2191_v45  ;;  %v716_v44 = vsub.f32 0.0, %v3240_v3  ;;  %v3244_v50 = vadd.f32 %v3037_v9, %v581_v23 }
 0x111   :  { %v2195_v14 = vpop.eup %2194  ;;  %2206 = vrcp.f32 %v906_v36  ;;  %v938_v51 = vadd.f32 1.0, %v2193_v42  ;;  %v484_v20 = vpop.f32.mrf.mxu2  ;;  %v1372_v30 = vmul.f32 1.442695, %v1260_v40 }
 0x112   :  { %v2197_v26 = vpop.eup %2196  ;;  %v1064_v37 = vmul.f32 %v2195_v14, %v3109_v25  ;;  %2208 = vrcp.f32 %v1419_v34  ;;  %v3248_v54 = vadd.f32 %v3024_v7, %v484_v20  ;;  %v661_v60 = vpop.f32.mrf.mxu3  ;;  %v797_v61 = vmul.f32 1.442695, %v716_v44 }
 0x113   :  { %v2199_v43 = vpop.eup %2198  ;;  %v1577_v58 = vmul.f32 %v2197_v26, %v3117_v11  ;;  %2210 = vrcp.f32 %v938_v51  ;;  %v1229_v46 = vsub.f32 0.0, %v3244_v50  ;;  %v407_v57 = vpop.f32.mrf.mxu0  ;;  %v3266_v1 = vadd.f32 %v3037_v9, %v661_v60 }
 0x114   :  { %v2201_v62 = vpop.eup %2200  ;;  %v1128_v38 = vpack.c.bf16 %v1064_v37, %v1064_v37  ;;  %v1033_v2 = vmul.f32 %v2199_v43, %v3144_v52  ;;  %2212 = vpow2.f32 %v1370_v28  ;;  %v748_v25 = vsub.f32 0.0, %v3248_v54  ;;  %v584_v39 = vpop.f32.mrf.mxu1 }
 0x115   :  { %v2203_v4 = vpop.eup %2202  ;;  %v1641_v0 = vpack.c.bf16 %v1577_v58, %v1577_v58  ;;  %v1546_v8 = vmul.f32 %v2201_v62, %v3151_v33  ;;  %2214 = vpow2.f32 %v795_v47  ;;  %v1310_v59 = vmul.f32 1.442695, %v1229_v46 }
 0x116   :  { %v2205_v11 = vpop.eup %2204  ;;  %1193 = vst.msk [vmem:[%s3870_s5 + $0xb4] sm:$0xf] %vm1147_vm2, %v1128_v38  ;;  %v1097_v22 = vpack.c.bf16 %v1033_v2, %v1033_v2  ;;  %v1065_v12 = vmul.f32 %v2203_v4, %v3154_v35  ;;  %2216 = vpow2.f32 %v1308_v48  ;;  %v861_v52 = vmul.f32 1.442695, %v748_v25 }
 0x117   :  { %v2207_v13 = vpop.eup %2206  ;;  %1705 = vst.msk [vmem:[%s3871_s6 + $0xb4] sm:$0xf] %vm1147_vm2, %v1641_v0  ;;  %v1610_v33 = vpack.c.bf16 %v1546_v8, %v1546_v8  ;;  %v1578_v16 = vmul.f32 %v2205_v11, %v3162_v63  ;;  %2218 = vpow2.f32 %v859_v27  ;;  %v3274_v31 = vadd.f32 %v3024_v7, %v407_v57 }
 0x118   :  { %v2209_v49 = vpop.eup %2208  ;;  %1162 = vst.msk [vmem:[%s3870_s5 + $0x38] sm:$0xf] %vm1147_vm2, %v1097_v22  ;;  %v1129_v35 = vpack.c.bf16 %v1065_v12, %v1065_v12  ;;  %v1034_v55 = vmul.f32 %v2207_v13, %v3168_v18  ;;  %2220 = vpow2.f32 %v1372_v30  ;;  %v1261_v24 = vsub.f32 0.0, %v3266_v1 }
 0x119   :  { %v2211_v23 = vpop.eup %2210  ;;  %1674 = vst.msk [vmem:[%s3871_s6 + $0x38] sm:$0xf] %vm1147_vm2, %v1610_v33  ;;  %v1642_v63 = vpack.c.bf16 %v1578_v16, %v1578_v16  ;;  %v1547_v5 = vmul.f32 %v2209_v49, %v3171_v10  ;;  %2222 = vpow2.f32 %v797_v61  ;;  %v487_v28 = vpop.f32.mrf.mxu2  ;;  %v717_v45 = vsub.f32 0.0, %v3274_v31 }
 0x11a   :  { %v2213_v29 = vpop.eup %2212  ;;  %1194 = vst.msk [vmem:[%s3870_s5 + $0xb8] sm:$0xf] %vm1147_vm2, %v1129_v35  ;;  %v1098_v18 = vpack.c.bf16 %v1034_v55, %v1034_v55  ;;  %v1066_v41 = vmul.f32 %v2211_v23, %v3178_v6  ;;  %2224 = vpow2.f32 %v1310_v59  ;;  %v664_v53 = vpop.f32.mrf.mxu3  ;;  %v1374_v34 = vmul.f32 1.442695, %v1261_v24 }
 0x11b   :  { %v2215_v32 = vpop.eup %2214  ;;  %1706 = vst.msk [vmem:[%s3871_s6 + $0xb8] sm:$0xf] %vm1147_vm2, %v1642_v63  ;;  %v1611_v10 = vpack.c.bf16 %v1547_v5, %v1547_v5  ;;  %v1451_v40 = vadd.f32 1.0, %v2213_v29  ;;  %2226 = vpow2.f32 %v861_v52  ;;  %v409_v36 = vpop.f32.mrf.mxu0  ;;  %v3297_v48 = vadd.f32 %v3037_v9, %v584_v39 }
 0x11c   :  { %v2217_v47 = vpop.eup %2216  ;;  %1163 = vst.msk [vmem:[%s3870_s5 + $0x3c] sm:$0xf] %vm1147_vm2, %v1098_v18  ;;  %v1130_v6 = vpack.c.bf16 %v1066_v41, %v1066_v41  ;;  %v907_v42 = vadd.f32 1.0, %v2215_v32  ;;  %v586_v27 = vpop.f32.mrf.mxu1  ;;  %v3304_v44 = vadd.f32 %v3024_v7, %v487_v28  ;;  %v3307_v20 = vadd.f32 %v3037_v9, %v664_v53 }
 0x11d   :  { %v2219_v14 = vpop.eup %2218  ;;  %1675 = vst.msk [vmem:[%s3871_s6 + $0x3c] sm:$0xf] %vm1147_vm2, %v1611_v10  ;;  %2228 = vrcp.f32 %v1451_v40  ;;  %v1420_v51 = vadd.f32 1.0, %v2217_v47  ;;  %v1230_v30 = vsub.f32 0.0, %v3297_v48  ;;  %v3315_v60 = vadd.f32 %v3024_v7, %v409_v36 }
 0x11e   :  { %v2221_v26 = vpop.eup %2220  ;;  %1195 = vst.msk [vmem:[%s3870_s5 + $0xbc] sm:$0xf] %vm1147_vm2, %v1130_v6  ;;  %2230 = vrcp.f32 %v907_v42  ;;  %v939_v37 = vadd.f32 1.0, %v2219_v14  ;;  %v749_v61 = vsub.f32 0.0, %v3304_v44  ;;  %v1262_v46 = vsub.f32 0.0, %v3307_v20 }
 0x11f   :  { %v2223_v43 = vpop.eup %2222  ;;  %2232 = vrcp.f32 %v1420_v51  ;;  %v1452_v58 = vadd.f32 1.0, %v2221_v26  ;;  %v799_v38 = vmul.f32 1.442695, %v717_v45  ;;  %v718_v2 = vsub.f32 0.0, %v3315_v60 }
 0x120   :  { %v2225_v57 = vpop.eup %2224  ;;  %2234 = vrcp.f32 %v939_v37  ;;  %v908_v62 = vadd.f32 1.0, %v2223_v43  ;;  %v1312_v4 = vmul.f32 1.442695, %v1230_v30  ;;  %v863_v0 = vmul.f32 1.442695, %v749_v61 }
 0x121   :  { %v2227_v25 = vpop.eup %2226  ;;  %2236 = vrcp.f32 %v1452_v58  ;;  %v1421_v39 = vadd.f32 1.0, %v2225_v57  ;;  %v489_v8 = vpop.f32.mrf.mxu2  ;;  %v1376_v11 = vmul.f32 1.442695, %v1262_v46  ;;  %v3321_v22 = vadd.f32 %v3037_v9, %v586_v27 }
 0x122   :  { %2238 = vrcp.f32 %v908_v62  ;;  %v940_v59 = vadd.f32 1.0, %v2227_v25  ;;  %v666_v12 = vpop.f32.mrf.mxu3  ;;  %v801_v13 = vmul.f32 1.442695, %v718_v2  ;;  %v3324_v33 = vadd.f32 %v3024_v7, %v489_v8 }
 0x123   :  { %v2229_v52 = vpop.eup %2228  ;;  %2240 = vrcp.f32 %v1421_v39  ;;  %v3327_v16 = vadd.f32 %v3037_v9, %v666_v12  ;;  %v412_v49 = vpop.f32.mrf.mxu0  ;;  %v1231_v23 = vsub.f32 0.0, %v3321_v22 }
 0x124   :  { %v2231_v35 = vpop.eup %2230  ;;  %v1579_v55 = vmul.f32 %v2229_v52, %v3194_v21  ;;  %2242 = vrcp.f32 %v940_v59  ;;  %v3332_v63 = vadd.f32 %v3024_v7, %v412_v49  ;;  %v589_v5 = vpop.f32.mrf.mxu1  ;;  %v750_v29 = vsub.f32 0.0, %v3324_v33 }
 0x125   :  { %v2233_v24 = vpop.eup %2232  ;;  %v1035_v28 = vmul.f32 %v2231_v35, %v3212_v56  ;;  %2244 = vpow2.f32 %v1374_v34  ;;  %v1263_v18 = vsub.f32 0.0, %v3327_v16  ;;  %v1314_v21 = vmul.f32 1.442695, %v1231_v23 }
 0x126   :  { %v2235_v41 = vpop.eup %2234  ;;  %v1643_v53 = vpack.c.bf16 %v1579_v55, %v1579_v55  ;;  %v1548_v32 = vmul.f32 %v2233_v24, %v3224_v17  ;;  %2246 = vpow2.f32 %v799_v38  ;;  %v865_v36 = vmul.f32 1.442695, %v750_v29 }
 0x127   :  { %v2237_v10 = vpop.eup %2236  ;;  %v1099_v40 = vpack.c.bf16 %v1035_v28, %v1035_v28  ;;  %v1067_v45 = vmul.f32 %v2235_v41, %v3231_v19  ;;  %2248 = vpow2.f32 %v1312_v4  ;;  %v1378_v42 = vmul.f32 1.442695, %v1263_v18 }
 0x128   :  { %v2239_v47 = vpop.eup %2238  ;;  %1707 = vst.msk [vmem:[%s3871_s6 + $0xbc] sm:$0xf] %vm1147_vm2, %v1643_v53  ;;  %v1612_v56 = vpack.c.bf16 %v1548_v32, %v1548_v32  ;;  %v1580_v6 = vmul.f32 %v2237_v10, %v3234_v15  ;;  %2250 = vpow2.f32 %v863_v0  ;;  %v719_v27 = vsub.f32 0.0, %v3332_v63 }
 0x129   :  { %v2241_v17 = vpop.eup %2240  ;;  %1164 = vst.msk [vmem:[%s3870_s5 + $0x40] sm:$0xf] %vm1147_vm2, %v1099_v40  ;;  %v1131_v19 = vpack.c.bf16 %v1067_v45, %v1067_v45  ;;  %v1036_v34 = vmul.f32 %v2239_v47, %v3240_v3  ;;  %2252 = vpow2.f32 %v1376_v11  ;;  %v492_v14 = vpop.f32.mrf.mxu2  ;;  %v3356_v37 = vadd.f32 %v3037_v9, %v589_v5 }
 0x12a   :  { %v2243_v51 = vpop.eup %2242  ;;  %1676 = vst.msk [vmem:[%s3871_s6 + $0x40] sm:$0xf] %vm1147_vm2, %v1612_v56  ;;  %v1644_v15 = vpack.c.bf16 %v1580_v6, %v1580_v6  ;;  %v1549_v26 = vmul.f32 %v2241_v17, %v3244_v50  ;;  %2254 = vpow2.f32 %v801_v13  ;;  %v669_v30 = vpop.f32.mrf.mxu3  ;;  %v3363_v61 = vmul.f32 1.442695, %v719_v27 }
 0x12b   :  { %v2245_v43 = vpop.eup %2244  ;;  %1196 = vst.msk [vmem:[%s3870_s5 + $0xc0] sm:$0xf] %vm1147_vm2, %v1131_v19  ;;  %v1100_v3 = vpack.c.bf16 %v1036_v34, %v1036_v34  ;;  %v1068_v58 = vmul.f32 %v2243_v51, %v3248_v54  ;;  %2256 = vpow2.f32 %v1314_v21  ;;  %v414_v46 = vpop.f32.mrf.mxu0  ;;  %v1232_v38 = vsub.f32 0.0, %v3356_v37 }
 0x12c   :  { %v2247_v57 = vpop.eup %2246  ;;  %1708 = vst.msk [vmem:[%s3871_s6 + $0xc0] sm:$0xf] %vm1147_vm2, %v1644_v15  ;;  %v1613_v50 = vpack.c.bf16 %v1549_v26, %v1549_v26  ;;  %v1453_v62 = vadd.f32 1.0, %v2245_v43  ;;  %2258 = vpow2.f32 %v865_v36  ;;  %v591_v2 = vpop.f32.mrf.mxu1  ;;  %v3375_v4 = vadd.f32 %v3024_v7, %v492_v14 }
 0x12d   :  { %v2249_v25 = vpop.eup %2248  ;;  %1165 = vst.msk [vmem:[%s3870_s5 + $0x44] sm:$0xf] %vm1147_vm2, %v1100_v3  ;;  %v1132_v54 = vpack.c.bf16 %v1068_v58, %v1068_v58  ;;  %v909_v39 = vadd.f32 1.0, %v2247_v57  ;;  %2260 = vpow2.f32 %v1378_v42  ;;  %v1316_v59 = vmul.f32 1.442695, %v1232_v38 }
 0x12e   :  { %v2251_v0 = vpop.eup %2250  ;;  %1677 = vst.msk [vmem:[%s3871_s6 + $0x44] sm:$0xf] %vm1147_vm2, %v1613_v50  ;;  %2262 = vrcp.f32 %v1453_v62  ;;  %v1422_v8 = vadd.f32 1.0, %v2249_v25  ;;  %v3382_v11 = vadd.f32 %v3037_v9, %v669_v30  ;;  %v751_v13 = vsub.f32 0.0, %v3375_v4 }
 0x12f   :  { %v2253_v12 = vpop.eup %2252  ;;  %1197 = vst.msk [vmem:[%s3870_s5 + $0xc4] sm:$0xf] %vm1147_vm2, %v1132_v54  ;;  %2264 = vrcp.f32 %v909_v39  ;;  %v941_v52 = vadd.f32 1.0, %v2251_v0  ;;  %v3390_v49 = vadd.f32 %v3024_v7, %v414_v46  ;;  %v3394_v5 = vadd.f32 %v3037_v9, %v591_v2 }
 0x130   :  { %v2255_v35 = vpop.eup %2254  ;;  %2266 = vrcp.f32 %v1422_v8  ;;  %v1454_v55 = vadd.f32 1.0, %v2253_v12  ;;  %v1264_v23 = vsub.f32 0.0, %v3382_v11  ;;  %v867_v29 = vmul.f32 1.442695, %v751_v13 }
 0x131   :  { %v2257_v24 = vpop.eup %2256  ;;  %2268 = vrcp.f32 %v941_v52  ;;  %v910_v28 = vadd.f32 1.0, %v2255_v35  ;;  %v720_v18 = vsub.f32 0.0, %v3390_v49  ;;  %v494_v41 = vpop.f32.mrf.mxu2  ;;  %v1233_v10 = vsub.f32 0.0, %v3394_v5 }
 0x132   :  { %v2259_v53 = vpop.eup %2258  ;;  %2270 = vrcp.f32 %v1454_v55  ;;  %v1423_v32 = vadd.f32 1.0, %v2257_v24  ;;  %v1380_v21 = vmul.f32 1.442695, %v1264_v23  ;;  %v671_v40 = vpop.f32.mrf.mxu3  ;;  %v3399_v56 = vadd.f32 %v3024_v7, %v494_v41 }
 0x133   :  { %v2261_v45 = vpop.eup %2260  ;;  %2272 = vrcp.f32 %v910_v28  ;;  %v942_v36 = vadd.f32 1.0, %v2259_v53  ;;  %v805_v47 = vmul.f32 1.442695, %v720_v18  ;;  %v417_v6 = vpop.f32.mrf.mxu0  ;;  %v1318_v19 = vmul.f32 1.442695, %v1233_v10 }
 0x134   :  { %v2263_v42 = vpop.eup %2262  ;;  %2274 = vrcp.f32 %v1423_v32  ;;  %v1455_v17 = vadd.f32 1.0, %v2261_v45  ;;  %v3402_v34 = vadd.f32 %v3037_v9, %v671_v40  ;;  %v594_v27 = vpop.f32.mrf.mxu1  ;;  %v752_v15 = vsub.f32 0.0, %v3399_v56  ;;  %v3449_v18 = vld [vmem:[%s3868_s2] ss:$0 sm:$0xff] }
 0x135   :  { %v2265_v14 = vpop.eup %2264  ;;  %v1581_v51 = vmul.f32 %v2263_v42, %v3266_v1  ;;  %2276 = vrcp.f32 %v942_v36  ;;  %v3407_v26 = vadd.f32 %v3024_v7, %v417_v6  ;;  %v3412_v58 = vadd.f32 %v3037_v9, %v594_v27 }
 0x136   :  { %v2267_v30 = vpop.eup %2266  ;;  %v1037_v43 = vmul.f32 %v2265_v14, %v3274_v31  ;;  %2278 = vrcp.f32 %v1455_v17  ;;  %v1265_v3 = vsub.f32 0.0, %v3402_v34  ;;  %v869_v1 = vmul.f32 1.442695, %v752_v15 }
 0x137   :  { %v2269_v46 = vpop.eup %2268  ;;  %v1645_v57 = vpack.c.bf16 %v1581_v51, %v1581_v51  ;;  %v1550_v50 = vmul.f32 %v2267_v30, %v3297_v48  ;;  %2280 = vpow2.f32 %v3363_v61  ;;  %v721_v48 = vsub.f32 0.0, %v3407_v26 }
 0x138   :  { %v2271_v62 = vpop.eup %2270  ;;  %v1101_v38 = vpack.c.bf16 %v1037_v43, %v1037_v43  ;;  %v1069_v7 = vmul.f32 %v2269_v46, %v3304_v44  ;;  %2282 = vpow2.f32 %v1316_v59  ;;  %v1382_v2 = vmul.f32 1.442695, %v1265_v3 }
 0x139   :  { %v2273_v31 = vpop.eup %2272  ;;  %1709 = vst.msk [vmem:[%s3871_s6 + $0xc4] sm:$0xf] %vm1147_vm2, %v1645_v57  ;;  %v1614_v9 = vpack.c.bf16 %v1550_v50, %v1550_v50  ;;  %v1582_v25 = vmul.f32 %v2271_v62, %v3307_v20  ;;  %2284 = vpow2.f32 %v867_v29  ;;  %v497_v61 = vpop.f32.mrf.mxu2  ;;  %v1234_v0 = vsub.f32 0.0, %v3412_v58 }
 0x13a   :  { %v2275_v54 = vpop.eup %2274  ;;  %1166 = vst.msk [vmem:[%s3870_s5 + $0x48] sm:$0xf] %vm1147_vm2, %v1101_v38  ;;  %v1133_v44 = vpack.c.bf16 %v1069_v7, %v1069_v7  ;;  %v1038_v39 = vmul.f32 %v2273_v31, %v3315_v60  ;;  %2286 = vpow2.f32 %v1380_v21  ;;  %v674_v8 = vpop.f32.mrf.mxu3  ;;  %v807_v52 = vmul.f32 1.442695, %v721_v48 }
 0x13b   :  { %v2277_v59 = vpop.eup %2276  ;;  %1678 = vst.msk [vmem:[%s3871_s6 + $0x48] sm:$0xf] %vm1147_vm2, %v1614_v9  ;;  %v1646_v20 = vpack.c.bf16 %v1582_v25, %v1582_v25  ;;  %v1551_v12 = vmul.f32 %v2275_v54, %v3321_v22  ;;  %2288 = vpow2.f32 %v805_v47  ;;  %v419_v13 = vpop.f32.mrf.mxu0  ;;  %v3439_v23 = vmul.f32 1.442695, %v1234_v0 }
 0x13c   :  { %v2279_v35 = vpop.eup %2278  ;;  %1198 = vst.msk [vmem:[%s3870_s5 + $0xc8] sm:$0xf] %vm1147_vm2, %v1133_v44  ;;  %v1102_v60 = vpack.c.bf16 %v1038_v39, %v1038_v39  ;;  %v1070_v55 = vmul.f32 %v2277_v59, %v3324_v33  ;;  %2290 = vpow2.f32 %v1318_v19  ;;  %v596_v24 = vpop.f32.mrf.mxu1  ;;  %v3452_v33 = vadd.f32 %v3449_v18, %v497_v61 }
 0x13d   :  { %v2281_v28 = vpop.eup %2280  ;;  %1710 = vst.msk [vmem:[%s3871_s6 + $0xc8] sm:$0xf] %vm1147_vm2, %v1646_v20  ;;  %v1615_v22 = vpack.c.bf16 %v1551_v12, %v1551_v12  ;;  %v1583_v29 = vmul.f32 %v2279_v35, %v3327_v16  ;;  %2292 = vpow2.f32 %v869_v1  ;;  %v3461_v16 = vld [vmem:[%s3869_s4] ss:$0 sm:$0xff]  ;;  %v3477_v17 = vadd.f32 %v3449_v18, %v419_v13 }
 0x13e   :  { %v2283_v41 = vpop.eup %2282  ;;  %1167 = vst.msk [vmem:[%s3870_s5 + $0x4c] sm:$0xf] %vm1147_vm2, %v1102_v60  ;;  %v1134_v53 = vpack.c.bf16 %v1070_v55, %v1070_v55  ;;  %v911_v32 = vadd.f32 1.0, %v2281_v28  ;;  %2294 = vpow2.f32 %v1382_v2  ;;  %v3464_v21 = vadd.f32 %v3461_v16, %v674_v8 }
 0x13f   :  { %v2285_v10 = vpop.eup %2284  ;;  %1679 = vst.msk [vmem:[%s3871_s6 + $0x4c] sm:$0xf] %vm1147_vm2, %v1615_v22  ;;  %v1647_v40 = vpack.c.bf16 %v1583_v29, %v1583_v29  ;;  %v1424_v45 = vadd.f32 1.0, %v2283_v41  ;;  %2296 = vpow2.f32 %v807_v52  ;;  %v753_v36 = vsub.f32 0.0, %v3452_v33 }
 0x140   :  { %v2287_v47 = vpop.eup %2286  ;;  %1199 = vst.msk [vmem:[%s3870_s5 + $0xcc] sm:$0xf] %vm1147_vm2, %v1134_v53  ;;  %2298 = vrcp.f32 %v911_v32  ;;  %v943_v6 = vadd.f32 1.0, %v2285_v10  ;;  %v1266_v42 = vsub.f32 0.0, %v3464_v21  ;;  %v3484_v51 = vadd.f32 %v3461_v16, %v596_v24 }
 0x141   :  { %v2289_v19 = vpop.eup %2288  ;;  %1711 = vst.msk [vmem:[%s3871_s6 + $0xcc] sm:$0xf] %vm1147_vm2, %v1647_v40  ;;  %2300 = vrcp.f32 %v1424_v45  ;;  %v1456_v27 = vadd.f32 1.0, %v2287_v47  ;;  %v871_v14 = vmul.f32 1.442695, %v753_v36  ;;  %v499_v15 = vpop.f32.mrf.mxu2  ;;  %v722_v46 = vsub.f32 0.0, %v3477_v17 }
 0x142   :  { %v2291_v30 = vpop.eup %2290  ;;  %2302 = vrcp.f32 %v943_v6  ;;  %v912_v43 = vadd.f32 1.0, %v2289_v19  ;;  %v1384_v3 = vmul.f32 1.442695, %v1266_v42  ;;  %v676_v57 = vpop.f32.mrf.mxu3  ;;  %v1235_v62 = vsub.f32 0.0, %v3484_v51 }
 0x143   :  { %v2293_v50 = vpop.eup %2292  ;;  %2304 = vrcp.f32 %v1456_v27  ;;  %v1425_v1 = vadd.f32 1.0, %v2291_v30  ;;  %v3489_v38 = vadd.f32 %v3449_v18, %v499_v15  ;;  %v422_v7 = vpop.f32.mrf.mxu0  ;;  %v809_v9 = vmul.f32 1.442695, %v722_v46 }
 0x144   :  { %v2295_v2 = vpop.eup %2294  ;;  %2306 = vrcp.f32 %v912_v43  ;;  %v944_v31 = vadd.f32 1.0, %v2293_v50  ;;  %v3492_v25 = vadd.f32 %v3461_v16, %v676_v57  ;;  %v599_v48 = vpop.f32.mrf.mxu1  ;;  %v1322_v44 = vmul.f32 1.442695, %v1235_v62 }
 0x145   :  { %v2297_v61 = vpop.eup %2296  ;;  %2308 = vrcp.f32 %v1425_v1  ;;  %v1457_v54 = vadd.f32 1.0, %v2295_v2  ;;  %v754_v39 = vsub.f32 0.0, %v3489_v38  ;;  %v3497_v20 = vadd.f32 %v3449_v18, %v422_v7 }
 0x146   :  { %v2299_v0 = vpop.eup %2298  ;;  %2310 = vrcp.f32 %v944_v31  ;;  %v913_v8 = vadd.f32 1.0, %v2297_v61  ;;  %v1267_v59 = vsub.f32 0.0, %v3492_v25  ;;  %v3501_v35 = vadd.f32 %v3461_v16, %v599_v48 }
 0x147   :  { %v2301_v12 = vpop.eup %2300  ;;  %v1039_v52 = vmul.f32 %v2299_v0, %v3332_v63  ;;  %2312 = vrcp.f32 %v1457_v54  ;;  %v873_v13 = vmul.f32 1.442695, %v754_v39  ;;  %v723_v28 = vsub.f32 0.0, %v3497_v20 }
 0x148   :  { %v2303_v60 = vpop.eup %2302  ;;  %v1552_v55 = vmul.f32 %v2301_v12, %v3356_v37  ;;  %2314 = vrcp.f32 %v913_v8  ;;  %v1386_v24 = vmul.f32 1.442695, %v1267_v59  ;;  %v1236_v63 = vsub.f32 0.0, %v3501_v35 }
 0x149   :  { %v2305_v22 = vpop.eup %2304  ;;  %v1103_v29 = vpack.c.bf16 %v1039_v52, %v1039_v52  ;;  %v1071_v41 = vmul.f32 %v2303_v60, %v3375_v4  ;;  %2316 = vpow2.f32 %v3439_v23  ;;  %v502_v53 = vpop.f32.mrf.mxu2  ;;  %v811_v45 = vmul.f32 1.442695, %v723_v28 }
 0x14a   :  { %v2307_v32 = vpop.eup %2306  ;;  %v1616_v10 = vpack.c.bf16 %v1552_v55, %v1552_v55  ;;  %v1584_v40 = vmul.f32 %v2305_v22, %v3382_v11  ;;  %2318 = vpow2.f32 %v871_v14  ;;  %v679_v37 = vpop.f32.mrf.mxu3  ;;  %v1324_v23 = vmul.f32 1.442695, %v1236_v63 }
 0x14b   :  { %v2309_v36 = vpop.eup %2308  ;;  %1168 = vst.msk [vmem:[%s3870_s5 + $0x50] sm:$0xf] %vm1147_vm2, %v1103_v29  ;;  %v1135_v47 = vpack.c.bf16 %v1071_v41, %v1071_v41  ;;  %v1040_v4 = vmul.f32 %v2307_v32, %v3390_v49  ;;  %2320 = vpow2.f32 %v1384_v3  ;;  %v424_v6 = vpop.f32.mrf.mxu0  ;;  %v3520_v27 = vadd.f32 %v3449_v18, %v502_v53 }
 0x14c   :  { %v2311_v42 = vpop.eup %2310  ;;  %1680 = vst.msk [vmem:[%s3871_s6 + $0x50] sm:$0xf] %vm1147_vm2, %v1616_v10  ;;  %v1648_v11 = vpack.c.bf16 %v1584_v40, %v1584_v40  ;;  %v1553_v19 = vmul.f32 %v2309_v36, %v3394_v5  ;;  %2322 = vpow2.f32 %v809_v9  ;;  %v601_v14 = vpop.f32.mrf.mxu1  ;;  %v3528_v43 = vadd.f32 %v3461_v16, %v679_v37 }
 0x14d   :  { %v2313_v15 = vpop.eup %2312  ;;  %1200 = vst.msk [vmem:[%s3870_s5 + $0xd0] sm:$0xf] %vm1147_vm2, %v1135_v47  ;;  %v1104_v49 = vpack.c.bf16 %v1040_v4, %v1040_v4  ;;  %v1072_v30 = vmul.f32 %v2311_v42, %v3399_v56  ;;  %2324 = vpow2.f32 %v1322_v44  ;;  %v3555_v44 = vadd.f32 %v3449_v18, %v424_v6 }
 0x14e   :  { %v2315_v3 = vpop.eup %2314  ;;  %1712 = vst.msk [vmem:[%s3871_s6 + $0xd0] sm:$0xf] %vm1147_vm2, %v1648_v11  ;;  %v1617_v5 = vpack.c.bf16 %v1553_v19, %v1553_v19  ;;  %v1585_v46 = vmul.f32 %v2313_v15, %v3402_v34  ;;  %2326 = vpow2.f32 %v873_v13  ;;  %v755_v34 = vsub.f32 0.0, %v3520_v27 }
 0x14f   :  { %v2317_v57 = vpop.eup %2316  ;;  %1169 = vst.msk [vmem:[%s3870_s5 + $0x54] sm:$0xf] %vm1147_vm2, %v1104_v49  ;;  %v1136_v56 = vpack.c.bf16 %v1072_v30, %v1072_v30  ;;  %v1041_v50 = vmul.f32 %v2315_v3, %v3407_v26  ;;  %2328 = vpow2.f32 %v1386_v24  ;;  %v1268_v9 = vsub.f32 0.0, %v3528_v43 }
 0x150   :  { %v2319_v1 = vpop.eup %2318  ;;  %1681 = vst.msk [vmem:[%s3871_s6 + $0x54] sm:$0xf] %vm1147_vm2, %v1617_v5  ;;  %v1649_v62 = vpack.c.bf16 %v1585_v46, %v1585_v46  ;;  %v1426_v7 = vadd.f32 1.0, %v2317_v57  ;;  %2330 = vpow2.f32 %v811_v45  ;;  %v3558_v39 = vadd.f32 %v3461_v16, %v601_v14 }
 0x151   :  { %v2321_v2 = vpop.eup %2320  ;;  %1201 = vst.msk [vmem:[%s3870_s5 + $0xd4] sm:$0xf] %vm1147_vm2, %v1136_v56  ;;  %v1105_v31 = vpack.c.bf16 %v1041_v50, %v1041_v50  ;;  %v945_v26 = vadd.f32 1.0, %v2319_v1  ;;  %2332 = vpow2.f32 %v1324_v23  ;;  %v504_v48 = vpop.f32.mrf.mxu2  ;;  %v724_v24 = vsub.f32 0.0, %v3555_v44 }
 0x152   :  { %v2323_v61 = vpop.eup %2322  ;;  %1713 = vst.msk [vmem:[%s3871_s6 + $0xd4] sm:$0xf] %vm1147_vm2, %v1649_v62  ;;  %2334 = vrcp.f32 %v1426_v7  ;;  %v1458_v54 = vadd.f32 1.0, %v2321_v2  ;;  %v681_v0 = vpop.f32.mrf.mxu3  ;;  %v3565_v12 = vadd.f32 %v3449_v18, %v504_v48  ;;  %v1237_v28 = vsub.f32 0.0, %v3558_v39 }
 0x153   :  { %v2325_v8 = vpop.eup %2324  ;;  %1170 = vst.msk [vmem:[%s3870_s5 + $0x58] sm:$0xf] %vm1147_vm2, %v1105_v31  ;;  %2336 = vrcp.f32 %v945_v26  ;;  %v914_v59 = vadd.f32 1.0, %v2323_v61  ;;  %v3568_v52 = vadd.f32 %v3461_v16, %v681_v0  ;;  %v427_v13 = vpop.f32.mrf.mxu0  ;;  %v875_v40 = vmul.f32 1.442695, %v755_v34 }
 0x154   :  { %v2327_v60 = vpop.eup %2326  ;;  %2338 = vrcp.f32 %v1458_v54  ;;  %v1427_v55 = vadd.f32 1.0, %v2325_v8  ;;  %v604_v22 = vpop.f32.mrf.mxu1  ;;  %v756_v63 = vsub.f32 0.0, %v3565_v12  ;;  %v1388_v45 = vmul.f32 1.442695, %v1268_v9 }
 0x155   :  { %v2329_v29 = vpop.eup %2328  ;;  %2340 = vrcp.f32 %v914_v59  ;;  %v946_v41 = vadd.f32 1.0, %v2327_v60  ;;  %v1269_v53 = vsub.f32 0.0, %v3568_v52  ;;  %v813_v47 = vmul.f32 1.442695, %v724_v24 }
 0x156   :  { %v2331_v32 = vpop.eup %2330  ;;  %2342 = vrcp.f32 %v1427_v55  ;;  %v1459_v10 = vadd.f32 1.0, %v2329_v29  ;;  %v1326_v4 = vmul.f32 1.442695, %v1237_v28  ;;  %v3575_v42 = vadd.f32 %v3449_v18, %v427_v13 }
 0x157   :  { %v2333_v37 = vpop.eup %2332  ;;  %2344 = vrcp.f32 %v946_v41  ;;  %v915_v36 = vadd.f32 1.0, %v2331_v32  ;;  %v3578_v11 = vadd.f32 %v3461_v16, %v604_v22  ;;  %v877_v15 = vmul.f32 1.442695, %v756_v63 }
 0x158   :  { %v2335_v23 = vpop.eup %2334  ;;  %2346 = vrcp.f32 %v1459_v10  ;;  %v1428_v6 = vadd.f32 1.0, %v2333_v37  ;;  %v1390_v49 = vmul.f32 1.442695, %v1269_v53  ;;  %v725_v46 = vsub.f32 0.0, %v3575_v42 }
 0x159   :  { %v2337_v19 = vpop.eup %2336  ;;  %v1554_v14 = vmul.f32 %v2335_v23, %v3412_v58  ;;  %2348 = vrcp.f32 %v915_v36  ;;  %v507_v30 = vpop.f32.mrf.mxu2  ;;  %v1238_v57 = vsub.f32 0.0, %v3578_v11 }
 0x15a   :  { %v2339_v3 = vpop.eup %2338  ;;  %v1073_v5 = vmul.f32 %v2337_v19, %v3452_v33  ;;  %2350 = vrcp.f32 %v1428_v6  ;;  %v684_v56 = vpop.f32.mrf.mxu3  ;;  %v3586_v58 = vadd.f32 %v3449_v18, %v507_v30  ;;  %v815_v33 = vmul.f32 1.442695, %v725_v46 }
 0x15b   :  { %v2341_v50 = vpop.eup %2340  ;;  %v1618_v1 = vpack.c.bf16 %v1554_v14, %v1554_v14  ;;  %v1586_v62 = vmul.f32 %v2339_v3, %v3464_v21  ;;  %2352 = vpow2.f32 %v875_v40  ;;  %v429_v7 = vpop.f32.mrf.mxu0  ;;  %v1328_v61 = vmul.f32 1.442695, %v1238_v57 }
 0x15c   :  { %v2343_v34 = vpop.eup %2342  ;;  %v1137_v2 = vpack.c.bf16 %v1073_v5, %v1073_v5  ;;  %v1042_v31 = vmul.f32 %v2341_v50, %v3477_v17  ;;  %2354 = vpow2.f32 %v1388_v45  ;;  %v606_v26 = vpop.f32.mrf.mxu1  ;;  %v757_v8 = vsub.f32 0.0, %v3586_v58 }
 0x15d   :  { %v2345_v9 = vpop.eup %2344  ;;  %1682 = vst.msk [vmem:[%s3871_s6 + $0x58] sm:$0xf] %vm1147_vm2, %v1618_v1  ;;  %v1650_v48 = vpack.c.bf16 %v1586_v62, %v1586_v62  ;;  %v1555_v21 = vmul.f32 %v2343_v34, %v3484_v51  ;;  %2356 = vpow2.f32 %v813_v47  ;;  %v3606_v60 = vadd.f32 %v3461_v16, %v684_v56 }
 0x15e   :  { %v2347_v54 = vpop.eup %2346  ;;  %1202 = vst.msk [vmem:[%s3870_s5 + $0xd8] sm:$0xf] %vm1147_vm2, %v1137_v2  ;;  %v1106_v17 = vpack.c.bf16 %v1042_v31, %v1042_v31  ;;  %v1074_v0 = vmul.f32 %v2345_v9, %v3489_v38  ;;  %2358 = vpow2.f32 %v1326_v4  ;;  %v879_v28 = vmul.f32 1.442695, %v757_v8 }
 0x15f   :  { %v2349_v59 = vpop.eup %2348  ;;  %1714 = vst.msk [vmem:[%s3871_s6 + $0xd8] sm:$0xf] %vm1147_vm2, %v1650_v48  ;;  %v1619_v51 = vpack.c.bf16 %v1555_v21, %v1555_v21  ;;  %v1587_v13 = vmul.f32 %v2347_v54, %v3492_v25  ;;  %2360 = vpow2.f32 %v877_v15  ;;  %v1270_v41 = vsub.f32 0.0, %v3606_v60 }
 0x160   :  { %v2351_v55 = vpop.eup %2350  ;;  %1171 = vst.msk [vmem:[%s3870_s5 + $0x5c] sm:$0xf] %vm1147_vm2, %v1106_v17  ;;  %v1138_v38 = vpack.c.bf16 %v1074_v0, %v1074_v0  ;;  %v1043_v24 = vmul.f32 %v2349_v59, %v3497_v20  ;;  %2362 = vpow2.f32 %v1390_v49  ;;  %v3624_v10 = vadd.f32 %v3449_v18, %v429_v7 }
 0x161   :  { %v2353_v22 = vpop.eup %2352  ;;  %1683 = vst.msk [vmem:[%s3871_s6 + $0x5c] sm:$0xf] %vm1147_vm2, %v1619_v51  ;;  %v1651_v25 = vpack.c.bf16 %v1587_v13, %v1587_v13  ;;  %v1556_v29 = vmul.f32 %v2351_v55, %v3501_v35  ;;  %2364 = vpow2.f32 %v815_v33  ;;  %v509_v63 = vpop.f32.mrf.mxu2  ;;  %v1392_v36 = vmul.f32 1.442695, %v1270_v41 }
 0x162   :  { %v2355_v53 = vpop.eup %2354  ;;  %1203 = vst.msk [vmem:[%s3870_s5 + $0xdc] sm:$0xf] %vm1147_vm2, %v1138_v38  ;;  %v1107_v20 = vpack.c.bf16 %v1043_v24, %v1043_v24  ;;  %v947_v32 = vadd.f32 1.0, %v2353_v22  ;;  %2366 = vpow2.f32 %v1328_v61  ;;  %v686_v40 = vpop.f32.mrf.mxu3  ;;  %v726_v6 = vsub.f32 0.0, %v3624_v10 }
 0x163   :  { %v2357_v45 = vpop.eup %2356  ;;  %1715 = vst.msk [vmem:[%s3871_s6 + $0xdc] sm:$0xf] %vm1147_vm2, %v1651_v25  ;;  %v1620_v35 = vpack.c.bf16 %v1556_v29, %v1556_v29  ;;  %v1460_v37 = vadd.f32 1.0, %v2355_v53  ;;  %2368 = vpow2.f32 %v879_v28  ;;  %v432_v47 = vpop.f32.mrf.mxu0  ;;  %v3636_v19 = vadd.f32 %v3461_v16, %v606_v26 }
 0x164   :  { %v2359_v4 = vpop.eup %2358  ;;  %1172 = vst.msk [vmem:[%s3870_s5 + $0x60] sm:$0xf] %vm1147_vm2, %v1107_v20  ;;  %2370 = vrcp.f32 %v947_v32  ;;  %v916_v23 = vadd.f32 1.0, %v2357_v45  ;;  %v609_v14 = vpop.f32.mrf.mxu1  ;;  %v3643_v30 = vadd.f32 %v3449_v18, %v509_v63  ;;  %v3646_v3 = vadd.f32 %v3461_v16, %v686_v40 }
 0x165   :  { %v2361_v15 = vpop.eup %2360  ;;  %1684 = vst.msk [vmem:[%s3871_s6 + $0x60] sm:$0xf] %vm1147_vm2, %v1620_v35  ;;  %2372 = vrcp.f32 %v1460_v37  ;;  %v1429_v49 = vadd.f32 1.0, %v2359_v4  ;;  %v817_v57 = vmul.f32 1.442695, %v726_v6  ;;  %v1239_v56 = vsub.f32 0.0, %v3636_v19 }
 0x166   :  { %v2363_v5 = vpop.eup %2362  ;;  %2374 = vrcp.f32 %v916_v23  ;;  %v948_v46 = vadd.f32 1.0, %v2361_v15  ;;  %v758_v62 = vsub.f32 0.0, %v3643_v30  ;;  %v1271_v7 = vsub.f32 0.0, %v3646_v3 }
 0x167   :  { %v2365_v50 = vpop.eup %2364  ;;  %2376 = vrcp.f32 %v1429_v49  ;;  %v1461_v1 = vadd.f32 1.0, %v2363_v5  ;;  %v1330_v31 = vmul.f32 1.442695, %v1239_v56  ;;  %v3652_v33 = vadd.f32 %v3449_v18, %v432_v47 }
 0x168   :  { %v2367_v34 = vpop.eup %2366  ;;  %2378 = vrcp.f32 %v948_v46  ;;  %v917_v2 = vadd.f32 1.0, %v2365_v50  ;;  %v881_v48 = vmul.f32 1.442695, %v758_v62  ;;  %v1394_v21 = vmul.f32 1.442695, %v1271_v7 }
 0x169   :  { %v2369_v26 = vpop.eup %2368  ;;  %2380 = vrcp.f32 %v1461_v1  ;;  %v1430_v9 = vadd.f32 1.0, %v2367_v34  ;;  %v512_v61 = vpop.f32.mrf.mxu2  ;;  %v727_v0 = vsub.f32 0.0, %v3652_v33  ;;  %v3656_v8 = vadd.f32 %v3461_v16, %v609_v14 }
 0x16a   :  { %v2371_v54 = vpop.eup %2370  ;;  %2382 = vrcp.f32 %v917_v2  ;;  %v949_v17 = vadd.f32 1.0, %v2369_v26  ;;  %v689_v59 = vpop.f32.mrf.mxu3  ;;  %v3660_v55 = vadd.f32 %v3449_v18, %v512_v61 }
 0x16b   :  { %v2373_v51 = vpop.eup %2372  ;;  %v1075_v13 = vmul.f32 %v2371_v54, %v3520_v27  ;;  %2384 = vrcp.f32 %v1430_v9  ;;  %v3663_v38 = vadd.f32 %v3461_v16, %v689_v59  ;;  %v434_v24 = vpop.f32.mrf.mxu0  ;;  %v819_v25 = vmul.f32 1.442695, %v727_v0 }
 0x16c   :  { %v2375_v28 = vpop.eup %2374  ;;  %v1588_v22 = vmul.f32 %v2373_v51, %v3528_v43  ;;  %2386 = vrcp.f32 %v949_v17  ;;  %v1240_v29 = vsub.f32 0.0, %v3656_v8  ;;  %v759_v27 = vsub.f32 0.0, %v3660_v55  ;;  %v611_v20 = vpop.f32.mrf.mxu1 }
 0x16d   :  { %v2377_v41 = vpop.eup %2376  ;;  %v1139_v63 = vpack.c.bf16 %v1075_v13, %v1075_v13  ;;  %v1044_v53 = vmul.f32 %v2375_v28, %v3555_v44  ;;  %2388 = vpow2.f32 %v1392_v36  ;;  %v1272_v23 = vsub.f32 0.0, %v3663_v38 }
 0x16e   :  { %v2379_v32 = vpop.eup %2378  ;;  %v1652_v40 = vpack.c.bf16 %v1588_v22, %v1588_v22  ;;  %v1557_v45 = vmul.f32 %v2377_v41, %v3558_v39  ;;  %2390 = vpow2.f32 %v817_v57  ;;  %v1332_v35 = vmul.f32 1.442695, %v1240_v29 }
 0x16f   :  { %v2381_v37 = vpop.eup %2380  ;;  %1204 = vst.msk [vmem:[%s3870_s5 + $0xe0] sm:$0xf] %vm1147_vm2, %v1139_v63  ;;  %v1108_v43 = vpack.c.bf16 %v1044_v53, %v1044_v53  ;;  %v1076_v47 = vmul.f32 %v2379_v32, %v3565_v12  ;;  %2392 = vpow2.f32 %v1330_v31  ;;  %v883_v44 = vmul.f32 1.442695, %v759_v27 }
 0x170   :  { %v2383_v36 = vpop.eup %2382  ;;  %1716 = vst.msk [vmem:[%s3871_s6 + $0xe0] sm:$0xf] %vm1147_vm2, %v1652_v40  ;;  %v1621_v39 = vpack.c.bf16 %v1557_v45, %v1557_v45  ;;  %v1589_v4 = vmul.f32 %v2381_v37, %v3568_v52  ;;  %2394 = vpow2.f32 %v881_v48  ;;  %v3687_v15 = vadd.f32 %v3449_v18, %v434_v24 }
 0x171   :  { %v2385_v6 = vpop.eup %2384  ;;  %1173 = vst.msk [vmem:[%s3870_s5 + $0x64] sm:$0xf] %vm1147_vm2, %v1108_v43  ;;  %v1140_v12 = vpack.c.bf16 %v1076_v47, %v1076_v47  ;;  %v1045_v14 = vmul.f32 %v2383_v36, %v3575_v42  ;;  %2396 = vpow2.f32 %v1394_v21  ;;  %v514_v49 = vpop.f32.mrf.mxu2  ;;  %v1396_v57 = vmul.f32 1.442695, %v1272_v23 }
 0x172   :  { %v2387_v5 = vpop.eup %2386  ;;  %1685 = vst.msk [vmem:[%s3871_s6 + $0x64] sm:$0xf] %vm1147_vm2, %v1621_v39  ;;  %v1653_v52 = vpack.c.bf16 %v1589_v4, %v1589_v4  ;;  %v1558_v46 = vmul.f32 %v2385_v6, %v3578_v11  ;;  %2398 = vpow2.f32 %v819_v25  ;;  %v691_v56 = vpop.f32.mrf.mxu3  ;;  %v728_v62 = vsub.f32 0.0, %v3687_v15 }
 0x173   :  { %v2389_v50 = vpop.eup %2388  ;;  %1205 = vst.msk [vmem:[%s3870_s5 + $0xe4] sm:$0xf] %vm1147_vm2, %v1140_v12  ;;  %v1109_v42 = vpack.c.bf16 %v1045_v14, %v1045_v14  ;;  %v1077_v1 = vmul.f32 %v2387_v5, %v3586_v58  ;;  %2400 = vpow2.f32 %v1332_v35  ;;  %v437_v7 = vpop.f32.mrf.mxu0  ;;  %v3705_v31 = vadd.f32 %v3461_v16, %v611_v20 }
 0x174   :  { %v2391_v34 = vpop.eup %2390  ;;  %1717 = vst.msk [vmem:[%s3871_s6 + $0xe4] sm:$0xf] %vm1147_vm2, %v1653_v52  ;;  %v1622_v11 = vpack.c.bf16 %v1558_v46, %v1558_v46  ;;  %v1462_v2 = vadd.f32 1.0, %v2389_v50  ;;  %2402 = vpow2.f32 %v883_v44  ;;  %v821_v48 = vmul.f32 1.442695, %v728_v62  ;;  %v614_v24 = vpop.f32.mrf.mxu1 }
 0x175   :  { %v2393_v26 = vpop.eup %2392  ;;  %1174 = vst.msk [vmem:[%s3870_s5 + $0x68] sm:$0xf] %vm1147_vm2, %v1109_v42  ;;  %v1141_v58 = vpack.c.bf16 %v1077_v1, %v1077_v1  ;;  %v918_v9 = vadd.f32 1.0, %v2391_v34  ;;  %2404 = vpow2.f32 %v1396_v57  ;;  %v1241_v54 = vsub.f32 0.0, %v3705_v31 }
 0x176   :  { %v2395_v21 = vpop.eup %2394  ;;  %1686 = vst.msk [vmem:[%s3871_s6 + $0x68] sm:$0xf] %vm1147_vm2, %v1622_v11  ;;  %2406 = vrcp.f32 %v1462_v2  ;;  %v1431_v61 = vadd.f32 1.0, %v2393_v26  ;;  %v3717_v17 = vadd.f32 %v3449_v18, %v514_v49  ;;  %v3724_v51 = vadd.f32 %v3461_v16, %v691_v56 }
 0x177   :  { %v2397_v0 = vpop.eup %2396  ;;  %1206 = vst.msk [vmem:[%s3870_s5 + $0xe8] sm:$0xf] %vm1147_vm2, %v1141_v58  ;;  %2408 = vrcp.f32 %v918_v9  ;;  %v950_v59 = vadd.f32 1.0, %v2395_v21  ;;  %v3727_v13 = vadd.f32 %v3449_v18, %v437_v7  ;;  %v1334_v25 = vmul.f32 1.442695, %v1241_v54 }
 0x178   :  { %v2399_v28 = vpop.eup %2398  ;;  %2410 = vrcp.f32 %v1431_v61  ;;  %v1463_v22 = vadd.f32 1.0, %v2397_v0  ;;  %v760_v29 = vsub.f32 0.0, %v3717_v17  ;;  %v1273_v53 = vsub.f32 0.0, %v3724_v51 }
 0x179   :  { %v2401_v41 = vpop.eup %2400  ;;  %2412 = vrcp.f32 %v950_v59  ;;  %v919_v63 = vadd.f32 1.0, %v2399_v28  ;;  %v729_v27 = vsub.f32 0.0, %v3727_v13  ;;  %v517_v20 = vpop.f32.mrf.mxu2  ;;  %v3733_v35 = vadd.f32 %v3461_v16, %v614_v24 }
 0x17a   :  { %v2403_v32 = vpop.eup %2402  ;;  %2414 = vrcp.f32 %v1463_v22  ;;  %v1432_v40 = vadd.f32 1.0, %v2401_v41  ;;  %v885_v45 = vmul.f32 1.442695, %v760_v29  ;;  %v694_v37 = vpop.f32.mrf.mxu3  ;;  %v1398_v44 = vmul.f32 1.442695, %v1273_v53 }
 0x17b   :  { %v2405_v43 = vpop.eup %2404  ;;  %2416 = vrcp.f32 %v919_v63  ;;  %v951_v47 = vadd.f32 1.0, %v2403_v32  ;;  %v823_v36 = vmul.f32 1.442695, %v729_v27  ;;  %v439_v39 = vpop.f32.mrf.mxu0  ;;  %v1242_v6 = vsub.f32 0.0, %v3733_v35 }
 0x17c   :  { %v2407_v4 = vpop.eup %2406  ;;  %2418 = vrcp.f32 %v1432_v40  ;;  %v1464_v23 = vadd.f32 1.0, %v2405_v43  ;;  %v3737_v12 = vadd.f32 %v3449_v18, %v517_v20  ;;  %v3741_v5 = vadd.f32 %v3461_v16, %v694_v37  ;;  %v616_v61 = vpop.f32.mrf.mxu1 }
 0x17d   :  { %v2409_v14 = vpop.eup %2408  ;;  %v1590_v49 = vmul.f32 %v2407_v4, %v3606_v60  ;;  %2420 = vrcp.f32 %v951_v47  ;;  %v3744_v52 = vadd.f32 %v3449_v18, %v439_v39  ;;  %v1336_v56 = vmul.f32 1.442695, %v1242_v6 }
 0x17e   :  { %v2411_v46 = vpop.eup %2410  ;;  %v1046_v57 = vmul.f32 %v2409_v14, %v3624_v10  ;;  %2422 = vrcp.f32 %v1464_v23  ;;  %v761_v50 = vsub.f32 0.0, %v3737_v12  ;;  %v1274_v60 = vsub.f32 0.0, %v3741_v5 }
 0x17f   :  { %v2413_v42 = vpop.eup %2412  ;;  %v1654_v1 = vpack.c.bf16 %v1590_v49, %v1590_v49  ;;  %v1559_v62 = vmul.f32 %v2411_v46, %v3636_v19  ;;  %2424 = vpow2.f32 %v821_v48  ;;  %v730_v21 = vsub.f32 0.0, %v3744_v52 }
 0x180   :  { %v2415_v7 = vpop.eup %2414  ;;  %v1110_v34 = vpack.c.bf16 %v1046_v57, %v1046_v57  ;;  %v1078_v11 = vmul.f32 %v2413_v42, %v3643_v30  ;;  %2426 = vpow2.f32 %v1334_v25  ;;  %v887_v2 = vmul.f32 1.442695, %v761_v50 }
 0x181   :  { %v2417_v26 = vpop.eup %2416  ;;  %1718 = vst.msk [vmem:[%s3871_s6 + $0xe8] sm:$0xf] %vm1147_vm2, %v1654_v1  ;;  %v1623_v10 = vpack.c.bf16 %v1559_v62, %v1559_v62  ;;  %v1591_v58 = vmul.f32 %v2415_v7, %v3646_v3  ;;  %2428 = vpow2.f32 %v885_v45  ;;  %v1400_v19 = vmul.f32 1.442695, %v1274_v60  ;;  %v519_v59 = vpop.f32.mrf.mxu2 }
 0x182   :  { %v2419_v9 = vpop.eup %2418  ;;  %1175 = vst.msk [vmem:[%s3870_s5 + $0x6c] sm:$0xf] %vm1147_vm2, %v1110_v34  ;;  %v1142_v30 = vpack.c.bf16 %v1078_v11, %v1078_v11  ;;  %v1047_v48 = vmul.f32 %v2417_v26, %v3652_v33  ;;  %2430 = vpow2.f32 %v1398_v44  ;;  %v825_v22 = vmul.f32 1.442695, %v730_v21  ;;  %v696_v63 = vpop.f32.mrf.mxu3 }
 0x183   :  { %v2421_v54 = vpop.eup %2420  ;;  %1687 = vst.msk [vmem:[%s3871_s6 + $0x6c] sm:$0xf] %vm1147_vm2, %v1623_v10  ;;  %v1655_v3 = vpack.c.bf16 %v1591_v58, %v1591_v58  ;;  %v1560_v0 = vmul.f32 %v2419_v9, %v3656_v8  ;;  %2432 = vpow2.f32 %v823_v36  ;;  %v3778_v41 = vadd.f32 %v3461_v16, %v616_v61 }
 0x184   :  { %v2423_v24 = vpop.eup %2422  ;;  %1207 = vst.msk [vmem:[%s3870_s5 + $0xec] sm:$0xf] %vm1147_vm2, %v1142_v30  ;;  %v1111_v33 = vpack.c.bf16 %v1047_v48, %v1047_v48  ;;  %v1079_v28 = vmul.f32 %v2421_v54, %v3660_v55  ;;  %2434 = vpow2.f32 %v1336_v56  ;;  %v3785_v20 = vadd.f32 %v3449_v18, %v519_v59 }
 0x185   :  { %v2425_v25 = vpop.eup %2424  ;;  %1719 = vst.msk [vmem:[%s3871_s6 + $0xec] sm:$0xf] %vm1147_vm2, %v1655_v3  ;;  %v1624_v8 = vpack.c.bf16 %v1560_v0, %v1560_v0  ;;  %v1592_v29 = vmul.f32 %v2423_v24, %v3663_v38  ;;  %2436 = vpow2.f32 %v887_v2  ;;  %v3796_v18 = vadd.f32 %v3461_v16, %v696_v63 }
 0x186   :  { %v2427_v53 = vpop.eup %2426  ;;  %1176 = vst.msk [vmem:[%s3870_s5 + $0x70] sm:$0xf] %vm1147_vm2, %v1111_v33  ;;  %v1143_v55 = vpack.c.bf16 %v1079_v28, %v1079_v28  ;;  %v920_v27 = vadd.f32 1.0, %v2425_v25  ;;  %2438 = vpow2.f32 %v1400_v19  ;;  %v1243_v44 = vsub.f32 0.0, %v3778_v41 }
 0x187   :  { %v2429_v32 = vpop.eup %2428  ;;  %1688 = vst.msk [vmem:[%s3871_s6 + $0x70] sm:$0xf] %vm1147_vm2, %v1624_v8  ;;  %v1656_v38 = vpack.c.bf16 %v1592_v29, %v1592_v29  ;;  %v1433_v40 = vadd.f32 1.0, %v2427_v53  ;;  %2440 = vpow2.f32 %v825_v22  ;;  %v762_v4 = vsub.f32 0.0, %v3785_v20 }
 0x188   :  { %v2431_v45 = vpop.eup %2430  ;;  %1208 = vst.msk [vmem:[%s3870_s5 + $0xf0] sm:$0xf] %vm1147_vm2, %v1143_v55  ;;  %2442 = vrcp.f32 %v920_v27  ;;  %v952_v37 = vadd.f32 1.0, %v2429_v32  ;;  %v1275_v16 = vsub.f32 0.0, %v3796_v18  ;;  %v1338_v56 = vmul.f32 1.442695, %v1243_v44 }
 0x189   :  { %v2433_v43 = vpop.eup %2432  ;;  %1720 = vst.msk [vmem:[%s3871_s6 + $0xf0] sm:$0xf] %vm1147_vm2, %v1656_v38  ;;  %2444 = vrcp.f32 %v1433_v40  ;;  %v1465_v47 = vadd.f32 1.0, %v2431_v45  ;;  %v889_v1 = vmul.f32 1.442695, %v762_v4 }
 0x18a   :  { %v2435_v36 = vpop.eup %2434  ;;  %2446 = vrcp.f32 %v952_v37  ;;  %v921_v39 = vadd.f32 1.0, %v2433_v43  ;;  %v1402_v7 = vmul.f32 1.442695, %v1275_v16 }
 0x18b   :  { %v2437_v23 = vpop.eup %2436  ;;  %2448 = vrcp.f32 %v1465_v47  ;;  %v1434_v6 = vadd.f32 1.0, %v2435_v36 }
 0x18c   :  { %v2439_v14 = vpop.eup %2438  ;;  %2450 = vrcp.f32 %v921_v39  ;;  %v953_v49 = vadd.f32 1.0, %v2437_v23 }
 0x18d   :  { %v2441_v46 = vpop.eup %2440  ;;  %2452 = vrcp.f32 %v1434_v6  ;;  %v1466_v57 = vadd.f32 1.0, %v2439_v14 }
 0x18e   :  { %v2443_v50 = vpop.eup %2442  ;;  %2454 = vrcp.f32 %v953_v49  ;;  %v922_v42 = vadd.f32 1.0, %v2441_v46 }
 0x18f   :  { %v2445_v62 = vpop.eup %2444  ;;  %v1048_v60 = vmul.f32 %v2443_v50, %v3687_v15  ;;  %2456 = vrcp.f32 %v1466_v57 }
 0x190   :  { %v2447_v34 = vpop.eup %2446  ;;  %v1561_v11 = vmul.f32 %v2445_v62, %v3705_v31  ;;  %2458 = vrcp.f32 %v922_v42 }
 0x191   :  { %v2449_v2 = vpop.eup %2448  ;;  %v1112_v26 = vpack.c.bf16 %v1048_v60, %v1048_v60  ;;  %v1080_v10 = vmul.f32 %v2447_v34, %v3717_v17  ;;  %2460 = vpow2.f32 %v1338_v56 }
 0x192   :  { %v2451_v58 = vpop.eup %2450  ;;  %v1625_v19 = vpack.c.bf16 %v1561_v11, %v1561_v11  ;;  %v1593_v9 = vmul.f32 %v2449_v2, %v3724_v51  ;;  %2462 = vpow2.f32 %v889_v1 }
 0x193   :  { %v2453_v30 = vpop.eup %2452  ;;  %1177 = vst.msk [vmem:[%s3870_s5 + $0x74] sm:$0xf] %vm1147_vm2, %v1112_v26  ;;  %v1144_v15 = vpack.c.bf16 %v1080_v10, %v1080_v10  ;;  %v1049_v31 = vmul.f32 %v2451_v58, %v3727_v13  ;;  %2464 = vpow2.f32 %v1402_v7 }
 0x194   :  { %v2455_v48 = vpop.eup %2454  ;;  %1689 = vst.msk [vmem:[%s3871_s6 + $0x74] sm:$0xf] %vm1147_vm2, %v1625_v19  ;;  %v1657_v17 = vpack.c.bf16 %v1593_v9, %v1593_v9  ;;  %v1562_v51 = vmul.f32 %v2453_v30, %v3733_v35 }
 0x195   :  { %v2457_v21 = vpop.eup %2456  ;;  %1209 = vst.msk [vmem:[%s3870_s5 + $0xf4] sm:$0xf] %vm1147_vm2, %v1144_v15  ;;  %v1113_v61 = vpack.c.bf16 %v1049_v31, %v1049_v31  ;;  %v1081_v54 = vmul.f32 %v2455_v48, %v3737_v12 }
 0x196   :  { %v2459_v13 = vpop.eup %2458  ;;  %1721 = vst.msk [vmem:[%s3871_s6 + $0xf4] sm:$0xf] %vm1147_vm2, %v1657_v17  ;;  %v1626_v3 = vpack.c.bf16 %v1562_v51, %v1562_v51  ;;  %v1594_v0 = vmul.f32 %v2457_v21, %v3741_v5 }
 0x197   :  { %v2461_v59 = vpop.eup %2460  ;;  %1178 = vst.msk [vmem:[%s3870_s5 + $0x78] sm:$0xf] %vm1147_vm2, %v1113_v61  ;;  %v1145_v35 = vpack.c.bf16 %v1081_v54, %v1081_v54  ;;  %v1050_v24 = vmul.f32 %v2459_v13, %v3744_v52 }
 0x198   :  { %v2463_v33 = vpop.eup %2462  ;;  %1690 = vst.msk [vmem:[%s3871_s6 + $0x78] sm:$0xf] %vm1147_vm2, %v1626_v3  ;;  %v1658_v12 = vpack.c.bf16 %v1594_v0, %v1594_v0  ;;  %v1435_v28 = vadd.f32 1.0, %v2461_v59 }
 0x199   :  { %v2465_v22 = vpop.eup %2464  ;;  %1210 = vst.msk [vmem:[%s3870_s5 + $0xf8] sm:$0xf] %vm1147_vm2, %v1145_v35  ;;  %v1114_v5 = vpack.c.bf16 %v1050_v24, %v1050_v24  ;;  %v954_v25 = vadd.f32 1.0, %v2463_v33 }
 0x19a   :  { %1722 = vst.msk [vmem:[%s3871_s6 + $0xf8] sm:$0xf] %vm1147_vm2, %v1658_v12  ;;  %2466 = vrcp.f32 %v1435_v28  ;;  %v1467_v52 = vadd.f32 1.0, %v2465_v22 }
 0x19b   :  { %1179 = vst.msk [vmem:[%s3870_s5 + $0x7c] sm:$0xf] %vm1147_vm2, %v1114_v5  ;;  %2468 = vrcp.f32 %v954_v25 }
 0x19c   :  { %2470 = vrcp.f32 %v1467_v52 }
 0x1a0   :  { %v2467_v8 = vpop.eup %2466 }
 0x1a1   :  { %v2469_v29 = vpop.eup %2468  ;;  %v1563_v63 = vmul.f32 %v2467_v8, %v3778_v41 }
 0x1a2   :  { %v2471_v53 = vpop.eup %2470  ;;  %v1082_v55 = vmul.f32 %v2469_v29, %v3785_v20 }
 0x1a3   :  { %v1627_v27 = vpack.c.bf16 %v1563_v63, %v1563_v63  ;;  %v1595_v32 = vmul.f32 %v2471_v53, %v3796_v18 }
 0x1a4   :  { %v1146_v38 = vpack.c.bf16 %v1082_v55, %v1082_v55 }
 0x1a5   :  { %1691 = vst.msk [vmem:[%s3871_s6 + $0x7c] sm:$0xf] %vm1147_vm2, %v1627_v27  ;;  %v1659_v40 = vpack.c.bf16 %v1595_v32, %v1595_v32 }
 0x1a6   :  { %1211 = vst.msk [vmem:[%s3870_s5 + $0xfc] sm:$0xf] %vm1147_vm2, %v1146_v38 }
 0x1a7   :  { %1723 = vst.msk [vmem:[%s3871_s6 + $0xfc] sm:$0xf] %vm1147_vm2, %v1659_v40 }

// kernel: _lambda_.7
= control target key start
LH: loop header
LB: loop body
LE: loop exit
PB: predicated region body
PF: predicated region fallthrough
CT: control target
= control target key end

     0   :  { %vm414_vm0 = vcmask 1041408   ;;  %vm317_vm1 = vcmask 31744   ;;  %vm2856_vm6 = vcmask 64512   ;;  %s5547_s4 = inlined_call_operand.vmem [shape: bf16[4,8], index: 4, kind: input, shape index: {}]   ;;  %s5548_s3 = inlined_call_operand.vmem [shape: bf16[4,8], index: 3, kind: input, shape index: {}]   ;;  %s5549_s5 = inlined_call_operand.vmem [shape: bf16[4,8], index: 5, kind: input, shape index: {}]   ;;  %s5550_s1 = inlined_call_operand.vmem [shape: bf16[512,4], index: 1, kind: input, shape index: {}]   ;;  %s5551_s0 = inlined_call_operand.vmem [shape: bf16[512,4], index: 0, kind: input, shape index: {}]   ;;  %s5552_s2 = inlined_call_operand.vmem [shape: bf16[512,4], index: 2, kind: input, shape index: {}]   ;;  %s5553_s6 = inlined_call_operand.vmem [shape: f32[1,8], index: 6, kind: input, shape index: {}]   ;;  %s5554_s7 = inlined_call_operand.vmem [shape: f32[512,8], index: 7, kind: output, shape index: {}]  }
   0x1   :  { %v156_v0 = vld [vmem:[%s5547_s4] sm:$0x3]  ;;  %v3438_v10 = vld [vmem:[%s5550_s1 + $0x8] sm:$0xff]  ;;  %v3439_v14 = vld [vmem:[%s5550_s1 + $0x10] sm:$0xff] }
   0x2   :  { %v91_v1 = vld [vmem:[%s5548_s3] sm:$0x3]  ;;  %v416_v3 = vsel %vm414_vm0, %v156_v0, 0  ;;  %v3462_v11 = vld [vmem:[%s5550_s1 + $0xc8] sm:$0xff]  ;;  %v3463_v15 = vld [vmem:[%s5550_s1 + $0xd0] sm:$0xff] }
   0x3   :  { %v1079_v2 = vld [vmem:[%s5549_s5] sm:$0x3]  ;;  %v844_v4 = vsel %vm414_vm0, %v91_v1, 0  ;;  %425 = vmatpush.bf16.msra.mxu0 %v416_v3  ;;  %3501 = vmatpush.bf16.msra.mxu3 %v416_v3  ;;  %v3406_v12 = vld [vmem:[%s5551_s0 + $0x8] sm:$0xff]  ;;  %v3407_v16 = vld [vmem:[%s5551_s0 + $0x10] sm:$0xff] }
   0x4   :  { %v1337_v5 = vsel %vm414_vm0, %v1079_v2, 0  ;;  %v3437_v6 = vld [vmem:[%s5550_s1] sm:$0xff]  ;;  %853 = vmatpush.bf16.msra.mxu1 %v844_v4  ;;  %v3470_v13 = vld [vmem:[%s5552_s2 + $0x8] sm:$0xff]  ;;  %v3471_v17 = vld [vmem:[%s5552_s2 + $0x10] sm:$0xff] }
   0x5   :  { %v3461_v7 = vld [vmem:[%s5550_s1 + $0xc0] sm:$0xff]  ;;  %1346 = vmatpush.bf16.msra.mxu2 %v1337_v5  ;;  %v3440_v18 = vld [vmem:[%s5550_s1 + $0x18] sm:$0xff]  ;;  %v3442_v26 = vld [vmem:[%s5550_s1 + $0x28] sm:$0xff] }
   0x6   :  { %v3405_v8 = vld [vmem:[%s5551_s0] sm:$0xff]  ;;  %3053 = vmatmul.msk.bf16.vlgmr.msra.gmra.mxu0 %vm317_vm1, %v3437_v6  ;;  %3077 = vmatmul.msk.bf16.vlgmr.msra.gmra.mxu3 %vm317_vm1, %v3461_v7  ;;  %v3464_v19 = vld [vmem:[%s5550_s1 + $0xd8] sm:$0xff]  ;;  %v3466_v27 = vld [vmem:[%s5550_s1 + $0xe8] sm:$0xff] }
   0x7   :  { %v3469_v9 = vld [vmem:[%s5552_s2] sm:$0xff]  ;;  %3502 = vmatpush.bf16.msrb.mxu3 %v844_v4  ;;  %3213 = vmatmul.msk.bf16.vlgmr.msra.gmra.mxu1 %vm317_vm1, %v3405_v8  ;;  %v3408_v20 = vld [vmem:[%s5551_s0 + $0x18] sm:$0xff]  ;;  %v3410_v28 = vld [vmem:[%s5551_s0 + $0x28] sm:$0xff] }
   0x8   :  { %3373 = vmatmul.msk.bf16.vlgmr.msra.gmra.mxu2 %vm317_vm1, %v3469_v9  ;;  %v3472_v21 = vld [vmem:[%s5552_s2 + $0x18] sm:$0xff]  ;;  %v3441_v22 = vld [vmem:[%s5550_s1 + $0x20] sm:$0xff]  ;;  %v3474_v29 = vld [vmem:[%s5552_s2 + $0x28] sm:$0xff] }
   0x9   :  { %v3465_v23 = vld [vmem:[%s5550_s1 + $0xe0] sm:$0xff]  ;;  %v3443_v30 = vld [vmem:[%s5550_s1 + $0x30] sm:$0xff]  ;;  %v3444_v34 = vld [vmem:[%s5550_s1 + $0x38] sm:$0xff] }
   0xa   :  { %v3409_v24 = vld [vmem:[%s5551_s0 + $0x20] sm:$0xff]  ;;  %v3467_v31 = vld [vmem:[%s5550_s1 + $0xf0] sm:$0xff]  ;;  %v3468_v35 = vld [vmem:[%s5550_s1 + $0xf8] sm:$0xff] }
   0xb   :  { %3503 = vmatpush.bf16.msra.mxu3 %v1337_v5  ;;  %v3473_v25 = vld [vmem:[%s5552_s2 + $0x20] sm:$0xff]  ;;  %v3411_v32 = vld [vmem:[%s5551_s0 + $0x30] sm:$0xff]  ;;  %v3412_v36 = vld [vmem:[%s5551_s0 + $0x38] sm:$0xff] }
   0xc   :  { %v3475_v33 = vld [vmem:[%s5552_s2 + $0x30] sm:$0xff]  ;;  %v3476_v37 = vld [vmem:[%s5552_s2 + $0x38] sm:$0xff]  ;;  %v3445_v38 = vld [vmem:[%s5550_s1 + $0x40] sm:$0xff] }
   0xd   :  { %v3429_v39 = vld [vmem:[%s5551_s0 + $0xc0] sm:$0xff]  ;;  %v3446_v57 = vld [vmem:[%s5550_s1 + $0x48] sm:$0xff] }
   0xe   :  { %v3413_v41 = vld [vmem:[%s5551_s0 + $0x40] sm:$0xff]  ;;  %v3430_v58 = vld [vmem:[%s5551_s0 + $0xc8] sm:$0xff] }
   0xf   :  { %v3477_v42 = vld [vmem:[%s5552_s2 + $0x40] sm:$0xff]  ;;  %v3414_v61 = vld [vmem:[%s5551_s0 + $0x48] sm:$0xff] }
  0x10   :  { %v3962_v46 = vld [vmem:[%s5553_s6] ss:$0 sm:$0xff]  ;;  %v3478_v62 = vld [vmem:[%s5552_s2 + $0x48] sm:$0xff] }
  0x16   :  { %3054 = vmatmul.msk.bf16.gmra.mxu0 %vm317_vm1, %v3438_v10  ;;  %3078 = vmatmul.msk.bf16.gmra.mxu3 %vm317_vm1, %v3462_v11 }
  0x17   :  { %3214 = vmatmul.msk.bf16.gmra.mxu1 %vm317_vm1, %v3406_v12 }
  0x18   :  { %3374 = vmatmul.msk.bf16.gmra.mxu2 %vm317_vm1, %v3470_v13 }
  0x26   :  { %3055 = vmatmul.msk.bf16.gmra.mxu0 %vm317_vm1, %v3439_v14  ;;  %3079 = vmatmul.msk.bf16.gmra.mxu3 %vm317_vm1, %v3463_v15 }
  0x27   :  { %3215 = vmatmul.msk.bf16.gmra.mxu1 %vm317_vm1, %v3407_v16 }
  0x28   :  { %3375 = vmatmul.msk.bf16.gmra.mxu2 %vm317_vm1, %v3471_v17 }
  0x36   :  { %3056 = vmatmul.msk.bf16.gmra.mxu0 %vm317_vm1, %v3440_v18  ;;  %3080 = vmatmul.msk.bf16.gmra.mxu3 %vm317_vm1, %v3464_v19 }
  0x37   :  { %3216 = vmatmul.msk.bf16.gmra.mxu1 %vm317_vm1, %v3408_v20  ;;  %v3447_v20 = vld [vmem:[%s5550_s1 + $0x50] sm:$0xff] }
  0x38   :  { %3376 = vmatmul.msk.bf16.gmra.mxu2 %vm317_vm1, %v3472_v21  ;;  %v3431_v21 = vld [vmem:[%s5551_s0 + $0xd0] sm:$0xff] }
  0x46   :  { %3057 = vmatmul.msk.bf16.gmra.mxu0 %vm317_vm1, %v3441_v22  ;;  %3081 = vmatmul.msk.bf16.gmra.mxu3 %vm317_vm1, %v3465_v23 }
  0x47   :  { %3217 = vmatmul.msk.bf16.gmra.mxu1 %vm317_vm1, %v3409_v24 }
  0x48   :  { %3377 = vmatmul.msk.bf16.gmra.mxu2 %vm317_vm1, %v3473_v25  ;;  %v3415_v25 = vld [vmem:[%s5551_s0 + $0x50] sm:$0xff] }
  0x56   :  { %3058 = vmatmul.msk.bf16.gmra.mxu0 %vm317_vm1, %v3442_v26  ;;  %3082 = vmatmul.msk.bf16.gmra.mxu3 %vm317_vm1, %v3466_v27  ;;  %v3479_v26 = vld [vmem:[%s5552_s2 + $0x50] sm:$0xff] }
  0x57   :  { %3218 = vmatmul.msk.bf16.gmra.mxu1 %vm317_vm1, %v3410_v28 }
  0x58   :  { %3378 = vmatmul.msk.bf16.gmra.mxu2 %vm317_vm1, %v3474_v29 }
  0x66   :  { %3059 = vmatmul.msk.bf16.gmra.mxu0 %vm317_vm1, %v3443_v30  ;;  %3083 = vmatmul.msk.bf16.gmra.mxu3 %vm317_vm1, %v3467_v31 }
  0x67   :  { %3219 = vmatmul.msk.bf16.gmra.mxu1 %vm317_vm1, %v3411_v32 }
  0x68   :  { %3379 = vmatmul.msk.bf16.gmra.mxu2 %vm317_vm1, %v3475_v33 }
  0x76   :  { %3060 = vmatmul.msk.bf16.gmra.mxu0 %vm317_vm1, %v3444_v34  ;;  %3084 = vmatmul.msk.bf16.gmra.mxu3 %vm317_vm1, %v3468_v35 }
  0x77   :  { %3220 = vmatmul.msk.bf16.gmra.mxu1 %vm317_vm1, %v3412_v36 }
  0x78   :  { %3380 = vmatmul.msk.bf16.gmra.mxu2 %vm317_vm1, %v3476_v37 }
  0x83   :  { %v427_v40 = vpop.f32.mrf.mxu0 }
  0x84   :  { %v855_v43 = vpop.f32.mrf.mxu1 }
  0x85   :  { %v856_v44 = vadd.f32 %v855_v43, %v427_v40 }
  0x86   :  { %3061 = vmatmul.msk.bf16.gmra.mxu0 %vm317_vm1, %v3445_v38  ;;  %3237 = vmatmul.msk.bf16.vlgmr.msrb.gmra.mxu3 %vm317_vm1, %v3429_v39 }
  0x87   :  { %3221 = vmatmul.msk.bf16.gmra.mxu1 %vm317_vm1, %v3413_v41 }
  0x88   :  { %3381 = vmatmul.msk.bf16.gmra.mxu2 %vm317_vm1, %v3477_v42 }
  0x89   :  { %v3957_v45 = vpop.f32.mrf.mxu3 }
  0x8b   :  { %v1348_v47 = vpop.f32.mrf.mxu2  ;;  %v429_v49 = vpop.f32.mrf.mxu0 }
  0x8c   :  { %v1508_v48 = vadd.f32 %v1348_v47, %v856_v44  ;;  %v857_v50 = vpop.f32.mrf.mxu1 }
  0x8d   :  { %v858_v54 = vadd.f32 %v857_v50, %v429_v49 }
  0x8e   :  { %v3965_v51 = vadd.f32 %v3962_v46, %v1508_v48 }
  0x90   :  { %v1640_v52 = vsub.f32 0.0, %v3965_v51 }
  0x91   :  { %v3968_v55 = vpop.f32.mrf.mxu3 }
  0x92   :  { %v1704_v53 = vmul.f32 1.442695, %v1640_v52 }
  0x93   :  { %v1350_v56 = vpop.f32.mrf.mxu2  ;;  %v432_v60 = vpop.f32.mrf.mxu0 }
  0x94   :  { %3505 = vpow2.f32 %v1704_v53  ;;  %v1509_v59 = vadd.f32 %v1350_v56, %v858_v54  ;;  %v860_v63 = vpop.f32.mrf.mxu1 }
  0x95   :  { %v861_v2 = vadd.f32 %v860_v63, %v432_v60 }
  0x96   :  { %v3983_v0 = vadd.f32 %v3962_v46, %v1509_v59  ;;  %3062 = vmatmul.msk.bf16.gmra.mxu0 %vm317_vm1, %v3446_v57  ;;  %3238 = vmatmul.msk.bf16.gmra.mxu3 %vm317_vm1, %v3430_v58 }
  0x97   :  { %3222 = vmatmul.msk.bf16.gmra.mxu1 %vm317_vm1, %v3414_v61 }
  0x98   :  { %v1641_v1 = vsub.f32 0.0, %v3983_v0  ;;  %3382 = vmatmul.msk.bf16.gmra.mxu2 %vm317_vm1, %v3478_v62 }
  0x99   :  { %v3990_v5 = vpop.f32.mrf.mxu3 }
  0x9a   :  { %v3506_v3 = vpop.eup %3505  ;;  %v1706_v4 = vmul.f32 1.442695, %v1641_v1 }
  0x9b   :  { %v1832_v6 = vadd.f32 1.0, %v3506_v3  ;;  %v1353_v7 = vpop.f32.mrf.mxu2  ;;  %v434_v9 = vpop.f32.mrf.mxu0  ;;  %v3448_v3 = vld [vmem:[%s5550_s1 + $0x58] sm:$0xff] }
  0x9c   :  { %3507 = vpow2.f32 %v1706_v4  ;;  %v1510_v8 = vadd.f32 %v1353_v7, %v861_v2  ;;  %v862_v10 = vpop.f32.mrf.mxu1  ;;  %v3432_v4 = vld [vmem:[%s5551_s0 + $0xd8] sm:$0xff] }
  0x9d   :  { %3509 = vrcp.f32 %v1832_v6  ;;  %v863_v15 = vadd.f32 %v862_v10, %v434_v9  ;;  %v1907_v30 = vand.u32 2147483648, %v1832_v6  ;;  %v1905_v32 = vand.u32 2147483647, %v1832_v6  ;;  %v3416_v10 = vld [vmem:[%s5551_s0 + $0x58] sm:$0xff] }
  0x9e   :  { %v3993_v11 = vadd.f32 %v3962_v46, %v1510_v8  ;;  %vm1901_vm3 = vweird.f32 %v1832_v6 }
  0x9f   :  { %v1908_v40 = vor.u32 1.1754944e-38, %v1907_v30  ;;  %vm1906_vm5 = vcmp.eq.f32.partialorder %v1905_v32, 8.507059e+37 }
  0xa0   :  { %v1642_v12 = vsub.f32 0.0, %v3993_v11 }
  0xa1   :  { %v3996_v16 = vpop.f32.mrf.mxu3 }
  0xa2   :  { %v3508_v13 = vpop.eup %3507  ;;  %v1708_v14 = vmul.f32 1.442695, %v1642_v12  ;;  %v3480_v12 = vld [vmem:[%s5552_s2 + $0x58] sm:$0xff] }
  0xa3   :  { %v3510_v17 = vpop.eup %3509  ;;  %v3998_v18 = vadd.f32 1.0, %v3508_v13  ;;  %v1355_v19 = vpop.f32.mrf.mxu2 }
  0xa4   :  { %v1897_v22 = vmul.f32 %v3510_v17, %v1832_v6  ;;  %3511 = vpow2.f32 %v1708_v14  ;;  %v1511_v23 = vadd.f32 %v1355_v19, %v863_v15  ;;  %v437_v24 = vpop.f32.mrf.mxu0  ;;  %v865_v27 = vpop.f32.mrf.mxu1  ;;  %vm1902_vm2 = vweird.f32 %v3510_v17 }
  0xa5   :  { %3513 = vrcp.f32 %v3998_v18  ;;  %v866_v37 = vadd.f32 %v865_v27, %v437_v24  ;;  %vm1903_vm4 = vmor %vm1901_vm3, %vm1902_vm2  ;;  %v1922_v54 = vand.u32 2147483648, %v3998_v18  ;;  %v1920_v57 = vand.u32 2147483647, %v3998_v18 }
  0xa6   :  { %v1898_v28 = vsub.f32 1.0, %v1897_v22  ;;  %v4014_v29 = vadd.f32 %v3962_v46, %v1511_v23  ;;  %3063 = vmatmul.msk.bf16.gmra.mxu0 %vm317_vm1, %v3447_v20  ;;  %3239 = vmatmul.msk.bf16.gmra.mxu3 %vm317_vm1, %v3431_v21  ;;  %vm1916_vm8 = vweird.f32 %v3998_v18 }
  0xa7   :  { %3223 = vmatmul.msk.bf16.gmra.mxu1 %vm317_vm1, %v3415_v25  ;;  %v1923_v63 = vor.u32 1.1754944e-38, %v1922_v54  ;;  %vm1921_vm10 = vcmp.eq.f32.partialorder %v1920_v57, 8.507059e+37  ;;  %v3449_v57 = vld [vmem:[%s5550_s1 + $0x60] sm:$0xff] }
  0xa8   :  { %v1899_v31 = vmul.f32 %v3510_v17, %v1898_v28  ;;  %v1643_v33 = vsub.f32 0.0, %v4014_v29  ;;  %3383 = vmatmul.msk.bf16.gmra.mxu2 %vm317_vm1, %v3479_v26 }
  0xa9   :  { %v4021_v38 = vpop.f32.mrf.mxu3 }
  0xaa   :  { %v3512_v34 = vpop.eup %3511  ;;  %v1900_v35 = vadd.f32 %v3510_v17, %v1899_v31  ;;  %v1710_v36 = vmul.f32 1.442695, %v1643_v33 }
  0xab   :  { %v3514_v39 = vpop.eup %3513  ;;  %v4023_v41 = vadd.f32 1.0, %v3512_v34  ;;  %v1358_v42 = vpop.f32.mrf.mxu2 }
  0xac   :  { %v1904_v43 = vsel %vm1903_vm4, %v3510_v17, %v1900_v35  ;;  %v1912_v44 = vmul.f32 %v3514_v39, %v3998_v18  ;;  %3515 = vpow2.f32 %v1710_v36  ;;  %v439_v47 = vpop.f32.mrf.mxu0  ;;  %v867_v49 = vpop.f32.mrf.mxu1  ;;  %v1512_v53 = vadd.f32 %v1358_v42, %v866_v37 }
  0xad   :  { %v1909_v48 = vsel %vm1906_vm5, %v1908_v40, %v1904_v43  ;;  %3517 = vrcp.f32 %v4023_v41  ;;  %vm1917_vm7 = vweird.f32 %v3514_v39  ;;  %v868_v14 = vadd.f32 %v867_v49, %v439_v47 }
  0xae   :  { %v1910_v50 = vmul.f32 %v1909_v48, %v3965_v51  ;;  %v1913_v52 = vsub.f32 1.0, %v1912_v44  ;;  %v4035_v58 = vadd.f32 %v3962_v46, %v1512_v53  ;;  %vm1918_vm9 = vmor %vm1916_vm8, %vm1917_vm7  ;;  %v1937_v19 = vand.u32 2147483648, %v4023_v41 }
  0xaf   :  { %v1935_v22 = vand.u32 2147483647, %v4023_v41  ;;  %vm1931_vm12 = vweird.f32 %v4023_v41 }
  0xb0   :  { %2857 = vst.msk [vmem:[%s5554_s7] sm:$0xff] %vm2856_vm6, %v1910_v50  ;;  %v1914_v56 = vmul.f32 %v3514_v39, %v1913_v52  ;;  %v1644_v51 = vsub.f32 0.0, %v4035_v58  ;;  %v1938_v27 = vor.u32 1.1754944e-38, %v1937_v19 }
  0xb1   :  { %v4039_v61 = vpop.f32.mrf.mxu3  ;;  %vm1936_vm14 = vcmp.eq.f32.partialorder %v1935_v22, 8.507059e+37 }
  0xb2   :  { %v3516_v59 = vpop.eup %3515  ;;  %v1915_v60 = vadd.f32 %v3514_v39, %v1914_v56  ;;  %v1712_v8 = vmul.f32 1.442695, %v1644_v51 }
  0xb3   :  { %v3518_v62 = vpop.eup %3517  ;;  %v4041_v1 = vadd.f32 1.0, %v3516_v59  ;;  %v1360_v2 = vpop.f32.mrf.mxu2  ;;  %v3433_v59 = vld [vmem:[%s5551_s0 + $0xe0] sm:$0xff] }
  0xb4   :  { %v1919_v6 = vsel %vm1918_vm9, %v3514_v39, %v1915_v60  ;;  %v1927_v7 = vmul.f32 %v3518_v62, %v4023_v41  ;;  %v442_v9 = vpop.f32.mrf.mxu0  ;;  %v870_v15 = vpop.f32.mrf.mxu1  ;;  %v1513_v20 = vadd.f32 %v1360_v2, %v868_v14  ;;  %vm1932_vm11 = vweird.f32 %v3518_v62 }
  0xb5   :  { %v1924_v13 = vsel %vm1921_vm10, %v1923_v63, %v1919_v6  ;;  %3519 = vrcp.f32 %v4041_v1  ;;  %v871_v23 = vadd.f32 %v870_v15, %v442_v9  ;;  %vm1933_vm13 = vmor %vm1931_vm12, %vm1932_vm11  ;;  %v1950_v44 = vand.u32 2147483647, %v4041_v1  ;;  %v3417_v63 = vld [vmem:[%s5551_s0 + $0x60] sm:$0xff] }
  0xb6   :  { %v1925_v17 = vmul.f32 %v1924_v13, %v3983_v0  ;;  %v1928_v18 = vsub.f32 1.0, %v1927_v7  ;;  %3521 = vpow2.f32 %v1712_v8  ;;  %3064 = vmatmul.msk.bf16.gmra.mxu0 %vm317_vm1, %v3448_v3  ;;  %3240 = vmatmul.msk.bf16.gmra.mxu3 %vm317_vm1, %v3432_v4  ;;  %v4069_v0 = vadd.f32 %v3962_v46, %v1513_v20 }
  0xb7   :  { %3224 = vmatmul.msk.bf16.gmra.mxu1 %vm317_vm1, %v3416_v10  ;;  %v1952_v47 = vand.u32 2147483648, %v4041_v1  ;;  %vm1946_vm0 = vweird.f32 %v4041_v1  ;;  %vm1951_vm3 = vcmp.eq.f32.partialorder %v1950_v44, 8.507059e+37 }
  0xb8   :  { %2858 = vst.msk [vmem:[%s5554_s7 + $0x8] sm:$0xff] %vm2856_vm6, %v1925_v17  ;;  %v1929_v21 = vmul.f32 %v3518_v62, %v1928_v18  ;;  %3384 = vmatmul.msk.bf16.gmra.mxu2 %vm317_vm1, %v3480_v12  ;;  %v1645_v28 = vsub.f32 0.0, %v4069_v0 }
  0xb9   :  { %v4072_v25 = vpop.f32.mrf.mxu3  ;;  %v1953_v54 = vor.u32 1.1754944e-38, %v1952_v47 }
  0xba   :  { %v1930_v24 = vadd.f32 %v3518_v62, %v1929_v21  ;;  %v1714_v39 = vmul.f32 1.442695, %v1645_v28 }
  0xbb   :  { %v3520_v26 = vpop.eup %3519  ;;  %v1363_v30 = vpop.f32.mrf.mxu2 }
  0xbc   :  { %v3522_v31 = vpop.eup %3521  ;;  %v1934_v32 = vsel %vm1933_vm13, %v3518_v62, %v1930_v24  ;;  %v1942_v33 = vmul.f32 %v3520_v26, %v4041_v1  ;;  %v1514_v34 = vadd.f32 %v1363_v30, %v871_v23  ;;  %v444_v35 = vpop.f32.mrf.mxu0  ;;  %vm1947_vm15 = vweird.f32 %v3520_v26  ;;  %v3481_v1 = vld [vmem:[%s5552_s2 + $0x60] sm:$0xff] }
  0xbd   :  { %v1939_v36 = vsel %vm1936_vm14, %v1938_v27, %v1934_v32  ;;  %v4076_v37 = vadd.f32 1.0, %v3522_v31  ;;  %v872_v40 = vpop.f32.mrf.mxu1  ;;  %vm1948_vm2 = vmor %vm1946_vm0, %vm1947_vm15 }
  0xbe   :  { %v1940_v41 = vmul.f32 %v1939_v36, %v3993_v11  ;;  %v1943_v42 = vsub.f32 1.0, %v1942_v33  ;;  %v4080_v43 = vadd.f32 %v3962_v46, %v1514_v34  ;;  %v873_v52 = vadd.f32 %v872_v40, %v444_v35 }
  0xbf   :  { %3523 = vrcp.f32 %v4076_v37  ;;  %v1967_v14 = vand.u32 2147483648, %v4076_v37  ;;  %v1965_v18 = vand.u32 2147483647, %v4076_v37  ;;  %vm1961_vm5 = vweird.f32 %v4076_v37 }
  0xc0   :  { %2859 = vst.msk [vmem:[%s5554_s7 + $0x10] sm:$0xff] %vm2856_vm6, %v1940_v41  ;;  %v1944_v48 = vmul.f32 %v3520_v26, %v1943_v42  ;;  %3525 = vpow2.f32 %v1714_v39  ;;  %v1646_v11 = vsub.f32 0.0, %v4080_v43 }
  0xc1   :  { %v4091_v53 = vpop.f32.mrf.mxu3  ;;  %v1968_v27 = vor.u32 1.1754944e-38, %v1967_v14  ;;  %vm1966_vm8 = vcmp.eq.f32.partialorder %v1965_v18, 8.507059e+37 }
  0xc2   :  { %v1945_v49 = vadd.f32 %v3520_v26, %v1944_v48  ;;  %v1716_v50 = vmul.f32 1.442695, %v1646_v11 }
  0xc3   :  { %v1365_v56 = vpop.f32.mrf.mxu2 }
  0xc4   :  { %v1949_v60 = vsel %vm1948_vm2, %v3520_v26, %v1945_v49  ;;  %3527 = vpow2.f32 %v1716_v50  ;;  %v1515_v51 = vadd.f32 %v1365_v56, %v873_v52  ;;  %v447_v62 = vpop.f32.mrf.mxu0  ;;  %v3450_v49 = vld [vmem:[%s5550_s1 + $0x68] sm:$0xff] }
  0xc5   :  { %v3524_v2 = vpop.eup %3523  ;;  %v1954_v3 = vsel %vm1951_vm3, %v1953_v54, %v1949_v60  ;;  %v875_v4 = vpop.f32.mrf.mxu1  ;;  %v3434_v50 = vld [vmem:[%s5551_s0 + $0xe8] sm:$0xff] }
  0xc6   :  { %v3526_v6 = vpop.eup %3525  ;;  %v1955_v7 = vmul.f32 %v1954_v3, %v4014_v29  ;;  %v1957_v8 = vmul.f32 %v3524_v2, %v4076_v37  ;;  %v4108_v9 = vadd.f32 %v3962_v46, %v1515_v51  ;;  %3065 = vmatmul.msk.bf16.gmra.mxu0 %vm317_vm1, %v3449_v57  ;;  %3241 = vmatmul.msk.bf16.gmra.mxu3 %vm317_vm1, %v3433_v59  ;;  %vm1962_vm4 = vweird.f32 %v3524_v2  ;;  %v3418_v57 = vld [vmem:[%s5551_s0 + $0x68] sm:$0xff] }
  0xc7   :  { %v4110_v10 = vadd.f32 1.0, %v3526_v6  ;;  %v876_v29 = vadd.f32 %v875_v4, %v447_v62  ;;  %3225 = vmatmul.msk.bf16.gmra.mxu1 %vm317_vm1, %v3417_v63  ;;  %vm1963_vm7 = vmor %vm1961_vm5, %vm1962_vm4  ;;  %v3482_v59 = vld [vmem:[%s5552_s2 + $0x68] sm:$0xff] }
  0xc8   :  { %2860 = vst.msk [vmem:[%s5554_s7 + $0x18] sm:$0xff] %vm2856_vm6, %v1955_v7  ;;  %v1958_v12 = vsub.f32 1.0, %v1957_v8  ;;  %v1647_v13 = vsub.f32 0.0, %v4108_v9  ;;  %3385 = vmatmul.msk.bf16.gmra.mxu2 %vm317_vm1, %v3481_v1 }
  0xc9   :  { %3529 = vrcp.f32 %v4110_v10  ;;  %v4124_v20 = vpop.f32.mrf.mxu3  ;;  %v1980_v44 = vand.u32 2147483647, %v4110_v10  ;;  %v1982_v47 = vand.u32 2147483648, %v4110_v10  ;;  %vm1976_vm10 = vweird.f32 %v4110_v10 }
  0xca   :  { %v3528_v15 = vpop.eup %3527  ;;  %v1959_v17 = vmul.f32 %v3524_v2, %v1958_v12  ;;  %v1718_v19 = vmul.f32 1.442695, %v1647_v13 }
  0xcb   :  { %v4126_v21 = vadd.f32 1.0, %v3528_v15  ;;  %v1368_v22 = vpop.f32.mrf.mxu2  ;;  %vm1981_vm12 = vcmp.eq.f32.partialorder %v1980_v44, 8.507059e+37  ;;  %v1983_v1 = vor.u32 1.1754944e-38, %v1982_v47 }
  0xcc   :  { %v1960_v23 = vadd.f32 %v3524_v2, %v1959_v17  ;;  %3531 = vpow2.f32 %v1718_v19  ;;  %v1516_v24 = vadd.f32 %v1368_v22, %v876_v29  ;;  %v449_v26 = vpop.f32.mrf.mxu0 }
  0xcd   :  { %3533 = vrcp.f32 %v4126_v21  ;;  %v877_v28 = vpop.f32.mrf.mxu1  ;;  %v1997_v3 = vand.u32 2147483648, %v4126_v21  ;;  %vm1991_vm14 = vweird.f32 %v4126_v21 }
  0xce   :  { %v1964_v30 = vsel %vm1963_vm7, %v3524_v2, %v1960_v23  ;;  %v4131_v31 = vadd.f32 %v3962_v46, %v1516_v24  ;;  %v878_v48 = vadd.f32 %v877_v28, %v449_v26  ;;  %v1995_v2 = vand.u32 2147483647, %v4126_v21 }
  0xcf   :  { %v3530_v32 = vpop.eup %3529  ;;  %v1969_v33 = vsel %vm1966_vm8, %v1968_v27, %v1964_v30  ;;  %v1998_v17 = vor.u32 1.1754944e-38, %v1997_v3 }
  0xd0   :  { %v1970_v34 = vmul.f32 %v1969_v33, %v4035_v58  ;;  %v1972_v35 = vmul.f32 %v3530_v32, %v4110_v10  ;;  %v1648_v36 = vsub.f32 0.0, %v4131_v31  ;;  %vm1977_vm9 = vweird.f32 %v3530_v32 }
  0xd1   :  { %v4140_v41 = vpop.f32.mrf.mxu3  ;;  %vm1978_vm11 = vmor %vm1976_vm10, %vm1977_vm9  ;;  %vm1996_vm0 = vcmp.eq.f32.partialorder %v1995_v2, 8.507059e+37 }
  0xd2   :  { %v3532_v37 = vpop.eup %3531  ;;  %2861 = vst.msk [vmem:[%s5554_s7 + $0x20] sm:$0xff] %vm2856_vm6, %v1970_v34  ;;  %v1973_v39 = vsub.f32 1.0, %v1972_v35  ;;  %v1720_v40 = vmul.f32 1.442695, %v1648_v36 }
  0xd3   :  { %v3534_v42 = vpop.eup %3533  ;;  %v4144_v58 = vadd.f32 1.0, %v3532_v37  ;;  %v1370_v11 = vpop.f32.mrf.mxu2 }
  0xd4   :  { %v1974_v52 = vmul.f32 %v3530_v32, %v1973_v39  ;;  %v1987_v54 = vmul.f32 %v3534_v42, %v4126_v21  ;;  %3535 = vpow2.f32 %v1720_v40  ;;  %v452_v56 = vpop.f32.mrf.mxu0  ;;  %v1517_v63 = vadd.f32 %v1370_v11, %v878_v48  ;;  %v3451_v48 = vld [vmem:[%s5550_s1 + $0x70] sm:$0xff] }
  0xd5   :  { %3537 = vrcp.f32 %v4144_v58  ;;  %v880_v60 = vpop.f32.mrf.mxu1  ;;  %vm1992_vm13 = vweird.f32 %v3534_v42  ;;  %v2010_v35 = vand.u32 2147483647, %v4144_v58  ;;  %vm2006_vm3 = vweird.f32 %v4144_v58  ;;  %v3435_v11 = vld [vmem:[%s5551_s0 + $0xf0] sm:$0xff] }
  0xd6   :  { %v1975_v51 = vadd.f32 %v3530_v32, %v1974_v52  ;;  %v1988_v62 = vsub.f32 1.0, %v1987_v54  ;;  %3066 = vmatmul.msk.bf16.gmra.mxu0 %vm317_vm1, %v3450_v49  ;;  %3242 = vmatmul.msk.bf16.gmra.mxu3 %vm317_vm1, %v3434_v50  ;;  %v4166_v7 = vadd.f32 %v3962_v46, %v1517_v63  ;;  %vm1993_vm15 = vmor %vm1991_vm14, %vm1992_vm13  ;;  %v881_v19 = vadd.f32 %v880_v60, %v452_v56  ;;  %v3419_v56 = vld [vmem:[%s5551_s0 + $0x70] sm:$0xff] }
  0xd7   :  { %3226 = vmatmul.msk.bf16.gmra.mxu1 %vm317_vm1, %v3418_v57  ;;  %vm2011_vm5 = vcmp.eq.f32.partialorder %v2010_v35, 8.507059e+37  ;;  %v3483_v57 = vld [vmem:[%s5552_s2 + $0x70] sm:$0xff] }
  0xd8   :  { %v1979_v4 = vsel %vm1978_vm11, %v3530_v32, %v1975_v51  ;;  %v1989_v6 = vmul.f32 %v3534_v42, %v1988_v62  ;;  %3386 = vmatmul.msk.bf16.gmra.mxu2 %vm317_vm1, %v3482_v59  ;;  %v1649_v29 = vsub.f32 0.0, %v4166_v7  ;;  %v2012_v32 = vand.u32 2147483648, %v4144_v58 }
  0xd9   :  { %v1984_v8 = vsel %vm1981_vm12, %v1983_v1, %v1979_v4  ;;  %v4173_v14 = vpop.f32.mrf.mxu3 }
  0xda   :  { %v3536_v10 = vpop.eup %3535  ;;  %v1985_v12 = vmul.f32 %v1984_v8, %v4069_v0  ;;  %v1990_v13 = vadd.f32 %v3534_v42, %v1989_v6  ;;  %v1722_v23 = vmul.f32 1.442695, %v1649_v29 }
  0xdb   :  { %v3538_v15 = vpop.eup %3537  ;;  %v4175_v18 = vadd.f32 1.0, %v3536_v10  ;;  %v1373_v22 = vpop.f32.mrf.mxu2 }
  0xdc   :  { %2862 = vst.msk [vmem:[%s5554_s7 + $0x28] sm:$0xff] %vm2856_vm6, %v1985_v12  ;;  %v1994_v0 = vsel %vm1993_vm15, %v3534_v42, %v1990_v13  ;;  %v2002_v21 = vmul.f32 %v3538_v15, %v4144_v58  ;;  %v454_v24 = vpop.f32.mrf.mxu0  ;;  %v1518_v33 = vadd.f32 %v1373_v22, %v881_v19  ;;  %vm2007_vm2 = vweird.f32 %v3538_v15 }
  0xdd   :  { %v1999_v26 = vsel %vm1996_vm0, %v1998_v17, %v1994_v0  ;;  %3539 = vrcp.f32 %v4175_v18  ;;  %v882_v27 = vpop.f32.mrf.mxu1  ;;  %vm2008_vm4 = vmor %vm2006_vm3, %vm2007_vm2  ;;  %v2013_v42 = vor.u32 1.1754944e-38, %v2012_v32  ;;  %v2025_v3 = vand.u32 2147483647, %v4175_v18 }
  0xde   :  { %v2000_v28 = vmul.f32 %v1999_v26, %v4080_v43  ;;  %v2003_v30 = vsub.f32 1.0, %v2002_v21  ;;  %3541 = vpow2.f32 %v1722_v23  ;;  %v4191_v36 = vadd.f32 %v3962_v46, %v1518_v33 }
  0xdf   :  { %v883_v43 = vadd.f32 %v882_v27, %v454_v24  ;;  %v2027_v4 = vand.u32 2147483648, %v4175_v18  ;;  %vm2021_vm8 = vweird.f32 %v4175_v18  ;;  %vm2026_vm10 = vcmp.eq.f32.partialorder %v2025_v3, 8.507059e+37 }
  0xe0   :  { %2863 = vst.msk [vmem:[%s5554_s7 + $0x30] sm:$0xff] %vm2856_vm6, %v2000_v28  ;;  %v2004_v34 = vmul.f32 %v3538_v15, %v2003_v30  ;;  %v1650_v44 = vsub.f32 0.0, %v4191_v36 }
  0xe1   :  { %v4194_v39 = vpop.f32.mrf.mxu3  ;;  %v2028_v29 = vor.u32 1.1754944e-38, %v2027_v4 }
  0xe2   :  { %v2005_v37 = vadd.f32 %v3538_v15, %v2004_v34  ;;  %v1724_v51 = vmul.f32 1.442695, %v1650_v44 }
  0xe3   :  { %v3540_v40 = vpop.eup %3539  ;;  %v1375_v47 = vpop.f32.mrf.mxu2 }
  0xe4   :  { %v3542_v49 = vpop.eup %3541  ;;  %v2009_v50 = vsel %vm2008_vm4, %v3538_v15, %v2005_v37  ;;  %v2017_v58 = vmul.f32 %v3540_v40, %v4175_v18  ;;  %v1519_v52 = vadd.f32 %v1375_v47, %v883_v43  ;;  %v457_v54 = vpop.f32.mrf.mxu0  ;;  %vm2022_vm7 = vweird.f32 %v3540_v40  ;;  %v3452_v47 = vld [vmem:[%s5550_s1 + $0x78] sm:$0xff] }
  0xe5   :  { %v2014_v59 = vsel %vm2011_vm5, %v2013_v42, %v2009_v50  ;;  %v4210_v60 = vadd.f32 1.0, %v3542_v49  ;;  %v885_v62 = vpop.f32.mrf.mxu1  ;;  %vm2023_vm9 = vmor %vm2021_vm8, %vm2022_vm7 }
  0xe6   :  { %v2015_v63 = vmul.f32 %v2014_v59, %v4108_v9  ;;  %v2018_v1 = vsub.f32 1.0, %v2017_v58  ;;  %v4214_v2 = vadd.f32 %v3962_v46, %v1519_v52  ;;  %3067 = vmatmul.msk.bf16.gmra.mxu0 %vm317_vm1, %v3451_v48  ;;  %3243 = vmatmul.msk.bf16.gmra.mxu3 %vm317_vm1, %v3435_v11  ;;  %v886_v8 = vadd.f32 %v885_v62, %v457_v54  ;;  %v3436_v48 = vld [vmem:[%s5551_s0 + $0xf8] sm:$0xff] }
  0xe7   :  { %3543 = vrcp.f32 %v4210_v60  ;;  %3227 = vmatmul.msk.bf16.gmra.mxu1 %vm317_vm1, %v3419_v56  ;;  %v2040_v33 = vand.u32 2147483647, %v4210_v60  ;;  %v2042_v34 = vand.u32 2147483648, %v4210_v60  ;;  %vm2036_vm12 = vweird.f32 %v4210_v60  ;;  %v3420_v58 = vld [vmem:[%s5551_s0 + $0x78] sm:$0xff] }
  0xe8   :  { %2864 = vst.msk [vmem:[%s5554_s7 + $0x38] sm:$0xff] %vm2856_vm6, %v2015_v63  ;;  %v2019_v9 = vmul.f32 %v3540_v40, %v2018_v1  ;;  %3545 = vpow2.f32 %v1724_v51  ;;  %v1651_v6 = vsub.f32 0.0, %v4214_v2  ;;  %3387 = vmatmul.msk.bf16.gmra.mxu2 %vm317_vm1, %v3483_v57  ;;  %v3484_v52 = vld [vmem:[%s5552_s2 + $0x78] sm:$0xff] }
  0xe9   :  { %v4229_v13 = vpop.f32.mrf.mxu3  ;;  %v2043_v54 = vor.u32 1.1754944e-38, %v2042_v34  ;;  %vm2041_vm14 = vcmp.eq.f32.partialorder %v2040_v33, 8.507059e+37 }
  0xea   :  { %v2020_v10 = vadd.f32 %v3540_v40, %v2019_v9  ;;  %v1726_v12 = vmul.f32 1.442695, %v1651_v6 }
  0xeb   :  { %v1378_v15 = vpop.f32.mrf.mxu2 }
  0xec   :  { %v2024_v17 = vsel %vm2023_vm9, %v3540_v40, %v2020_v10  ;;  %3547 = vpow2.f32 %v1726_v12  ;;  %v1520_v19 = vadd.f32 %v1378_v15, %v886_v8  ;;  %v459_v22 = vpop.f32.mrf.mxu0 }
  0xed   :  { %v3544_v0 = vpop.eup %3543  ;;  %v2029_v21 = vsel %vm2026_vm10, %v2028_v29, %v2024_v17  ;;  %v887_v23 = vpop.f32.mrf.mxu1 }
  0xee   :  { %v3546_v24 = vpop.eup %3545  ;;  %v2030_v26 = vmul.f32 %v2029_v21, %v4131_v31  ;;  %v2032_v18 = vmul.f32 %v3544_v0, %v4210_v60  ;;  %v4235_v27 = vadd.f32 %v3962_v46, %v1520_v19  ;;  %vm2037_vm11 = vweird.f32 %v3544_v0 }
  0xef   :  { %v4237_v28 = vadd.f32 1.0, %v3546_v24  ;;  %v888_v43 = vadd.f32 %v887_v23, %v459_v22  ;;  %vm2038_vm13 = vmor %vm2036_vm12, %vm2037_vm11 }
  0xf0   :  { %2865 = vst.msk [vmem:[%s5554_s7 + $0x40] sm:$0xff] %vm2856_vm6, %v2030_v26  ;;  %v2033_v30 = vsub.f32 1.0, %v2032_v18  ;;  %v1652_v32 = vsub.f32 0.0, %v4235_v27 }
  0xf1   :  { %3549 = vrcp.f32 %v4237_v28  ;;  %v4247_v40 = vpop.f32.mrf.mxu3  ;;  %v2055_v10 = vand.u32 2147483647, %v4237_v28  ;;  %v2057_v12 = vand.u32 2147483648, %v4237_v28  ;;  %vm2051_vm0 = vweird.f32 %v4237_v28 }
  0xf2   :  { %v3548_v31 = vpop.eup %3547  ;;  %v2034_v35 = vmul.f32 %v3544_v0, %v2033_v30  ;;  %v1728_v37 = vmul.f32 1.442695, %v1652_v32 }
  0xf3   :  { %v4249_v42 = vadd.f32 1.0, %v3548_v31  ;;  %v1380_v44 = vpop.f32.mrf.mxu2  ;;  %vm2056_vm3 = vcmp.eq.f32.partialorder %v2055_v10, 8.507059e+37  ;;  %v2058_v26 = vor.u32 1.1754944e-38, %v2057_v12 }
  0xf4   :  { %v2035_v11 = vadd.f32 %v3544_v0, %v2034_v35  ;;  %3551 = vpow2.f32 %v1728_v37  ;;  %v1521_v49 = vadd.f32 %v1380_v44, %v888_v43  ;;  %v462_v50 = vpop.f32.mrf.mxu0 }
  0xf5   :  { %3553 = vrcp.f32 %v4249_v42  ;;  %v890_v56 = vpop.f32.mrf.mxu1  ;;  %v2070_v18 = vand.u32 2147483647, %v4249_v42  ;;  %v2072_v30 = vand.u32 2147483648, %v4249_v42  ;;  %vm2066_vm5 = vweird.f32 %v4249_v42 }
  0xf6   :  { %v2039_v57 = vsel %vm2038_vm13, %v3544_v0, %v2035_v11  ;;  %v4267_v59 = vadd.f32 %v3962_v46, %v1521_v49  ;;  %3068 = vmatmul.msk.bf16.gmra.mxu0 %vm317_vm1, %v3452_v47  ;;  %3244 = vmatmul.msk.bf16.gmra.mxu3 %vm317_vm1, %v3436_v48  ;;  %v891_v6 = vadd.f32 %v890_v56, %v462_v50  ;;  %v3453_v50 = vld [vmem:[%s5550_s1 + $0x80] sm:$0xff] }
  0xf7   :  { %v3550_v60 = vpop.eup %3549  ;;  %v2044_v51 = vsel %vm2041_vm14, %v2043_v54, %v2039_v57  ;;  %3228 = vmatmul.msk.bf16.gmra.mxu1 %vm317_vm1, %v3420_v58  ;;  %v2073_v48 = vor.u32 1.1754944e-38, %v2072_v30  ;;  %vm2071_vm8 = vcmp.eq.f32.partialorder %v2070_v18, 8.507059e+37  ;;  %v3421_v56 = vld [vmem:[%s5551_s0 + $0x80] sm:$0xff] }
  0xf8   :  { %v2045_v62 = vmul.f32 %v2044_v51, %v4166_v7  ;;  %v2047_v63 = vmul.f32 %v3550_v60, %v4237_v28  ;;  %v1653_v1 = vsub.f32 0.0, %v4267_v59  ;;  %3388 = vmatmul.msk.bf16.gmra.mxu2 %vm317_vm1, %v3484_v52  ;;  %vm2052_vm15 = vweird.f32 %v3550_v60  ;;  %v3485_v57 = vld [vmem:[%s5552_s2 + $0x80] sm:$0xff] }
  0xf9   :  { %v4280_v8 = vpop.f32.mrf.mxu3  ;;  %vm2053_vm2 = vmor %vm2051_vm0, %vm2052_vm15 }
  0xfa   :  { %v3552_v3 = vpop.eup %3551  ;;  %2866 = vst.msk [vmem:[%s5554_s7 + $0x48] sm:$0xff] %vm2856_vm6, %v2045_v62  ;;  %v2048_v4 = vsub.f32 1.0, %v2047_v63  ;;  %v1730_v9 = vmul.f32 1.442695, %v1653_v1 }
  0xfb   :  { %v3554_v7 = vpop.eup %3553  ;;  %v4284_v29 = vadd.f32 1.0, %v3552_v3  ;;  %v1383_v15 = vpop.f32.mrf.mxu2 }
  0xfc   :  { %v2049_v17 = vmul.f32 %v3550_v60, %v2048_v4  ;;  %v2062_v19 = vmul.f32 %v3554_v7, %v4249_v42  ;;  %3555 = vpow2.f32 %v1730_v9  ;;  %v464_v22 = vpop.f32.mrf.mxu0  ;;  %v1522_v24 = vadd.f32 %v1383_v15, %v891_v6 }
  0xfd   :  { %3557 = vrcp.f32 %v4284_v29  ;;  %v892_v0 = vpop.f32.mrf.mxu1  ;;  %vm2067_vm4 = vweird.f32 %v3554_v7  ;;  %v2087_v3 = vand.u32 2147483648, %v4284_v29  ;;  %v2085_v6 = vand.u32 2147483647, %v4284_v29 }
  0xfe   :  { %v2050_v21 = vadd.f32 %v3550_v60, %v2049_v17  ;;  %v2063_v23 = vsub.f32 1.0, %v2062_v19  ;;  %v4292_v34 = vadd.f32 %v3962_v46, %v1522_v24  ;;  %vm2068_vm7 = vmor %vm2066_vm5, %vm2067_vm4  ;;  %v893_v51 = vadd.f32 %v892_v0, %v464_v22 }
  0xff   :  { %vm2081_vm10 = vweird.f32 %v4284_v29  ;;  %v2088_v17 = vor.u32 1.1754944e-38, %v2087_v3  ;;  %vm2086_vm12 = vcmp.eq.f32.partialorder %v2085_v6, 8.507059e+37 }
 0x100   :  { %v2054_v32 = vsel %vm2053_vm2, %v3550_v60, %v2050_v21  ;;  %v2064_v33 = vmul.f32 %v3554_v7, %v2063_v23  ;;  %v1654_v43 = vsub.f32 0.0, %v4292_v34 }
 0x101   :  { %v2059_v31 = vsel %vm2056_vm3, %v2058_v26, %v2054_v32  ;;  %v4297_v44 = vpop.f32.mrf.mxu3 }
 0x102   :  { %v3556_v35 = vpop.eup %3555  ;;  %v2060_v37 = vmul.f32 %v2059_v31, %v4191_v36  ;;  %v2065_v28 = vadd.f32 %v3554_v7, %v2064_v33  ;;  %v3493_v36 = vld [vmem:[%s5552_s2 + $0xc0] sm:$0xff]  ;;  %v1732_v52 = vmul.f32 1.442695, %v1654_v43 }
 0x103   :  { %v3558_v47 = vpop.eup %3557  ;;  %v4299_v11 = vadd.f32 1.0, %v3556_v35  ;;  %v1385_v49 = vpop.f32.mrf.mxu2 }
 0x104   :  { %2867 = vst.msk [vmem:[%s5554_s7 + $0x50] sm:$0xff] %vm2856_vm6, %v2060_v37  ;;  %v2069_v42 = vsel %vm2068_vm7, %v3554_v7, %v2065_v28  ;;  %v2077_v58 = vmul.f32 %v3558_v47, %v4284_v29  ;;  %v467_v54 = vpop.f32.mrf.mxu0  ;;  %v1523_v4 = vadd.f32 %v1385_v49, %v893_v51  ;;  %vm2082_vm9 = vweird.f32 %v3558_v47 }
 0x105   :  { %v2074_v60 = vsel %vm2071_vm8, %v2073_v48, %v2069_v42  ;;  %3559 = vrcp.f32 %v4299_v11  ;;  %v895_v62 = vpop.f32.mrf.mxu1  ;;  %vm2083_vm11 = vmor %vm2081_vm10, %vm2082_vm9  ;;  %v2100_v37 = vand.u32 2147483647, %v4299_v11  ;;  %v2102_v28 = vand.u32 2147483648, %v4299_v11  ;;  %v3454_v42 = vld [vmem:[%s5550_s1 + $0x88] sm:$0xff] }
 0x106   :  { %v2075_v63 = vmul.f32 %v2074_v60, %v4214_v2  ;;  %v2078_v1 = vsub.f32 1.0, %v2077_v58  ;;  %3561 = vpow2.f32 %v1732_v52  ;;  %3069 = vmatmul.msk.bf16.gmra.mxu0 %vm317_vm1, %v3453_v50  ;;  %3397 = vmatmul.msk.bf16.vlgmr.msra.gmra.mxu3 %vm317_vm1, %v3493_v36  ;;  %v896_v7 = vadd.f32 %v895_v62, %v467_v54  ;;  %v3494_v58 = vld [vmem:[%s5552_s2 + $0xc8] sm:$0xff] }
 0x107   :  { %3229 = vmatmul.msk.bf16.gmra.mxu1 %vm317_vm1, %v3421_v56  ;;  %v4331_v2 = vadd.f32 %v3962_v46, %v1523_v4  ;;  %vm2096_vm14 = vweird.f32 %v4299_v11  ;;  %v2103_v50 = vor.u32 1.1754944e-38, %v2102_v28  ;;  %vm2101_vm0 = vcmp.eq.f32.partialorder %v2100_v37, 8.507059e+37  ;;  %v3422_v56 = vld [vmem:[%s5551_s0 + $0x88] sm:$0xff]  ;;  %v4372_v4 = vld [vmem:[%s5553_s6] ss:$0 sm:$0xff] }
 0x108   :  { %2868 = vst.msk [vmem:[%s5554_s7 + $0x58] sm:$0xff] %vm2856_vm6, %v2075_v63  ;;  %v2079_v9 = vmul.f32 %v3558_v47, %v2078_v1  ;;  %3389 = vmatmul.msk.bf16.gmra.mxu2 %vm317_vm1, %v3485_v57  ;;  %v3486_v57 = vld [vmem:[%s5552_s2 + $0x88] sm:$0xff] }
 0x109   :  { %v4334_v12 = vpop.f32.mrf.mxu3  ;;  %v1655_v19 = vsub.f32 0.0, %v4331_v2 }
 0x10a   :  { %v2080_v10 = vadd.f32 %v3558_v47, %v2079_v9 }
 0x10b   :  { %v3560_v15 = vpop.eup %3559  ;;  %v1388_v22 = vpop.f32.mrf.mxu2  ;;  %v1734_v32 = vmul.f32 1.442695, %v1655_v19 }
 0x10c   :  { %v3562_v0 = vpop.eup %3561  ;;  %v2084_v21 = vsel %vm2083_vm11, %v3558_v47, %v2080_v10  ;;  %v2092_v23 = vmul.f32 %v3560_v15, %v4299_v11  ;;  %v1524_v24 = vadd.f32 %v1388_v22, %v896_v7  ;;  %v469_v26 = vpop.f32.mrf.mxu0  ;;  %vm2097_vm13 = vweird.f32 %v3560_v15 }
 0x10d   :  { %v2089_v18 = vsel %vm2086_vm12, %v2088_v17, %v2084_v21  ;;  %v4338_v30 = vadd.f32 1.0, %v3562_v0  ;;  %v897_v29 = vpop.f32.mrf.mxu1  ;;  %vm2098_vm15 = vmor %vm2096_vm14, %vm2097_vm13 }
 0x10e   :  { %v2090_v33 = vmul.f32 %v2089_v18, %v4235_v27  ;;  %v2093_v31 = vsub.f32 1.0, %v2092_v23  ;;  %v4342_v35 = vadd.f32 %v3962_v46, %v1524_v24  ;;  %v898_v48 = vadd.f32 %v897_v29, %v469_v26 }
 0x10f   :  { %3563 = vrcp.f32 %v4338_v30  ;;  %v2115_v22 = vand.u32 2147483647, %v4338_v30  ;;  %vm2111_vm3 = vweird.f32 %v4338_v30 }
 0x110   :  { %2869 = vst.msk [vmem:[%s5554_s7 + $0x60] sm:$0xff] %vm2856_vm6, %v2090_v33  ;;  %v2094_v43 = vmul.f32 %v3560_v15, %v2093_v31  ;;  %3565 = vpow2.f32 %v1734_v32  ;;  %v1656_v27 = vsub.f32 0.0, %v4342_v35 }
 0x111   :  { %v4353_v49 = vpop.f32.mrf.mxu3  ;;  %vm2116_vm5 = vcmp.eq.f32.partialorder %v2115_v22, 8.507059e+37 }
 0x112   :  { %v2095_v47 = vadd.f32 %v3560_v15, %v2094_v43  ;;  %v1736_v46 = vmul.f32 1.442695, %v1656_v27 }
 0x113   :  { %v1390_v36 = vpop.f32.mrf.mxu2 }
 0x114   :  { %v2099_v52 = vsel %vm2098_vm15, %v3560_v15, %v2095_v47  ;;  %3567 = vpow2.f32 %v1736_v46  ;;  %v1525_v54 = vadd.f32 %v1390_v36, %v898_v48  ;;  %v472_v11 = vpop.f32.mrf.mxu0  ;;  %v2117_v15 = vand.u32 2147483648, %v4338_v30 }
 0x115   :  { %v3564_v60 = vpop.eup %3563  ;;  %v2104_v51 = vsel %vm2101_vm0, %v2103_v50, %v2099_v52  ;;  %v900_v62 = vpop.f32.mrf.mxu1 }
 0x116   :  { %v3566_v63 = vpop.eup %3565  ;;  %v2105_v1 = vmul.f32 %v2104_v51, %v4267_v59  ;;  %v2107_v3 = vmul.f32 %v3564_v60, %v4338_v30  ;;  %v4375_v9 = vadd.f32 %v4372_v4, %v1525_v54  ;;  %3070 = vmatmul.msk.bf16.gmra.mxu0 %vm317_vm1, %v3454_v42  ;;  %3398 = vmatmul.msk.bf16.gmra.mxu3 %vm317_vm1, %v3494_v58  ;;  %vm2112_vm2 = vweird.f32 %v3564_v60 }
 0x117   :  { %v4377_v6 = vadd.f32 1.0, %v3566_v63  ;;  %v901_v10 = vadd.f32 %v900_v62, %v472_v11  ;;  %3230 = vmatmul.msk.bf16.gmra.mxu1 %vm317_vm1, %v3422_v56  ;;  %vm2113_vm4 = vmor %vm2111_vm3, %vm2112_vm2  ;;  %v2118_v29 = vor.u32 1.1754944e-38, %v2117_v15  ;;  %v3455_v56 = vld [vmem:[%s5550_s1 + $0x90] sm:$0xff] }
 0x118   :  { %2870 = vst.msk [vmem:[%s5554_s7 + $0x68] sm:$0xff] %vm2856_vm6, %v2105_v1  ;;  %v2108_v59 = vsub.f32 1.0, %v2107_v3  ;;  %v1657_v7 = vsub.f32 0.0, %v4375_v9  ;;  %3390 = vmatmul.msk.bf16.gmra.mxu2 %vm317_vm1, %v3486_v57  ;;  %v3495_v57 = vld [vmem:[%s5552_s2 + $0xd0] sm:$0xff] }
 0x119   :  { %3569 = vrcp.f32 %v4377_v6  ;;  %v4391_v21 = vpop.f32.mrf.mxu3  ;;  %v2130_v58 = vand.u32 2147483647, %v4377_v6  ;;  %v2132_v52 = vand.u32 2147483648, %v4377_v6  ;;  %v3423_v63 = vld [vmem:[%s5551_s0 + $0x90] sm:$0xff]  ;;  %vm2126_vm8 = vweird.f32 %v4377_v6 }
 0x11a   :  { %v3568_v17 = vpop.eup %3567  ;;  %v2109_v19 = vmul.f32 %v3564_v60, %v2108_v59  ;;  %v1738_v0 = vmul.f32 1.442695, %v1657_v7  ;;  %v3487_v1 = vld [vmem:[%s5552_s2 + $0x90] sm:$0xff] }
 0x11b   :  { %v4393_v23 = vadd.f32 1.0, %v3568_v17  ;;  %v1393_v24 = vpop.f32.mrf.mxu2  ;;  %vm2131_vm10 = vcmp.eq.f32.partialorder %v2130_v58, 8.507059e+37  ;;  %v2133_v15 = vor.u32 1.1754944e-38, %v2132_v52 }
 0x11c   :  { %v2110_v26 = vadd.f32 %v3564_v60, %v2109_v19  ;;  %3571 = vpow2.f32 %v1738_v0  ;;  %v1526_v18 = vadd.f32 %v1393_v24, %v901_v10  ;;  %v474_v32 = vpop.f32.mrf.mxu0 }
 0x11d   :  { %3573 = vrcp.f32 %v4393_v23  ;;  %v902_v33 = vpop.f32.mrf.mxu1  ;;  %v2145_v17 = vand.u32 2147483647, %v4393_v23  ;;  %v2147_v19 = vand.u32 2147483648, %v4393_v23  ;;  %vm2141_vm12 = vweird.f32 %v4393_v23 }
 0x11e   :  { %v2114_v31 = vsel %vm2113_vm4, %v3564_v60, %v2110_v26  ;;  %v4398_v37 = vadd.f32 %v4372_v4, %v1526_v18  ;;  %v903_v54 = vadd.f32 %v902_v33, %v474_v32 }
 0x11f   :  { %v3570_v28 = vpop.eup %3569  ;;  %v2119_v43 = vsel %vm2116_vm5, %v2118_v29, %v2114_v31  ;;  %vm2146_vm14 = vcmp.eq.f32.partialorder %v2145_v17, 8.507059e+37 }
 0x120   :  { %v2120_v27 = vmul.f32 %v2119_v43, %v4292_v34  ;;  %v2122_v47 = vmul.f32 %v3570_v28, %v4377_v6  ;;  %v1658_v30 = vsub.f32 0.0, %v4398_v37  ;;  %vm2127_vm7 = vweird.f32 %v3570_v28 }
 0x121   :  { %v4407_v36 = vpop.f32.mrf.mxu3  ;;  %vm2128_vm9 = vmor %vm2126_vm8, %vm2127_vm7 }
 0x122   :  { %v3572_v46 = vpop.eup %3571  ;;  %2871 = vst.msk [vmem:[%s5554_s7 + $0x70] sm:$0xff] %vm2856_vm6, %v2120_v27  ;;  %v2123_v48 = vsub.f32 1.0, %v2122_v47  ;;  %v1740_v50 = vmul.f32 1.442695, %v1658_v30 }
 0x123   :  { %v3574_v42 = vpop.eup %3573  ;;  %v4411_v34 = vadd.f32 1.0, %v3572_v46  ;;  %v1395_v11 = vpop.f32.mrf.mxu2 }
 0x124   :  { %v2124_v60 = vmul.f32 %v3570_v28, %v2123_v48  ;;  %v2137_v51 = vmul.f32 %v3574_v42, %v4393_v23  ;;  %3575 = vpow2.f32 %v1740_v50  ;;  %v477_v62 = vpop.f32.mrf.mxu0  ;;  %v1527_v10 = vadd.f32 %v1395_v11, %v903_v54 }
 0x125   :  { %3577 = vrcp.f32 %v4411_v34  ;;  %v905_v3 = vpop.f32.mrf.mxu1  ;;  %vm2142_vm11 = vweird.f32 %v3574_v42  ;;  %v2162_v54 = vand.u32 2147483648, %v4411_v34  ;;  %vm2156_vm0 = vweird.f32 %v4411_v34 }
 0x126   :  { %v2125_v59 = vadd.f32 %v3570_v28, %v2124_v60  ;;  %v2138_v7 = vsub.f32 1.0, %v2137_v51  ;;  %3071 = vmatmul.msk.bf16.gmra.mxu0 %vm317_vm1, %v3455_v56  ;;  %3399 = vmatmul.msk.bf16.gmra.mxu3 %vm317_vm1, %v3495_v57  ;;  %v4433_v24 = vadd.f32 %v4372_v4, %v1527_v10  ;;  %vm2143_vm13 = vmor %vm2141_vm12, %vm2142_vm11  ;;  %v906_v27 = vadd.f32 %v905_v3, %v477_v62 }
 0x127   :  { %3231 = vmatmul.msk.bf16.gmra.mxu1 %vm317_vm1, %v3423_v63  ;;  %v2160_v56 = vand.u32 2147483647, %v4411_v34  ;;  %v2163_v63 = vor.u32 1.1754944e-38, %v2162_v54 }
 0x128   :  { %v2129_v22 = vsel %vm2128_vm9, %v3570_v28, %v2125_v59  ;;  %v2139_v0 = vmul.f32 %v3574_v42, %v2138_v7  ;;  %3391 = vmatmul.msk.bf16.gmra.mxu2 %vm317_vm1, %v3487_v1  ;;  %v1659_v29 = vsub.f32 0.0, %v4433_v24  ;;  %v2148_v28 = vor.u32 1.1754944e-38, %v2147_v19  ;;  %v3456_v59 = vld [vmem:[%s5550_s1 + $0x98] sm:$0xff] }
 0x129   :  { %v2134_v6 = vsel %vm2131_vm10, %v2133_v15, %v2129_v22  ;;  %v4440_v33 = vpop.f32.mrf.mxu3  ;;  %v3496_v7 = vld [vmem:[%s5552_s2 + $0xd8] sm:$0xff]  ;;  %vm2161_vm3 = vcmp.eq.f32.partialorder %v2160_v56, 8.507059e+37 }
 0x12a   :  { %v3576_v26 = vpop.eup %3575  ;;  %v2135_v18 = vmul.f32 %v2134_v6, %v4331_v2  ;;  %v2140_v32 = vadd.f32 %v3574_v42, %v2139_v0  ;;  %v1742_v30 = vmul.f32 1.442695, %v1659_v29  ;;  %v3424_v22 = vld [vmem:[%s5551_s0 + $0x98] sm:$0xff] }
 0x12b   :  { %v3578_v31 = vpop.eup %3577  ;;  %v4442_v43 = vadd.f32 1.0, %v3576_v26  ;;  %v1398_v47 = vpop.f32.mrf.mxu2  ;;  %v3488_v0 = vld [vmem:[%s5552_s2 + $0x98] sm:$0xff] }
 0x12c   :  { %2872 = vst.msk [vmem:[%s5554_s7 + $0x78] sm:$0xff] %vm2856_vm6, %v2135_v18  ;;  %v2144_v2 = vsel %vm2143_vm13, %v3574_v42, %v2140_v32  ;;  %v2152_v23 = vmul.f32 %v3578_v31, %v4411_v34  ;;  %v479_v46 = vpop.f32.mrf.mxu0  ;;  %v1528_v11 = vadd.f32 %v1398_v47, %v906_v27  ;;  %vm2157_vm15 = vweird.f32 %v3578_v31 }
 0x12d   :  { %v2149_v48 = vsel %vm2146_vm14, %v2148_v28, %v2144_v2  ;;  %3579 = vrcp.f32 %v4442_v43  ;;  %v907_v50 = vpop.f32.mrf.mxu1  ;;  %vm2158_vm2 = vmor %vm2156_vm0, %vm2157_vm15  ;;  %v2175_v27 = vand.u32 2147483647, %v4442_v43  ;;  %v2177_v47 = vand.u32 2147483648, %v4442_v43 }
 0x12e   :  { %v2150_v58 = vmul.f32 %v2149_v48, %v4342_v35  ;;  %v2153_v52 = vsub.f32 1.0, %v2152_v23  ;;  %3581 = vpow2.f32 %v1742_v30  ;;  %v4458_v57 = vadd.f32 %v4372_v4, %v1528_v11 }
 0x12f   :  { %v908_v35 = vadd.f32 %v907_v50, %v479_v46  ;;  %vm2171_vm5 = vweird.f32 %v4442_v43  ;;  %v2178_v50 = vor.u32 1.1754944e-38, %v2177_v47  ;;  %vm2176_vm8 = vcmp.eq.f32.partialorder %v2175_v27, 8.507059e+37  ;;  %v3425_v27 = vld [vmem:[%s5551_s0 + $0xa0] sm:$0xff] }
 0x130   :  { %2873 = vst.msk [vmem:[%s5554_s7 + $0x80] sm:$0xff] %vm2856_vm6, %v2150_v58  ;;  %v2154_v42 = vmul.f32 %v3578_v31, %v2153_v52  ;;  %v1660_v1 = vsub.f32 0.0, %v4458_v57  ;;  %v3489_v47 = vld [vmem:[%s5552_s2 + $0xa0] sm:$0xff] }
 0x131   :  { %v4461_v51 = vpop.f32.mrf.mxu3 }
 0x132   :  { %v2155_v60 = vadd.f32 %v3578_v31, %v2154_v42  ;;  %v1744_v18 = vmul.f32 1.442695, %v1660_v1 }
 0x133   :  { %v3580_v62 = vpop.eup %3579  ;;  %v1400_v3 = vpop.f32.mrf.mxu2 }
 0x134   :  { %v3582_v10 = vpop.eup %3581  ;;  %v2159_v15 = vsel %vm2158_vm2, %v3578_v31, %v2155_v60  ;;  %v2167_v34 = vmul.f32 %v3580_v62, %v4442_v43  ;;  %v1529_v17 = vadd.f32 %v1400_v3, %v908_v35  ;;  %v482_v19 = vpop.f32.mrf.mxu0  ;;  %vm2172_vm4 = vweird.f32 %v3580_v62 }
 0x135   :  { %v2164_v6 = vsel %vm2161_vm3, %v2163_v63, %v2159_v15  ;;  %v4477_v26 = vadd.f32 1.0, %v3582_v10  ;;  %v910_v32 = vpop.f32.mrf.mxu1  ;;  %vm2173_vm7 = vmor %vm2171_vm5, %vm2172_vm4 }
 0x136   :  { %v2165_v29 = vmul.f32 %v2164_v6, %v4375_v9  ;;  %v2168_v31 = vsub.f32 1.0, %v2167_v34  ;;  %v4481_v28 = vadd.f32 %v4372_v4, %v1529_v17  ;;  %3072 = vmatmul.msk.bf16.gmra.mxu0 %vm317_vm1, %v3456_v59  ;;  %3400 = vmatmul.msk.bf16.gmra.mxu3 %vm317_vm1, %v3496_v7  ;;  %v911_v23 = vadd.f32 %v910_v32, %v482_v19  ;;  %v3457_v6 = vld [vmem:[%s5550_s1 + $0xa0] sm:$0xff] }
 0x137   :  { %3583 = vrcp.f32 %v4477_v26  ;;  %3232 = vmatmul.msk.bf16.gmra.mxu1 %vm317_vm1, %v3424_v22  ;;  %v2190_v7 = vand.u32 2147483647, %v4477_v26  ;;  %v2192_v10 = vand.u32 2147483648, %v4477_v26  ;;  %vm2186_vm10 = vweird.f32 %v4477_v26 }
 0x138   :  { %2874 = vst.msk [vmem:[%s5554_s7 + $0x88] sm:$0xff] %vm2856_vm6, %v2165_v29  ;;  %v2169_v9 = vmul.f32 %v3580_v62, %v2168_v31  ;;  %3585 = vpow2.f32 %v1744_v18  ;;  %v1661_v2 = vsub.f32 0.0, %v4481_v28  ;;  %3392 = vmatmul.msk.bf16.gmra.mxu2 %vm317_vm1, %v3488_v0  ;;  %v3497_v18 = vld [vmem:[%s5552_s2 + $0xe0] sm:$0xff] }
 0x139   :  { %v4496_v48 = vpop.f32.mrf.mxu3  ;;  %vm2191_vm12 = vcmp.eq.f32.partialorder %v2190_v7, 8.507059e+37 }
 0x13a   :  { %v2170_v30 = vadd.f32 %v3580_v62, %v2169_v9  ;;  %v1746_v46 = vmul.f32 1.442695, %v1661_v2  ;;  %v2193_v9 = vor.u32 1.1754944e-38, %v2192_v10 }
 0x13b   :  { %v1403_v58 = vpop.f32.mrf.mxu2 }
 0x13c   :  { %v2174_v52 = vsel %vm2173_vm7, %v3580_v62, %v2170_v30  ;;  %3587 = vpow2.f32 %v1746_v46  ;;  %v1530_v54 = vadd.f32 %v1403_v58, %v911_v23  ;;  %v484_v11 = vpop.f32.mrf.mxu0 }
 0x13d   :  { %v3584_v42 = vpop.eup %3583  ;;  %v2179_v56 = vsel %vm2176_vm8, %v2178_v50, %v2174_v52  ;;  %v912_v60 = vpop.f32.mrf.mxu1 }
 0x13e   :  { %v3586_v35 = vpop.eup %3585  ;;  %v2180_v63 = vmul.f32 %v2179_v56, %v4398_v37  ;;  %v2182_v43 = vmul.f32 %v3584_v42, %v4477_v26  ;;  %v4502_v1 = vadd.f32 %v4372_v4, %v1530_v54  ;;  %vm2187_vm9 = vweird.f32 %v3584_v42 }
 0x13f   :  { %v4504_v3 = vadd.f32 1.0, %v3586_v35  ;;  %v913_v17 = vadd.f32 %v912_v60, %v484_v11  ;;  %vm2188_vm11 = vmor %vm2186_vm10, %vm2187_vm9 }
 0x140   :  { %2875 = vst.msk [vmem:[%s5554_s7 + $0x90] sm:$0xff] %vm2856_vm6, %v2180_v63  ;;  %v2183_v62 = vsub.f32 1.0, %v2182_v43  ;;  %v1662_v59 = vsub.f32 0.0, %v4502_v1 }
 0x141   :  { %3589 = vrcp.f32 %v4504_v3  ;;  %v4514_v19 = vpop.f32.mrf.mxu3  ;;  %v2205_v35 = vand.u32 2147483647, %v4504_v3  ;;  %v2207_v63 = vand.u32 2147483648, %v4504_v3  ;;  %vm2201_vm14 = vweird.f32 %v4504_v3 }
 0x142   :  { %v3588_v37 = vpop.eup %3587  ;;  %v2184_v15 = vmul.f32 %v3584_v42, %v2183_v62  ;;  %v1748_v34 = vmul.f32 1.442695, %v1662_v59 }
 0x143   :  { %v4516_v22 = vadd.f32 1.0, %v3588_v37  ;;  %v1405_v0 = vpop.f32.mrf.mxu2  ;;  %vm2206_vm0 = vcmp.eq.f32.partialorder %v2205_v35, 8.507059e+37  ;;  %v3490_v35 = vld [vmem:[%s5552_s2 + $0xa8] sm:$0xff] }
 0x144   :  { %v2185_v32 = vadd.f32 %v3584_v42, %v2184_v15  ;;  %3591 = vpow2.f32 %v1748_v34  ;;  %v1531_v29 = vadd.f32 %v1405_v0, %v913_v17  ;;  %v487_v31 = vpop.f32.mrf.mxu0  ;;  %v2208_v0 = vor.u32 1.1754944e-38, %v2207_v63 }
 0x145   :  { %3593 = vrcp.f32 %v4516_v22  ;;  %v915_v2 = vpop.f32.mrf.mxu1  ;;  %vm2216_vm3 = vweird.f32 %v4516_v22 }
 0x146   :  { %v2189_v23 = vsel %vm2188_vm11, %v3584_v42, %v2185_v32  ;;  %v4534_v26 = vadd.f32 %v4372_v4, %v1531_v29  ;;  %3073 = vmatmul.msk.bf16.gmra.mxu0 %vm317_vm1, %v3457_v6  ;;  %3401 = vmatmul.msk.bf16.gmra.mxu3 %vm317_vm1, %v3497_v18  ;;  %v916_v56 = vadd.f32 %v915_v2, %v487_v31  ;;  %v2220_v6 = vand.u32 2147483647, %v4516_v22 }
 0x147   :  { %v3590_v30 = vpop.eup %3589  ;;  %v2194_v46 = vsel %vm2191_vm12, %v2193_v9, %v2189_v23  ;;  %3233 = vmatmul.msk.bf16.gmra.mxu1 %vm317_vm1, %v3425_v27  ;;  %v2222_v18 = vand.u32 2147483648, %v4516_v22 }
 0x148   :  { %v2195_v50 = vmul.f32 %v2194_v46, %v4433_v24  ;;  %v2197_v58 = vmul.f32 %v3590_v30, %v4504_v3  ;;  %v1663_v52 = vsub.f32 0.0, %v4534_v26  ;;  %3393 = vmatmul.msk.bf16.gmra.mxu2 %vm317_vm1, %v3489_v47  ;;  %vm2202_vm13 = vweird.f32 %v3590_v30 }
 0x149   :  { %v4547_v60 = vpop.f32.mrf.mxu3  ;;  %vm2203_vm15 = vmor %vm2201_vm14, %vm2202_vm13  ;;  %vm2221_vm5 = vcmp.eq.f32.partialorder %v2220_v6, 8.507059e+37 }
 0x14a   :  { %v3592_v54 = vpop.eup %3591  ;;  %2876 = vst.msk [vmem:[%s5554_s7 + $0x98] sm:$0xff] %vm2856_vm6, %v2195_v50  ;;  %v2198_v11 = vsub.f32 1.0, %v2197_v58  ;;  %v1750_v42 = vmul.f32 1.442695, %v1663_v52  ;;  %v2223_v50 = vor.u32 1.1754944e-38, %v2222_v18  ;;  %v3458_v52 = vld [vmem:[%s5550_s1 + $0xa8] sm:$0xff] }
 0x14b   :  { %v3594_v24 = vpop.eup %3593  ;;  %v4551_v43 = vadd.f32 1.0, %v3592_v54  ;;  %v1408_v62 = vpop.f32.mrf.mxu2 }
 0x14c   :  { %v2199_v59 = vmul.f32 %v3590_v30, %v2198_v11  ;;  %v2212_v7 = vmul.f32 %v3594_v24, %v4516_v22  ;;  %3595 = vpow2.f32 %v1750_v42  ;;  %v489_v10 = vpop.f32.mrf.mxu0  ;;  %v1532_v17 = vadd.f32 %v1408_v62, %v916_v56  ;;  %v3426_v56 = vld [vmem:[%s5551_s0 + $0xa8] sm:$0xff] }
 0x14d   :  { %3597 = vrcp.f32 %v4551_v43  ;;  %v917_v37 = vpop.f32.mrf.mxu1  ;;  %vm2217_vm2 = vweird.f32 %v3594_v24  ;;  %vm2231_vm8 = vweird.f32 %v4551_v43 }
 0x14e   :  { %v2200_v15 = vadd.f32 %v3590_v30, %v2199_v59  ;;  %v2213_v34 = vsub.f32 1.0, %v2212_v7  ;;  %v4559_v31 = vadd.f32 %v4372_v4, %v1532_v17  ;;  %vm2218_vm4 = vmor %vm2216_vm3, %vm2217_vm2  ;;  %v918_v62 = vadd.f32 %v917_v37, %v489_v10 }
 0x14f   :  { %v2235_v10 = vand.u32 2147483647, %v4551_v43 }
 0x150   :  { %v2204_v32 = vsel %vm2203_vm15, %v3590_v30, %v2200_v15  ;;  %v2214_v29 = vmul.f32 %v3594_v24, %v2213_v34  ;;  %v1664_v2 = vsub.f32 0.0, %v4559_v31  ;;  %v2237_v15 = vand.u32 2147483648, %v4551_v43 }
 0x151   :  { %v2209_v27 = vsel %vm2206_vm0, %v2208_v0, %v2204_v32  ;;  %v4564_v23 = vpop.f32.mrf.mxu3  ;;  %vm2236_vm10 = vcmp.eq.f32.partialorder %v2235_v10, 8.507059e+37 }
 0x152   :  { %v3596_v47 = vpop.eup %3595  ;;  %v2210_v9 = vmul.f32 %v2209_v27, %v4458_v57  ;;  %v2215_v3 = vadd.f32 %v3594_v24, %v2214_v29  ;;  %v3498_v57 = vld [vmem:[%s5552_s2 + $0xe8] sm:$0xff]  ;;  %v1752_v11 = vmul.f32 1.442695, %v1664_v2  ;;  %v2238_v32 = vor.u32 1.1754944e-38, %v2237_v15  ;;  %v3459_v15 = vld [vmem:[%s5550_s1 + $0xb0] sm:$0xff] }
 0x153   :  { %v3598_v46 = vpop.eup %3597  ;;  %v4566_v30 = vadd.f32 1.0, %v3596_v47  ;;  %v1410_v58 = vpop.f32.mrf.mxu2 }
 0x154   :  { %2877 = vst.msk [vmem:[%s5554_s7 + $0xa0] sm:$0xff] %vm2856_vm6, %v2210_v9  ;;  %v2219_v22 = vsel %vm2218_vm4, %v3594_v24, %v2215_v3  ;;  %v2227_v54 = vmul.f32 %v3598_v46, %v4551_v43  ;;  %v492_v42 = vpop.f32.mrf.mxu0  ;;  %v1533_v34 = vadd.f32 %v1410_v58, %v918_v62  ;;  %vm2232_vm7 = vweird.f32 %v3598_v46 }
 0x155   :  { %v2224_v63 = vsel %vm2221_vm5, %v2223_v50, %v2219_v22  ;;  %3599 = vrcp.f32 %v4566_v30  ;;  %v920_v59 = vpop.f32.mrf.mxu1  ;;  %vm2233_vm9 = vmor %vm2231_vm8, %vm2232_vm7  ;;  %vm2246_vm12 = vweird.f32 %v4566_v30 }
 0x156   :  { %v2225_v24 = vmul.f32 %v2224_v63, %v4481_v28  ;;  %v2228_v7 = vsub.f32 1.0, %v2227_v54  ;;  %3601 = vpow2.f32 %v1752_v11  ;;  %3074 = vmatmul.msk.bf16.gmra.mxu0 %vm317_vm1, %v3458_v52  ;;  %3402 = vmatmul.msk.bf16.gmra.mxu3 %vm317_vm1, %v3498_v57  ;;  %v921_v37 = vadd.f32 %v920_v59, %v492_v42 }
 0x157   :  { %3234 = vmatmul.msk.bf16.gmra.mxu1 %vm317_vm1, %v3426_v56  ;;  %v4598_v28 = vadd.f32 %v4372_v4, %v1533_v34  ;;  %v2250_v42 = vand.u32 2147483647, %v4566_v30  ;;  %v3499_v34 = vld [vmem:[%s5552_s2 + $0xf0] sm:$0xff] }
 0x158   :  { %2878 = vst.msk [vmem:[%s5554_s7 + $0xa8] sm:$0xff] %vm2856_vm6, %v2225_v24  ;;  %v2229_v17 = vmul.f32 %v3598_v46, %v2228_v7  ;;  %3394 = vmatmul.msk.bf16.gmra.mxu2 %vm317_vm1, %v3490_v35 }
 0x159   :  { %v4601_v6 = vpop.f32.mrf.mxu3  ;;  %v1665_v29 = vsub.f32 0.0, %v4598_v28  ;;  %vm2251_vm14 = vcmp.eq.f32.partialorder %v2250_v42, 8.507059e+37 }
 0x15a   :  { %v2230_v0 = vadd.f32 %v3598_v46, %v2229_v17 }
 0x15b   :  { %v3600_v18 = vpop.eup %3599  ;;  %v1413_v27 = vpop.f32.mrf.mxu2  ;;  %v1754_v57 = vmul.f32 1.442695, %v1665_v29 }
 0x15c   :  { %v3602_v47 = vpop.eup %3601  ;;  %v2234_v9 = vsel %vm2233_vm9, %v3598_v46, %v2230_v0  ;;  %v2242_v3 = vmul.f32 %v3600_v18, %v4566_v30  ;;  %v1534_v2 = vadd.f32 %v1413_v27, %v921_v37  ;;  %v494_v50 = vpop.f32.mrf.mxu0  ;;  %v2252_v46 = vand.u32 2147483648, %v4566_v30  ;;  %v3427_v37 = vld [vmem:[%s5551_s0 + $0xb0] sm:$0xff] }
 0x15d   :  { %v2239_v58 = vsel %vm2236_vm10, %v2238_v32, %v2234_v9  ;;  %v4605_v52 = vadd.f32 1.0, %v3602_v47  ;;  %v922_v43 = vpop.f32.mrf.mxu1  ;;  %vm2247_vm11 = vweird.f32 %v3600_v18  ;;  %v3491_v0 = vld [vmem:[%s5552_s2 + $0xb0] sm:$0xff] }
 0x15e   :  { %v2240_v22 = vmul.f32 %v2239_v58, %v4502_v1  ;;  %v2243_v54 = vsub.f32 1.0, %v2242_v3  ;;  %v4609_v11 = vadd.f32 %v4372_v4, %v1534_v2  ;;  %v923_v62 = vadd.f32 %v922_v43, %v494_v50  ;;  %vm2248_vm13 = vmor %vm2246_vm12, %vm2247_vm11 }
 0x15f   :  { %3603 = vrcp.f32 %v4605_v52  ;;  %v2253_v24 = vor.u32 1.1754944e-38, %v2252_v46  ;;  %vm2261_vm0 = vweird.f32 %v4605_v52 }
 0x160   :  { %2879 = vst.msk [vmem:[%s5554_s7 + $0xb0] sm:$0xff] %vm2856_vm6, %v2240_v22  ;;  %v2244_v56 = vmul.f32 %v3600_v18, %v2243_v54  ;;  %3605 = vpow2.f32 %v1754_v57  ;;  %v1666_v1 = vsub.f32 0.0, %v4609_v11  ;;  %v2267_v57 = vand.u32 2147483648, %v4605_v52 }
 0x161   :  { %v4620_v59 = vpop.f32.mrf.mxu3  ;;  %v2265_v54 = vand.u32 2147483647, %v4605_v52 }
 0x162   :  { %v2245_v35 = vadd.f32 %v3600_v18, %v2244_v56  ;;  %v1756_v63 = vmul.f32 1.442695, %v1666_v1 }
 0x163   :  { %v1415_v7 = vpop.f32.mrf.mxu2  ;;  %vm2266_vm3 = vcmp.eq.f32.partialorder %v2265_v54, 8.507059e+37 }
 0x164   :  { %v2249_v17 = vsel %vm2248_vm13, %v3600_v18, %v2245_v35  ;;  %3607 = vpow2.f32 %v1756_v63  ;;  %v1535_v10 = vadd.f32 %v1415_v7, %v923_v62  ;;  %v497_v30 = vpop.f32.mrf.mxu0 }
 0x165   :  { %v3604_v32 = vpop.eup %3603  ;;  %v2254_v29 = vsel %vm2251_vm14, %v2253_v24, %v2249_v17  ;;  %v925_v27 = vpop.f32.mrf.mxu1  ;;  %v2268_v24 = vor.u32 1.1754944e-38, %v2267_v57  ;;  %v3500_v57 = vld [vmem:[%s5552_s2 + $0xf8] sm:$0xff] }
 0x166   :  { %v3606_v47 = vpop.eup %3605  ;;  %v2255_v9 = vmul.f32 %v2254_v29, %v4534_v26  ;;  %v2257_v18 = vmul.f32 %v3604_v32, %v4605_v52  ;;  %v4637_v3 = vadd.f32 %v4372_v4, %v1535_v10  ;;  %3075 = vmatmul.msk.bf16.gmra.mxu0 %vm317_vm1, %v3459_v15  ;;  %3403 = vmatmul.msk.bf16.gmra.mxu3 %vm317_vm1, %v3499_v34  ;;  %vm2262_vm15 = vweird.f32 %v3604_v32 }
 0x167   :  { %v4639_v2 = vadd.f32 1.0, %v3606_v47  ;;  %v926_v26 = vadd.f32 %v925_v27, %v497_v30  ;;  %3235 = vmatmul.msk.bf16.gmra.mxu1 %vm317_vm1, %v3427_v37  ;;  %vm2263_vm2 = vmor %vm2261_vm0, %vm2262_vm15 }
 0x168   :  { %2880 = vst.msk [vmem:[%s5554_s7 + $0xb8] sm:$0xff] %vm2856_vm6, %v2255_v9  ;;  %v2258_v50 = vsub.f32 1.0, %v2257_v18  ;;  %v1667_v58 = vsub.f32 0.0, %v4637_v3  ;;  %3395 = vmatmul.msk.bf16.gmra.mxu2 %vm317_vm1, %v3491_v0 }
 0x169   :  { %3609 = vrcp.f32 %v4639_v2  ;;  %v4653_v46 = vpop.f32.mrf.mxu3  ;;  %v2280_v9 = vand.u32 2147483647, %v4639_v2  ;;  %v2282_v18 = vand.u32 2147483648, %v4639_v2  ;;  %vm2276_vm5 = vweird.f32 %v4639_v2 }
 0x16a   :  { %v3608_v43 = vpop.eup %3607  ;;  %v2259_v22 = vmul.f32 %v3604_v32, %v2258_v50  ;;  %v1758_v42 = vmul.f32 1.442695, %v1667_v58 }
 0x16b   :  { %v4655_v56 = vadd.f32 1.0, %v3608_v43  ;;  %v1418_v1 = vpop.f32.mrf.mxu2  ;;  %vm2281_vm8 = vcmp.eq.f32.partialorder %v2280_v9, 8.507059e+37 }
 0x16c   :  { %v2260_v35 = vadd.f32 %v3604_v32, %v2259_v22  ;;  %3611 = vpow2.f32 %v1758_v42  ;;  %v1536_v63 = vadd.f32 %v1418_v1, %v926_v26  ;;  %v499_v62 = vpop.f32.mrf.mxu0  ;;  %v3460_v26 = vld [vmem:[%s5550_s1 + $0xb8] sm:$0xff] }
 0x16d   :  { %3613 = vrcp.f32 %v4655_v56  ;;  %v927_v7 = vpop.f32.mrf.mxu1  ;;  %v3428_v42 = vld [vmem:[%s5551_s0 + $0xb8] sm:$0xff]  ;;  %vm2291_vm10 = vweird.f32 %v4655_v56 }
 0x16e   :  { %v2264_v15 = vsel %vm2263_vm2, %v3604_v32, %v2260_v35  ;;  %v4660_v34 = vadd.f32 %v4372_v4, %v1536_v63  ;;  %v928_v50 = vadd.f32 %v927_v7, %v499_v62  ;;  %v3492_v1 = vld [vmem:[%s5552_s2 + $0xb8] sm:$0xff]  ;;  %v2283_v7 = vor.u32 1.1754944e-38, %v2282_v18 }
 0x16f   :  { %v3610_v17 = vpop.eup %3609  ;;  %v2269_v10 = vsel %vm2266_vm3, %v2268_v24, %v2264_v15  ;;  %v2295_v15 = vand.u32 2147483647, %v4655_v56 }
 0x170   :  { %v2270_v30 = vmul.f32 %v2269_v10, %v4559_v31  ;;  %v2272_v37 = vmul.f32 %v3610_v17, %v4639_v2  ;;  %v1668_v52 = vsub.f32 0.0, %v4660_v34  ;;  %vm2277_vm4 = vweird.f32 %v3610_v17 }
 0x171   :  { %v4669_v27 = vpop.f32.mrf.mxu3  ;;  %vm2278_vm7 = vmor %vm2276_vm5, %vm2277_vm4  ;;  %v2297_v10 = vand.u32 2147483648, %v4655_v56 }
 0x172   :  { %v3612_v0 = vpop.eup %3611  ;;  %2881 = vst.msk [vmem:[%s5554_s7 + $0xc0] sm:$0xff] %vm2856_vm6, %v2270_v30  ;;  %v2273_v29 = vsub.f32 1.0, %v2272_v37  ;;  %v1760_v32 = vmul.f32 1.442695, %v1668_v52 }
 0x173   :  { %v3614_v47 = vpop.eup %3613  ;;  %v4673_v31 = vadd.f32 1.0, %v3612_v0  ;;  %v1420_v58 = vpop.f32.mrf.mxu2 }
 0x174   :  { %v2274_v43 = vmul.f32 %v3610_v17, %v2273_v29  ;;  %v2287_v22 = vmul.f32 %v3614_v47, %v4655_v56  ;;  %3615 = vpow2.f32 %v1760_v32  ;;  %v502_v54 = vpop.f32.mrf.mxu0  ;;  %v1537_v24 = vadd.f32 %v1420_v58, %v928_v50 }
 0x175   :  { %3617 = vrcp.f32 %v4673_v31  ;;  %v930_v35 = vpop.f32.mrf.mxu1  ;;  %vm2292_vm9 = vweird.f32 %v3614_v47  ;;  %v2298_v50 = vor.u32 1.1754944e-38, %v2297_v10  ;;  %vm2306_vm13 = vweird.f32 %v4673_v31 }
 0x176   :  { %v2275_v63 = vadd.f32 %v3610_v17, %v2274_v43  ;;  %v2288_v62 = vsub.f32 1.0, %v2287_v22  ;;  %3076 = vmatmul.msk.bf16.gmra.mxu0 %vm317_vm1, %v3460_v26  ;;  %3404 = vmatmul.msk.bf16.gmra.mxu3 %vm317_vm1, %v3500_v57  ;;  %v4695_v52 = vadd.f32 %v4372_v4, %v1537_v24  ;;  %vm2293_vm11 = vmor %vm2291_vm10, %vm2292_vm9  ;;  %v931_v26 = vadd.f32 %v930_v35, %v502_v54 }
 0x177   :  { %3236 = vmatmul.msk.bf16.gmra.mxu1 %vm317_vm1, %v3428_v42  ;;  %v2312_v54 = vand.u32 2147483648, %v4673_v31  ;;  %v2310_v24 = vand.u32 2147483647, %v4673_v31 }
 0x178   :  { %v2279_v30 = vsel %vm2278_vm7, %v3610_v17, %v2275_v63  ;;  %v2289_v37 = vmul.f32 %v3614_v47, %v2288_v62  ;;  %3396 = vmatmul.msk.bf16.gmra.mxu2 %vm317_vm1, %v3492_v1  ;;  %v1669_v9 = vsub.f32 0.0, %v4695_v52  ;;  %vm2296_vm1 = vcmp.eq.f32.partialorder %v2295_v15, 8.507059e+37 }
 0x179   :  { %v2284_v2 = vsel %vm2281_vm8, %v2283_v7, %v2279_v30  ;;  %v4702_v18 = vpop.f32.mrf.mxu3  ;;  %vm2311_vm15 = vcmp.eq.f32.partialorder %v2310_v24, 8.507059e+37 }
 0x17a   :  { %v3616_v0 = vpop.eup %3615  ;;  %v2285_v29 = vmul.f32 %v2284_v2, %v4598_v28  ;;  %v2290_v32 = vadd.f32 %v3614_v47, %v2289_v37  ;;  %v1762_v43 = vmul.f32 1.442695, %v1669_v9  ;;  %v2313_v37 = vor.u32 1.1754944e-38, %v2312_v54 }
 0x17b   :  { %v3618_v17 = vpop.eup %3617  ;;  %v4704_v58 = vadd.f32 1.0, %v3616_v0  ;;  %v1423_v57 = vpop.f32.mrf.mxu2  ;;  %v976_v54 = vadd.f32 %v4334_v12, %v3957_v45 }
 0x17c   :  { %2882 = vst.msk [vmem:[%s5554_s7 + $0xc8] sm:$0xff] %vm2856_vm6, %v2285_v29  ;;  %v2294_v28 = vsel %vm2293_vm11, %v3614_v47, %v2290_v32  ;;  %v2302_v56 = vmul.f32 %v3618_v17, %v4673_v31  ;;  %v504_v22 = vpop.f32.mrf.mxu0  ;;  %v1538_v35 = vadd.f32 %v1423_v57, %v931_v26  ;;  %vm2307_vm12 = vweird.f32 %v3618_v17 }
 0x17d   :  { %v2299_v42 = vsel %vm2296_vm1, %v2298_v50, %v2294_v28  ;;  %3619 = vrcp.f32 %v4704_v58  ;;  %v932_v1 = vpop.f32.mrf.mxu1  ;;  %vm2308_vm14 = vmor %vm2306_vm13, %vm2307_vm12  ;;  %vm2321_vm2 = vweird.f32 %v4704_v58 }
 0x17e   :  { %v2300_v63 = vmul.f32 %v2299_v42, %v4609_v11  ;;  %v2303_v62 = vsub.f32 1.0, %v2302_v56  ;;  %3621 = vpow2.f32 %v1762_v43  ;;  %v4720_v7 = vadd.f32 %v4372_v4, %v1538_v35 }
 0x17f   :  { %v933_v11 = vadd.f32 %v932_v1, %v504_v22  ;;  %v2325_v1 = vand.u32 2147483647, %v4704_v58 }
 0x180   :  { %2883 = vst.msk [vmem:[%s5554_s7 + $0xd0] sm:$0xff] %vm2856_vm6, %v2300_v63  ;;  %v2304_v47 = vmul.f32 %v3618_v17, %v2303_v62  ;;  %v1670_v2 = vsub.f32 0.0, %v4720_v7 }
 0x181   :  { %v4723_v10 = vpop.f32.mrf.mxu3  ;;  %vm2326_vm4 = vcmp.eq.f32.partialorder %v2325_v1, 8.507059e+37 }
 0x182   :  { %v2305_v15 = vadd.f32 %v3618_v17, %v2304_v47  ;;  %v1764_v56 = vmul.f32 1.442695, %v1670_v2 }
 0x183   :  { %v3620_v30 = vpop.eup %3619  ;;  %v1425_v0 = vpop.f32.mrf.mxu2 }
 0x184   :  { %v3622_v29 = vpop.eup %3621  ;;  %v2309_v32 = vsel %vm2308_vm14, %v3618_v17, %v2305_v15  ;;  %v2317_v9 = vmul.f32 %v3620_v30, %v4704_v58  ;;  %v1539_v50 = vadd.f32 %v1425_v0, %v933_v11  ;;  %v507_v26 = vpop.f32.mrf.mxu0  ;;  %vm2322_vm0 = vweird.f32 %v3620_v30 }
 0x185   :  { %v2314_v57 = vsel %vm2311_vm15, %v2313_v37, %v2309_v32  ;;  %v1861_v28 = vadd.f32 1.0, %v3622_v29  ;;  %v935_v31 = vpop.f32.mrf.mxu1  ;;  %v2327_v17 = vand.u32 2147483648, %v4704_v58  ;;  %vm2323_vm3 = vmor %vm2321_vm2, %vm2322_vm0 }
 0x186   :  { %v2315_v43 = vmul.f32 %v2314_v57, %v4637_v3  ;;  %v2318_v22 = vsub.f32 1.0, %v2317_v9  ;;  %v4729_v42 = vadd.f32 %v4372_v4, %v1539_v50  ;;  %v936_v3 = vadd.f32 %v935_v31, %v507_v26 }
 0x187   :  { %3623 = vrcp.f32 %v1861_v28  ;;  %v2328_v15 = vor.u32 1.1754944e-38, %v2327_v17  ;;  %v978_v31 = vadd.f32 %v4353_v49, %v3968_v55  ;;  %v2342_v1 = vand.u32 2147483648, %v1861_v28 }
 0x188   :  { %2884 = vst.msk [vmem:[%s5554_s7 + $0xd8] sm:$0xff] %vm2856_vm6, %v2315_v43  ;;  %v2319_v63 = vmul.f32 %v3620_v30, %v2318_v22  ;;  %3625 = vpow2.f32 %v1764_v56  ;;  %v1671_v62 = vsub.f32 0.0, %v4729_v42  ;;  %vm2336_vm7 = vweird.f32 %v1861_v28 }
 0x189   :  { %v1468_v24 = vpop.f32.mrf.mxu3 }
 0x18a   :  { %v2320_v35 = vadd.f32 %v3620_v30, %v2319_v63  ;;  %v1766_v47 = vmul.f32 1.442695, %v1671_v62  ;;  %v1556_v37 = vadd.f32 %v1468_v24, %v976_v54 }
 0x18b   :  { %v1428_v11 = vpop.f32.mrf.mxu2 }
 0x18c   :  { %v2324_v2 = vsel %vm2323_vm3, %v3620_v30, %v2320_v35  ;;  %3627 = vpow2.f32 %v1766_v47  ;;  %v1540_v0 = vadd.f32 %v1428_v11, %v936_v3  ;;  %v509_v29 = vpop.f32.mrf.mxu0  ;;  %v4742_v50 = vadd.f32 %v4372_v4, %v1556_v37 }
 0x18d   :  { %v3624_v32 = vpop.eup %3623  ;;  %v2329_v9 = vsel %vm2326_vm4, %v2328_v15, %v2324_v2  ;;  %v937_v45 = vpop.f32.mrf.mxu1  ;;  %v2343_v11 = vor.u32 1.1754944e-38, %v2342_v1 }
 0x18e   :  { %v3626_v12 = vpop.eup %3625  ;;  %v2330_v58 = vmul.f32 %v2329_v9, %v4660_v34  ;;  %v2332_v26 = vmul.f32 %v3624_v32, %v1861_v28  ;;  %v4746_v57 = vadd.f32 %v4372_v4, %v1540_v0  ;;  %v1688_v30 = vsub.f32 0.0, %v4742_v50 }
 0x18f   :  { %v4748_v56 = vadd.f32 1.0, %v3626_v12  ;;  %vm2337_vm5 = vweird.f32 %v3624_v32  ;;  %v2340_v34 = vand.u32 2147483647, %v1861_v28  ;;  %v938_v3 = vadd.f32 %v937_v45, %v509_v29  ;;  %v4773_v28 = vld [vmem:[%s5553_s6] ss:$0 sm:$0xff] }
 0x190   :  { %2885 = vst.msk [vmem:[%s5554_s7 + $0xe0] sm:$0xff] %vm2856_vm6, %v2330_v58  ;;  %v2333_v43 = vsub.f32 1.0, %v2332_v26  ;;  %v1672_v22 = vsub.f32 0.0, %v4746_v57  ;;  %v1800_v62 = vmul.f32 1.442695, %v1688_v30  ;;  %vm4762_vm8 = vmor %vm2336_vm7, %vm2337_vm5  ;;  %v981_v58 = vadd.f32 %v4391_v21, %v3990_v5 }
 0x191   :  { %3629 = vrcp.f32 %v4748_v56  ;;  %v1470_v54 = vpop.f32.mrf.mxu3  ;;  %vm2341_vm9 = vcmp.eq.f32.partialorder %v2340_v34, 8.507059e+37  ;;  %v2355_v37 = vand.u32 2147483647, %v4748_v56  ;;  %v4785_v26 = vadd.f32 %v4407_v36, %v3996_v16 }
 0x192   :  { %v3628_v4 = vpop.eup %3627  ;;  %v2334_v17 = vmul.f32 %v3624_v32, %v2333_v43  ;;  %v1768_v63 = vmul.f32 1.442695, %v1672_v22  ;;  %v1557_v35 = vadd.f32 %v1470_v54, %v978_v31  ;;  %v4793_v31 = vadd.f32 %v4461_v51, %v4039_v61 }
 0x193   :  { %v4759_v55 = vadd.f32 1.0, %v3628_v4  ;;  %v1430_v49 = vpop.f32.mrf.mxu2  ;;  %v4800_v5 = vadd.f32 %v4496_v48, %v4072_v25  ;;  %v4804_v16 = vadd.f32 %v4514_v19, %v4091_v53  ;;  %vm2351_vm10 = vweird.f32 %v4748_v56 }
 0x194   :  { %v2335_v47 = vadd.f32 %v3624_v32, %v2334_v17  ;;  %3631 = vpow2.f32 %v1768_v63  ;;  %v1541_v24 = vadd.f32 %v1430_v49, %v938_v3  ;;  %v512_v2 = vpop.f32.mrf.mxu0  ;;  %v4779_v45 = vadd.f32 %v4773_v28, %v1557_v35 }
 0x195   :  { %3633 = vrcp.f32 %v4759_v55  ;;  %v940_v0 = vpop.f32.mrf.mxu1  ;;  %vm4813_vm11 = vcmp.eq.f32.partialorder %v2355_v37, 8.507059e+37  ;;  %v2370_v54 = vand.u32 2147483647, %v4759_v55  ;;  %v2372_v49 = vand.u32 2147483648, %v4759_v55 }
 0x196   :  { %v2339_v29 = vsel %vm4762_vm8, %v3624_v32, %v2335_v47  ;;  %3635 = vpow2.f32 %v1800_v62  ;;  %v4776_v9 = vadd.f32 %v4773_v28, %v1541_v24  ;;  %v4789_v32 = vadd.f32 %v4440_v33, %v4021_v38 }
 0x197   :  { %v3630_v12 = vpop.eup %3629  ;;  %v2344_v30 = vsel %vm2341_vm9, %v2343_v11, %v2339_v29  ;;  %v2357_v38 = vand.u32 2147483648, %v4748_v56  ;;  %v1689_v21 = vsub.f32 0.0, %v4779_v45  ;;  %vm2366_vm14 = vweird.f32 %v4759_v55 }
 0x198   :  { %v2345_v43 = vmul.f32 %v2344_v30, %v4695_v52  ;;  %v2347_v22 = vmul.f32 %v3630_v12, %v4748_v56  ;;  %v1673_v34 = vsub.f32 0.0, %v4776_v9  ;;  %v941_v52 = vadd.f32 %v940_v0, %v512_v2 }
 0x199   :  { %v1473_v53 = vpop.f32.mrf.mxu3  ;;  %v1802_v19 = vmul.f32 1.442695, %v1689_v21  ;;  %vm2352_vm1 = vweird.f32 %v3630_v12  ;;  %v2358_v3 = vor.u32 1.1754944e-38, %v2357_v38  ;;  %vm4844_vm15 = vcmp.eq.f32.partialorder %v2370_v54, 8.507059e+37 }
 0x19a   :  { %v3632_v61 = vpop.eup %3631  ;;  %2886 = vst.msk [vmem:[%s5554_s7 + $0xe8] sm:$0xff] %vm2856_vm6, %v2345_v43  ;;  %v2348_v36 = vsub.f32 1.0, %v2347_v22  ;;  %v1770_v33 = vmul.f32 1.442695, %v1673_v34  ;;  %v1558_v4 = vadd.f32 %v1473_v53, %v981_v58  ;;  %vm2353_vm12 = vmor %vm2351_vm10, %vm2352_vm1  ;;  %v4835_v43 = vadd.f32 %v4547_v60, %v4124_v20 }
 0x19b   :  { %v3634_v51 = vpop.eup %3633  ;;  %v4817_v48 = vadd.f32 1.0, %v3632_v61  ;;  %v1433_v1 = vpop.f32.mrf.mxu2 }
 0x19c   :  { %v3636_v17 = vpop.eup %3635  ;;  %v2349_v63 = vmul.f32 %v3630_v12, %v2348_v36  ;;  %v2362_v62 = vmul.f32 %v3634_v51, %v4759_v55  ;;  %3637 = vpow2.f32 %v1770_v33  ;;  %vm2367_vm13 = vweird.f32 %v3634_v51  ;;  %v514_v2 = vpop.f32.mrf.mxu0 }
 0x19d   :  { %3639 = vrcp.f32 %v4817_v48  ;;  %v4823_v24 = vadd.f32 1.0, %v3636_v17  ;;  %v2385_v15 = vand.u32 2147483647, %v4817_v48  ;;  %v1542_v11 = vadd.f32 %v1433_v1, %v941_v52  ;;  %v942_v0 = vpop.f32.mrf.mxu1  ;;  %vm2368_vm0 = vmor %vm2366_vm14, %vm2367_vm13 }
 0x19e   :  { %v2350_v35 = vadd.f32 %v3630_v12, %v2349_v63  ;;  %v2363_v47 = vsub.f32 1.0, %v2362_v62  ;;  %3641 = vpow2.f32 %v1802_v19  ;;  %v4829_v37 = vadd.f32 %v4773_v28, %v1558_v4 }
 0x19f   :  { %v2387_v30 = vand.u32 2147483648, %v4817_v48  ;;  %3643 = vrcp.f32 %v4823_v24  ;;  %v4841_v22 = vadd.f32 %v4773_v28, %v1542_v11  ;;  %v2373_v36 = vor.u32 1.1754944e-38, %v2372_v49 }
 0x1a0   :  { %v2354_v29 = vsel %vm2353_vm12, %v3630_v12, %v2350_v35  ;;  %v2364_v58 = vmul.f32 %v3634_v51, %v2363_v47  ;;  %v1690_v61 = vsub.f32 0.0, %v4829_v37  ;;  %vm2381_vm2 = vweird.f32 %v4817_v48 }
 0x1a1   :  { %v2359_v56 = vsel %vm4813_vm11, %v2358_v3, %v2354_v29  ;;  %v1475_v20 = vpop.f32.mrf.mxu3  ;;  %v1674_v25 = vsub.f32 0.0, %v4841_v22  ;;  %vm4859_vm3 = vcmp.eq.f32.partialorder %v2385_v15, 8.507059e+37  ;;  %v2388_v1 = vor.u32 1.1754944e-38, %v2387_v30 }
 0x1a2   :  { %v3638_v34 = vpop.eup %3637  ;;  %v2360_v12 = vmul.f32 %v2359_v56, %v4720_v7  ;;  %v2365_v38 = vadd.f32 %v3634_v51, %v2364_v58  ;;  %v2625_v17 = vand.u32 2147483647, %v4823_v24  ;;  %v2627_v63 = vand.u32 2147483648, %v4823_v24 }
 0x1a3   :  { %v3640_v60 = vpop.eup %3639  ;;  %v4851_v55 = vadd.f32 1.0, %v3638_v34  ;;  %v1435_v33 = vpop.f32.mrf.mxu2  ;;  %v1804_v49 = vmul.f32 1.442695, %v1690_v61  ;;  %vm2621_vm4 = vweird.f32 %v4823_v24  ;;  %v1772_v47 = vmul.f32 1.442695, %v1674_v25 }
 0x1a4   :  { %v3642_v7 = vpop.eup %3641  ;;  %2887 = vst.msk [vmem:[%s5554_s7 + $0xf0] sm:$0xff] %vm2856_vm6, %v2360_v12  ;;  %v2369_v53 = vsel %vm2368_vm0, %v3634_v51, %v2365_v38  ;;  %v2377_v19 = vmul.f32 %v3640_v60, %v4817_v48  ;;  %v943_v15 = vadd.f32 %v942_v0, %v514_v2  ;;  %vm2382_vm5 = vweird.f32 %v3640_v60  ;;  %v517_v56 = vpop.f32.mrf.mxu0 }
 0x1a5   :  { %v2374_v4 = vsel %vm4844_vm15, %v2373_v36, %v2369_v53  ;;  %3645 = vrcp.f32 %v4851_v55  ;;  %v3644_v62 = vpop.eup %3643  ;;  %v4869_v54 = vadd.f32 1.0, %v3642_v7  ;;  %v2402_v29 = vand.u32 2147483648, %v4851_v55  ;;  %v945_v2 = vpop.f32.mrf.mxu1  ;;  %vm2383_vm8 = vmor %vm2381_vm2, %vm2382_vm5 }
 0x1a6   :  { %v2375_v3 = vmul.f32 %v2374_v4, %v4729_v42  ;;  %v2378_v51 = vsub.f32 1.0, %v2377_v19  ;;  %v2617_v35 = vmul.f32 %v3644_v62, %v4823_v24  ;;  %vm4879_vm7 = vcmp.eq.f32.partialorder %v2625_v17, 8.507059e+37 }
 0x1a7   :  { %3647 = vrcp.f32 %v4869_v54  ;;  %v2628_v30 = vor.u32 1.1754944e-38, %v2627_v63  ;;  %v1543_v34 = vadd.f32 %v1435_v33, %v943_v15  ;;  %v1559_v12 = vadd.f32 %v1475_v20, %v4785_v26 }
 0x1a8   :  { %2888 = vst.msk [vmem:[%s5554_s7 + $0xf8] sm:$0xff] %vm2856_vm6, %v2375_v3  ;;  %v2379_v11 = vmul.f32 %v3640_v60, %v2378_v51  ;;  %v2618_v42 = vsub.f32 1.0, %v2617_v35  ;;  %3649 = vpow2.f32 %v1772_v47  ;;  %vm2622_vm9 = vweird.f32 %v3644_v62 }
 0x1a9   :  { %3651 = vpow2.f32 %v1804_v49  ;;  %v1478_v38 = vpop.f32.mrf.mxu3  ;;  %vm2396_vm10 = vweird.f32 %v4851_v55  ;;  %v2400_v36 = vand.u32 2147483647, %v4851_v55  ;;  %v2403_v19 = vor.u32 1.1754944e-38, %v2402_v29  ;;  %vm2623_vm11 = vmor %vm2621_vm4, %vm2622_vm9 }
 0x1aa   :  { %v2380_v0 = vadd.f32 %v3640_v60, %v2379_v11  ;;  %v2619_v61 = vmul.f32 %v3644_v62, %v2618_v42  ;;  %v4891_v33 = vadd.f32 %v4773_v28, %v1543_v34  ;;  %v2640_v48 = vand.u32 2147483647, %v4869_v54 }
 0x1ab   :  { %v3646_v21 = vpop.eup %3645  ;;  %v1438_v25 = vpop.f32.mrf.mxu2  ;;  %v4897_v4 = vadd.f32 %v4773_v28, %v1559_v12  ;;  %v946_v51 = vadd.f32 %v945_v2, %v517_v56  ;;  %vm2401_vm14 = vcmp.eq.f32.partialorder %v2400_v36, 8.507059e+37  ;;  %vm2636_vm15 = vweird.f32 %v4869_v54 }
 0x1ac   :  { %v2384_v7 = vsel %vm2383_vm8, %v3640_v60, %v2380_v0  ;;  %v2392_v53 = vmul.f32 %v3646_v21, %v4851_v55  ;;  %v2620_v20 = vadd.f32 %v3644_v62, %v2619_v61  ;;  %v1675_v3 = vsub.f32 0.0, %v4891_v33 }
 0x1ad   :  { %v2389_v26 = vsel %vm4859_vm3, %v2388_v1, %v2384_v7  ;;  %v3648_v17 = vpop.eup %3647  ;;  %v2642_v1 = vand.u32 2147483648, %v4869_v54  ;;  %v1691_v47 = vsub.f32 0.0, %v4897_v4  ;;  %vm2397_vm1 = vweird.f32 %v3646_v21  ;;  %v947_v12 = vpop.f32.mrf.mxu1 }
 0x1ae   :  { %v2390_v63 = vmul.f32 %v2389_v26, %v4746_v57  ;;  %v2393_v60 = vsub.f32 1.0, %v2392_v53  ;;  %v3650_v49 = vpop.eup %3649  ;;  %v2624_v35 = vsel %vm2623_vm11, %v3644_v62, %v2620_v20  ;;  %v2632_v52 = vmul.f32 %v3648_v17, %v4869_v54  ;;  %vm2398_vm12 = vmor %vm2396_vm10, %vm2397_vm1 }
 0x1af   :  { %v3652_v15 = vpop.eup %3651  ;;  %v2629_v57 = vsel %vm4879_vm7, %v2628_v30, %v2624_v35  ;;  %v4912_v11 = vadd.f32 1.0, %v3650_v49  ;;  %v1774_v56 = vmul.f32 1.442695, %v1675_v3  ;;  %v1806_v0 = vmul.f32 1.442695, %v1691_v47  ;;  %v519_v30 = vpop.f32.mrf.mxu0 }
 0x1b0   :  { %2889 = vst.msk [vmem:[%s5554_s7 + $0x100] sm:$0xff] %vm2856_vm6, %v2390_v63  ;;  %v2394_v24 = vmul.f32 %v3646_v21, %v2393_v60  ;;  %v2630_v62 = vmul.f32 %v2629_v57, %v4742_v50  ;;  %v2633_v29 = vsub.f32 1.0, %v2632_v52  ;;  %v4915_v42 = vadd.f32 1.0, %v3652_v15 }
 0x1b1   :  { %3653 = vrcp.f32 %v4912_v11  ;;  %v1544_v34 = vadd.f32 %v1438_v25, %v946_v51  ;;  %vm2637_vm13 = vweird.f32 %v3648_v17  ;;  %v1560_v50 = vadd.f32 %v1478_v38, %v4789_v32  ;;  %v1480_v55 = vpop.f32.mrf.mxu3 }
 0x1b2   :  { %v2395_v2 = vadd.f32 %v3646_v21, %v2394_v24  ;;  %2905 = vst.msk [vmem:[%s5554_s7 + $0x180] sm:$0xff] %vm2856_vm6, %v2630_v62  ;;  %v2634_v58 = vmul.f32 %v3648_v17, %v2633_v29  ;;  %3655 = vrcp.f32 %v4915_v42  ;;  %v4928_v61 = vadd.f32 %v4564_v23, %v4140_v41  ;;  %vm2638_vm0 = vmor %vm2636_vm15, %vm2637_vm13 }
 0x1b3   :  { %v4932_v25 = vadd.f32 %v4601_v6, %v4173_v14  ;;  %3657 = vpow2.f32 %v1774_v56  ;;  %v1440_v20 = vpop.f32.mrf.mxu2  ;;  %vm2641_vm2 = vcmp.eq.f32.partialorder %v2640_v48, 8.507059e+37  ;;  %v2643_v41 = vor.u32 1.1754944e-38, %v2642_v1 }
 0x1b4   :  { %v2399_v7 = vsel %vm2398_vm12, %v3646_v21, %v2395_v2  ;;  %v2635_v26 = vadd.f32 %v3648_v17, %v2634_v58  ;;  %3659 = vpow2.f32 %v1806_v0  ;;  %vm2411_vm3 = vweird.f32 %v4912_v11 }
 0x1b5   :  { %v2404_v53 = vsel %vm2401_vm14, %v2403_v19, %v2399_v7  ;;  %v2415_v14 = vand.u32 2147483647, %v4912_v11  ;;  %v4940_v6 = vadd.f32 %v4773_v28, %v1544_v34  ;;  %v4943_v38 = vadd.f32 %v4773_v28, %v1560_v50  ;;  %v950_v34 = vpop.f32.mrf.mxu1 }
 0x1b6   :  { %v2405_v32 = vmul.f32 %v2404_v53, %v4776_v9  ;;  %v2639_v23 = vsel %vm2638_vm0, %v3648_v17, %v2635_v26  ;;  %v2417_v21 = vand.u32 2147483648, %v4912_v11  ;;  %v948_v36 = vadd.f32 %v947_v12, %v519_v30 }
 0x1b7   :  { %v3654_v54 = vpop.eup %3653  ;;  %v2644_v9 = vsel %vm2641_vm2, %v2643_v41, %v2639_v23  ;;  %v1561_v19 = vadd.f32 %v1480_v55, %v4793_v31  ;;  %vm2651_vm4 = vweird.f32 %v4915_v42  ;;  %v1676_v60 = vsub.f32 0.0, %v4940_v6  ;;  %v522_v0 = vpop.f32.mrf.mxu0 }
 0x1b8   :  { %2890 = vst.msk [vmem:[%s5554_s7 + $0x108] sm:$0xff] %vm2856_vm6, %v2405_v32  ;;  %v3656_v48 = vpop.eup %3655  ;;  %v2645_v17 = vmul.f32 %v2644_v9, %v4779_v45  ;;  %v2407_v63 = vmul.f32 %v3654_v54, %v4912_v11  ;;  %v2655_v51 = vand.u32 2147483647, %v4915_v42  ;;  %v1692_v49 = vsub.f32 0.0, %v4943_v38 }
 0x1b9   :  { %v2647_v3 = vmul.f32 %v3656_v48, %v4915_v42  ;;  %v1545_v35 = vadd.f32 %v1440_v20, %v948_v36  ;;  %v3658_v52 = vpop.eup %3657  ;;  %v2657_v31 = vand.u32 2147483648, %v4915_v42  ;;  %v1776_v1 = vmul.f32 1.442695, %v1676_v60  ;;  %v1483_v30 = vpop.f32.mrf.mxu3 }
 0x1ba   :  { %2906 = vst.msk [vmem:[%s5554_s7 + $0x188] sm:$0xff] %vm2856_vm6, %v2645_v17  ;;  %v2408_v45 = vsub.f32 1.0, %v2407_v63  ;;  %v4964_v47 = vadd.f32 %v4773_v28, %v1561_v19  ;;  %v3660_v15 = vpop.eup %3659  ;;  %vm2412_vm5 = vweird.f32 %v3654_v54  ;;  %v4966_v24 = vadd.f32 1.0, %v3658_v52 }
 0x1bb   :  { %v2648_v57 = vsub.f32 1.0, %v2647_v3  ;;  %v1808_v62 = vmul.f32 1.442695, %v1692_v49  ;;  %v4968_v56 = vadd.f32 1.0, %v3660_v15  ;;  %3661 = vpow2.f32 %v1776_v1  ;;  %v1443_v53 = vpop.f32.mrf.mxu2  ;;  %vm2413_vm9 = vmor %vm2411_vm3, %vm2412_vm5 }
 0x1bc   :  { %v2409_v29 = vmul.f32 %v3654_v54, %v2408_v45  ;;  %v4971_v2 = vadd.f32 %v4773_v28, %v1545_v35  ;;  %vm4973_vm7 = vcmp.eq.f32.partialorder %v2415_v14, 8.507059e+37  ;;  %vm2652_vm8 = vweird.f32 %v3656_v48 }
 0x1bd   :  { %v2649_v50 = vmul.f32 %v3656_v48, %v2648_v57  ;;  %3663 = vrcp.f32 %v4966_v24  ;;  %v2418_v7 = vor.u32 1.1754944e-38, %v2417_v21  ;;  %v1693_v55 = vsub.f32 0.0, %v4964_v47  ;;  %vm2653_vm11 = vmor %vm2651_vm4, %vm2652_vm8 }
 0x1be   :  { %v2410_v12 = vadd.f32 %v3654_v54, %v2409_v29  ;;  %3665 = vrcp.f32 %v4968_v56  ;;  %vm2656_vm10 = vcmp.eq.f32.partialorder %v2655_v51, 8.507059e+37  ;;  %v2658_v20 = vor.u32 1.1754944e-38, %v2657_v31 }
 0x1bf   :  { %v2650_v26 = vadd.f32 %v3656_v48, %v2649_v50  ;;  %v951_v32 = vadd.f32 %v950_v34, %v522_v0  ;;  %3667 = vpow2.f32 %v1808_v62  ;;  %v1677_v23 = vsub.f32 0.0, %v4971_v2  ;;  %v524_v57 = vpop.f32.mrf.mxu0  ;;  %v952_v62 = vpop.f32.mrf.mxu1 }
 0x1c0   :  { %v2414_v41 = vsel %vm2413_vm9, %v3654_v54, %v2410_v12  ;;  %v1562_v14 = vadd.f32 %v1483_v30, %v4800_v5  ;;  %v2430_v11 = vand.u32 2147483647, %v4966_v24  ;;  %v2432_v36 = vand.u32 2147483648, %v4966_v24 }
 0x1c1   :  { %v2419_v9 = vsel %vm4973_vm7, %v2418_v7, %v2414_v41  ;;  %v2654_v21 = vsel %vm2653_vm11, %v3656_v48, %v2650_v26  ;;  %v3662_v19 = vpop.eup %3661  ;;  %v1778_v63 = vmul.f32 1.442695, %v1677_v23  ;;  %v1810_v42 = vmul.f32 1.442695, %v1693_v55  ;;  %v1485_v55 = vpop.f32.mrf.mxu3 }
 0x1c2   :  { %v2420_v17 = vmul.f32 %v2419_v9, %v4841_v22  ;;  %v2659_v54 = vsel %vm2656_vm10, %v2658_v20, %v2654_v21  ;;  %v2670_v51 = vand.u32 2147483647, %v4968_v56  ;;  %v4994_v5 = vadd.f32 1.0, %v3662_v19 }
 0x1c3   :  { %v3664_v60 = vpop.eup %3663  ;;  %v2660_v3 = vmul.f32 %v2659_v54, %v4829_v37  ;;  %v1546_v49 = vadd.f32 %v1443_v53, %v951_v32  ;;  %vm2426_vm1 = vweird.f32 %v4966_v24  ;;  %vm2666_vm12 = vweird.f32 %v4968_v56  ;;  %v1445_v7 = vpop.f32.mrf.mxu2 }
 0x1c4   :  { %v3666_v35 = vpop.eup %3665  ;;  %2891 = vst.msk [vmem:[%s5554_s7 + $0x110] sm:$0xff] %vm2856_vm6, %v2420_v17  ;;  %v2422_v48 = vmul.f32 %v3664_v60, %v4966_v24  ;;  %3669 = vpow2.f32 %v1778_v63  ;;  %vm5007_vm13 = vcmp.eq.f32.partialorder %v2430_v11, 8.507059e+37  ;;  %v2672_v52 = vand.u32 2147483648, %v4968_v56 }
 0x1c5   :  { %2907 = vst.msk [vmem:[%s5554_s7 + $0x190] sm:$0xff] %vm2856_vm6, %v2660_v3  ;;  %v2662_v22 = vmul.f32 %v3666_v35, %v4968_v56  ;;  %3671 = vrcp.f32 %v4994_v5  ;;  %v3668_v45 = vpop.eup %3667  ;;  %v2433_v1 = vor.u32 1.1754944e-38, %v2432_v36  ;;  %v5015_v15 = vadd.f32 %v4773_v28, %v1562_v14 }
 0x1c6   :  { %v2423_v31 = vsub.f32 1.0, %v2422_v48  ;;  %3673 = vpow2.f32 %v1810_v42  ;;  %vm5017_vm14 = vcmp.eq.f32.partialorder %v2670_v51, 8.507059e+37  ;;  %v5021_v34 = vadd.f32 1.0, %v3668_v45 }
 0x1c7   :  { %v2663_v29 = vsub.f32 1.0, %v2662_v22  ;;  %v5024_v58 = vadd.f32 %v4773_v28, %v1546_v49  ;;  %vm2427_vm15 = vweird.f32 %v3664_v60  ;;  %v2445_v30 = vand.u32 2147483647, %v4994_v5 }
 0x1c8   :  { %v2424_v50 = vmul.f32 %v3664_v60, %v2423_v31  ;;  %v2447_v12 = vand.u32 2147483648, %v4994_v5  ;;  %vm2667_vm0 = vweird.f32 %v3666_v35  ;;  %3675 = vrcp.f32 %v5021_v34  ;;  %vm2428_vm3 = vmor %vm2426_vm1, %vm2427_vm15 }
 0x1c9   :  { %v2664_v53 = vmul.f32 %v3666_v35, %v2663_v29  ;;  %v953_v26 = vadd.f32 %v952_v62, %v524_v57  ;;  %v2673_v41 = vor.u32 1.1754944e-38, %v2672_v52  ;;  %vm2441_vm2 = vweird.f32 %v4994_v5  ;;  %vm2668_vm4 = vmor %vm2666_vm12, %vm2667_vm0  ;;  %v955_v62 = vpop.f32.mrf.mxu1 }
 0x1ca   :  { %v3670_v20 = vpop.eup %3669  ;;  %v2425_v32 = vadd.f32 %v3664_v60, %v2424_v50  ;;  %v1694_v23 = vsub.f32 0.0, %v5015_v15  ;;  %v1678_v11 = vsub.f32 0.0, %v5024_v58  ;;  %vm5041_vm5 = vcmp.eq.f32.partialorder %v2445_v30, 8.507059e+37 }
 0x1cb   :  { %v3672_v14 = vpop.eup %3671  ;;  %v2665_v9 = vadd.f32 %v3666_v35, %v2664_v53  ;;  %v5034_v21 = vadd.f32 1.0, %v3670_v20  ;;  %v1547_v36 = vadd.f32 %v1445_v7, %v953_v26  ;;  %v2448_v24 = vor.u32 1.1754944e-38, %v2447_v12  ;;  %v1488_v7 = vpop.f32.mrf.mxu3 }
 0x1cc   :  { %v3674_v19 = vpop.eup %3673  ;;  %v2429_v17 = vsel %vm2428_vm3, %v3664_v60, %v2425_v32  ;;  %v2437_v54 = vmul.f32 %v3672_v14, %v4994_v5  ;;  %v2685_v42 = vand.u32 2147483647, %v5021_v34  ;;  %v2687_v49 = vand.u32 2147483648, %v5021_v34  ;;  %v1448_v32 = vpop.f32.mrf.mxu2 }
 0x1cd   :  { %v2434_v3 = vsel %vm5007_vm13, %v2433_v1, %v2429_v17  ;;  %v2669_v51 = vsel %vm2668_vm4, %v3666_v35, %v2665_v9  ;;  %3677 = vrcp.f32 %v5034_v21  ;;  %v1812_v22 = vmul.f32 1.442695, %v1694_v23  ;;  %v527_v1 = vpop.f32.mrf.mxu0 }
 0x1ce   :  { %v2435_v56 = vmul.f32 %v2434_v3, %v4891_v33  ;;  %v2674_v60 = vsel %vm5017_vm14, %v2673_v41, %v2669_v51  ;;  %v2438_v48 = vsub.f32 1.0, %v2437_v54  ;;  %v3676_v52 = vpop.eup %3675  ;;  %v5054_v31 = vadd.f32 1.0, %v3674_v19 }
 0x1cf   :  { %v2675_v45 = vmul.f32 %v2674_v60, %v4897_v4  ;;  %v1780_v57 = vmul.f32 1.442695, %v1678_v11  ;;  %v5057_v37 = vadd.f32 %v4773_v28, %v1547_v36  ;;  %vm2442_vm7 = vweird.f32 %v3672_v14 }
 0x1d0   :  { %2892 = vst.msk [vmem:[%s5554_s7 + $0x118] sm:$0xff] %vm2856_vm6, %v2435_v56  ;;  %v2439_v33 = vmul.f32 %v3672_v14, %v2438_v48  ;;  %v2677_v35 = vmul.f32 %v3676_v52, %v5021_v34  ;;  %vm2681_vm8 = vweird.f32 %v5021_v34  ;;  %vm5069_vm9 = vcmp.eq.f32.partialorder %v2685_v42, 8.507059e+37  ;;  %vm2443_vm10 = vmor %vm2441_vm2, %vm2442_vm7 }
 0x1d1   :  { %2908 = vst.msk [vmem:[%s5554_s7 + $0x198] sm:$0xff] %vm2856_vm6, %v2675_v45  ;;  %v2688_v29 = vor.u32 1.1754944e-38, %v2687_v49  ;;  %v2460_v0 = vand.u32 2147483647, %v5034_v21  ;;  %3679 = vrcp.f32 %v5054_v31  ;;  %v2462_v12 = vand.u32 2147483648, %v5034_v21 }
 0x1d2   :  { %v2440_v50 = vadd.f32 %v3672_v14, %v2439_v33  ;;  %v2678_v30 = vsub.f32 1.0, %v2677_v35  ;;  %3681 = vpow2.f32 %v1780_v57  ;;  %vm2456_vm11 = vweird.f32 %v5034_v21  ;;  %v957_v35 = vpop.f32.mrf.mxu1 }
 0x1d3   :  { %v3678_v53 = vpop.eup %3677  ;;  %3683 = vpow2.f32 %v1812_v22  ;;  %v1679_v26 = vsub.f32 0.0, %v5057_v37  ;;  %v1563_v20 = vadd.f32 %v1485_v55, %v4804_v16  ;;  %vm2682_vm1 = vweird.f32 %v3676_v52 }
 0x1d4   :  { %v2444_v41 = vsel %vm2443_vm10, %v3672_v14, %v2440_v50  ;;  %v2679_v23 = vmul.f32 %v3676_v52, %v2678_v30  ;;  %v2452_v9 = vmul.f32 %v3678_v53, %v5034_v21  ;;  %vm5085_vm12 = vcmp.eq.f32.partialorder %v2460_v0, 8.507059e+37  ;;  %vm2683_vm13 = vmor %vm2681_vm8, %vm2682_vm1  ;;  %v1490_v0 = vpop.f32.mrf.mxu3 }
 0x1d5   :  { %v2449_v11 = vsel %vm5041_vm5, %v2448_v24, %v2444_v41  ;;  %v1782_v5 = vmul.f32 1.442695, %v1679_v26  ;;  %v5090_v19 = vadd.f32 %v4773_v28, %v1563_v20  ;;  %v2463_v14 = vor.u32 1.1754944e-38, %v2462_v12 }
 0x1d6   :  { %v2450_v17 = vmul.f32 %v2449_v11, %v4940_v6  ;;  %v2680_v16 = vadd.f32 %v3676_v52, %v2679_v23  ;;  %v2453_v55 = vsub.f32 1.0, %v2452_v9  ;;  %vm2696_vm14 = vweird.f32 %v5054_v31 }
 0x1d7   :  { %v3680_v54 = vpop.eup %3679  ;;  %3685 = vpow2.f32 %v1782_v5  ;;  %v1695_v63 = vsub.f32 0.0, %v5090_v19  ;;  %v956_v24 = vadd.f32 %v955_v62, %v527_v1  ;;  %vm2457_vm15 = vweird.f32 %v3678_v53 }
 0x1d8   :  { %v3682_v42 = vpop.eup %3681  ;;  %2893 = vst.msk [vmem:[%s5554_s7 + $0x120] sm:$0xff] %vm2856_vm6, %v2450_v17  ;;  %v2684_v6 = vsel %vm2683_vm13, %v3676_v52, %v2680_v16  ;;  %v2454_v3 = vmul.f32 %v3678_v53, %v2453_v55  ;;  %v2692_v51 = vmul.f32 %v3680_v54, %v5054_v31  ;;  %v2700_v56 = vand.u32 2147483647, %v5054_v31  ;;  %v529_v52 = vpop.f32.mrf.mxu0  ;;  %vm2458_vm0 = vmor %vm2456_vm11, %vm2457_vm15 }
 0x1d9   :  { %v3684_v49 = vpop.eup %3683  ;;  %v2689_v34 = vsel %vm5069_vm9, %v2688_v29, %v2684_v6  ;;  %v2702_v60 = vand.u32 2147483648, %v5054_v31  ;;  %v5106_v48 = vadd.f32 1.0, %v3682_v42  ;;  %v1814_v1 = vmul.f32 1.442695, %v1695_v63 }
 0x1da   :  { %v2690_v22 = vmul.f32 %v2689_v34, %v4943_v38  ;;  %v2455_v45 = vadd.f32 %v3678_v53, %v2454_v3  ;;  %v2693_v57 = vsub.f32 1.0, %v2692_v51  ;;  %v5109_v33 = vadd.f32 1.0, %v3684_v49 }
 0x1db   :  { %3687 = vrcp.f32 %v5106_v48  ;;  %v1548_v62 = vadd.f32 %v1448_v32, %v956_v24  ;;  %v1564_v4 = vadd.f32 %v1488_v7, %v4835_v43  ;;  %vm2697_vm2 = vweird.f32 %v3680_v54  ;;  %v1450_v7 = vpop.f32.mrf.mxu2 }
 0x1dc   :  { %2909 = vst.msk [vmem:[%s5554_s7 + $0x1a0] sm:$0xff] %vm2856_vm6, %v2690_v22  ;;  %v2459_v38 = vsel %vm2458_vm0, %v3678_v53, %v2455_v45  ;;  %v2694_v29 = vmul.f32 %v3680_v54, %v2693_v57  ;;  %3689 = vrcp.f32 %v5109_v33  ;;  %v2703_v30 = vor.u32 1.1754944e-38, %v2702_v60  ;;  %vm2698_vm3 = vmor %vm2696_vm14, %vm2697_vm2  ;;  %v960_v22 = vpop.f32.mrf.mxu1 }
 0x1dd   :  { %v3686_v50 = vpop.eup %3685  ;;  %v2464_v21 = vsel %vm5085_vm12, %v2463_v14, %v2459_v38  ;;  %v2475_v12 = vand.u32 2147483647, %v5106_v48  ;;  %v2477_v43 = vand.u32 2147483648, %v5106_v48  ;;  %v2715_v53 = vand.u32 2147483647, %v5109_v33 }
 0x1de   :  { %v2465_v26 = vmul.f32 %v2464_v21, %v4971_v2  ;;  %v2695_v20 = vadd.f32 %v3680_v54, %v2694_v29  ;;  %v5126_v32 = vadd.f32 1.0, %v3686_v50  ;;  %v2717_v41 = vand.u32 2147483648, %v5109_v33  ;;  %v1493_v29 = vpop.f32.mrf.mxu3 }
 0x1df   :  { %3691 = vpow2.f32 %v1814_v1  ;;  %v5132_v23 = vadd.f32 %v4773_v28, %v1548_v62  ;;  %v5135_v9 = vadd.f32 %v4773_v28, %v1564_v4  ;;  %vm2701_vm4 = vcmp.eq.f32.partialorder %v2700_v56, 8.507059e+37 }
 0x1e0   :  { %2894 = vst.msk [vmem:[%s5554_s7 + $0x128] sm:$0xff] %vm2856_vm6, %v2465_v26  ;;  %v2699_v2 = vsel %vm2698_vm3, %v3680_v54, %v2695_v20  ;;  %3693 = vrcp.f32 %v5126_v32  ;;  %v958_v31 = vadd.f32 %v957_v35, %v529_v52  ;;  %vm2471_vm5 = vweird.f32 %v5106_v48  ;;  %v532_v60 = vpop.f32.mrf.mxu0 }
 0x1e1   :  { %v3688_v11 = vpop.eup %3687  ;;  %v2704_v36 = vsel %vm2701_vm4, %v2703_v30, %v2699_v2  ;;  %vm2711_vm7 = vweird.f32 %v5109_v33  ;;  %v1680_v5 = vsub.f32 0.0, %v5132_v23  ;;  %vm5147_vm8 = vcmp.eq.f32.partialorder %v2475_v12, 8.507059e+37 }
 0x1e2   :  { %v3690_v17 = vpop.eup %3689  ;;  %v2705_v16 = vmul.f32 %v2704_v36, %v4964_v47  ;;  %v2467_v55 = vmul.f32 %v3688_v11, %v5106_v48  ;;  %v2478_v54 = vor.u32 1.1754944e-38, %v2477_v43  ;;  %v1696_v63 = vsub.f32 0.0, %v5135_v9 }
 0x1e3   :  { %v2707_v24 = vmul.f32 %v3690_v17, %v5109_v33  ;;  %vm5153_vm9 = vcmp.eq.f32.partialorder %v2715_v53, 8.507059e+37  ;;  %v2718_v6 = vor.u32 1.1754944e-38, %v2717_v41  ;;  %v2490_v3 = vand.u32 2147483647, %v5126_v32  ;;  %v1453_v30 = vpop.f32.mrf.mxu2 }
 0x1e4   :  { %v2492_v47 = vand.u32 2147483648, %v5126_v32  ;;  %2910 = vst.msk [vmem:[%s5554_s7 + $0x1a8] sm:$0xff] %vm2856_vm6, %v2705_v16  ;;  %v2468_v51 = vsub.f32 1.0, %v2467_v55  ;;  %v1784_v49 = vmul.f32 1.442695, %v1680_v5  ;;  %v1549_v56 = vadd.f32 %v1450_v7, %v958_v31 }
 0x1e5   :  { %v1816_v34 = vmul.f32 1.442695, %v1696_v63  ;;  %v3692_v45 = vpop.eup %3691  ;;  %vm2472_vm10 = vweird.f32 %v3688_v11  ;;  %v2708_v57 = vsub.f32 1.0, %v2707_v24  ;;  %vm2486_vm11 = vweird.f32 %v5126_v32 }
 0x1e6   :  { %v1565_v52 = vadd.f32 %v1490_v0, %v4928_v61  ;;  %v961_v35 = vadd.f32 %v960_v22, %v532_v60  ;;  %v3694_v1 = vpop.eup %3693  ;;  %v2469_v62 = vmul.f32 %v3688_v11, %v2468_v51  ;;  %v5165_v4 = vadd.f32 1.0, %v3692_v45  ;;  %vm2473_vm13 = vmor %vm2471_vm5, %vm2472_vm10  ;;  %v1495_v45 = vpop.f32.mrf.mxu3 }
 0x1e7   :  { %3695 = vpow2.f32 %v1784_v49  ;;  %v5168_v38 = vadd.f32 %v4773_v28, %v1549_v56  ;;  %v2709_v50 = vmul.f32 %v3690_v17, %v2708_v57  ;;  %vm2712_vm1 = vweird.f32 %v3690_v17 }
 0x1e8   :  { %v2482_v21 = vmul.f32 %v3694_v1, %v5126_v32  ;;  %3697 = vpow2.f32 %v1816_v34  ;;  %v2470_v12 = vadd.f32 %v3688_v11, %v2469_v62  ;;  %vm5171_vm12 = vcmp.eq.f32.partialorder %v2490_v3, 8.507059e+37  ;;  %vm2713_vm14 = vmor %vm2711_vm7, %vm2712_vm1 }
 0x1e9   :  { %v2493_v61 = vor.u32 1.1754944e-38, %v2492_v47  ;;  %3699 = vrcp.f32 %v5165_v4  ;;  %v2710_v0 = vadd.f32 %v3690_v17, %v2709_v50  ;;  %v1681_v26 = vsub.f32 0.0, %v5168_v38 }
 0x1ea   :  { %v2483_v7 = vsub.f32 1.0, %v2482_v21  ;;  %v1566_v20 = vadd.f32 %v1493_v29, %v4932_v25  ;;  %v2474_v53 = vsel %vm2473_vm13, %v3688_v11, %v2470_v12  ;;  %vm2487_vm15 = vweird.f32 %v3694_v1 }
 0x1eb   :  { %v5184_v41 = vadd.f32 %v4773_v28, %v1565_v52  ;;  %v1550_v2 = vadd.f32 %v1453_v30, %v961_v35  ;;  %v2479_v31 = vsel %vm5147_vm8, %v2478_v54, %v2474_v53  ;;  %v2714_v48 = vsel %vm2713_vm14, %v3690_v17, %v2710_v0  ;;  %vm2488_vm0 = vmor %vm2486_vm11, %vm2487_vm15 }
 0x1ec   :  { %v2484_v36 = vmul.f32 %v3694_v1, %v2483_v7  ;;  %v2730_v5 = vand.u32 2147483647, %v5165_v4  ;;  %v2480_v55 = vmul.f32 %v2479_v31, %v5024_v58  ;;  %v2719_v25 = vsel %vm5153_vm9, %v2718_v6, %v2714_v48 }
 0x1ed   :  { %v3696_v16 = vpop.eup %3695  ;;  %v1786_v33 = vmul.f32 1.442695, %v1681_v26  ;;  %v1697_v11 = vsub.f32 0.0, %v5184_v41  ;;  %v2720_v24 = vmul.f32 %v2719_v25, %v5015_v15  ;;  %v2732_v14 = vand.u32 2147483648, %v5165_v4 }
 0x1ee   :  { %v3698_v63 = vpop.eup %3697  ;;  %v2485_v3 = vadd.f32 %v3694_v1, %v2484_v36  ;;  %v5195_v54 = vadd.f32 1.0, %v3696_v16  ;;  %2895 = vst.msk [vmem:[%s5554_s7 + $0x130] sm:$0xff] %vm2856_vm6, %v2480_v55  ;;  %v5207_v15 = vadd.f32 %v4773_v28, %v1550_v2  ;;  %v5216_v32 = vadd.f32 %v4773_v28, %v1566_v20 }
 0x1ef   :  { %v3700_v17 = vpop.eup %3699  ;;  %v5204_v58 = vadd.f32 1.0, %v3698_v63  ;;  %3701 = vpow2.f32 %v1786_v33  ;;  %v1818_v42 = vmul.f32 1.442695, %v1697_v11  ;;  %2911 = vst.msk [vmem:[%s5554_s7 + $0x1b0] sm:$0xff] %vm2856_vm6, %v2720_v24  ;;  %v1003_v51 = vadd.f32 %v4620_v59, %v4194_v39  ;;  %v534_v59 = vpop.f32.mrf.mxu0 }
 0x1f0   :  { %v2489_v6 = vsel %vm2488_vm0, %v3694_v1, %v2485_v3  ;;  %v2722_v47 = vmul.f32 %v3700_v17, %v5165_v4  ;;  %3703 = vrcp.f32 %v5195_v54  ;;  %v5222_v49 = vadd.f32 %v4653_v46, %v4229_v13  ;;  %v962_v46 = vpop.f32.mrf.mxu1  ;;  %v1455_v1 = vpop.f32.mrf.mxu2 }
 0x1f1   :  { %v2494_v34 = vsel %vm5171_vm12, %v2493_v61, %v2489_v6  ;;  %v5228_v56 = vadd.f32 %v4669_v27, %v4247_v40  ;;  %3705 = vrcp.f32 %v5204_v58  ;;  %vm2726_vm2 = vweird.f32 %v5165_v4 }
 0x1f2   :  { %v2495_v60 = vmul.f32 %v2494_v34, %v5057_v37  ;;  %v2723_v22 = vsub.f32 1.0, %v2722_v47  ;;  %vm2727_vm3 = vweird.f32 %v3700_v17  ;;  %vm5233_vm4 = vcmp.eq.f32.partialorder %v2730_v5, 8.507059e+37 }
 0x1f3   :  { %v2733_v13 = vor.u32 1.1754944e-38, %v2732_v14  ;;  %3707 = vpow2.f32 %v1818_v42  ;;  %v1682_v27 = vsub.f32 0.0, %v5207_v15  ;;  %v1698_v37 = vsub.f32 0.0, %v5216_v32  ;;  %vm2728_vm7 = vmor %vm2726_vm2, %vm2727_vm3 }
 0x1f4   :  { %2896 = vst.msk [vmem:[%s5554_s7 + $0x138] sm:$0xff] %vm2856_vm6, %v2495_v60  ;;  %v2724_v40 = vmul.f32 %v3700_v17, %v2723_v22  ;;  %vm2501_vm5 = vweird.f32 %v5195_v54  ;;  %v2505_v52 = vand.u32 2147483647, %v5195_v54  ;;  %v2507_v35 = vand.u32 2147483648, %v5195_v54 }
 0x1f5   :  { %v3702_v57 = vpop.eup %3701  ;;  %v1567_v62 = vadd.f32 %v1495_v45, %v1003_v51  ;;  %v1788_v30 = vmul.f32 1.442695, %v1682_v27  ;;  %v963_v12 = vadd.f32 %v962_v46, %v534_v59  ;;  %vm2741_vm8 = vweird.f32 %v5204_v58  ;;  %v1498_v45 = vpop.f32.mrf.mxu3 }
 0x1f6   :  { %v3704_v29 = vpop.eup %3703  ;;  %v2725_v50 = vadd.f32 %v3700_v17, %v2724_v40  ;;  %v5246_v21 = vadd.f32 1.0, %v3702_v57  ;;  %v2745_v61 = vand.u32 2147483647, %v5204_v58  ;;  %v2747_v0 = vand.u32 2147483648, %v5204_v58 }
 0x1f7   :  { %v2497_v43 = vmul.f32 %v3704_v29, %v5195_v54  ;;  %v1820_v7 = vmul.f32 1.442695, %v1698_v37  ;;  %v3706_v26 = vpop.eup %3705  ;;  %v1551_v53 = vadd.f32 %v1455_v1, %v963_v12  ;;  %v5257_v2 = vadd.f32 %v4773_v28, %v1567_v62  ;;  %v537_v42 = vpop.f32.mrf.mxu0 }
 0x1f8   :  { %v2729_v20 = vsel %vm2728_vm7, %v3700_v17, %v2725_v50  ;;  %3709 = vrcp.f32 %v5246_v21  ;;  %vm5261_vm9 = vcmp.eq.f32.partialorder %v2505_v52, 8.507059e+37  ;;  %v2737_v36 = vmul.f32 %v3706_v26, %v5204_v58  ;;  %v965_v6 = vpop.f32.mrf.mxu1  ;;  %v1458_v52 = vpop.f32.mrf.mxu2 }
 0x1f9   :  { %v2734_v4 = vsel %vm5233_vm4, %v2733_v13, %v2729_v20  ;;  %v2498_v31 = vsub.f32 1.0, %v2497_v43  ;;  %v3708_v5 = vpop.eup %3707  ;;  %vm2502_vm10 = vweird.f32 %v3704_v29  ;;  %v2508_v55 = vor.u32 1.1754944e-38, %v2507_v35 }
 0x1fa   :  { %v2735_v16 = vmul.f32 %v2734_v4, %v5090_v19  ;;  %3711 = vpow2.f32 %v1788_v30  ;;  %v2738_v33 = vsub.f32 1.0, %v2737_v36  ;;  %v5267_v28 = vadd.f32 1.0, %v3708_v5  ;;  %v5280_v19 = vld [vmem:[%s5553_s6] ss:$0 sm:$0xff]  ;;  %vm2503_vm12 = vmor %vm2501_vm5, %vm2502_vm10 }
 0x1fb   :  { %v2499_v25 = vmul.f32 %v3704_v29, %v2498_v31  ;;  %3713 = vpow2.f32 %v1820_v7  ;;  %vm5273_vm11 = vcmp.eq.f32.partialorder %v2745_v61, 8.507059e+37  ;;  %v2748_v63 = vor.u32 1.1754944e-38, %v2747_v0 }
 0x1fc   :  { %2912 = vst.msk [vmem:[%s5554_s7 + $0x1b8] sm:$0xff] %vm2856_vm6, %v2735_v16  ;;  %v5283_v24 = vadd.f32 %v5280_v19, %v1551_v53  ;;  %v1699_v3 = vsub.f32 0.0, %v5257_v2  ;;  %v2739_v17 = vmul.f32 %v3706_v26, %v2738_v33  ;;  %vm2742_vm1 = vweird.f32 %v3706_v26 }
 0x1fd   :  { %v2500_v14 = vadd.f32 %v3704_v29, %v2499_v25  ;;  %3715 = vrcp.f32 %v5267_v28  ;;  %v2520_v51 = vand.u32 2147483647, %v5246_v21  ;;  %v2522_v34 = vand.u32 2147483648, %v5246_v21  ;;  %vm2743_vm13 = vmor %vm2741_vm8, %vm2742_vm1  ;;  %v1500_v11 = vpop.f32.mrf.mxu3 }
 0x1fe   :  { %v3710_v47 = vpop.eup %3709  ;;  %v1683_v60 = vsub.f32 0.0, %v5283_v24  ;;  %v966_v22 = vadd.f32 %v965_v6, %v537_v42  ;;  %v2740_v13 = vadd.f32 %v3706_v26, %v2739_v17  ;;  %v2760_v46 = vand.u32 2147483647, %v5267_v28 }
 0x1ff   :  { %v2504_v39 = vsel %vm2503_vm12, %v3704_v29, %v2500_v14  ;;  %v2512_v59 = vmul.f32 %v3710_v47, %v5246_v21  ;;  %v2762_v54 = vand.u32 2147483648, %v5267_v28  ;;  %v1822_v57 = vmul.f32 1.442695, %v1699_v3  ;;  %v539_v36 = vpop.f32.mrf.mxu0 }
 0x200   :  { %v3712_v40 = vpop.eup %3711  ;;  %v2509_v27 = vsel %vm5261_vm9, %v2508_v55, %v2504_v39  ;;  %v1790_v37 = vmul.f32 1.442695, %v1683_v60  ;;  %v2744_v62 = vsel %vm2743_vm13, %v3706_v26, %v2740_v13  ;;  %vm2517_vm14 = vweird.f32 %v3710_v47  ;;  %v967_v33 = vpop.f32.mrf.mxu1 }
 0x201   :  { %v3714_v35 = vpop.eup %3713  ;;  %v2510_v1 = vmul.f32 %v2509_v27, %v5132_v23  ;;  %v2513_v29 = vsub.f32 1.0, %v2512_v59  ;;  %v5302_v50 = vadd.f32 1.0, %v3712_v40  ;;  %v2749_v30 = vsel %vm5273_vm11, %v2748_v63, %v2744_v62 }
 0x202   :  { %v5306_v12 = vadd.f32 1.0, %v3714_v35  ;;  %3717 = vpow2.f32 %v1790_v37  ;;  %v2750_v43 = vmul.f32 %v2749_v30, %v5135_v9  ;;  %v1552_v61 = vadd.f32 %v1458_v52, %v966_v22 }
 0x203   :  { %v3716_v58 = vpop.eup %3715  ;;  %2897 = vst.msk [vmem:[%s5554_s7 + $0x140] sm:$0xff] %vm2856_vm6, %v2510_v1  ;;  %v2514_v23 = vmul.f32 %v3710_v47, %v2513_v29  ;;  %3719 = vrcp.f32 %v5302_v50  ;;  %v5316_v0 = vadd.f32 %v4702_v18, %v4280_v8  ;;  %vm2516_vm15 = vweird.f32 %v5246_v21 }
 0x204   :  { %vm5319_vm0 = vcmp.eq.f32.partialorder %v2520_v51, 8.507059e+37  ;;  %v2752_v26 = vmul.f32 %v3716_v58, %v5267_v28  ;;  %2913 = vst.msk [vmem:[%s5554_s7 + $0x1c0] sm:$0xff] %vm2856_vm6, %v2750_v43  ;;  %v2523_v20 = vor.u32 1.1754944e-38, %v2522_v34  ;;  %vm2756_vm2 = vweird.f32 %v5267_v28  ;;  %vm2518_vm3 = vmor %vm2516_vm15, %vm2517_vm14  ;;  %v1460_v51 = vpop.f32.mrf.mxu2 }
 0x205   :  { %v2515_v9 = vadd.f32 %v3710_v47, %v2514_v23  ;;  %3721 = vrcp.f32 %v5306_v12  ;;  %vm5331_vm4 = vcmp.eq.f32.partialorder %v2760_v46, 8.507059e+37  ;;  %v2763_v21 = vor.u32 1.1754944e-38, %v2762_v54 }
 0x206   :  { %v2753_v8 = vsub.f32 1.0, %v2752_v26  ;;  %v2535_v53 = vand.u32 2147483647, %v5302_v50  ;;  %v2537_v31 = vand.u32 2147483648, %v5302_v50  ;;  %3723 = vpow2.f32 %v1822_v57 }
 0x207   :  { %v2519_v4 = vsel %vm2518_vm3, %v3710_v47, %v2515_v9  ;;  %v5338_v48 = vadd.f32 %v5280_v19, %v1552_v61  ;;  %vm2757_vm5 = vweird.f32 %v3716_v58  ;;  %v1568_v25 = vadd.f32 %v1498_v45, %v5222_v49  ;;  %v542_v61 = vpop.f32.mrf.mxu0 }
 0x208   :  { %v3718_v5 = vpop.eup %3717  ;;  %v2524_v16 = vsel %vm5319_vm0, %v2523_v20, %v2519_v4  ;;  %v2754_v55 = vmul.f32 %v3716_v58, %v2753_v8  ;;  %vm2531_vm7 = vweird.f32 %v5302_v50  ;;  %vm2771_vm8 = vweird.f32 %v5306_v12  ;;  %vm2758_vm9 = vmor %vm2756_vm2, %vm2757_vm5  ;;  %v970_v20 = vpop.f32.mrf.mxu1 }
 0x209   :  { %v3720_v63 = vpop.eup %3719  ;;  %v2525_v3 = vmul.f32 %v2524_v16, %v5168_v38  ;;  %v5345_v14 = vadd.f32 1.0, %v3718_v5  ;;  %v1684_v17 = vsub.f32 0.0, %v5338_v48  ;;  %v2775_v47 = vand.u32 2147483647, %v5306_v12  ;;  %v1503_v8 = vpop.f32.mrf.mxu3 }
 0x20a   :  { %v2755_v42 = vadd.f32 %v3716_v58, %v2754_v55  ;;  %v2527_v6 = vmul.f32 %v3720_v63, %v5302_v50  ;;  %vm5358_vm10 = vcmp.eq.f32.partialorder %v2535_v53, 8.507059e+37  ;;  %v2538_v34 = vor.u32 1.1754944e-38, %v2537_v31 }
 0x20b   :  { %v3722_v49 = vpop.eup %3721  ;;  %2898 = vst.msk [vmem:[%s5554_s7 + $0x148] sm:$0xff] %vm2856_vm6, %v2525_v3  ;;  %3725 = vrcp.f32 %v5345_v14  ;;  %v5364_v60 = vadd.f32 %v5280_v19, %v1568_v25  ;;  %v2777_v13 = vand.u32 2147483648, %v5306_v12  ;;  %vm2532_vm11 = vweird.f32 %v3720_v63 }
 0x20c   :  { %v2759_v22 = vsel %vm2758_vm9, %v3716_v58, %v2755_v42  ;;  %v2528_v45 = vsub.f32 1.0, %v2527_v6  ;;  %v2767_v39 = vmul.f32 %v3722_v49, %v5306_v12  ;;  %v3724_v59 = vpop.eup %3723  ;;  %v1792_v46 = vmul.f32 1.442695, %v1684_v17  ;;  %vm2533_vm13 = vmor %vm2531_vm7, %vm2532_vm11 }
 0x20d   :  { %v2764_v28 = vsel %vm5331_vm4, %v2763_v21, %v2759_v22  ;;  %v968_v40 = vadd.f32 %v967_v33, %v539_v36  ;;  %v5371_v57 = vadd.f32 1.0, %v3724_v59  ;;  %vm5373_vm1 = vcmp.eq.f32.partialorder %v2775_v47, 8.507059e+37  ;;  %v1463_v36 = vpop.f32.mrf.mxu2 }
 0x20e   :  { %v2765_v27 = vmul.f32 %v2764_v28, %v5184_v41  ;;  %v2529_v54 = vmul.f32 %v3720_v63, %v2528_v45  ;;  %v2768_v37 = vsub.f32 1.0, %v2767_v39  ;;  %3727 = vpow2.f32 %v1792_v46 }
 0x20f   :  { %v1700_v35 = vsub.f32 0.0, %v5364_v60  ;;  %v1553_v1 = vadd.f32 %v1460_v51, %v968_v40  ;;  %vm2772_vm12 = vweird.f32 %v3722_v49  ;;  %3729 = vrcp.f32 %v5371_v57 }
 0x210   :  { %2914 = vst.msk [vmem:[%s5554_s7 + $0x1c8] sm:$0xff] %vm2856_vm6, %v2765_v27  ;;  %v2530_v62 = vadd.f32 %v3720_v63, %v2529_v54  ;;  %v2769_v29 = vmul.f32 %v3722_v49, %v2768_v37  ;;  %v2778_v30 = vor.u32 1.1754944e-38, %v2777_v13  ;;  %v1569_v23 = vadd.f32 %v1500_v11, %v5228_v56  ;;  %vm2773_vm15 = vmor %vm2771_vm8, %vm2772_vm12  ;;  %v972_v27 = vpop.f32.mrf.mxu1 }
 0x211   :  { %v3726_v41 = vpop.eup %3725  ;;  %v1824_v58 = vmul.f32 1.442695, %v1700_v35  ;;  %v5387_v43 = vadd.f32 %v5280_v19, %v1553_v1  ;;  %vm2546_vm14 = vweird.f32 %v5345_v14  ;;  %v2550_v18 = vand.u32 2147483647, %v5345_v14  ;;  %v1505_v54 = vpop.f32.mrf.mxu3 }
 0x212   :  { %v2534_v7 = vsel %vm2533_vm13, %v3720_v63, %v2530_v62  ;;  %v2770_v26 = vadd.f32 %v3722_v49, %v2769_v29  ;;  %v2542_v9 = vmul.f32 %v3726_v41, %v5345_v14  ;;  %v2552_v56 = vand.u32 2147483648, %v5345_v14  ;;  %v544_v14 = vpop.f32.mrf.mxu0 }
 0x213   :  { %v2539_v50 = vsel %vm5358_vm10, %v2538_v34, %v2534_v7  ;;  %3731 = vpow2.f32 %v1824_v58  ;;  %v1685_v31 = vsub.f32 0.0, %v5387_v43  ;;  %vm2547_vm0 = vweird.f32 %v3726_v41 }
 0x214   :  { %v2540_v21 = vmul.f32 %v2539_v50, %v5207_v15  ;;  %v2774_v53 = vsel %vm2773_vm15, %v3722_v49, %v2770_v26  ;;  %v2543_v4 = vsub.f32 1.0, %v2542_v9  ;;  %v3728_v5 = vpop.eup %3727  ;;  %v5404_v12 = vadd.f32 %v5280_v19, %v1569_v23  ;;  %vm2548_vm3 = vmor %vm2546_vm14, %vm2547_vm0 }
 0x215   :  { %v2779_v16 = vsel %vm5373_vm1, %v2778_v30, %v2774_v53  ;;  %v971_v55 = vadd.f32 %v970_v20, %v542_v61  ;;  %v3730_v25 = vpop.eup %3729  ;;  %v5411_v11 = vadd.f32 1.0, %v3728_v5  ;;  %v1794_v63 = vmul.f32 1.442695, %v1685_v31 }
 0x216   :  { %2899 = vst.msk [vmem:[%s5554_s7 + $0x150] sm:$0xff] %vm2856_vm6, %v2540_v21  ;;  %v2780_v15 = vmul.f32 %v2779_v16, %v5216_v32  ;;  %v2544_v33 = vmul.f32 %v3726_v41, %v2543_v4  ;;  %vm5413_vm2 = vcmp.eq.f32.partialorder %v2550_v18, 8.507059e+37  ;;  %v2782_v17 = vmul.f32 %v3730_v25, %v5371_v57 }
 0x217   :  { %v1701_v42 = vsub.f32 0.0, %v5404_v12  ;;  %v1554_v6 = vadd.f32 %v1463_v36, %v971_v55  ;;  %v2553_v32 = vor.u32 1.1754944e-38, %v2552_v56  ;;  %v2790_v51 = vand.u32 2147483647, %v5371_v57 }
 0x218   :  { %2915 = vst.msk [vmem:[%s5554_s7 + $0x1d0] sm:$0xff] %vm2856_vm6, %v2780_v15  ;;  %v2545_v47 = vadd.f32 %v3726_v41, %v2544_v33  ;;  %3733 = vrcp.f32 %v5411_v11  ;;  %v2783_v38 = vsub.f32 1.0, %v2782_v17  ;;  %v1570_v22 = vadd.f32 %v1503_v8, %v5316_v0 }
 0x219   :  { %v3732_v49 = vpop.eup %3731  ;;  %3735 = vpow2.f32 %v1794_v63  ;;  %v1826_v34 = vmul.f32 1.442695, %v1701_v42  ;;  %v2792_v39 = vand.u32 2147483648, %v5371_v57  ;;  %v5433_v59 = vadd.f32 %v5280_v19, %v1554_v6 }
 0x21a   :  { %v2549_v45 = vsel %vm2548_vm3, %v3726_v41, %v2545_v47  ;;  %v5430_v13 = vadd.f32 1.0, %v3732_v49  ;;  %v2784_v46 = vmul.f32 %v3730_v25, %v2783_v38  ;;  %vm2787_vm4 = vweird.f32 %v3730_v25  ;;  %v1465_v41 = vpop.f32.mrf.mxu2 }
 0x21b   :  { %v2554_v28 = vsel %vm5413_vm2, %v2553_v32, %v2549_v45  ;;  %3737 = vpow2.f32 %v1826_v34  ;;  %v1013_v40 = vadd.f32 %v4723_v10, %v4297_v44  ;;  %vm2786_vm5 = vweird.f32 %v5371_v57 }
 0x21c   :  { %v2555_v0 = vmul.f32 %v2554_v28, %v5283_v24  ;;  %3739 = vrcp.f32 %v5430_v13  ;;  %v2785_v37 = vadd.f32 %v3730_v25, %v2784_v46  ;;  %v1686_v52 = vsub.f32 0.0, %v5433_v59  ;;  %vm2788_vm7 = vmor %vm2786_vm5, %vm2787_vm4 }
 0x21d   :  { %v5444_v35 = vadd.f32 %v5280_v19, %v1570_v22  ;;  %vm2791_vm8 = vcmp.eq.f32.partialorder %v2790_v51, 8.507059e+37  ;;  %v2793_v44 = vor.u32 1.1754944e-38, %v2792_v39  ;;  %v2565_v10 = vand.u32 2147483647, %v5411_v11 }
 0x21e   :  { %v3734_v1 = vpop.eup %3733  ;;  %2900 = vst.msk [vmem:[%s5554_s7 + $0x158] sm:$0xff] %vm2856_vm6, %v2555_v0  ;;  %v2789_v62 = vsel %vm2788_vm7, %v3730_v25, %v2785_v37  ;;  %v973_v29 = vadd.f32 %v972_v27, %v544_v14  ;;  %v1571_v30 = vadd.f32 %v1505_v54, %v1013_v40  ;;  %v1796_v61 = vmul.f32 1.442695, %v1686_v52 }
 0x21f   :  { %v3736_v24 = vpop.eup %3735  ;;  %v2557_v57 = vmul.f32 %v3734_v1, %v5411_v11  ;;  %v2794_v58 = vsel %vm2791_vm8, %v2793_v44, %v2789_v62  ;;  %v1702_v7 = vsub.f32 0.0, %v5444_v35  ;;  %v2567_v8 = vand.u32 2147483648, %v5411_v11 }
 0x220   :  { %v5452_v23 = vadd.f32 1.0, %v3736_v24  ;;  %v2795_v9 = vmul.f32 %v2794_v58, %v5257_v2  ;;  %vm2562_vm9 = vweird.f32 %v3734_v1  ;;  %v1555_v18 = vadd.f32 %v1465_v41, %v973_v29 }
 0x221   :  { %v3738_v26 = vpop.eup %3737  ;;  %v2558_v20 = vsub.f32 1.0, %v2557_v57  ;;  %v5466_v2 = vadd.f32 %v5280_v19, %v1571_v30  ;;  %vm2561_vm10 = vweird.f32 %v5411_v11  ;;  %vm5469_vm11 = vcmp.eq.f32.partialorder %v2565_v10, 8.507059e+37 }
 0x222   :  { %v3740_v50 = vpop.eup %3739  ;;  %3741 = vrcp.f32 %v5452_v23  ;;  %2916 = vst.msk [vmem:[%s5554_s7 + $0x1d8] sm:$0xff] %vm2856_vm6, %v2795_v9  ;;  %v5463_v53 = vadd.f32 1.0, %v3738_v26  ;;  %v1828_v31 = vmul.f32 1.442695, %v1702_v7  ;;  %v2568_v5 = vor.u32 1.1754944e-38, %v2567_v8  ;;  %vm2563_vm1 = vmor %vm2561_vm10, %vm2562_vm9 }
 0x223   :  { %v2559_v56 = vmul.f32 %v3734_v1, %v2558_v20  ;;  %v2797_v21 = vmul.f32 %v3740_v50, %v5430_v13  ;;  %3743 = vpow2.f32 %v1796_v61  ;;  %v2805_v55 = vand.u32 2147483647, %v5430_v13 }
 0x224   :  { %3745 = vrcp.f32 %v5463_v53  ;;  %v2807_v25 = vand.u32 2147483648, %v5430_v13  ;;  %v5478_v15 = vadd.f32 %v5280_v19, %v1555_v18  ;;  %vm2802_vm12 = vweird.f32 %v3740_v50 }
 0x225   :  { %v2560_v36 = vadd.f32 %v3734_v1, %v2559_v56  ;;  %v2798_v16 = vsub.f32 1.0, %v2797_v21  ;;  %3747 = vpow2.f32 %v1828_v31  ;;  %v1703_v63 = vsub.f32 0.0, %v5466_v2 }
 0x226   :  { %v1687_v42 = vsub.f32 0.0, %v5478_v15  ;;  %vm2801_vm13 = vweird.f32 %v5430_v13  ;;  %vm2806_vm15 = vcmp.eq.f32.partialorder %v2805_v55, 8.507059e+37  ;;  %v2808_v51 = vor.u32 1.1754944e-38, %v2807_v25 }
 0x227   :  { %v2564_v33 = vsel %vm2563_vm1, %v3734_v1, %v2560_v36  ;;  %v2799_v11 = vmul.f32 %v3740_v50, %v2798_v16  ;;  %vm2803_vm14 = vmor %vm2801_vm13, %vm2802_vm12  ;;  %v2582_v49 = vand.u32 2147483648, %v5452_v23  ;;  %v1830_v39 = vmul.f32 1.442695, %v1703_v63 }
 0x228   :  { %v3742_v3 = vpop.eup %3741  ;;  %v2569_v17 = vsel %vm5469_vm11, %v2568_v5, %v2564_v33  ;;  %v1798_v38 = vmul.f32 1.442695, %v1687_v42  ;;  %v2580_v46 = vand.u32 2147483647, %v5452_v23  ;;  %vm2576_vm2 = vweird.f32 %v5452_v23 }
 0x229   :  { %v2570_v6 = vmul.f32 %v2569_v17, %v5338_v48  ;;  %v2800_v47 = vadd.f32 %v3740_v50, %v2799_v11  ;;  %v2572_v32 = vmul.f32 %v3742_v3, %v5452_v23  ;;  %v3744_v19 = vpop.eup %3743  ;;  %vm2577_vm0 = vweird.f32 %v3742_v3 }
 0x22a   :  { %v3746_v34 = vpop.eup %3745  ;;  %v5492_v45 = vadd.f32 1.0, %v3744_v19  ;;  %3749 = vpow2.f32 %v1798_v38  ;;  %v2583_v52 = vor.u32 1.1754944e-38, %v2582_v49  ;;  %v2822_v1 = vand.u32 2147483648, %v5463_v53  ;;  %vm2578_vm3 = vmor %vm2576_vm2, %vm2577_vm0 }
 0x22b   :  { %2901 = vst.msk [vmem:[%s5554_s7 + $0x160] sm:$0xff] %vm2856_vm6, %v2570_v6  ;;  %v2804_v22 = vsel %vm2803_vm14, %v3740_v50, %v2800_v47  ;;  %v2573_v48 = vsub.f32 1.0, %v2572_v32  ;;  %v3748_v13 = vpop.eup %3747  ;;  %v2812_v14 = vmul.f32 %v3746_v34, %v5463_v53  ;;  %vm2817_vm4 = vweird.f32 %v3746_v34 }
 0x22c   :  { %v2809_v28 = vsel %vm2806_vm15, %v2808_v51, %v2804_v22  ;;  %3751 = vrcp.f32 %v5492_v45  ;;  %v5499_v54 = vadd.f32 1.0, %v3748_v13  ;;  %v2820_v44 = vand.u32 2147483647, %v5463_v53 }
 0x22d   :  { %v2810_v40 = vmul.f32 %v2809_v28, %v5364_v60  ;;  %v2574_v0 = vmul.f32 %v3742_v3, %v2573_v48  ;;  %v2813_v27 = vsub.f32 1.0, %v2812_v14  ;;  %3753 = vpow2.f32 %v1830_v39 }
 0x22e   :  { %3755 = vrcp.f32 %v5499_v54  ;;  %vm2581_vm5 = vcmp.eq.f32.partialorder %v2580_v46, 8.507059e+37  ;;  %vm2816_vm7 = vweird.f32 %v5463_v53  ;;  %v2823_v30 = vor.u32 1.1754944e-38, %v2822_v1 }
 0x22f   :  { %2917 = vst.msk [vmem:[%s5554_s7 + $0x1e0] sm:$0xff] %vm2856_vm6, %v2810_v40  ;;  %v2575_v37 = vadd.f32 %v3742_v3, %v2574_v0  ;;  %v2814_v60 = vmul.f32 %v3746_v34, %v2813_v27  ;;  %vm2818_vm8 = vmor %vm2816_vm7, %vm2817_vm4  ;;  %vm2821_vm9 = vcmp.eq.f32.partialorder %v2820_v44, 8.507059e+37  ;;  %v2597_v50 = vand.u32 2147483648, %v5492_v45 }
 0x230   :  { %v3750_v24 = vpop.eup %3749  ;;  %v2595_v21 = vand.u32 2147483647, %v5492_v45  ;;  %vm2591_vm11 = vweird.f32 %v5492_v45  ;;  %v2835_v16 = vand.u32 2147483647, %v5499_v54  ;;  %vm2831_vm14 = vweird.f32 %v5499_v54 }
 0x231   :  { %v2579_v10 = vsel %vm2578_vm3, %v3742_v3, %v2575_v37  ;;  %v2815_v57 = vadd.f32 %v3746_v34, %v2814_v60  ;;  %v1879_v58 = vadd.f32 1.0, %v3750_v24  ;;  %v2598_v36 = vor.u32 1.1754944e-38, %v2597_v50 }
 0x232   :  { %v2584_v62 = vsel %vm2581_vm5, %v2583_v52, %v2579_v10  ;;  %v3752_v29 = vpop.eup %3751  ;;  %vm2596_vm13 = vcmp.eq.f32.partialorder %v2595_v21, 8.507059e+37  ;;  %vm2836_vm0 = vcmp.eq.f32.partialorder %v2835_v16, 8.507059e+37 }
 0x233   :  { %v2585_v41 = vmul.f32 %v2584_v62, %v5387_v43  ;;  %v2819_v23 = vsel %vm2818_vm8, %v3746_v34, %v2815_v57  ;;  %v2587_v61 = vmul.f32 %v3752_v29, %v5492_v45  ;;  %v3754_v7 = vpop.eup %3753  ;;  %3757 = vrcp.f32 %v1879_v58 }
 0x234   :  { %v2824_v26 = vsel %vm2821_vm9, %v2823_v30, %v2819_v23  ;;  %v3756_v9 = vpop.eup %3755  ;;  %v1895_v43 = vadd.f32 1.0, %v3754_v7  ;;  %vm2592_vm10 = vweird.f32 %v3752_v29  ;;  %v2612_v47 = vand.u32 2147483648, %v1879_v58 }
 0x235   :  { %2902 = vst.msk [vmem:[%s5554_s7 + $0x168] sm:$0xff] %vm2856_vm6, %v2585_v41  ;;  %v2825_v20 = vmul.f32 %v2824_v26, %v5404_v12  ;;  %v2588_v8 = vsub.f32 1.0, %v2587_v61  ;;  %v2827_v18 = vmul.f32 %v3756_v9, %v5499_v54  ;;  %v2837_v12 = vand.u32 2147483648, %v5499_v54  ;;  %vm2593_vm1 = vmor %vm2591_vm11, %vm2592_vm10 }
 0x236   :  { %3759 = vrcp.f32 %v1895_v43  ;;  %vm2832_vm12 = vweird.f32 %v3756_v9  ;;  %v2610_v49 = vand.u32 2147483647, %v1879_v58  ;;  %vm2606_vm3 = vweird.f32 %v1879_v58 }
 0x237   :  { %2918 = vst.msk [vmem:[%s5554_s7 + $0x1e8] sm:$0xff] %vm2856_vm6, %v2825_v20  ;;  %v2589_v56 = vmul.f32 %v3752_v29, %v2588_v8  ;;  %v2828_v53 = vsub.f32 1.0, %v2827_v18  ;;  %vm2833_vm15 = vmor %vm2831_vm14, %vm2832_vm12  ;;  %v2838_v17 = vor.u32 1.1754944e-38, %v2837_v12  ;;  %v2852_v22 = vand.u32 2147483648, %v1895_v43 }
 0x238   :  { %v2613_v48 = vor.u32 1.1754944e-38, %v2612_v47  ;;  %v2850_v39 = vand.u32 2147483647, %v1895_v43  ;;  %vm2611_vm7 = vcmp.eq.f32.partialorder %v2610_v49, 8.507059e+37  ;;  %vm2846_vm8 = vweird.f32 %v1895_v43 }
 0x239   :  { %v2590_v4 = vadd.f32 %v3752_v29, %v2589_v56  ;;  %v3758_v31 = vpop.eup %3757  ;;  %v2829_v5 = vmul.f32 %v3756_v9, %v2828_v53  ;;  %v2853_v14 = vor.u32 1.1754944e-38, %v2852_v22 }
 0x23a   :  { %v2602_v25 = vmul.f32 %v3758_v31, %v1879_v58  ;;  %vm2607_vm2 = vweird.f32 %v3758_v31  ;;  %vm2851_vm10 = vcmp.eq.f32.partialorder %v2850_v39, 8.507059e+37 }
 0x23b   :  { %v2594_v55 = vsel %vm2593_vm1, %v3752_v29, %v2590_v4  ;;  %v2830_v11 = vadd.f32 %v3756_v9, %v2829_v5  ;;  %vm2608_vm4 = vmor %vm2606_vm3, %vm2607_vm2 }
 0x23c   :  { %v2599_v33 = vsel %vm2596_vm13, %v2598_v36, %v2594_v55  ;;  %v3760_v63 = vpop.eup %3759  ;;  %v2603_v42 = vsub.f32 1.0, %v2602_v25 }
 0x23d   :  { %v2600_v3 = vmul.f32 %v2599_v33, %v5433_v59  ;;  %v2834_v6 = vsel %vm2833_vm15, %v3756_v9, %v2830_v11  ;;  %v2842_v32 = vmul.f32 %v3760_v63, %v1895_v43  ;;  %vm2847_vm5 = vweird.f32 %v3760_v63 }
 0x23e   :  { %v2839_v19 = vsel %vm2836_vm0, %v2838_v17, %v2834_v6  ;;  %v2604_v51 = vmul.f32 %v3758_v31, %v2603_v42  ;;  %vm2848_vm9 = vmor %vm2846_vm8, %vm2847_vm5 }
 0x23f   :  { %2903 = vst.msk [vmem:[%s5554_s7 + $0x170] sm:$0xff] %vm2856_vm6, %v2600_v3  ;;  %v2840_v38 = vmul.f32 %v2839_v19, %v5444_v35  ;;  %v2843_v34 = vsub.f32 1.0, %v2842_v32 }
 0x240   :  { %v2605_v59 = vadd.f32 %v3758_v31, %v2604_v51 }
 0x241   :  { %2919 = vst.msk [vmem:[%s5554_s7 + $0x1f0] sm:$0xff] %vm2856_vm6, %v2840_v38  ;;  %v2844_v45 = vmul.f32 %v3760_v63, %v2843_v34 }
 0x242   :  { %v2609_v13 = vsel %vm2608_vm4, %v3758_v31, %v2605_v59 }
 0x243   :  { %v2614_v28 = vsel %vm2611_vm7, %v2613_v48, %v2609_v13  ;;  %v2845_v46 = vadd.f32 %v3760_v63, %v2844_v45 }
 0x244   :  { %v2615_v35 = vmul.f32 %v2614_v28, %v5478_v15 }
 0x245   :  { %v2849_v40 = vsel %vm2848_vm9, %v3760_v63, %v2845_v46 }
 0x246   :  { %2904 = vst.msk [vmem:[%s5554_s7 + $0x178] sm:$0xff] %vm2856_vm6, %v2615_v35  ;;  %v2854_v0 = vsel %vm2851_vm10, %v2853_v14, %v2849_v40 }
 0x247   :  { %v2855_v27 = vmul.f32 %v2854_v0, %v5466_v2 }
 0x249   :  { %2920 = vst.msk [vmem:[%s5554_s7 + $0x1f8] sm:$0xff] %vm2856_vm6, %v2855_v27 }

// kernel: _lambda_.5
= control target key start
LH: loop header
LB: loop body
LE: loop exit
PB: predicated region body
PF: predicated region fallthrough
CT: control target
= control target key end

     0   :  { %s5629_s12 = smov 0   ;;  %s5631_s13 = smov 0   ;;  %s7220_s0 = inlined_call_operand.vmem [shape: bf16[2,16,16,4], index: 0, kind: input, shape index: {}]   ;;  %s7221_s1 = inlined_call_operand.vmem [shape: bf16[9,4,4], index: 1, kind: input, shape index: {}]   ;;  %s7222_s2 = inlined_call_operand.vmem [shape: f32[1,4], index: 2, kind: input, shape index: {}]   ;;  %s7223_s3 = inlined_call_operand.vmem [shape: bf16[2,256,4], index: 3, kind: output, shape index: {}]  }
   0x1   :  { %s5633_s14 = smov 0  }
   0x2 LB: > { %s25_s15 = sadd.s32 1, %s5602_s13  ;;  %p4921_p0 = scmp.ge.s32.totalorder %s5606_s14, 1  ;;  %s5606_s14 = sphi %s5633_s14, %s13_s14   ;;  %s5602_s13 = sphi %s5631_s13, %s7253_s13   ;;  %s5598_s12 = sphi %s5629_s12, %s7252_s12  }
   0x3   : > { %p27_p1 = scmp.ge.s32.totalorder %s25_s15, 2  ;;  %p151_p2 = scmp.lt.s32.totalorder %s5606_s14, 3 }
   0x5   : > { %s7255_s15 = smov (%p27_p1, %s25_s15), 0  ;;  %p152_p3 = pnand %p4921_p0, %p151_p2 }
   0x7   : > { %155 = sbr.rel (%p152_p3) target bundleno = 862 (0x35e), region = 32 }
   0xc   : > { %v4974_v0 = vld [vmem:[%s7221_s1 + $0x2] sm:$0x3]  ;;  %vm2659_vm0 = vcmask 1041408   ;;  %p179_p4 = scmp.lt.s32.totalorder %s5598_s12, 1  ;;  %vm196_vm1 = vcmask 27648   ;;  %vm199_vm2 = vcmask 24576  }
   0xd   : > { %v2661_v1 = vsel %vm2659_vm0, %v4974_v0, 0  ;;  %v5608_v2 = vmov 0   ;;  %vm287_vm3 = vsmask.f32 256  ;;  %vm288_vm4 = vsmask.f32 4368 }
   0xe   : > { %210 = vst.msk [vmem:[#allocation2 + $0x30] sm:$0xf] %vm196_vm1, %v5608_v2  ;;  %5370 = vmatpush.bf16.msra.mxu1 %v2661_v1  ;;  %5371 = vmatpush.bf16.msra.mxu2 %v2661_v1  ;;  %s7257_s12 = smov (!%p179_p4, %s5598_s12), 1  ;;  %vm612_vm5 = vsmask.f32 7938  ;;  %vm5679_vm6 = vmand %vm199_vm2, %vm287_vm3  ;;  %vm2610_vm12 = vcmask 31744  }
   0xf   : > { %211 = vst.msk [vmem:[#allocation2 + $0x34] sm:$0xf] %vm196_vm1, %v5608_v2  ;;  %5372 = vmatpush.bf16.msra.mxu3 %v2661_v1  ;;  %2670 = vmatpush.bf16.msra.mxu0 %v2661_v1  ;;  %s5320_s18 = sshll.u32 %s7257_s12, 7  ;;  %vm5687_vm7 = vmor %vm287_vm3, %vm288_vm4  ;;  %vm776_vm9 = vsmask.f32 3328  ;;  %vm1227_vm13 = vcmask 1042432  }
  0x10   : > { %212 = vst.msk [vmem:[#allocation2 + $0x38] sm:$0x1] %vm199_vm2, %v5608_v2  ;;  %s5667_s21 = scalar_lea.vmem %s7220_s0, %s5320_s18  ;;  %vm5695_vm8 = vmand %vm196_vm1, %vm612_vm5  ;;  %vm777_vm10 = vsmask.f32 7440  ;;  %vm1228_vm14 = vcmask 1046532   ;;  %s6889_s20 = scalar_lea.vmem %s7223_s3, %s5320_s18 }
  0x11   : > { %197 = vst.msk [vmem:[#allocation2] sm:$0xf] %vm196_vm1, %v5608_v2  ;;  %v261_v3 = vld [vmem:[%s5667_s21 + $0x18] sm:$0xf]  ;;  %v262_v4 = vld [vmem:[%s5667_s21 + $0x1c] sm:$0xf]  ;;  %vm5736_vm11 = vmor %vm776_vm9, %vm777_vm10 }
  0x12   : > { %198 = vst.msk [vmem:[#allocation2 + $0x4] sm:$0xf] %vm196_vm1, %v5608_v2  ;;  %v342_v5 = vshrl.u32 %v261_v3, 16  ;;  %v345_v6 = vshll.u32 %v261_v3, 16  ;;  %v350_v7 = vshrl.u32 %v262_v4, 16  ;;  %v353_v8 = vshll.u32 %v262_v4, 16  ;;  %vm6139_vm15 = vmor %vm1227_vm13, %vm1228_vm14 }
  0x13   : > { %200 = vst.msk [vmem:[#allocation2 + $0x8] sm:$0x1] %vm199_vm2, %v5608_v2  ;;  %v5761_v46 = vld [vmem:[%s5667_s21 + $0x38] sm:$0xf]  ;;  %v5766_v47 = vld [vmem:[%s5667_s21 + $0x3c] sm:$0xf] }
  0x14   : > { %201 = vst.msk [vmem:[#allocation2 + $0xc] sm:$0xf] %vm196_vm1, %v5608_v2  ;;  %v344_v11 = vrot.slane %v342_v5, 7  ;;  %v352_v12 = vrot.slane %v350_v7, 7  ;;  %v5769_v48 = vld [vmem:[%s5667_s21 + $0x58] sm:$0xf] }
  0x15   : > { %202 = vst.msk [vmem:[#allocation2 + $0x10] sm:$0xf] %vm196_vm1, %v5608_v2  ;;  %v637_v14 = vld [vmem:[#allocation2 + $0x30] sm:$0xf]  ;;  %v410_v49 = vshrl.u32 %v5761_v46, 16  ;;  %v418_v50 = vshrl.u32 %v5766_v47, 16 }
  0x16   : > { %203 = vst.msk [vmem:[#allocation2 + $0x14] sm:$0x1] %vm199_vm2, %v5608_v2  ;;  %v347_v16 = vor.u32 %v345_v6, %v344_v11  ;;  %v348_v17 = vrot.slane %v344_v11, 4  ;;  %v355_v18 = vor.u32 %v353_v8, %v352_v12  ;;  %v357_v19 = vrot.slane %v352_v12, 4  ;;  %v5781_v51 = vld [vmem:[%s5667_s21 + $0x5c] sm:$0xf] }
  0x17   : > { %v641_v15 = vld [vmem:[#allocation2 + $0x38] sm:$0x1]  ;;  %204 = vst.msk [vmem:[#allocation2 + $0x18] sm:$0xf] %vm196_vm1, %v5608_v2  ;;  %v478_v52 = vshrl.u32 %v5769_v48, 16  ;;  %v5790_v59 = vrot.slane %v410_v49, 7 }
  0x18   : > { %205 = vst.msk [vmem:[#allocation2 + $0x1c] sm:$0xf] %vm196_vm1, %v5608_v2  ;;  %v356_v20 = vsel %vm5687_vm7, %v348_v17, %v355_v18  ;;  %v638_v21 = vsel %vm5695_vm8, %v347_v16, %v637_v14  ;;  %v642_v22 = vsel %vm5679_vm6, %v357_v19, %v641_v15  ;;  %v728_v53 = vld [vmem:[#allocation2] sm:$0xf]  ;;  %v486_v60 = vshrl.u32 %v5781_v51, 16 }
  0x19   : > { %206 = vst.msk [vmem:[#allocation2 + $0x20] sm:$0x1] %vm199_vm2, %v5608_v2  ;;  %v729_v54 = vld [vmem:[#allocation2 + $0x4] sm:$0xf]  ;;  %v780_v55 = vshrl.u32 %v728_v53, 16  ;;  %v783_v56 = vshll.u32 %v728_v53, 16 }
  0x1a   : > { %207 = vst.msk [vmem:[#allocation2 + $0x24] sm:$0xf] %vm196_vm1, %v5608_v2  ;;  %v789_v57 = vshll.u32 %v729_v54, 16  ;;  %v793_v58 = vshrl.u32 %v729_v54, 16  ;;  %v5794_v61 = vld [vmem:[%s5667_s21 + $0x20] sm:$0xf] }
  0x1b   : > { %639 = vst [vmem:[#allocation2 + $0x30] sm:$0xf] %v638_v21  ;;  %v782_v62 = vrot.slane %v780_v55, 4  ;;  %v785_v63 = vrot.slane %v783_v56, 5  ;;  %v760_v3 = vld [vmem:[#allocation2 + $0x8] sm:$0x1] }
  0x1c   : > { %640 = vst.msk [vmem:[#allocation2 + $0x34] sm:$0xf] %vm196_vm1, %v356_v20  ;;  %v791_v0 = vrot.slane %v789_v57, 5  ;;  %v795_v1 = vrot.slane %v793_v58, 4  ;;  %v5801_v4 = vld [vmem:[%s5667_s21 + $0x24] sm:$0xf] }
  0x1d   : > { %643 = vst [vmem:[#allocation2 + $0x38] sm:$0x1] %v642_v22  ;;  %v5805_v5 = vrot.slane %v478_v52, 7  ;;  %v786_v6 = vor.u32 %v785_v63, %v782_v62  ;;  %v799_v8 = vshll.u32 %v760_v3, 16  ;;  %v413_v11 = vshll.u32 %v5761_v46, 16 }
  0x1e   : > { %208 = vst.msk [vmem:[#allocation2 + $0x28] sm:$0xf] %vm196_vm1, %v5608_v2  ;;  %v796_v7 = vor.u32 %v795_v1, %v791_v0  ;;  %v5810_v12 = vrot.slane %v418_v50, 7  ;;  %v359_v14 = vshrl.u32 %v5794_v61, 16  ;;  %v367_v18 = vshrl.u32 %v5801_v4, 16 }
  0x1f   : > { %209 = vst.msk [vmem:[#allocation2 + $0x2c] sm:$0x1] %vm199_vm2, %v5608_v2  ;;  %v787_v15 = vrot.slane %v786_v6, 4  ;;  %v801_v17 = vrot.slane %v799_v8, 5  ;;  %v416_v19 = vrot.slane %v5790_v59, 4  ;;  %v421_v20 = vshll.u32 %v5766_v47, 16 }
  0x20   : > { %213 = vst.msk [vmem:[#allocation2 + $0x3c] sm:$0xf] %vm196_vm1, %v5608_v2  ;;  %v797_v16 = vrot.slane %v796_v7, 4  ;;  %v425_v21 = vrot.slane %v5810_v12, 4  ;;  %v481_v22 = vshll.u32 %v5769_v48, 16  ;;  %v362_v46 = vshll.u32 %v5794_v61, 16 }
  0x21   : > { %214 = vst.msk [vmem:[#allocation2 + $0x40] sm:$0xf] %vm196_vm1, %v5608_v2  ;;  %v5169_v55 = vld [vmem:[%s7221_s1 + $0x8] sm:$0x3]  ;;  %v280_v6 = vld [vmem:[%s5667_s21 + $0x64] sm:$0xf] }
  0x22   : > { %v736_v23 = vld [vmem:[#allocation2 + $0x30] sm:$0xf]  ;;  %215 = vst.msk [vmem:[#allocation2 + $0x44] sm:$0x1] %vm199_vm2, %v5608_v2  ;;  %v483_v47 = vor.u32 %v481_v22, %v5805_v5  ;;  %v255_v22 = vld [vmem:[%s5667_s21] sm:$0xf] }
  0x23   : > { %v737_v24 = vld [vmem:[#allocation2 + $0x34] sm:$0xf]  ;;  %v876_v25 = vshrl.u32 %v736_v23, 16  ;;  %v879_v26 = vshll.u32 %v736_v23, 16  ;;  %216 = vst.msk [vmem:[#allocation2 + $0x48] sm:$0xf] %vm196_vm1, %v5608_v2 }
  0x24   : > { %v764_v27 = vld [vmem:[#allocation2 + $0x38] sm:$0x1]  ;;  %v885_v28 = vshll.u32 %v737_v24, 16  ;;  %v889_v29 = vshrl.u32 %v737_v24, 16  ;;  %217 = vst.msk [vmem:[#allocation2 + $0x4c] sm:$0xf] %vm196_vm1, %v5608_v2 }
  0x25   : > { %v878_v30 = vrot.slane %v876_v25, 4  ;;  %v881_v31 = vrot.slane %v879_v26, 5  ;;  %v895_v32 = vshll.u32 %v764_v27, 16  ;;  %218 = vst.msk [vmem:[#allocation2 + $0x50] sm:$0x1] %vm199_vm2, %v5608_v2  ;;  %v484_v23 = vrot.slane %v5805_v5, 4 }
  0x26   : > { %v887_v33 = vrot.slane %v885_v28, 5  ;;  %v891_v34 = vrot.slane %v889_v29, 4  ;;  %219 = vst.msk [vmem:[#allocation2 + $0x54] sm:$0xf] %vm196_vm1, %v5608_v2  ;;  %v5825_v24 = vrot.slane %v486_v60, 7  ;;  %v792_v25 = vsel %vm5736_vm11, %v787_v15, %v791_v0 }
  0x27   : > { %v882_v35 = vor.u32 %v881_v31, %v878_v30  ;;  %220 = vst.msk [vmem:[#allocation2 + $0x58] sm:$0xf] %vm196_vm1, %v5608_v2  ;;  %v897_v38 = vrot.slane %v895_v32, 5  ;;  %v802_v26 = vsel %vm5736_vm11, %v797_v16, %v801_v17  ;;  %v5832_v27 = vld [vmem:[%s5667_s21 + $0x40] sm:$0xf]  ;;  %v489_v29 = vshll.u32 %v5781_v51, 16 }
  0x28   : > { %v892_v37 = vor.u32 %v891_v34, %v887_v33  ;;  %221 = vst.msk [vmem:[#allocation2 + $0x5c] sm:$0x1] %vm199_vm2, %v5608_v2  ;;  %v2562_v30 = vunpack.c.l.b16 %v792_v25  ;;  %v2563_v31 = vunpack.c.l.b16 %v802_v26  ;;  %v370_v32 = vshll.u32 %v5801_v4, 16  ;;  %v2559_v51 = vld [vmem:[%s7221_s1] sm:$0x3] }
  0x29   : > { %v883_v39 = vrot.slane %v882_v35, 4  ;;  %222 = vst.msk [vmem:[#allocation2 + $0x60] sm:$0xf] %vm196_vm1, %v5608_v2  ;;  %v361_v34 = vrot.slane %v359_v14, 7  ;;  %v5841_v35 = vrot.slane %v367_v18, 7  ;;  %v491_v48 = vor.u32 %v489_v29, %v5825_v24 }
  0x2a   : > { %v893_v40 = vrot.slane %v892_v37, 4  ;;  %223 = vst.msk [vmem:[#allocation2 + $0x64] sm:$0xf] %vm196_vm1, %v5608_v2  ;;  %v5844_v37 = vld [vmem:[%s5667_s21 + $0x44] sm:$0xf]  ;;  %v2865_v54 = vsel %vm2659_vm0, %v2559_v51, 0 }
  0x2b   : > { %v888_v41 = vsel %vm5736_vm11, %v883_v39, %v887_v33  ;;  %224 = vst.msk [vmem:[#allocation2 + $0x68] sm:$0x1] %vm199_vm2, %v5608_v2  ;;  %v415_v33 = vor.u32 %v413_v11, %v5790_v59  ;;  %v493_v39 = vrot.slane %v5825_v24, 4  ;;  %v435_v52 = vshrl.u32 %v5844_v37, 16  ;;  %2874 = vmatpush.bf16.msrb.mxu1 %v2865_v54  ;;  %v644_v60 = vld [vmem:[#allocation2 + $0x3c] sm:$0xf] }
  0x2c   : > { %v898_v42 = vsel %vm5736_vm11, %v893_v40, %v897_v38  ;;  %v2570_v43 = vunpack.c.l.b16 %v888_v41  ;;  %225 = vst.msk [vmem:[#allocation2 + $0x6c] sm:$0xf] %vm196_vm1, %v5608_v2  ;;  %v5071_v40 = vld [vmem:[%s7221_s1 + $0x4] sm:$0x3]  ;;  %v2594_v41 = vpack.c.b16 %v2563_v31, %v2562_v30  ;;  %v365_v56 = vrot.slane %v361_v34, 4 }
  0x2d   : > { %v2571_v44 = vunpack.c.l.b16 %v898_v42  ;;  %226 = vst.msk [vmem:[#allocation2 + $0x70] sm:$0xf] %vm196_vm1, %v5608_v2  ;;  %v427_v42 = vshrl.u32 %v5832_v27, 16  ;;  %v372_v57 = vor.u32 %v370_v32, %v5841_v35  ;;  %v3515_v59 = vsel %vm2659_vm0, %v5169_v55, 0  ;;  %v279_v4 = vld [vmem:[%s5667_s21 + $0x60] sm:$0xf] }
  0x2e   : > { %227 = vst.msk [vmem:[#allocation2 + $0x74] sm:$0x1] %vm199_vm2, %v5608_v2  ;;  %4975 = vmatmul.msk.bf16.vlgmr.msra.gmra.mxu0 %vm2610_vm12, %v2594_v41  ;;  %v430_v62 = vshll.u32 %v5832_v27, 16  ;;  %v438_v63 = vshll.u32 %v5844_v37, 16  ;;  %v364_v3 = vor.u32 %v362_v46, %v361_v34  ;;  %v437_v7 = vrot.slane %v435_v52, 7 }
  0x2f   : > { %v2598_v45 = vpack.c.b16 %v2571_v44, %v2570_v43  ;;  %228 = vst.msk [vmem:[#allocation2 + $0x78] sm:$0xf] %vm196_vm1, %v5608_v2  ;;  %v423_v43 = vor.u32 %v421_v20, %v5810_v12  ;;  %v3055_v44 = vsel %vm2659_vm0, %v5071_v40, 0  ;;  %v429_v61 = vrot.slane %v427_v42, 7  ;;  %3524 = vmatpush.bf16.msrb.mxu0 %v3515_v59  ;;  %v648_v16 = vld [vmem:[#allocation2 + $0x44] sm:$0x1] }
  0x30   : > { %229 = vst.msk [vmem:[#allocation2 + $0x7c] sm:$0xf] %vm196_vm1, %v5608_v2  ;;  %v665_v28 = vld [vmem:[#allocation2 + $0x60] sm:$0xf]  ;;  %3064 = vmatpush.bf16.msrb.mxu2 %v3055_v44  ;;  %v495_v8 = vshrl.u32 %v279_v4, 16  ;;  %v498_v11 = vshll.u32 %v279_v4, 16  ;;  %v373_v18 = vsel %vm5687_vm7, %v365_v56, %v372_v57  ;;  %v645_v25 = vsel %vm5695_vm8, %v364_v3, %v644_v60 }
  0x31   : > { %4979 = vmatmul.msk.bf16.vlgmr.msra.gmra.mxu1 %vm2610_vm12, %v2598_v45  ;;  %230 = vst.msk [vmem:[#allocation2 + $0x80] sm:$0x1] %vm199_vm2, %v5608_v2  ;;  %v5088_v45 = vld [vmem:[%s7221_s1 + $0x6] sm:$0x3]  ;;  %v666_v53 = vsel %vm5695_vm8, %v415_v33, %v665_v28  ;;  %v424_v0 = vsel %vm5687_vm7, %v416_v19, %v423_v43  ;;  %v503_v12 = vshrl.u32 %v280_v6, 16  ;;  %v374_v15 = vrot.slane %v5841_v35, 4 }
  0x32   : > { %231 = vst.msk [vmem:[#allocation2 + $0x84] sm:$0xf] %vm196_vm1, %v5608_v2  ;;  %v669_v38 = vld [vmem:[#allocation2 + $0x68] sm:$0x1]  ;;  %v3293_v50 = vsel %vm2659_vm0, %v5088_v45, 0  ;;  %v506_v17 = vshll.u32 %v280_v6, 16  ;;  %v432_v26 = vor.u32 %v430_v62, %v429_v61 }
  0x33   : > { %232 = vst.msk [vmem:[#allocation2 + $0x88] sm:$0xf] %vm196_vm1, %v5608_v2  ;;  %3302 = vmatpush.bf16.msrb.mxu3 %v3293_v50  ;;  %v670_v1 = vsel %vm5679_vm6, %v425_v21, %v669_v38  ;;  %v672_v19 = vld [vmem:[#allocation2 + $0x6c] sm:$0xf]  ;;  %v497_v20 = vrot.slane %v495_v8, 7  ;;  %v505_v21 = vrot.slane %v503_v12, 7  ;;  %v649_v37 = vsel %vm5679_vm6, %v374_v15, %v648_v16 }
  0x34   : > { %233 = vst.msk [vmem:[#allocation2 + $0x8c] sm:$0x1] %vm199_vm2, %v5608_v2  ;;  %v256_v27 = vld [vmem:[%s5667_s21 + $0x4] sm:$0xf]  ;;  %v291_v5 = vshrl.u32 %v255_v22, 16  ;;  %v433_v28 = vrot.slane %v429_v61, 4  ;;  %v673_v41 = vsel %vm5695_vm8, %v432_v26, %v672_v19 }
  0x35   : > { %234 = vst.msk [vmem:[#allocation2 + $0x90] sm:$0xf] %vm196_vm1, %v5608_v2  ;;  %v442_v29 = vrot.slane %v437_v7, 4  ;;  %v676_v30 = vld [vmem:[#allocation2 + $0x74] sm:$0x1]  ;;  %v5911_v31 = vor.u32 %v498_v11, %v497_v20  ;;  %v501_v32 = vrot.slane %v497_v20, 4  ;;  %v508_v33 = vor.u32 %v506_v17, %v505_v21 }
  0x36   : > { %235 = vst.msk [vmem:[#allocation2 + $0x94] sm:$0xf] %vm196_vm1, %v5608_v2  ;;  %v5914_v34 = vrot.slane %v291_v5, 7  ;;  %v299_v35 = vshrl.u32 %v256_v27, 16  ;;  %v510_v38 = vrot.slane %v505_v21, 4  ;;  %v294_v40 = vshll.u32 %v255_v22, 16 }
  0x37   : > { %236 = vst.msk [vmem:[#allocation2 + $0x98] sm:$0x1] %vm199_vm2, %v5608_v2  ;;  %v302_v44 = vshll.u32 %v256_v27, 16  ;;  %v509_v52 = vsel %vm5687_vm7, %v501_v32, %v508_v33  ;;  %v614_v59 = vld [vmem:[#allocation2 + $0xc] sm:$0xf] }
  0x38   : > { %237 = vst.msk [vmem:[#allocation2 + $0x9c] sm:$0xf] %vm196_vm1, %v5608_v2  ;;  %v5922_v43 = vrot.slane %v299_v35, 7 }
  0x39   : > { %238 = vst.msk [vmem:[#allocation2 + $0xa0] sm:$0xf] %vm196_vm1, %v5608_v2 }
  0x3a   : > { %239 = vst.msk [vmem:[#allocation2 + $0xa4] sm:$0x1] %vm199_vm2, %v5608_v2 }
  0x3b   : > { %240 = vst.msk [vmem:[#allocation2 + $0xa8] sm:$0xf] %vm196_vm1, %v5608_v2 }
  0x3c   : > { %241 = vst.msk [vmem:[#allocation2 + $0xac] sm:$0xf] %vm196_vm1, %v5608_v2  ;;  %v693_v49 = vld [vmem:[#allocation2 + $0x90] sm:$0xf] }
  0x3d   : > { %242 = vst.msk [vmem:[#allocation2 + $0xb0] sm:$0x1] %vm199_vm2, %v5608_v2  ;;  %v694_v14 = vsel %vm5695_vm8, %v483_v47, %v693_v49  ;;  %v677_v47 = vsel %vm5679_vm6, %v442_v29, %v676_v30 }
  0x3e   : > { %243 = vst.msk [vmem:[#allocation2 + $0xb4] sm:$0xf] %vm196_vm1, %v5608_v2  ;;  %v697_v58 = vld [vmem:[#allocation2 + $0x98] sm:$0x1] }
  0x3f   : > { %244 = vst.msk [vmem:[#allocation2 + $0xb8] sm:$0xf] %vm196_vm1, %v5608_v2  ;;  %v698_v24 = vsel %vm5679_vm6, %v493_v39, %v697_v58  ;;  %v5918_v39 = vld [vmem:[#allocation2 + $0x9c] sm:$0xf]  ;;  %v296_v58 = vor.u32 %v294_v40, %v5914_v34  ;;  %v5950_v40 = vld [vmem:[%s5667_s21 + $0x28] sm:$0xf] }
  0x40   : > { %245 = vst.msk [vmem:[#allocation2 + $0xbc] sm:$0x1] %vm199_vm2, %v5608_v2 }
  0x41   : > { %246 = vst.msk [vmem:[#allocation2 + $0xc0] sm:$0xf] %vm196_vm1, %v5608_v2  ;;  %v704_v42 = vld [vmem:[#allocation2 + $0xa4] sm:$0x1] }
  0x42   : > { %247 = vst.msk [vmem:[#allocation2 + $0xc4] sm:$0xf] %vm196_vm1, %v5608_v2  ;;  %v705_v57 = vsel %vm5679_vm6, %v510_v38, %v704_v42 }
  0x43   : > { %248 = vst.msk [vmem:[#allocation2 + $0xc8] sm:$0x1] %vm199_vm2, %v5608_v2 }
  0x44   : > { %249 = vst.msk [vmem:[#allocation2 + $0xcc] sm:$0xf] %vm196_vm1, %v5608_v2 }
  0x45   : > { %250 = vst.msk [vmem:[#allocation2 + $0xd0] sm:$0xf] %vm196_vm1, %v5608_v2 }
  0x46   : > { %251 = vst.msk [vmem:[#allocation2 + $0xd4] sm:$0x1] %vm199_vm2, %v5608_v2  ;;  %v492_v2 = vsel %vm5687_vm7, %v484_v23, %v491_v48  ;;  %v440_v23 = vor.u32 %v438_v63, %v437_v7  ;;  %v297_v48 = vrot.slane %v5914_v34, 4 }
  0x47   : > { %667 = vst [vmem:[#allocation2 + $0x60] sm:$0xf] %v666_v53  ;;  %v701_v53 = vsel %vm5695_vm8, %v5911_v31, %v5918_v39 }
  0x48   : > { %668 = vst.msk [vmem:[#allocation2 + $0x64] sm:$0xf] %vm196_vm1, %v424_v0  ;;  %v441_v46 = vsel %vm5687_vm7, %v433_v28, %v440_v23  ;;  %v5940_v0 = vor.u32 %v302_v44, %v5922_v43 }
  0x49   : > { %671 = vst [vmem:[#allocation2 + $0x68] sm:$0x1] %v670_v1 }
  0x4a   : > { %695 = vst [vmem:[#allocation2 + $0x90] sm:$0xf] %v694_v14 }
  0x4b   : > { %696 = vst.msk [vmem:[#allocation2 + $0x94] sm:$0xf] %vm196_vm1, %v492_v2 }
  0x4c   : > { %699 = vst [vmem:[#allocation2 + $0x98] sm:$0x1] %v698_v24 }
  0x4d   : > { %646 = vst [vmem:[#allocation2 + $0x3c] sm:$0xf] %v645_v25  ;;  %v615_v25 = vsel %vm5695_vm8, %v296_v58, %v614_v59 }
  0x4e   : > { %v744_v45 = vld [vmem:[#allocation2 + $0x60] sm:$0xf]  ;;  %647 = vst.msk [vmem:[#allocation2 + $0x40] sm:$0xf] %vm196_vm1, %v373_v18 }
  0x4f   : > { %v745_v49 = vld [vmem:[#allocation2 + $0x64] sm:$0xf]  ;;  %v972_v50 = vshrl.u32 %v744_v45, 16  ;;  %v975_v51 = vshll.u32 %v744_v45, 16  ;;  %650 = vst [vmem:[#allocation2 + $0x44] sm:$0x1] %v649_v37 }
  0x50   : > { %v768_v54 = vld [vmem:[#allocation2 + $0x68] sm:$0x1]  ;;  %v981_v55 = vshll.u32 %v745_v49, 16  ;;  %v985_v56 = vshrl.u32 %v745_v49, 16  ;;  %674 = vst [vmem:[#allocation2 + $0x6c] sm:$0xf] %v673_v41 }
  0x51   : > { %v974_v60 = vrot.slane %v972_v50, 4  ;;  %v977_v61 = vrot.slane %v975_v51, 5  ;;  %v991_v62 = vshll.u32 %v768_v54, 16  ;;  %v752_v63 = vld [vmem:[#allocation2 + $0x90] sm:$0xf] }
  0x52   : > { %v983_v1 = vrot.slane %v981_v55, 5  ;;  %v987_v3 = vrot.slane %v985_v56, 4  ;;  %v753_v4 = vld [vmem:[#allocation2 + $0x94] sm:$0xf]  ;;  %v1068_v6 = vshrl.u32 %v752_v63, 16  ;;  %v1071_v7 = vshll.u32 %v752_v63, 16 }
  0x53   : > { %v978_v8 = vor.u32 %v977_v61, %v974_v60  ;;  %v993_v11 = vrot.slane %v991_v62, 5  ;;  %v772_v12 = vld [vmem:[#allocation2 + $0x98] sm:$0x1]  ;;  %v1077_v14 = vshll.u32 %v753_v4, 16  ;;  %v1081_v15 = vshrl.u32 %v753_v4, 16 }
  0x54   : > { %v988_v16 = vor.u32 %v987_v3, %v983_v1  ;;  %v1070_v17 = vrot.slane %v1068_v6, 4  ;;  %v1073_v2 = vrot.slane %v1071_v7, 5  ;;  %v1087_v18 = vshll.u32 %v772_v12, 16  ;;  %v738_v19 = vld [vmem:[#allocation2 + $0x3c] sm:$0xf] }
  0x55   : > { %v979_v20 = vrot.slane %v978_v8, 4  ;;  %v1079_v21 = vrot.slane %v1077_v14, 5  ;;  %v1083_v22 = vrot.slane %v1081_v15, 4  ;;  %v739_v24 = vld [vmem:[#allocation2 + $0x40] sm:$0xf]  ;;  %v900_v23 = vshrl.u32 %v738_v19, 16 }
  0x56   : > { %v989_v26 = vrot.slane %v988_v16, 4  ;;  %v1074_v27 = vor.u32 %v1073_v2, %v1070_v17  ;;  %v1089_v5 = vrot.slane %v1087_v18, 5  ;;  %v765_v28 = vld [vmem:[#allocation2 + $0x44] sm:$0x1]  ;;  %v903_v31 = vshll.u32 %v738_v19, 16 }
  0x57   : > { %v984_v29 = vsel %vm5736_vm11, %v979_v20, %v983_v1  ;;  %v1084_v30 = vor.u32 %v1083_v22, %v1079_v21  ;;  %v909_v32 = vshll.u32 %v739_v24, 16  ;;  %675 = vst.msk [vmem:[#allocation2 + $0x70] sm:$0xf] %vm196_vm1, %v441_v46  ;;  %v746_v33 = vld [vmem:[#allocation2 + $0x6c] sm:$0xf]  ;;  %v902_v39 = vrot.slane %v900_v23, 4 }
  0x58   : > { %v994_v35 = vsel %vm5736_vm11, %v989_v26, %v993_v11  ;;  %v2578_v37 = vunpack.c.l.b16 %v984_v29  ;;  %v1075_v38 = vrot.slane %v1074_v27, 4  ;;  %678 = vst [vmem:[#allocation2 + $0x74] sm:$0x1] %v677_v47  ;;  %v905_v44 = vrot.slane %v903_v31, 5  ;;  %v5971_v16 = vld [vmem:[%s5667_s21 + $0x2c] sm:$0xf] }
  0x59   : > { %v2579_v41 = vunpack.c.l.b16 %v994_v35  ;;  %v1085_v42 = vrot.slane %v1084_v30, 4  ;;  %v911_v45 = vrot.slane %v909_v32, 5  ;;  %702 = vst [vmem:[#allocation2 + $0x9c] sm:$0xf] %v701_v53  ;;  %v913_v50 = vshrl.u32 %v739_v24, 16 }
  0x5a   : > { %v1080_v49 = vsel %vm5736_vm11, %v1075_v38, %v1079_v21  ;;  %v919_v46 = vshll.u32 %v765_v28, 16  ;;  %v996_v51 = vshrl.u32 %v746_v33, 16  ;;  %703 = vst.msk [vmem:[#allocation2 + $0xa0] sm:$0xf] %vm196_vm1, %v509_v52  ;;  %v906_v56 = vor.u32 %v905_v44, %v902_v39  ;;  %v620_v29 = vld [vmem:[#allocation2 + $0x14] sm:$0x1] }
  0x5b   : > { %v2602_v54 = vpack.c.b16 %v2579_v41, %v2578_v37  ;;  %v1090_v55 = vsel %vm5736_vm11, %v1085_v42, %v1089_v5  ;;  %v2586_v47 = vunpack.c.l.b16 %v1080_v49  ;;  %706 = vst [vmem:[#allocation2 + $0xa4] sm:$0x1] %v705_v57  ;;  %v915_v59 = vrot.slane %v913_v50, 4 }
  0x5c   : > { %v2587_v58 = vunpack.c.l.b16 %v1090_v55  ;;  %616 = vst [vmem:[#allocation2 + $0xc] sm:$0xf] %v615_v25  ;;  %v376_v53 = vshrl.u32 %v5950_v40, 16  ;;  %v379_v60 = vshll.u32 %v5950_v40, 16  ;;  %v907_v61 = vrot.slane %v906_v56, 4 }
  0x5d   : > { %4983 = vmatmul.msk.bf16.vlgmr.msra.gmra.mxu2 %vm2610_vm12, %v2602_v54  ;;  %v998_v62 = vrot.slane %v996_v51, 4  ;;  %v999_v63 = vshll.u32 %v746_v33, 16  ;;  %v305_v52 = vsel %vm5687_vm7, %v297_v48, %v5940_v0  ;;  %v916_v57 = vor.u32 %v915_v59, %v911_v45 }
  0x5e   : > { %v2606_v1 = vpack.c.b16 %v2587_v58, %v2586_v47  ;;  %v921_v3 = vrot.slane %v919_v46, 5  ;;  %v747_v4 = vld [vmem:[#allocation2 + $0x70] sm:$0xf]  ;;  %v306_v6 = vrot.slane %v5922_v43, 4  ;;  %617 = vst.msk [vmem:[#allocation2 + $0x10] sm:$0xf] %vm196_vm1, %v305_v52  ;;  %v912_v7 = vsel %vm5736_vm11, %v907_v61, %v911_v45 }
  0x5f   : > { %v769_v8 = vld [vmem:[#allocation2 + $0x74] sm:$0x1]  ;;  %v1001_v11 = vrot.slane %v999_v63, 5  ;;  %v1005_v12 = vshll.u32 %v747_v4, 16  ;;  %v1009_v14 = vshrl.u32 %v747_v4, 16  ;;  %v917_v34 = vrot.slane %v916_v57, 4 }
  0x60   : > { %4987 = vmatmul.msk.bf16.vlgmr.msra.gmra.mxu3 %vm2610_vm12, %v2606_v1  ;;  %v2572_v48 = vunpack.c.l.b16 %v912_v7  ;;  %v1015_v0 = vshll.u32 %v769_v8, 16  ;;  %v754_v15 = vld [vmem:[#allocation2 + $0x9c] sm:$0xf]  ;;  %v5973_v17 = vrot.slane %v376_v53, 7  ;;  %v384_v42 = vshrl.u32 %v5971_v16, 16 }
  0x61   : > { %v1002_v43 = vor.u32 %v1001_v11, %v998_v62  ;;  %v1007_v2 = vrot.slane %v1005_v12, 5  ;;  %v1011_v18 = vrot.slane %v1009_v14, 4  ;;  %v755_v19 = vld [vmem:[#allocation2 + $0xa0] sm:$0xf]  ;;  %v1092_v20 = vshrl.u32 %v754_v15, 16 }
  0x62   : > { %v922_v21 = vsel %vm5736_vm11, %v917_v34, %v921_v3  ;;  %v1017_v22 = vrot.slane %v1015_v0, 5  ;;  %v773_v24 = vld [vmem:[#allocation2 + $0xa4] sm:$0x1]  ;;  %v1095_v25 = vshll.u32 %v754_v15, 16  ;;  %v1101_v26 = vshll.u32 %v755_v19, 16 }
  0x63   : > { %v2573_v27 = vunpack.c.l.b16 %v922_v21  ;;  %v1003_v5 = vrot.slane %v1002_v43, 4  ;;  %v1012_v28 = vor.u32 %v1011_v18, %v1007_v2  ;;  %v1094_v23 = vrot.slane %v1092_v20, 4  ;;  %v730_v35 = vld [vmem:[#allocation2 + $0xc] sm:$0xf]  ;;  %v651_v52 = vld [vmem:[#allocation2 + $0x48] sm:$0xf] }
  0x64   : > { %v1097_v30 = vrot.slane %v1095_v25, 5  ;;  %v1103_v31 = vrot.slane %v1101_v26, 5  ;;  %v1105_v32 = vshrl.u32 %v755_v19, 16  ;;  %v1111_v33 = vshll.u32 %v773_v24, 16  ;;  %v274_v14 = vld [vmem:[%s5667_s21 + $0x4c] sm:$0xf] }
  0x65   : > { %v2599_v37 = vpack.c.b16 %v2573_v27, %v2572_v48  ;;  %v1008_v38 = vsel %vm5736_vm11, %v1003_v5, %v1007_v2  ;;  %v1013_v39 = vrot.slane %v1012_v28, 4  ;;  %v5979_v41 = vld [vmem:[#allocation2 + $0x10] sm:$0xf]  ;;  %v621_v51 = vsel %vm5679_vm6, %v306_v6, %v620_v29  ;;  %v273_v6 = vld [vmem:[%s5667_s21 + $0x48] sm:$0xf] }
  0x66   : > { %v2580_v44 = vunpack.c.l.b16 %v1008_v38  ;;  %v1098_v45 = vor.u32 %v1097_v30, %v1094_v23  ;;  %v1107_v49 = vrot.slane %v1105_v32, 4  ;;  %v1113_v50 = vrot.slane %v1111_v33, 5  ;;  %622 = vst [vmem:[#allocation2 + $0x14] sm:$0x1] %v621_v51  ;;  %v655_v2 = vld [vmem:[#allocation2 + $0x50] sm:$0x1] }
  0x67   : > { %4980 = vmatmul.msk.bf16.gmra.mxu1 %vm2610_vm12, %v2599_v37  ;;  %v1018_v46 = vsel %vm5736_vm11, %v1013_v39, %v1017_v22  ;;  %v804_v54 = vshrl.u32 %v730_v35, 16  ;;  %v807_v55 = vshll.u32 %v730_v35, 16  ;;  %v813_v59 = vshll.u32 %v5979_v41, 16  ;;  %v281_v22 = vld [vmem:[%s5667_s21 + $0x68] sm:$0xf] }
  0x68   : > { %v2581_v47 = vunpack.c.l.b16 %v1018_v46  ;;  %v1099_v56 = vrot.slane %v1098_v45, 4  ;;  %v1108_v58 = vor.u32 %v1107_v49, %v1103_v31  ;;  %v817_v62 = vshrl.u32 %v5979_v41, 16  ;;  %v282_v5 = vld [vmem:[%s5667_s21 + $0x6c] sm:$0xf]  ;;  %v683_v46 = vld [vmem:[#allocation2 + $0x80] sm:$0x1] }
  0x69   : > { %v806_v53 = vrot.slane %v804_v54, 4  ;;  %v809_v61 = vrot.slane %v807_v55, 5  ;;  %v381_v63 = vor.u32 %v379_v60, %v5973_v17  ;;  %v815_v4 = vrot.slane %v813_v59, 5  ;;  %v707_v54 = vld [vmem:[#allocation2 + $0xa8] sm:$0xf] }
  0x6a   : > { %v2603_v1 = vpack.c.b16 %v2581_v47, %v2580_v44  ;;  %v1104_v57 = vsel %vm5736_vm11, %v1099_v56, %v1103_v31  ;;  %v1109_v3 = vrot.slane %v1108_v58, 4  ;;  %v819_v11 = vrot.slane %v817_v62, 4  ;;  %v679_v31 = vld [vmem:[#allocation2 + $0x78] sm:$0xf] }
  0x6b   : > { %v2588_v7 = vunpack.c.l.b16 %v1104_v57  ;;  %v810_v8 = vor.u32 %v809_v61, %v806_v53  ;;  %v382_v12 = vrot.slane %v5973_v17, 4  ;;  %v386_v40 = vrot.slane %v384_v42, 7 }
  0x6c   : > { %v1114_v34 = vsel %vm5736_vm11, %v1109_v3, %v1113_v50  ;;  %v387_v60 = vshll.u32 %v5971_v16, 16  ;;  %v652_v48 = vsel %vm5695_vm8, %v381_v63, %v651_v52  ;;  %v820_v43 = vor.u32 %v819_v11, %v815_v4  ;;  %v711_v63 = vld [vmem:[#allocation2 + $0xb0] sm:$0x1]  ;;  %v257_v52 = vld [vmem:[%s5667_s21 + $0x8] sm:$0xf] }
  0x6d   : > { %4984 = vmatmul.msk.bf16.gmra.mxu2 %vm2610_vm12, %v2603_v1  ;;  %v2589_v0 = vunpack.c.l.b16 %v1114_v34  ;;  %v811_v15 = vrot.slane %v810_v8, 4  ;;  %653 = vst [vmem:[#allocation2 + $0x48] sm:$0xf] %v652_v48  ;;  %v444_v17 = vshrl.u32 %v273_v6, 16  ;;  %v391_v19 = vrot.slane %v386_v40, 4 }
  0x6e   : > { %v389_v18 = vor.u32 %v387_v60, %v386_v40  ;;  %v447_v20 = vshll.u32 %v273_v6, 16  ;;  %v452_v21 = vshrl.u32 %v274_v14, 16  ;;  %v6004_v25 = vld [vmem:[#allocation2 + $0x14] sm:$0x1]  ;;  %v821_v26 = vrot.slane %v820_v43, 4 }
  0x6f   : > { %v2607_v24 = vpack.c.b16 %v2589_v0, %v2588_v7  ;;  %v816_v16 = vsel %vm5736_vm11, %v811_v15, %v815_v4  ;;  %v446_v27 = vrot.slane %v444_v17, 7  ;;  %v823_v28 = vshll.u32 %v6004_v25, 16  ;;  %v258_v6 = vld [vmem:[%s5667_s21 + $0xc] sm:$0xf]  ;;  %v6032_v0 = vld [vmem:[%s5667_s21 + $0x30] sm:$0xf] }
  0x70   : > { %v2564_v23 = vunpack.c.l.b16 %v816_v16  ;;  %v390_v29 = vsel %vm5687_vm7, %v382_v12, %v389_v18  ;;  %v656_v30 = vsel %vm5679_vm6, %v391_v19, %v655_v2  ;;  %v454_v35 = vrot.slane %v452_v21, 7 }
  0x71   : > { %4988 = vmatmul.msk.bf16.gmra.mxu3 %vm2610_vm12, %v2607_v24  ;;  %654 = vst.msk [vmem:[#allocation2 + $0x4c] sm:$0xf] %vm196_vm1, %v390_v29  ;;  %v449_v32 = vor.u32 %v447_v20, %v446_v27  ;;  %v450_v33 = vrot.slane %v446_v27, 4  ;;  %v455_v37 = vshll.u32 %v274_v14, 16  ;;  %v825_v38 = vrot.slane %v823_v28, 5 }
  0x72   : > { %657 = vst [vmem:[#allocation2 + $0x50] sm:$0x1] %v656_v30  ;;  %v512_v39 = vshrl.u32 %v281_v22, 16  ;;  %v515_v42 = vshll.u32 %v281_v22, 16  ;;  %v520_v44 = vshrl.u32 %v282_v5, 16  ;;  %v459_v49 = vrot.slane %v454_v35, 4 }
  0x73   : > { %v457_v45 = vor.u32 %v455_v37, %v454_v35  ;;  %v680_v50 = vsel %vm5695_vm8, %v449_v32, %v679_v31  ;;  %v523_v51 = vshll.u32 %v282_v5, 16  ;;  %v826_v55 = vsel %vm5736_vm11, %v821_v26, %v825_v38 }
  0x74   : > { %v740_v47 = vld [vmem:[#allocation2 + $0x48] sm:$0xf]  ;;  %681 = vst [vmem:[#allocation2 + $0x78] sm:$0xf] %v680_v50  ;;  %v514_v56 = vrot.slane %v512_v39, 7  ;;  %v522_v58 = vrot.slane %v520_v44, 7  ;;  %v2565_v59 = vunpack.c.l.b16 %v826_v55  ;;  %v684_v1 = vsel %vm5679_vm6, %v459_v49, %v683_v46 }
  0x75   : > { %v924_v53 = vshrl.u32 %v740_v47, 16  ;;  %v927_v61 = vshll.u32 %v740_v47, 16  ;;  %v458_v62 = vsel %vm5687_vm7, %v450_v33, %v457_v45  ;;  %685 = vst [vmem:[#allocation2 + $0x80] sm:$0x1] %v684_v1  ;;  %v308_v60 = vshrl.u32 %v257_v52, 16 }
  0x76   : > { %682 = vst.msk [vmem:[#allocation2 + $0x7c] sm:$0xf] %vm196_vm1, %v458_v62  ;;  %v517_v57 = vor.u32 %v515_v42, %v514_v56  ;;  %v518_v3 = vrot.slane %v514_v56, 4  ;;  %v525_v4 = vor.u32 %v523_v51, %v522_v58  ;;  %v2595_v7 = vpack.c.b16 %v2565_v59, %v2564_v23 }
  0x77   : > { %v926_v8 = vrot.slane %v924_v53, 4  ;;  %v929_v11 = vrot.slane %v927_v61, 5  ;;  %v527_v12 = vrot.slane %v522_v58, 4  ;;  %v311_v48 = vshll.u32 %v257_v52, 16 }
  0x78   : > { %v741_v14 = vld [vmem:[#allocation2 + $0x4c] sm:$0xf]  ;;  %v526_v34 = vsel %vm5687_vm7, %v518_v3, %v525_v4  ;;  %v708_v40 = vsel %vm5695_vm8, %v517_v57, %v707_v54  ;;  %4976 = vmatmul.msk.bf16.gmra.mxu0 %vm2610_vm12, %v2595_v7  ;;  %v310_v20 = vrot.slane %v308_v60, 7  ;;  %v316_v21 = vshrl.u32 %v258_v6, 16  ;;  %v623_v3 = vld [vmem:[#allocation2 + $0x18] sm:$0xf] }
  0x79   : > { %v766_v15 = vld [vmem:[#allocation2 + $0x50] sm:$0x1]  ;;  %v930_v43 = vor.u32 %v929_v11, %v926_v8  ;;  %v933_v2 = vshll.u32 %v741_v14, 16  ;;  %v937_v17 = vshrl.u32 %v741_v14, 16  ;;  %709 = vst [vmem:[#allocation2 + $0xa8] sm:$0xf] %v708_v40  ;;  %v712_v18 = vsel %vm5679_vm6, %v527_v12, %v711_v63 }
  0x7a   : > { %v943_v19 = vshll.u32 %v766_v15, 16  ;;  %710 = vst.msk [vmem:[#allocation2 + $0xac] sm:$0xf] %vm196_vm1, %v526_v34  ;;  %v319_v27 = vshll.u32 %v258_v6, 16  ;;  %v393_v29 = vshrl.u32 %v6032_v0, 16  ;;  %v313_v33 = vor.u32 %v311_v48, %v310_v20 }
  0x7b   : > { %v931_v22 = vrot.slane %v930_v43, 4  ;;  %v935_v24 = vrot.slane %v933_v2, 5  ;;  %v939_v16 = vrot.slane %v937_v17, 4  ;;  %v748_v26 = vld [vmem:[#allocation2 + $0x78] sm:$0xf]  ;;  %v318_v35 = vrot.slane %v316_v21, 7 }
  0x7c   : > { %v945_v5 = vrot.slane %v943_v19, 5  ;;  %v1020_v28 = vshrl.u32 %v748_v26, 16  ;;  %v1023_v23 = vshll.u32 %v748_v26, 16  ;;  %713 = vst [vmem:[#allocation2 + $0xb0] sm:$0x1] %v712_v18  ;;  %v314_v44 = vrot.slane %v310_v20, 4 }
  0x7d   : > { %v936_v30 = vsel %vm5736_vm11, %v931_v22, %v935_v24  ;;  %v940_v31 = vor.u32 %v939_v16, %v935_v24  ;;  %v749_v32 = vld [vmem:[#allocation2 + $0x7c] sm:$0xf]  ;;  %v770_v37 = vld [vmem:[#allocation2 + $0x80] sm:$0x1]  ;;  %v321_v47 = vor.u32 %v319_v27, %v318_v35  ;;  %v323_v56 = vrot.slane %v318_v35, 4 }
  0x7e   : > { %v1022_v38 = vrot.slane %v1020_v28, 4  ;;  %v1025_v39 = vrot.slane %v1023_v23, 5  ;;  %v1029_v42 = vshll.u32 %v749_v32, 16  ;;  %v2574_v49 = vunpack.c.l.b16 %v936_v30  ;;  %v627_v12 = vld [vmem:[#allocation2 + $0x20] sm:$0x1] }
  0x7f   : > { %v941_v45 = vrot.slane %v940_v31, 4  ;;  %v1033_v50 = vshrl.u32 %v749_v32, 16  ;;  %v1039_v46 = vshll.u32 %v770_v37, 16  ;;  %v322_v11 = vsel %vm5687_vm7, %v314_v44, %v321_v47  ;;  %v268_v2 = vld [vmem:[%s5667_s21 + $0x34] sm:$0xf] }
  0x80   : > { %v1026_v51 = vor.u32 %v1025_v39, %v1022_v38  ;;  %v1031_v54 = vrot.slane %v1029_v42, 5  ;;  %v756_v55 = vld [vmem:[#allocation2 + $0xa8] sm:$0xf]  ;;  %626 = vst.msk [vmem:[#allocation2 + $0x1c] sm:$0xf] %vm196_vm1, %v322_v11  ;;  %v624_v19 = vsel %vm5695_vm8, %v313_v33, %v623_v3  ;;  %v628_v20 = vsel %vm5679_vm6, %v323_v56, %v627_v12 }
  0x81   : > { %v946_v58 = vsel %vm5736_vm11, %v941_v45, %v945_v5  ;;  %v1035_v59 = vrot.slane %v1033_v50, 4  ;;  %v1041_v53 = vrot.slane %v1039_v46, 5  ;;  %v757_v61 = vld [vmem:[#allocation2 + $0xac] sm:$0xf]  ;;  %v1116_v62 = vshrl.u32 %v756_v55, 16 }
  0x82   : > { %v2575_v63 = vunpack.c.l.b16 %v946_v58  ;;  %v1027_v52 = vrot.slane %v1026_v51, 4  ;;  %v1119_v1 = vshll.u32 %v756_v55, 16  ;;  %v1125_v57 = vshll.u32 %v757_v61, 16  ;;  %v275_v21 = vld [vmem:[%s5667_s21 + $0x50] sm:$0xf] }
  0x83   : > { %v1036_v4 = vor.u32 %v1035_v59, %v1031_v54  ;;  %v774_v6 = vld [vmem:[#allocation2 + $0xb0] sm:$0x1]  ;;  %v1118_v7 = vrot.slane %v1116_v62, 4  ;;  %v1129_v8 = vshrl.u32 %v757_v61, 16  ;;  %625 = vst [vmem:[#allocation2 + $0x18] sm:$0xf] %v624_v19 }
  0x84   : > { %v2600_v14 = vpack.c.b16 %v2575_v63, %v2574_v49  ;;  %v1032_v34 = vsel %vm5736_vm11, %v1027_v52, %v1031_v54  ;;  %v1121_v40 = vrot.slane %v1119_v1, 5  ;;  %v1127_v60 = vrot.slane %v1125_v57, 5  ;;  %629 = vst [vmem:[#allocation2 + $0x20] sm:$0x1] %v628_v20  ;;  %v658_v42 = vld [vmem:[#allocation2 + $0x54] sm:$0xf] }
  0x85   : > { %v1037_v48 = vrot.slane %v1036_v4, 4  ;;  %v1131_v15 = vrot.slane %v1129_v8, 4  ;;  %v1135_v43 = vshll.u32 %v774_v6, 16  ;;  %v2582_v17 = vunpack.c.l.b16 %v1032_v34  ;;  %v662_v47 = vld [vmem:[#allocation2 + $0x5c] sm:$0x1] }
  0x86   : > { %4981 = vmatmul.msk.bf16.gmra.mxu1 %vm2610_vm12, %v2600_v14  ;;  %v1122_v18 = vor.u32 %v1121_v40, %v1118_v7  ;;  %v395_v26 = vrot.slane %v393_v29, 7  ;;  %v396_v28 = vshll.u32 %v6032_v0, 16  ;;  %v401_v23 = vshrl.u32 %v268_v2, 16  ;;  %v276_v0 = vld [vmem:[%s5667_s21 + $0x54] sm:$0xf] }
  0x87   : > { %v1042_v22 = vsel %vm5736_vm11, %v1037_v48, %v1041_v53  ;;  %v1132_v24 = vor.u32 %v1131_v15, %v1127_v60  ;;  %v1137_v16 = vrot.slane %v1135_v43, 5  ;;  %v404_v32 = vshll.u32 %v268_v2, 16  ;;  %v6062_v45 = vld [vmem:[#allocation2 + $0x1c] sm:$0xf]  ;;  %v686_v56 = vld [vmem:[#allocation2 + $0x84] sm:$0xf] }
  0x88   : > { %v2583_v27 = vunpack.c.l.b16 %v1042_v22  ;;  %v1123_v5 = vrot.slane %v1122_v18, 4  ;;  %v399_v31 = vrot.slane %v395_v26, 4  ;;  %v461_v33 = vshrl.u32 %v275_v21, 16  ;;  %v283_v62 = vld [vmem:[%s5667_s21 + $0x70] sm:$0xf] }
  0x89   : > { %v1133_v30 = vrot.slane %v1132_v24, 4  ;;  %v398_v38 = vor.u32 %v396_v28, %v395_v26  ;;  %v403_v39 = vrot.slane %v401_v23, 7  ;;  %v464_v50 = vshll.u32 %v275_v21, 16  ;;  %v284_v63 = vld [vmem:[%s5667_s21 + $0x74] sm:$0xf] }
  0x8a   : > { %v2604_v35 = vpack.c.b16 %v2583_v27, %v2582_v17  ;;  %v1128_v37 = vsel %vm5736_vm11, %v1123_v5, %v1127_v60  ;;  %v463_v49 = vrot.slane %v461_v33, 7  ;;  %v837_v51 = vshll.u32 %v6062_v45, 16  ;;  %v732_v1 = vld [vmem:[#allocation2 + $0x18] sm:$0xf]  ;;  %v6075_v6 = vld [vmem:[%s5667_s21 + $0x10] sm:$0xf] }
  0x8b   : > { %v1138_v29 = vsel %vm5736_vm11, %v1133_v30, %v1137_v16  ;;  %v2590_v44 = vunpack.c.l.b16 %v1128_v37  ;;  %v841_v54 = vshrl.u32 %v6062_v45, 16  ;;  %v406_v55 = vor.u32 %v404_v32, %v403_v39  ;;  %v6077_v7 = vld [vmem:[#allocation2 + $0x20] sm:$0x1]  ;;  %v690_v24 = vld [vmem:[#allocation2 + $0x8c] sm:$0x1] }
  0x8c   : > { %4985 = vmatmul.msk.bf16.gmra.mxu2 %vm2610_vm12, %v2604_v35  ;;  %v2591_v46 = vunpack.c.l.b16 %v1138_v29  ;;  %v408_v58 = vrot.slane %v403_v39, 4  ;;  %v659_v59 = vsel %vm5695_vm8, %v398_v38, %v658_v42  ;;  %v466_v53 = vor.u32 %v464_v50, %v463_v49  ;;  %v5548_v9 = vld [vmem:[#allocation2 + $0xb0] sm:$0x1] }
  0x8d   : > { %v467_v61 = vrot.slane %v463_v49, 4  ;;  %v839_v57 = vrot.slane %v837_v51, 5  ;;  %v843_v3 = vrot.slane %v841_v54, 4  ;;  %v407_v4 = vsel %vm5687_vm7, %v399_v31, %v406_v55  ;;  %660 = vst [vmem:[#allocation2 + $0x54] sm:$0xf] %v659_v59 }
  0x8e   : > { %v2608_v52 = vpack.c.b16 %v2591_v46, %v2590_v44  ;;  %v828_v8 = vshrl.u32 %v732_v1, 16  ;;  %v831_v11 = vshll.u32 %v732_v1, 16  ;;  %661 = vst.msk [vmem:[#allocation2 + $0x58] sm:$0xf] %vm196_vm1, %v407_v4  ;;  %v663_v12 = vsel %vm5679_vm6, %v408_v58, %v662_v47  ;;  %v718_v49 = vld [vmem:[#allocation2 + $0xbc] sm:$0x1] }
  0x8f   : > { %v687_v14 = vsel %vm5695_vm8, %v466_v53, %v686_v56  ;;  %v844_v34 = vor.u32 %v843_v3, %v839_v57  ;;  %v847_v40 = vshll.u32 %v6077_v7, 16  ;;  %664 = vst [vmem:[#allocation2 + $0x5c] sm:$0x1] %v663_v12  ;;  %v469_v60 = vshrl.u32 %v276_v0, 16 }
  0x90   : > { %4989 = vmatmul.msk.bf16.gmra.mxu3 %vm2610_vm12, %v2608_v52  ;;  %v472_v48 = vshll.u32 %v276_v0, 16  ;;  %v830_v15 = vrot.slane %v828_v8, 4  ;;  %v833_v43 = vrot.slane %v831_v11, 5  ;;  %688 = vst [vmem:[#allocation2 + $0x84] sm:$0xf] %v687_v14  ;;  %v529_v2 = vshrl.u32 %v283_v62, 16 }
  0x91   : > { %v532_v17 = vshll.u32 %v283_v62, 16  ;;  %v845_v18 = vrot.slane %v844_v34, 4  ;;  %v849_v19 = vrot.slane %v847_v40, 5  ;;  %v471_v20 = vrot.slane %v469_v60, 7  ;;  %v714_v0 = vld [vmem:[#allocation2 + $0xb4] sm:$0xf] }
  0x92   : > { %v537_v21 = vshrl.u32 %v284_v63, 16  ;;  %v834_v22 = vor.u32 %v833_v43, %v830_v15  ;;  %v531_v16 = vrot.slane %v529_v2, 7  ;;  %v540_v26 = vshll.u32 %v284_v63, 16  ;;  %v260_v8 = vld [vmem:[%s5667_s21 + $0x14] sm:$0xf] }
  0x93   : > { %v325_v27 = vshrl.u32 %v6075_v6, 16  ;;  %v850_v5 = vsel %vm5736_vm11, %v845_v18, %v849_v19  ;;  %v474_v28 = vor.u32 %v472_v48, %v471_v20  ;;  %v476_v23 = vrot.slane %v471_v20, 4 }
  0x94   : > { %v539_v30 = vrot.slane %v537_v21, 7  ;;  %v835_v31 = vrot.slane %v834_v22, 4  ;;  %v2567_v32 = vunpack.c.l.b16 %v850_v5  ;;  %v742_v33 = vld [vmem:[#allocation2 + $0x54] sm:$0xf]  ;;  %v534_v35 = vor.u32 %v532_v17, %v531_v16  ;;  %v630_v22 = vld [vmem:[#allocation2 + $0x24] sm:$0xf] }
  0x95   : > { %v535_v37 = vrot.slane %v531_v16, 4  ;;  %v6089_v38 = vld [vmem:[#allocation2 + $0x58] sm:$0xf]  ;;  %v948_v39 = vshrl.u32 %v742_v33, 16  ;;  %v951_v42 = vshll.u32 %v742_v33, 16  ;;  %v475_v29 = vsel %vm5687_vm7, %v467_v61, %v474_v28 }
  0x96   : > { %v691_v44 = vsel %vm5679_vm6, %v476_v23, %v690_v24  ;;  %v840_v50 = vsel %vm5736_vm11, %v835_v31, %v839_v57  ;;  %v6097_v46 = vld [vmem:[#allocation2 + $0x5c] sm:$0x1]  ;;  %v957_v51 = vshll.u32 %v6089_v38, 16  ;;  %v961_v54 = vshrl.u32 %v6089_v38, 16  ;;  %689 = vst.msk [vmem:[#allocation2 + $0x88] sm:$0xf] %vm196_vm1, %v475_v29 }
  0x97   : > { %v542_v55 = vor.u32 %v540_v26, %v539_v30  ;;  %v2566_v47 = vunpack.c.l.b16 %v840_v50  ;;  %v950_v56 = vrot.slane %v948_v39, 4  ;;  %v953_v58 = vrot.slane %v951_v42, 5  ;;  %692 = vst [vmem:[#allocation2 + $0x8c] sm:$0x1] %v691_v44  ;;  %v750_v62 = vld [vmem:[#allocation2 + $0x84] sm:$0xf] }
  0x98   : > { %v967_v59 = vshll.u32 %v6097_v46, 16  ;;  %v959_v53 = vrot.slane %v957_v51, 5  ;;  %v963_v61 = vrot.slane %v961_v54, 4  ;;  %v544_v52 = vrot.slane %v539_v30, 4 }
  0x99   : > { %v543_v63 = vsel %vm5687_vm7, %v535_v37, %v542_v55  ;;  %v2596_v1 = vpack.c.b16 %v2567_v32, %v2566_v47  ;;  %v954_v57 = vor.u32 %v953_v58, %v950_v56  ;;  %v1044_v4 = vshrl.u32 %v750_v62, 16 }
  0x9a   : > { %v969_v3 = vrot.slane %v967_v59, 5  ;;  %717 = vst.msk [vmem:[#allocation2 + $0xb8] sm:$0xf] %vm196_vm1, %v543_v63  ;;  %v964_v11 = vor.u32 %v963_v61, %v959_v53  ;;  %v1047_v12 = vshll.u32 %v750_v62, 16  ;;  %v715_v14 = vsel %vm5695_vm8, %v534_v35, %v714_v0  ;;  %v634_v59 = vld [vmem:[#allocation2 + $0x2c] sm:$0x1] }
  0x9b   : > { %v719_v34 = vsel %vm5679_vm6, %v544_v52, %v718_v49  ;;  %4977 = vmatmul.msk.bf16.gmra.mxu0 %vm2610_vm12, %v2596_v1  ;;  %v955_v40 = vrot.slane %v954_v57, 4  ;;  %v1046_v60 = vrot.slane %v1044_v4, 4  ;;  %716 = vst [vmem:[#allocation2 + $0xb4] sm:$0xf] %v715_v14  ;;  %v327_v48 = vrot.slane %v325_v27, 7 }
  0x9c   : > { %v328_v15 = vshll.u32 %v6075_v6, 16  ;;  %v965_v43 = vrot.slane %v964_v11, 4  ;;  %v1049_v2 = vrot.slane %v1047_v12, 5  ;;  %720 = vst [vmem:[#allocation2 + $0xbc] sm:$0x1] %v719_v34  ;;  %v333_v17 = vshrl.u32 %v260_v8, 16 }
  0x9d   : > { %v960_v18 = vsel %vm5736_vm11, %v955_v40, %v959_v53  ;;  %v751_v19 = vld [vmem:[#allocation2 + $0x88] sm:$0xf]  ;;  %v336_v21 = vshll.u32 %v260_v8, 16  ;;  %v331_v29 = vrot.slane %v327_v48, 4  ;;  %v1163_v40 = vld [vmem:[#allocation2] sm:$0xe] }
  0x9e   : > { %v330_v20 = vor.u32 %v328_v15, %v327_v48  ;;  %v970_v24 = vsel %vm5736_vm11, %v965_v43, %v969_v3  ;;  %v2576_v16 = vunpack.c.l.b16 %v960_v18  ;;  %v771_v26 = vld [vmem:[#allocation2 + $0x8c] sm:$0x1]  ;;  %v1050_v5 = vor.u32 %v1049_v2, %v1046_v60  ;;  %v5527_v43 = vld [vmem:[#allocation2 + $0x4] sm:$0xf] }
  0x9f   : > { %v1053_v27 = vshll.u32 %v751_v19, 16  ;;  %v2577_v28 = vunpack.c.l.b16 %v970_v24  ;;  %v1057_v6 = vshrl.u32 %v751_v19, 16  ;;  %v1063_v23 = vshll.u32 %v771_v26, 16  ;;  %v5203_v3 = vld [vmem:[%s7221_s1 + $0xc] sm:$0x3] }
  0xa0   : > { %v1051_v30 = vrot.slane %v1050_v5, 4  ;;  %v335_v33 = vrot.slane %v333_v17, 7  ;;  %v631_v35 = vsel %vm5695_vm8, %v330_v20, %v630_v22  ;;  %v1232_v2 = vrot.slane %v5527_v43, 5 }
  0xa1   : > { %v1055_v31 = vrot.slane %v1053_v27, 5  ;;  %v759_v32 = vld [vmem:[#allocation2 + $0xb8] sm:$0xf]  ;;  %v2601_v37 = vpack.c.b16 %v2577_v28, %v2576_v16  ;;  %v1059_v39 = vrot.slane %v1057_v6, 4  ;;  %632 = vst [vmem:[#allocation2 + $0x24] sm:$0xf] %v631_v35 }
  0xa2   : > { %v1149_v42 = vshll.u32 %v759_v32, 16  ;;  %v1065_v44 = vrot.slane %v1063_v23, 5  ;;  %v758_v0 = vld [vmem:[#allocation2 + $0xb4] sm:$0xf]  ;;  %v1153_v49 = vshrl.u32 %v759_v32, 16  ;;  %v338_v50 = vor.u32 %v336_v21, %v335_v33 }
  0xa3   : > { %v340_v51 = vrot.slane %v335_v33, 4  ;;  %4982 = vmatmul.msk.bf16.gmra.mxu1 %vm2610_vm12, %v2601_v37  ;;  %v1056_v54 = vsel %vm5736_vm11, %v1051_v30, %v1055_v31  ;;  %v1060_v55 = vor.u32 %v1059_v39, %v1055_v31  ;;  %v775_v47 = vld [vmem:[#allocation2 + $0xbc] sm:$0x1]  ;;  %v1140_v56 = vshrl.u32 %v758_v0, 16  ;;  %v1342_v16 = vld [vmem:[#allocation2 + $0xc] sm:$0xf] }
  0xa4   : > { %v1143_v58 = vshll.u32 %v758_v0, 16  ;;  %v1151_v53 = vrot.slane %v1149_v42, 5  ;;  %v1155_v61 = vrot.slane %v1153_v49, 4  ;;  %v1159_v62 = vshll.u32 %v775_v47, 16  ;;  %v5528_v23 = vld [vmem:[#allocation2 + $0x8] sm:$0x1] }
  0xa5   : > { %v1061_v63 = vrot.slane %v1060_v55, 4  ;;  %v1142_v52 = vrot.slane %v1140_v56, 4  ;;  %v339_v57 = vsel %vm5687_vm7, %v331_v29, %v338_v50  ;;  %v2584_v4 = vunpack.c.l.b16 %v1056_v54  ;;  %v1343_v33 = vld [vmem:[#allocation2 + $0x10] sm:$0xf]  ;;  %v5322_v54 = vld [vmem:[#allocation2] sm:$0xff] }
  0xa6   : > { %v1145_v1 = vrot.slane %v1143_v58, 5  ;;  %v1156_v8 = vor.u32 %v1155_v61, %v1151_v53  ;;  %v1161_v11 = vrot.slane %v1159_v62, 5  ;;  %633 = vst.msk [vmem:[#allocation2 + $0x28] sm:$0xf] %vm196_vm1, %v339_v57  ;;  %v635_v12 = vsel %vm5679_vm6, %v340_v51, %v634_v59  ;;  %v5284_v61 = vld [vmem:[%s7221_s1 + $0xe] sm:$0x3] }
  0xa7   : > { %v1066_v14 = vsel %vm5736_vm11, %v1061_v63, %v1065_v44  ;;  %636 = vst [vmem:[#allocation2 + $0x2c] sm:$0x1] %v635_v12  ;;  %v3975_v17 = vsel %vm2659_vm0, %v5203_v3, 0  ;;  %v4926_v24 = vrot.slane %v1163_v40, 9  ;;  %v1235_v30 = vrot.slane %v5528_v23, 5 }
  0xa8   : > { %v1146_v34 = vor.u32 %v1145_v1, %v1142_v52  ;;  %v2585_v60 = vunpack.c.l.b16 %v1066_v14  ;;  %v1157_v48 = vrot.slane %v1156_v8, 4  ;;  %v734_v15 = vld [vmem:[#allocation2 + $0x24] sm:$0xf]  ;;  %3984 = vmatpush.bf16.msra.mxu2 %v3975_v17  ;;  %v1234_v32 = vrot.slane %v1232_v2, 4  ;;  %v5186_v62 = vld [vmem:[%s7221_s1 + $0xa] sm:$0x3] }
  0xa9   : > { %v852_v19 = vshrl.u32 %v734_v15, 16  ;;  %v855_v20 = vshll.u32 %v734_v15, 16  ;;  %v1391_v39 = vshrl.u32 %v1342_v16, 16  ;;  %v1233_v49 = vsel %vm6139_vm15, %v4926_v24, %v1232_v2  ;;  %v5301_v3 = vld [vmem:[%s7221_s1 + $0x10] sm:$0x3] }
  0xaa   : > { %v1147_v18 = vrot.slane %v1146_v34, 4  ;;  %v2605_v21 = vpack.c.b16 %v2585_v60, %v2584_v4  ;;  %v1162_v22 = vsel %vm5736_vm11, %v1157_v48, %v1161_v11  ;;  %v1394_v55 = vshll.u32 %v1342_v16, 16  ;;  %v1374_v15 = vld [vmem:[#allocation2 + $0x14] sm:$0x1]  ;;  %v1164_v16 = vld [vmem:[#allocation2 + $0xc] sm:$0xe] }
  0xab   : > { %v2593_v5 = vunpack.c.l.b16 %v1162_v22  ;;  %v854_v27 = vrot.slane %v852_v19, 4  ;;  %v857_v28 = vrot.slane %v855_v20, 5  ;;  %v1400_v47 = vshll.u32 %v1343_v33, 16 }
  0xac   : > { %v1152_v26 = vsel %vm5736_vm11, %v1147_v18, %v1151_v53  ;;  %4986 = vmatmul.msk.bf16.gmra.mxu2 %vm2610_vm12, %v2605_v21  ;;  %v1236_v59 = vsel %vm6139_vm15, %v1234_v32, %v1235_v30  ;;  %v1404_v53 = vshrl.u32 %v1343_v33, 16  ;;  %v2958_v57 = vunpack.c.l.b16 %v1233_v49  ;;  %v1344_v30 = vld [vmem:[#allocation2 + $0x18] sm:$0xf] }
  0xad   : > { %v2592_v31 = vunpack.c.l.b16 %v1152_v26  ;;  %v6144_v35 = vld [vmem:[#allocation2 + $0x28] sm:$0xf]  ;;  %v858_v37 = vor.u32 %v857_v28, %v854_v27  ;;  %v2959_v4 = vunpack.c.l.b16 %v1236_v59  ;;  %v1393_v8 = vrot.slane %v1391_v39, 4  ;;  %v5338_v26 = vld [vmem:[#allocation2 + $0xc] sm:$0xff]  ;;  %v1165_v27 = vld [vmem:[#allocation2 + $0x18] sm:$0xe] }
  0xae   : > { %v6146_v29 = vld [vmem:[#allocation2 + $0x2c] sm:$0x1]  ;;  %v861_v44 = vshll.u32 %v6144_v35, 16  ;;  %v865_v0 = vshrl.u32 %v6144_v35, 16  ;;  %v1396_v11 = vrot.slane %v1394_v55, 5  ;;  %v1402_v12 = vrot.slane %v1400_v47, 5 }
  0xaf   : > { %v2609_v42 = vpack.c.b16 %v2593_v5, %v2592_v31  ;;  %v859_v50 = vrot.slane %v858_v37, 4  ;;  %v871_v51 = vshll.u32 %v6146_v29, 16  ;;  %v1406_v34 = vrot.slane %v1404_v53, 4 }
  0xb0   : > { %v863_v56 = vrot.slane %v861_v44, 5  ;;  %v867_v58 = vrot.slane %v865_v0, 4  ;;  %v4197_v40 = vsel %vm2659_vm0, %v5284_v61, 0  ;;  %v3737_v60 = vsel %vm2659_vm0, %v5186_v62, 0 }
  0xb1   : > { %4990 = vmatmul.msk.bf16.gmra.mxu3 %vm2610_vm12, %v2609_v42  ;;  %v873_v1 = vrot.slane %v871_v51, 5  ;;  %3746 = vmatpush.bf16.msra.mxu1 %v3737_v60  ;;  %v4419_v43 = vsel %vm2659_vm0, %v5301_v3, 0  ;;  %v1397_v18 = vor.u32 %v1396_v11, %v1393_v8  ;;  %v2990_v19 = vpack.c.b16 %v2959_v4, %v2958_v57  ;;  %v1345_v42 = vld [vmem:[#allocation2 + $0x1c] sm:$0xf]  ;;  %v1375_v8 = vld [vmem:[#allocation2 + $0x20] sm:$0x1] }
  0xb2   : > { %v864_v63 = vsel %vm5736_vm11, %v859_v50, %v863_v56  ;;  %v868_v52 = vor.u32 %v867_v58, %v863_v56  ;;  %4206 = vmatpush.bf16.msra.mxu3 %v4197_v40  ;;  %4428 = vmatpush.bf16.msra.mxu0 %v4419_v43  ;;  %v1407_v20 = vor.u32 %v1406_v34, %v1402_v12  ;;  %v1410_v21 = vshll.u32 %v1374_v15, 16  ;;  %v5323_v50 = vld [vmem:[#allocation2 + $0xc] sm:$0xff]  ;;  %v5339_v15 = vld [vmem:[#allocation2 + $0x18] sm:$0xff] }
  0xb3   : > { %5055 = vmatmul.msk.bf16.vlgmr.msrb.gmra.mxu1 %vm2610_vm12, %v5322_v54  ;;  %v2568_v48 = vunpack.c.l.b16 %v864_v63  ;;  %v1239_v24 = vrot.slane %v5979_v41, 5  ;;  %v1398_v5 = vrot.slane %v1397_v18, 4  ;;  %v4928_v31 = vrot.slane %v1165_v27, 9 }
  0xb4   : > { %v869_v14 = vrot.slane %v868_v52, 4  ;;  %v1408_v28 = vrot.slane %v1407_v20, 4  ;;  %v1412_v23 = vrot.slane %v1410_v21, 5  ;;  %v1246_v32 = vrot.slane %v6062_v45, 5  ;;  %v5324_v20 = vld [vmem:[#allocation2 + $0x18] sm:$0xff] }
  0xb5   : > { %v4927_v33 = vrot.slane %v1164_v16, 9  ;;  %v1241_v37 = vrot.slane %v1239_v24, 4  ;;  %v1242_v39 = vrot.slane %v6004_v25, 5  ;;  %v1249_v41 = vrot.slane %v6077_v7, 5 }
  0xb6   : > { %v874_v2 = vsel %vm5736_vm11, %v869_v14, %v873_v1  ;;  %v1247_v44 = vsel %vm6139_vm15, %v4928_v31, %v1246_v32  ;;  %v1248_v0 = vrot.slane %v1246_v32, 4  ;;  %v1403_v49 = vsel %vm5736_vm11, %v1398_v5, %v1402_v12  ;;  %v1376_v31 = vld [vmem:[#allocation2 + $0x2c] sm:$0x1] }
  0xb7   : > { %v2569_v17 = vunpack.c.l.b16 %v874_v2  ;;  %v1415_v51 = vshrl.u32 %v1344_v30, 16  ;;  %v1418_v54 = vshll.u32 %v1344_v30, 16  ;;  %v2962_v55 = vunpack.c.l.b16 %v1247_v44 }
  0xb8   : > { %v1413_v45 = vsel %vm5736_vm11, %v1408_v28, %v1412_v23  ;;  %v1424_v25 = vshll.u32 %v1345_v42, 16  ;;  %v1428_v47 = vshrl.u32 %v1345_v42, 16  ;;  %v1250_v7 = vsel %vm6139_vm15, %v1248_v0, %v1249_v41  ;;  %v1166_v42 = vld [vmem:[#allocation2 + $0x24] sm:$0xe] }
  0xb9   : > { %v2597_v22 = vpack.c.b16 %v2569_v17, %v2568_v48  ;;  %v1240_v56 = vsel %vm6139_vm15, %v4927_v33, %v1239_v24  ;;  %v1243_v58 = vsel %vm6139_vm15, %v1241_v37, %v1242_v39  ;;  %v2963_v59 = vunpack.c.l.b16 %v1250_v7  ;;  %v1346_v48 = vld [vmem:[#allocation2 + $0x24] sm:$0xf]  ;;  %v1347_v17 = vld [vmem:[#allocation2 + $0x28] sm:$0xf] }
  0xba   : > { %v3418_v53 = vunpack.c.l.b16 %v1403_v49  ;;  %v3419_v61 = vunpack.c.l.b16 %v1413_v45  ;;  %v1417_v62 = vrot.slane %v1415_v51, 4  ;;  %v1420_v63 = vrot.slane %v1418_v54, 5  ;;  %v5340_v51 = vld [vmem:[#allocation2 + $0x24] sm:$0xff]  ;;  %v1348_v45 = vld [vmem:[#allocation2 + $0x30] sm:$0xf] }
  0xbb   : > { %4978 = vmatmul.msk.bf16.gmra.mxu0 %vm2610_vm12, %v2597_v22  ;;  %v2992_v52 = vpack.c.b16 %v2963_v59, %v2962_v55  ;;  %v2960_v1 = vunpack.c.l.b16 %v1240_v56  ;;  %v2961_v57 = vunpack.c.l.b16 %v1243_v58  ;;  %v1426_v3 = vrot.slane %v1424_v25, 5  ;;  %v1349_v25 = vld [vmem:[#allocation2 + $0x34] sm:$0xf]  ;;  %v5325_v7 = vld [vmem:[#allocation2 + $0x24] sm:$0xff] }
  0xbc   : > { %5072 = vmatmul.msk.bf16.vlgmr.msrb.gmra.mxu2 %vm2610_vm12, %v2990_v19  ;;  %v1430_v4 = vrot.slane %v1428_v47, 4  ;;  %v3450_v11 = vpack.c.b16 %v3419_v61, %v3418_v53  ;;  %v1421_v12 = vor.u32 %v1420_v63, %v1417_v62  ;;  %v1434_v40 = vshll.u32 %v1375_v8, 16 }
  0xbd   : > { %v2991_v14 = vpack.c.b16 %v2961_v57, %v2960_v1  ;;  %v1439_v18 = vshrl.u32 %v1346_v48, 16  ;;  %v1442_v21 = vshll.u32 %v1346_v48, 16  ;;  %v1448_v22 = vshll.u32 %v1347_v17, 16 }
  0xbe   : > { %v1431_v34 = vor.u32 %v1430_v4, %v1426_v3  ;;  %v1422_v60 = vrot.slane %v1421_v12, 4  ;;  %v1436_v2 = vrot.slane %v1434_v40, 5  ;;  %v1452_v24 = vshrl.u32 %v1347_v17, 16  ;;  %v1377_v12 = vld [vmem:[#allocation2 + $0x38] sm:$0x1] }
  0xbf   : > { %v1441_v5 = vrot.slane %v1439_v18, 4  ;;  %v1444_v28 = vrot.slane %v1442_v21, 5  ;;  %v1450_v23 = vrot.slane %v1448_v22, 5  ;;  %v1458_v39 = vshll.u32 %v1376_v31, 16  ;;  %v1350_v17 = vld [vmem:[#allocation2 + $0x3c] sm:$0xf] }
  0xc0   : > { %v1432_v43 = vrot.slane %v1431_v34, 4  ;;  %v1427_v19 = vsel %vm5736_vm11, %v1422_v60, %v1426_v3  ;;  %v1454_v30 = vrot.slane %v1452_v24, 4  ;;  %v1253_v41 = vrot.slane %v6144_v35, 5  ;;  %v1351_v18 = vld [vmem:[#allocation2 + $0x40] sm:$0xf] }
  0xc1   : > { %5153 = vmatmul.msk.bf16.vlgmr.msrb.gmra.mxu3 %vm2610_vm12, %v5338_v26  ;;  %v3420_v26 = vunpack.c.l.b16 %v1427_v19  ;;  %v1445_v33 = vor.u32 %v1444_v28, %v1441_v5  ;;  %v1460_v49 = vrot.slane %v1458_v39, 5  ;;  %v1256_v55 = vrot.slane %v6146_v29, 5  ;;  %v5341_v19 = vld [vmem:[#allocation2 + $0x30] sm:$0xff] }
  0xc2   : > { %v1437_v16 = vsel %vm5736_vm11, %v1432_v43, %v1436_v2  ;;  %v1455_v37 = vor.u32 %v1454_v30, %v1450_v23  ;;  %v1255_v54 = vrot.slane %v1253_v41, 4  ;;  %v1463_v58 = vshrl.u32 %v1348_v45, 16  ;;  %v1167_v2 = vld [vmem:[#allocation2 + $0x30] sm:$0xe] }
  0xc3   : > { %5056 = vmatmul.msk.bf16.gmra.mxu1 %vm2610_vm12, %v5323_v50  ;;  %v3421_v27 = vunpack.c.l.b16 %v1437_v16  ;;  %v1446_v44 = vrot.slane %v1445_v33, 4  ;;  %v4929_v50 = vrot.slane %v1166_v42, 9  ;;  %v1466_v53 = vshll.u32 %v1348_v45, 16 }
  0xc4   : > { %v1456_v0 = vrot.slane %v1455_v37, 4  ;;  %v1257_v59 = vsel %vm6139_vm15, %v1255_v54, %v1256_v55  ;;  %v1472_v29 = vshll.u32 %v1349_v25, 16  ;;  %v1476_v61 = vshrl.u32 %v1349_v25, 16  ;;  %v1378_v54 = vld [vmem:[#allocation2 + $0x44] sm:$0x1] }
  0xc5   : > { %v3451_v32 = vpack.c.b16 %v3421_v27, %v3420_v26  ;;  %v1451_v47 = vsel %vm5736_vm11, %v1446_v44, %v1450_v23  ;;  %v1254_v56 = vsel %vm6139_vm15, %v4929_v50, %v1253_v41  ;;  %v2965_v1 = vunpack.c.l.b16 %v1257_v59  ;;  %v5530_v26 = vld [vmem:[#allocation2 + $0x38] sm:$0x1] }
  0xc6   : > { %v1461_v35 = vsel %vm5736_vm11, %v1456_v0, %v1460_v49  ;;  %v3422_v62 = vunpack.c.l.b16 %v1451_v47  ;;  %v1465_v57 = vrot.slane %v1463_v58, 4  ;;  %v1468_v3 = vrot.slane %v1466_v53, 5 }
  0xc7   : > { %v3423_v63 = vunpack.c.l.b16 %v1461_v35  ;;  %v1474_v4 = vrot.slane %v1472_v29, 5  ;;  %v1478_v8 = vrot.slane %v1476_v61, 4  ;;  %v1482_v48 = vshll.u32 %v1377_v12, 16  ;;  %v5531_v29 = vld [vmem:[#allocation2 + $0x40] sm:$0xf] }
  0xc8   : > { %v1469_v40 = vor.u32 %v1468_v3, %v1465_v57  ;;  %v4930_v24 = vrot.slane %v1167_v2, 9  ;;  %v1263_v5 = vrot.slane %v5530_v26, 5  ;;  %v1487_v27 = vshrl.u32 %v1350_v17, 16  ;;  %v6238_v57 = vpop.f32.mrf.mxu0  ;;  %v5342_v3 = vld [vmem:[#allocation2 + $0x3c] sm:$0xff] }
  0xc9   : > { %v1479_v60 = vor.u32 %v1478_v8, %v1474_v4  ;;  %v1484_v22 = vrot.slane %v1482_v48, 5  ;;  %v1490_v28 = vshll.u32 %v1350_v17, 16  ;;  %v1496_v23 = vshll.u32 %v1351_v18, 16  ;;  %v1353_v8 = vld [vmem:[#allocation2 + $0x4c] sm:$0xf] }
  0xca   : > { %v1500_v30 = vshrl.u32 %v1351_v18, 16  ;;  %v1489_v41 = vrot.slane %v1487_v27, 4  ;;  %v1267_v61 = vrot.slane %v5531_v29, 5  ;;  %v1520_v18 = vshll.u32 %v1353_v8, 16 }
  0xcb   : > { %5170 = vmatmul.msk.bf16.vlgmr.msrb.gmra.mxu0 %vm2610_vm12, %v3450_v11  ;;  %v6215_v11 = vpop.f32.mrf.mxu1  ;;  %v1480_v21 = vrot.slane %v1479_v60, 4  ;;  %v1492_v44 = vrot.slane %v1490_v28, 5  ;;  %v1498_v0 = vrot.slane %v1496_v23, 5 }
  0xcc   : > { %5073 = vmatmul.msk.bf16.gmra.mxu2 %vm2610_vm12, %v2991_v14  ;;  %v3452_v14 = vpack.c.b16 %v3423_v63, %v3422_v62  ;;  %v1502_v49 = vrot.slane %v1500_v30, 4  ;;  %v1522_v28 = vrot.slane %v1520_v18, 5 }
  0xcd   : > { %v1485_v37 = vsel %vm5736_vm11, %v1480_v21, %v1484_v22  ;;  %v1493_v47 = vor.u32 %v1492_v44, %v1489_v41 }
  0xce   : > { %v1503_v35 = vor.u32 %v1502_v49, %v1498_v0 }
  0xcf   : > { %v1494_v62 = vrot.slane %v1493_v47, 4 }
  0xd0   : > { %v1504_v63 = vrot.slane %v1503_v35, 4 }
  0xd1   : > { %5154 = vmatmul.msk.bf16.gmra.mxu3 %vm2610_vm12, %v5339_v15  ;;  %v5529_v15 = vld [vmem:[#allocation2 + $0x34] sm:$0xf]  ;;  %v1499_v48 = vsel %vm5736_vm11, %v1494_v62, %v1498_v0 }
  0xd2   : > { %v1260_v43 = vrot.slane %v5529_v15, 5 }
  0xd3   : > { %5057 = vmatmul.msk.bf16.gmra.mxu1 %vm2610_vm12, %v5324_v20  ;;  %v1470_v20 = vrot.slane %v1469_v40, 4  ;;  %v6219_v31 = vpop.f32.mrf.mxu1  ;;  %v5532_v40 = vld [vmem:[#allocation2 + $0x44] sm:$0x1] }
  0xd4   : > { %v1262_v16 = vrot.slane %v1260_v43, 4  ;;  %v1261_v39 = vsel %vm6139_vm15, %v4930_v24, %v1260_v43  ;;  %v1270_v60 = vrot.slane %v5532_v40, 5  ;;  %v5327_v43 = vld [vmem:[#allocation2 + $0x3c] sm:$0xff]  ;;  %v3426_v24 = vunpack.c.l.b16 %v1499_v48 }
  0xd5   : > { %v1475_v33 = vsel %vm5736_vm11, %v1470_v20, %v1474_v4  ;;  %v2966_v45 = vunpack.c.l.b16 %v1261_v39  ;;  %v1352_v4 = vld [vmem:[#allocation2 + $0x48] sm:$0xf] }
  0xd6   : > { %v1264_v42 = vsel %vm6139_vm15, %v1262_v16, %v1263_v5  ;;  %v3424_v50 = vunpack.c.l.b16 %v1475_v33  ;;  %v1511_v2 = vshrl.u32 %v1352_v4, 16  ;;  %v1514_v17 = vshll.u32 %v1352_v4, 16  ;;  %v1379_v33 = vld [vmem:[#allocation2 + $0x50] sm:$0x1]  ;;  %v5328_v4 = vld [vmem:[#allocation2 + $0x48] sm:$0xff] }
  0xd7   : > { %v2967_v25 = vunpack.c.l.b16 %v1264_v42  ;;  %v1530_v44 = vshll.u32 %v1379_v33, 16 }
  0xd8   : > { %v1513_v5 = vrot.slane %v1511_v2, 4  ;;  %v1516_v27 = vrot.slane %v1514_v17, 5 }
  0xd9   : > { %v2994_v59 = vpack.c.b16 %v2967_v25, %v2966_v45  ;;  %v1532_v47 = vrot.slane %v1530_v44, 5  ;;  %v1170_v44 = vld [vmem:[#allocation2 + $0x54] sm:$0xe] }
  0xda   : > { %v1517_v42 = vor.u32 %v1516_v27, %v1513_v5  ;;  %v1380_v27 = vld [vmem:[#allocation2 + $0x5c] sm:$0x1] }
  0xdb   : > { %5171 = vmatmul.msk.bf16.gmra.mxu0 %vm2610_vm12, %v3451_v32  ;;  %v5326_v32 = vld [vmem:[#allocation2 + $0x30] sm:$0xff] }
  0xdc   : > { %5074 = vmatmul.msk.bf16.gmra.mxu2 %vm2610_vm12, %v2992_v52  ;;  %v2964_v52 = vunpack.c.l.b16 %v1254_v56  ;;  %v1518_v45 = vrot.slane %v1517_v42, 4  ;;  %v1281_v42 = vrot.slane %v6089_v38, 5 }
  0xde   : > { %v2993_v34 = vpack.c.b16 %v2965_v1, %v2964_v52  ;;  %v1168_v1 = vld [vmem:[#allocation2 + $0x3c] sm:$0xe] }
  0xe0   : > { %v6231_v55 = vpop.f32.mrf.mxu2 }
  0xe1   : > { %5155 = vmatmul.msk.bf16.gmra.mxu3 %vm2610_vm12, %v5340_v51  ;;  %v3425_v51 = vunpack.c.l.b16 %v1485_v37  ;;  %v6257_v37 = vpop.f32.mrf.mxu0 }
  0xe3   : > { %5058 = vmatmul.msk.bf16.gmra.mxu1 %vm2610_vm12, %v5325_v7  ;;  %v1506_v7 = vshll.u32 %v1378_v54, 16  ;;  %v3453_v56 = vpack.c.b16 %v3425_v51, %v3424_v50  ;;  %v6233_v58 = vpop.f32.mrf.mxu3  ;;  %v1169_v50 = vld [vmem:[#allocation2 + $0x48] sm:$0xe]  ;;  %v5533_v51 = vld [vmem:[#allocation2 + $0x4c] sm:$0xf] }
  0xe4   : > { %v6235_v53 = vpop.f32.mrf.mxu1  ;;  %v1274_v54 = vrot.slane %v5533_v51, 5 }
  0xe5   : > { %v1508_v52 = vrot.slane %v1506_v7, 5  ;;  %v4932_v7 = vrot.slane %v1169_v50, 9  ;;  %v5344_v50 = vld [vmem:[#allocation2 + $0x54] sm:$0xff] }
  0xe6   : > { %v1276_v29 = vrot.slane %v1274_v54, 4 }
  0xe7   : > { %v1509_v15 = vsel %vm5736_vm11, %v1504_v63, %v1508_v52  ;;  %v1354_v63 = vld [vmem:[#allocation2 + $0x54] sm:$0xf]  ;;  %v1355_v52 = vld [vmem:[#allocation2 + $0x58] sm:$0xf] }
  0xe8   : > { %v6241_v12 = vpop.f32.mrf.mxu2  ;;  %v3427_v16 = vunpack.c.l.b16 %v1509_v15  ;;  %v1544_v48 = vshll.u32 %v1355_v52, 16  ;;  %v1548_v15 = vshrl.u32 %v1355_v52, 16 }
  0xea   : > { %v3454_v39 = vpack.c.b16 %v3427_v16, %v3426_v24  ;;  %v1546_v24 = vrot.slane %v1544_v48, 5  ;;  %v1550_v16 = vrot.slane %v1548_v15, 4 }
  0xeb   : > { %5172 = vmatmul.msk.bf16.gmra.mxu0 %vm2610_vm12, %v3452_v14  ;;  %v4931_v14 = vrot.slane %v1168_v1, 9  ;;  %v6248_v20 = vpop.f32.mrf.mxu3  ;;  %v1523_v1 = vsel %vm5736_vm11, %v1518_v45, %v1522_v28 }
  0xec   : > { %5075 = vmatmul.msk.bf16.gmra.mxu2 %vm2610_vm12, %v2993_v34  ;;  %v1269_v34 = vrot.slane %v1267_v61, 4  ;;  %v6254_v26 = vpop.f32.mrf.mxu1  ;;  %v3428_v2 = vunpack.c.l.b16 %v1523_v1  ;;  %v1551_v33 = vor.u32 %v1550_v16, %v1546_v24 }
  0xed   : > { %v1268_v21 = vsel %vm6139_vm15, %v4931_v14, %v1267_v61  ;;  %v5534_v61 = vld [vmem:[#allocation2 + $0x50] sm:$0x1]  ;;  %v1535_v14 = vshrl.u32 %v1354_v63, 16 }
  0xee   : > { %v1271_v22 = vsel %vm6139_vm15, %v1269_v34, %v1270_v60  ;;  %v2968_v30 = vunpack.c.l.b16 %v1268_v21  ;;  %v1277_v62 = vrot.slane %v5534_v61, 5  ;;  %v1538_v60 = vshll.u32 %v1354_v63, 16  ;;  %v5329_v61 = vld [vmem:[#allocation2 + $0x54] sm:$0xff] }
  0xef   : > { %v1537_v21 = vrot.slane %v1535_v14, 4 }
  0xf0   : > { %v6259_v0 = vpop.f32.mrf.mxu2  ;;  %v1278_v40 = vsel %vm6139_vm15, %v1276_v29, %v1277_v62  ;;  %v1357_v29 = vld [vmem:[#allocation2 + $0x64] sm:$0xf] }
  0xf1   : > { %5156 = vmatmul.msk.bf16.gmra.mxu3 %vm2610_vm12, %v5341_v19  ;;  %v1524_v19 = vshrl.u32 %v1353_v8, 16  ;;  %v1275_v8 = vsel %vm6139_vm15, %v4932_v7, %v1274_v54  ;;  %v1552_v54 = vrot.slane %v1551_v33, 4  ;;  %v1283_v7 = vrot.slane %v1281_v42, 4 }
  0xf2   : > { %v2970_v18 = vunpack.c.l.b16 %v1275_v8  ;;  %v1572_v8 = vshrl.u32 %v1357_v29, 16 }
  0xf3   : > { %5059 = vmatmul.msk.bf16.gmra.mxu1 %vm2610_vm12, %v5326_v32  ;;  %v1526_v23 = vrot.slane %v1524_v19, 4  ;;  %v2969_v32 = vunpack.c.l.b16 %v1271_v22  ;;  %v2971_v19 = vunpack.c.l.b16 %v1278_v40  ;;  %v1540_v22 = vrot.slane %v1538_v60, 5 }
  0xf4   : > { %v6262_v35 = vpop.f32.mrf.mxu3 }
  0xf5   : > { %v1527_v41 = vor.u32 %v1526_v23, %v1522_v28  ;;  %v2995_v49 = vpack.c.b16 %v2969_v32, %v2968_v30  ;;  %v6273_v34 = vpop.f32.mrf.mxu0  ;;  %v2996_v30 = vpack.c.b16 %v2971_v19, %v2970_v18  ;;  %v1541_v32 = vor.u32 %v1540_v22, %v1537_v21 }
  0xf6   : > { %v1574_v21 = vrot.slane %v1572_v8, 4 }
  0xf7   : > { %v1528_v25 = vrot.slane %v1527_v41, 4  ;;  %v1542_v51 = vrot.slane %v1541_v32, 4 }
  0xf9   : > { %v1547_v52 = vsel %vm5736_vm11, %v1542_v51, %v1546_v24  ;;  %v1381_v24 = vld [vmem:[#allocation2 + $0x68] sm:$0x1]  ;;  %v5345_v51 = vld [vmem:[#allocation2 + $0x60] sm:$0xff] }
  0xfa   : > { %v3430_v40 = vunpack.c.l.b16 %v1547_v52  ;;  %v1578_v32 = vshll.u32 %v1381_v24, 16 }
  0xfb   : > { %5173 = vmatmul.msk.bf16.gmra.mxu0 %vm2610_vm12, %v3453_v56  ;;  %v5343_v56 = vld [vmem:[#allocation2 + $0x48] sm:$0xff] }
  0xfc   : > { %5076 = vmatmul.msk.bf16.gmra.mxu2 %vm2610_vm12, %v2994_v59  ;;  %v6281_v5 = vpop.f32.mrf.mxu3 }
  0xfd   : > { %v6286_v41 = vpop.f32.mrf.mxu0 }
 0x101   : > { %5157 = vmatmul.msk.bf16.gmra.mxu3 %vm2610_vm12, %v5342_v3  ;;  %v1533_v3 = vsel %vm5736_vm11, %v1528_v25, %v1532_v47  ;;  %v1356_v25 = vld [vmem:[#allocation2 + $0x60] sm:$0xf]  ;;  %v4933_v47 = vrot.slane %v1170_v44, 9 }
 0x102   : > { %v3429_v17 = vunpack.c.l.b16 %v1533_v3  ;;  %v1559_v62 = vshrl.u32 %v1356_v25, 16  ;;  %v1562_v63 = vshll.u32 %v1356_v25, 16  ;;  %v1580_v25 = vrot.slane %v1578_v32, 5 }
 0x103   : > { %5060 = vmatmul.msk.bf16.gmra.mxu1 %vm2610_vm12, %v5327_v43  ;;  %v6265_v59 = vpop.f32.mrf.mxu1  ;;  %v6278_v43 = vpop.f32.mrf.mxu2 }
 0x104   : > { %v3455_v23 = vpack.c.b16 %v3429_v17, %v3428_v2  ;;  %v1561_v48 = vrot.slane %v1559_v62, 4  ;;  %v1564_v15 = vrot.slane %v1562_v63, 5  ;;  %v1359_v62 = vld [vmem:[#allocation2 + $0x70] sm:$0xf] }
 0x10b   : > { %5174 = vmatmul.msk.bf16.gmra.mxu0 %vm2610_vm12, %v3454_v39  ;;  %v6283_v28 = vpop.f32.mrf.mxu1  ;;  %v1554_v39 = vshll.u32 %v1380_v27, 16 }
 0x10c   : > { %5077 = vmatmul.msk.bf16.gmra.mxu2 %vm2610_vm12, %v2995_v49 }
 0x10d   : > { %v1556_v45 = vrot.slane %v1554_v39, 5 }
 0x10f   : > { %v6289_v49 = vpop.f32.mrf.mxu2  ;;  %v1557_v1 = vsel %vm5736_vm11, %v1552_v54, %v1556_v45 }
 0x110   : > { %v3431_v60 = vunpack.c.l.b16 %v1557_v1  ;;  %v5330_v1 = vld [vmem:[#allocation2 + $0x60] sm:$0xff] }
 0x111   : > { %5158 = vmatmul.msk.bf16.gmra.mxu3 %vm2610_vm12, %v5343_v56  ;;  %v1284_v56 = vrot.slane %v6097_v46, 5  ;;  %v1282_v46 = vsel %vm6139_vm15, %v4933_v47, %v1281_v42  ;;  %v5535_v42 = vld [vmem:[#allocation2 + $0x64] sm:$0xf]  ;;  %v1358_v47 = vld [vmem:[#allocation2 + $0x6c] sm:$0xf] }
 0x112   : > { %v2972_v17 = vunpack.c.l.b16 %v1282_v46  ;;  %v3456_v16 = vpack.c.b16 %v3431_v60, %v3430_v40  ;;  %v1288_v44 = vrot.slane %v5535_v42, 5  ;;  %v1586_v8 = vshll.u32 %v1358_v47, 16 }
 0x113   : > { %5061 = vmatmul.msk.bf16.gmra.mxu1 %vm2610_vm12, %v5328_v4  ;;  %v6293_v38 = vpop.f32.mrf.mxu3  ;;  %v1568_v4 = vshll.u32 %v1357_v29, 16  ;;  %v1285_v14 = vsel %vm6139_vm15, %v1283_v7, %v1284_v56  ;;  %v5536_v7 = vld [vmem:[#allocation2 + $0x68] sm:$0x1]  ;;  %v1592_v60 = vshll.u32 %v1359_v62, 16 }
 0x114   : > { %v2973_v18 = vunpack.c.l.b16 %v1285_v14  ;;  %v1291_v56 = vrot.slane %v5536_v7, 5 }
 0x115   : > { %v1570_v19 = vrot.slane %v1568_v4, 5  ;;  %v1583_v4 = vshrl.u32 %v1358_v47, 16  ;;  %v1594_v32 = vrot.slane %v1592_v60, 5  ;;  %v1361_v60 = vld [vmem:[#allocation2 + $0x7c] sm:$0xf] }
 0x116   : > { %v2997_v27 = vpack.c.b16 %v2973_v18, %v2972_v17 }
 0x117   : > { %v6309_v22 = vpop.f32.mrf.mxu2 }
 0x118   : > { %v6307_v2 = vpop.f32.mrf.mxu0 }
 0x11b   : > { %5175 = vmatmul.msk.bf16.gmra.mxu0 %vm2610_vm12, %v3455_v23  ;;  %v1565_v23 = vor.u32 %v1564_v15, %v1561_v48  ;;  %v6313_v39 = vpop.f32.mrf.mxu3  ;;  %v1596_v48 = vshrl.u32 %v1359_v62, 16 }
 0x11c   : > { %5078 = vmatmul.msk.bf16.gmra.mxu2 %vm2610_vm12, %v2996_v30  ;;  %v1575_v30 = vor.u32 %v1574_v21, %v1570_v19  ;;  %7234 = vst [vmem:[#allocation3_spill] sm:$0xff] %v6313_v39 }
 0x11d   : > { %v1566_v54 = vrot.slane %v1565_v23, 4  ;;  %v1598_v42 = vrot.slane %v1596_v48, 4  ;;  %v5538_v48 = vld [vmem:[#allocation2 + $0x74] sm:$0x1] }
 0x11e   : > { %v1576_v45 = vrot.slane %v1575_v30, 4  ;;  %v1382_v30 = vld [vmem:[#allocation2 + $0x74] sm:$0x1] }
 0x11f   : > { %v1571_v46 = vsel %vm5736_vm11, %v1566_v54, %v1570_v19  ;;  %v1588_v19 = vrot.slane %v1586_v8, 5  ;;  %v1602_v54 = vshll.u32 %v1382_v30, 16  ;;  %v1599_v47 = vor.u32 %v1598_v42, %v1594_v32  ;;  %v5346_v8 = vld [vmem:[#allocation2 + $0x6c] sm:$0xff] }
 0x120   : > { %v6300_v3 = vpop.f32.mrf.mxu1  ;;  %v6317_v63 = vpop.f32.mrf.mxu0  ;;  %v1581_v14 = vsel %vm5736_vm11, %v1576_v45, %v1580_v25  ;;  %v3432_v18 = vunpack.c.l.b16 %v1571_v46  ;;  %v1616_v42 = vshll.u32 %v1361_v60, 16 }
 0x121   : > { %5159 = vmatmul.msk.bf16.gmra.mxu3 %vm2610_vm12, %v5344_v50  ;;  %v1171_v50 = vld [vmem:[#allocation2 + $0x60] sm:$0xe]  ;;  %v3433_v21 = vunpack.c.l.b16 %v1581_v14  ;;  %v1600_v46 = vrot.slane %v1599_v47, 4  ;;  %v1360_v14 = vld [vmem:[#allocation2 + $0x78] sm:$0xf]  ;;  %v1620_v47 = vshrl.u32 %v1361_v60, 16 }
 0x122   : > { %v4934_v29 = vrot.slane %v1171_v50, 9  ;;  %v1610_v30 = vshll.u32 %v1360_v14, 16 }
 0x123   : > { %5062 = vmatmul.msk.bf16.gmra.mxu1 %vm2610_vm12, %v5329_v61  ;;  %v1290_v61 = vrot.slane %v1288_v44, 4  ;;  %v3457_v50 = vpack.c.b16 %v3433_v21, %v3432_v18 }
 0x124   : > { %v1289_v15 = vsel %vm6139_vm15, %v4934_v29, %v1288_v44 }
 0x125   : > { %v1292_v17 = vsel %vm6139_vm15, %v1290_v61, %v1291_v56  ;;  %v5537_v56 = vld [vmem:[#allocation2 + $0x70] sm:$0xf]  ;;  %v1172_v61 = vld [vmem:[#allocation2 + $0x6c] sm:$0xe] }
 0x126   : > { %v2975_v23 = vunpack.c.l.b16 %v1292_v17  ;;  %v1295_v29 = vrot.slane %v5537_v56, 5  ;;  %v4935_v17 = vrot.slane %v1172_v61, 9 }
 0x128   : > { %v6311_v33 = vpop.f32.mrf.mxu1  ;;  %v1297_v18 = vrot.slane %v1295_v29, 4 }
 0x12b   : > { %5176 = vmatmul.msk.bf16.gmra.mxu0 %vm2610_vm12, %v3456_v16  ;;  %v1585_v16 = vrot.slane %v1583_v4, 4  ;;  %v1604_v4 = vrot.slane %v1602_v54, 5 }
 0x12c   : > { %5079 = vmatmul.msk.bf16.gmra.mxu2 %vm2610_vm12, %v2997_v27  ;;  %v2974_v27 = vunpack.c.l.b16 %v1289_v15  ;;  %v1298_v15 = vrot.slane %v5538_v48, 5 }
 0x12d   : > { %v1589_v44 = vor.u32 %v1588_v19, %v1585_v16 }
 0x12e   : > { %v2998_v25 = vpack.c.b16 %v2975_v23, %v2974_v27  ;;  %v5331_v27 = vld [vmem:[#allocation2 + $0x6c] sm:$0xff]  ;;  %v1607_v23 = vshrl.u32 %v1360_v14, 16  ;;  %v1612_v14 = vrot.slane %v1610_v30, 5 }
 0x12f   : > { %v6319_v52 = vpop.f32.mrf.mxu2 }
 0x130   : > { %v2876_v40 = vpop.f32.mrf.mxu1 }
 0x131   : > { %5160 = vmatmul.msk.bf16.gmra.mxu3 %vm2610_vm12, %v5345_v51  ;;  %v2877_v21 = vadd.f32 %v2876_v40, %v6238_v57  ;;  %v1296_v57 = vsel %vm6139_vm15, %v4935_v17, %v1295_v29  ;;  %v1299_v40 = vsel %vm6139_vm15, %v1297_v18, %v1298_v15 }
 0x133   : > { %5063 = vmatmul.msk.bf16.gmra.mxu1 %vm2610_vm12, %v5330_v1  ;;  %v1590_v1 = vrot.slane %v1589_v44, 4  ;;  %v1605_v44 = vsel %vm5736_vm11, %v1600_v46, %v1604_v4  ;;  %v2977_v4 = vunpack.c.l.b16 %v1299_v40  ;;  %v1622_v46 = vrot.slane %v1620_v47, 4 }
 0x134   : > { %v6330_v24 = vpop.f32.mrf.mxu3  ;;  %v3435_v56 = vunpack.c.l.b16 %v1605_v44 }
 0x135   : > { %7235 = vst [vmem:[#allocation4_spill] sm:$0xff] %v6330_v24  ;;  %v1595_v16 = vsel %vm5736_vm11, %v1590_v1, %v1594_v32  ;;  %v1609_v1 = vrot.slane %v1607_v23, 4 }
 0x136   : > { %v3434_v32 = vunpack.c.l.b16 %v1595_v16 }
 0x137   : > { %v6333_v51 = vpop.f32.mrf.mxu2  ;;  %v1613_v17 = vor.u32 %v1612_v14, %v1609_v1 }
 0x138   : > { %v6335_v45 = vpop.f32.mrf.mxu0  ;;  %v2878_v7 = vpop.f32.mrf.mxu1 }
 0x139   : > { %v2879_v60 = vadd.f32 %v2878_v7, %v6257_v37  ;;  %v5347_v7 = vld [vmem:[#allocation2 + $0x78] sm:$0xff]  ;;  %v1614_v40 = vrot.slane %v1613_v17, 4 }
 0x13b   : > { %5177 = vmatmul.msk.bf16.gmra.mxu0 %vm2610_vm12, %v3457_v50 }
 0x13c   : > { %v6338_v62 = vpop.f32.mrf.mxu3  ;;  %5080 = vmatmul.msk.bf16.gmra.mxu2 %vm2610_vm12, %v2998_v25 }
 0x13d   : > { %7236 = vst [vmem:[#allocation5_spill] sm:$0xff] %v6338_v62  ;;  %v2976_v62 = vunpack.c.l.b16 %v1296_v57  ;;  %v1363_v57 = vld [vmem:[#allocation2 + $0x88] sm:$0xf] }
 0x13f   : > { %v3066_v19 = vpop.f32.mrf.mxu2  ;;  %v2999_v18 = vpack.c.b16 %v2977_v4, %v2976_v62 }
 0x140   : > { %v6344_v50 = vpop.f32.mrf.mxu0  ;;  %v3146_v54 = vadd.f32 %v3066_v19, %v2877_v21  ;;  %v2881_v25 = vpop.f32.mrf.mxu1  ;;  %v1383_v21 = vld [vmem:[#allocation2 + $0x80] sm:$0x1]  ;;  %v3458_v19 = vpack.c.b16 %v3435_v56, %v3434_v32 }
 0x141   : > { %5161 = vmatmul.msk.bf16.gmra.mxu3 %vm2610_vm12, %v5346_v8  ;;  %v1618_v8 = vrot.slane %v1616_v42, 5  ;;  %v1626_v44 = vshll.u32 %v1383_v21, 16  ;;  %v1173_v42 = vld [vmem:[#allocation2 + $0x78] sm:$0xe]  ;;  %v5540_v56 = vld [vmem:[#allocation2 + $0x80] sm:$0x1] }
 0x142   : > { %v4936_v1 = vrot.slane %v1173_v42, 9  ;;  %v1644_v21 = vshrl.u32 %v1363_v57, 16 }
 0x143   : > { %5064 = vmatmul.msk.bf16.gmra.mxu1 %vm2610_vm12, %v5331_v27  ;;  %v1623_v16 = vor.u32 %v1622_v46, %v1618_v8  ;;  %v5539_v27 = vld [vmem:[#allocation2 + $0x7c] sm:$0xf]  ;;  %v1628_v62 = vrot.slane %v1626_v44, 5  ;;  %v1640_v46 = vshll.u32 %v1363_v57, 16  ;;  %v1619_v17 = vsel %vm5736_vm11, %v1614_v40, %v1618_v8 }
 0x144   : > { %v3304_v61 = vpop.f32.mrf.mxu3  ;;  %v1302_v23 = vrot.slane %v5539_v27, 5  ;;  %v1646_v57 = vrot.slane %v1644_v21, 4  ;;  %v3436_v8 = vunpack.c.l.b16 %v1619_v17 }
 0x145   : > { %v3384_v48 = vadd.f32 %v3304_v61, %v3146_v54  ;;  %v1362_v54 = vld [vmem:[#allocation2 + $0x84] sm:$0xf]  ;;  %v1624_v32 = vrot.slane %v1623_v16, 4  ;;  %v1305_v61 = vrot.slane %v5540_v56, 5 }
 0x146   : > { %v1304_v14 = vrot.slane %v1302_v23, 4  ;;  %v1631_v4 = vshrl.u32 %v1362_v54, 16 }
 0x147   : > { %v3068_v29 = vpop.f32.mrf.mxu2 }
 0x148   : > { %v3526_v24 = vpop.f32.mrf.mxu0  ;;  %v3147_v15 = vadd.f32 %v3068_v29, %v2879_v60  ;;  %v2883_v39 = vpop.f32.mrf.mxu1  ;;  %v1633_v42 = vrot.slane %v1631_v4, 4 }
 0x149   : > { %v6355_v30 = vadd.f32 %v3526_v24, %v3384_v48  ;;  %v2882_v24 = vadd.f32 %v2881_v25, %v6273_v34  ;;  %v1634_v48 = vshll.u32 %v1362_v54, 16  ;;  %v1303_v34 = vsel %vm6139_vm15, %v4936_v1, %v1302_v23 }
 0x14a   : > { %v1306_v25 = vsel %vm6139_vm15, %v1304_v14, %v1305_v61  ;;  %v2884_v23 = vadd.f32 %v2883_v39, %v6286_v41 }
 0x14b   : > { %5178 = vmatmul.msk.bf16.gmra.mxu0 %vm2610_vm12, %v3458_v19  ;;  %v5332_v19 = vld [vmem:[#allocation2 + $0x78] sm:$0xff]  ;;  %v1636_v54 = vrot.slane %v1634_v48, 5  ;;  %v2979_v56 = vunpack.c.l.b16 %v1306_v25  ;;  %v5348_v25 = vld [vmem:[#allocation2 + $0x84] sm:$0xff] }
 0x14c   : > { %v3306_v47 = vpop.f32.mrf.mxu3  ;;  %5081 = vmatmul.msk.bf16.gmra.mxu2 %vm2610_vm12, %v2999_v18 }
 0x14d   : > { %v3385_v37 = vadd.f32 %v3306_v47, %v3147_v15  ;;  %v1629_v15 = vsel %vm5736_vm11, %v1624_v32, %v1628_v62  ;;  %v1642_v47 = vrot.slane %v1640_v46, 5  ;;  %v1384_v32 = vld [vmem:[#allocation2 + $0x8c] sm:$0x1]  ;;  %v1637_v1 = vor.u32 %v1636_v54, %v1633_v42  ;;  %v1364_v42 = vld [vmem:[#allocation2 + $0x90] sm:$0xf] }
 0x14e   : > { %v1650_v61 = vshll.u32 %v1384_v32, 16  ;;  %v1365_v54 = vld [vmem:[#allocation2 + $0x94] sm:$0xf] }
 0x14f   : > { %v3071_v60 = vpop.f32.mrf.mxu2 }
 0x150   : > { %v3528_v29 = vpop.f32.mrf.mxu0  ;;  %v3148_v18 = vadd.f32 %v3071_v60, %v2882_v24  ;;  %v2886_v16 = vpop.f32.mrf.mxu1  ;;  %v1647_v24 = vor.u32 %v1646_v57, %v1642_v47  ;;  %v5542_v57 = vld [vmem:[#allocation2 + $0x8c] sm:$0x1] }
 0x151   : > { %5162 = vmatmul.msk.bf16.gmra.mxu3 %vm2610_vm12, %v5347_v7  ;;  %v2887_v44 = vadd.f32 %v2886_v16, %v6307_v2  ;;  %v6370_v27 = vadd.f32 %v3528_v29, %v3385_v37  ;;  %v3437_v7 = vunpack.c.l.b16 %v1629_v15  ;;  %v2978_v2 = vunpack.c.l.b16 %v1303_v34  ;;  %v5541_v29 = vld [vmem:[#allocation2 + $0x88] sm:$0xf]  ;;  %v1174_v34 = vld [vmem:[#allocation2 + $0x84] sm:$0xe] }
 0x152   : > { %v1309_v17 = vrot.slane %v5541_v29, 5  ;;  %v1638_v15 = vrot.slane %v1637_v1, 4  ;;  %v1652_v16 = vrot.slane %v1650_v61, 5  ;;  %v1664_v1 = vshll.u32 %v1365_v54, 16 }
 0x153   : > { %5065 = vmatmul.msk.bf16.gmra.mxu1 %vm2610_vm12, %v5332_v19  ;;  %v3459_v37 = vpack.c.b16 %v3437_v7, %v3436_v8  ;;  %v3000_v46 = vpack.c.b16 %v2979_v56, %v2978_v2  ;;  %v1312_v8 = vrot.slane %v5542_v57, 5  ;;  %v5333_v2 = vld [vmem:[#allocation2 + $0x84] sm:$0xff]  ;;  %v1655_v56 = vshrl.u32 %v1364_v42, 16 }
 0x154   : > { %v3309_v40 = vpop.f32.mrf.mxu3  ;;  %v1311_v7 = vrot.slane %v1309_v17, 4 }
 0x155   : > { %v3386_v62 = vadd.f32 %v3309_v40, %v3148_v18  ;;  %v1648_v18 = vrot.slane %v1647_v24, 4  ;;  %v1643_v40 = vsel %vm5736_vm11, %v1638_v15, %v1642_v47  ;;  %v1668_v24 = vshrl.u32 %v1365_v54, 16 }
 0x156   : > { %v1313_v47 = vsel %vm6139_vm15, %v1311_v7, %v1312_v8 }
 0x157   : > { %v3073_v14 = vpop.f32.mrf.mxu2  ;;  %v1653_v32 = vsel %vm5736_vm11, %v1648_v18, %v1652_v16  ;;  %v1657_v18 = vrot.slane %v1655_v56, 4 }
 0x158   : > { %v3531_v4 = vpop.f32.mrf.mxu0  ;;  %v3149_v48 = vadd.f32 %v3073_v14, %v2884_v23  ;;  %v2888_v21 = vpop.f32.mrf.mxu1  ;;  %v1658_v23 = vshll.u32 %v1364_v42, 16  ;;  %v3439_v29 = vunpack.c.l.b16 %v1653_v32  ;;  %v1385_v42 = vld [vmem:[#allocation2 + $0x98] sm:$0x1] }
 0x159   : > { %v2889_v60 = vadd.f32 %v2888_v21, %v6317_v63  ;;  %v6375_v19 = vadd.f32 %v3531_v4, %v3386_v62  ;;  %v4937_v63 = vrot.slane %v1174_v34, 9  ;;  %v3438_v21 = vunpack.c.l.b16 %v1643_v40 }
 0x15a   : > { %v1660_v16 = vrot.slane %v1658_v23, 5  ;;  %v1666_v34 = vrot.slane %v1664_v1, 5  ;;  %v1674_v8 = vshll.u32 %v1385_v42, 16  ;;  %v1366_v23 = vld [vmem:[#allocation2 + $0x9c] sm:$0xf] }
 0x15b   : > { %5179 = vmatmul.msk.bf16.gmra.mxu0 %vm2610_vm12, %v3459_v37  ;;  %v3460_v54 = vpack.c.b16 %v3439_v29, %v3438_v21  ;;  %v1367_v1 = vld [vmem:[#allocation2 + $0xa0] sm:$0xf]  ;;  %v1679_v29 = vshrl.u32 %v1366_v23, 16 }
 0x15c   : > { %v3311_v41 = vpop.f32.mrf.mxu3  ;;  %5082 = vmatmul.msk.bf16.gmra.mxu2 %vm2610_vm12, %v3000_v46  ;;  %v1661_v57 = vor.u32 %v1660_v16, %v1657_v18  ;;  %v5544_v18 = vld [vmem:[#allocation2 + $0x98] sm:$0x1] }
 0x15d   : > { %v3387_v39 = vadd.f32 %v3311_v41, %v3149_v48  ;;  %v1310_v48 = vsel %vm6139_vm15, %v4937_v63, %v1309_v17  ;;  %v1319_v16 = vrot.slane %v5544_v18, 5 }
 0x15f   : > { %v3076_v62 = vpop.f32.mrf.mxu2 }
 0x160   : > { %v3533_v61 = vpop.f32.mrf.mxu0  ;;  %v3150_v37 = vadd.f32 %v3076_v62, %v2887_v44  ;;  %v2891_v14 = vpop.f32.mrf.mxu1  ;;  %v1670_v44 = vrot.slane %v1668_v24, 4 }
 0x161   : > { %5163 = vmatmul.msk.bf16.gmra.mxu3 %vm2610_vm12, %v5348_v25  ;;  %v2892_v4 = vadd.f32 %v2891_v14, %v6335_v45  ;;  %v6389_v46 = vadd.f32 %v3533_v61, %v3387_v39  ;;  %v2980_v25 = vunpack.c.l.b16 %v1310_v48  ;;  %v2981_v45 = vunpack.c.l.b16 %v1313_v47  ;;  %v1175_v61 = vld [vmem:[#allocation2 + $0x90] sm:$0xe] }
 0x162   : > { %v1671_v63 = vor.u32 %v1670_v44, %v1666_v34  ;;  %v1662_v14 = vrot.slane %v1661_v57, 4  ;;  %v1676_v47 = vrot.slane %v1674_v8, 5  ;;  %v4938_v44 = vrot.slane %v1175_v61, 9 }
 0x163   : > { %5066 = vmatmul.msk.bf16.gmra.mxu1 %vm2610_vm12, %v5333_v2  ;;  %v3001_v40 = vpack.c.b16 %v2981_v45, %v2980_v25  ;;  %v5543_v2 = vld [vmem:[#allocation2 + $0x94] sm:$0xf] }
 0x164   : > { %v3314_v15 = vpop.f32.mrf.mxu3  ;;  %v1316_v56 = vrot.slane %v5543_v2, 5  ;;  %v1672_v48 = vrot.slane %v1671_v63, 4  ;;  %v1667_v45 = vsel %vm5736_vm11, %v1662_v14, %v1666_v34 }
 0x165   : > { %v3388_v41 = vadd.f32 %v3314_v15, %v3150_v37  ;;  %v1682_v15 = vshll.u32 %v1366_v23, 16  ;;  %v3440_v61 = vunpack.c.l.b16 %v1667_v45  ;;  %v5545_v45 = vld [vmem:[#allocation2 + $0xa0] sm:$0xf] }
 0x166   : > { %v1318_v25 = vrot.slane %v1316_v56, 4  ;;  %v1677_v42 = vsel %vm5736_vm11, %v1672_v48, %v1676_v47 }
 0x167   : > { %v3078_v17 = vpop.f32.mrf.mxu2 }
 0x168   : > { %v3536_v39 = vpop.f32.mrf.mxu0  ;;  %v3151_v7 = vadd.f32 %v3078_v17, %v2889_v60  ;;  %v2893_v32 = vpop.f32.mrf.mxu1  ;;  %v5349_v60 = vld [vmem:[#allocation2 + $0x90] sm:$0xff]  ;;  %v1320_v2 = vsel %vm6139_vm15, %v1318_v25, %v1319_v16 }
 0x169   : > { %v2894_v62 = vadd.f32 %v2893_v32, %v6344_v50  ;;  %v6393_v24 = vadd.f32 %v3536_v39, %v3388_v41  ;;  %v1688_v50 = vshll.u32 %v1367_v1, 16  ;;  %v1692_v41 = vshrl.u32 %v1367_v1, 16  ;;  %v5334_v17 = vld [vmem:[#allocation2 + $0x90] sm:$0xff]  ;;  %v1386_v1 = vld [vmem:[#allocation2 + $0xa4] sm:$0x1] }
 0x16a   : > { %v1681_v39 = vrot.slane %v1679_v29, 4  ;;  %v1317_v32 = vsel %vm6139_vm15, %v4938_v44, %v1316_v56  ;;  %v2983_v47 = vunpack.c.l.b16 %v1320_v2 }
 0x16b   : > { %5180 = vmatmul.msk.bf16.gmra.mxu0 %vm2610_vm12, %v3460_v54  ;;  %v1694_v34 = vrot.slane %v1692_v41, 4  ;;  %v2982_v48 = vunpack.c.l.b16 %v1317_v32  ;;  %v5546_v32 = vld [vmem:[#allocation2 + $0xa4] sm:$0x1] }
 0x16c   : > { %v3316_v37 = vpop.f32.mrf.mxu3  ;;  %5083 = vmatmul.msk.bf16.gmra.mxu2 %vm2610_vm12, %v3001_v40  ;;  %v1690_v40 = vrot.slane %v1688_v50, 5  ;;  %v1326_v2 = vrot.slane %v5546_v32, 5 }
 0x16d   : > { %v3389_v21 = vadd.f32 %v3316_v37, %v3151_v7  ;;  %v1684_v7 = vrot.slane %v1682_v15, 5  ;;  %v3441_v37 = vunpack.c.l.b16 %v1677_v42  ;;  %v1698_v15 = vshll.u32 %v1386_v1, 16 }
 0x16e   : > { %v1695_v29 = vor.u32 %v1694_v34, %v1690_v40  ;;  %v3002_v16 = vpack.c.b16 %v2983_v47, %v2982_v48  ;;  %v1323_v42 = vrot.slane %v5545_v45, 5 }
 0x16f   : > { %v3081_v54 = vpop.f32.mrf.mxu2  ;;  %v3461_v50 = vpack.c.b16 %v3441_v37, %v3440_v61 }
 0x170   : > { %v3538_v57 = vpop.f32.mrf.mxu0  ;;  %v3152_v63 = vadd.f32 %v3081_v54, %v2892_v4  ;;  %v2896_v8 = vpop.f32.mrf.mxu1  ;;  %v1696_v41 = vrot.slane %v1695_v29, 4  ;;  %v1700_v54 = vrot.slane %v1698_v15, 5  ;;  %v285_v29 = vld [vmem:[%s5667_s21 + $0x78] sm:$0xf] }
 0x171   : > { %5164 = vmatmul.msk.bf16.gmra.mxu3 %vm2610_vm12, %v5349_v60  ;;  %v6406_v23 = vadd.f32 %v3538_v57, %v3389_v21  ;;  %v1685_v60 = vor.u32 %v1684_v7, %v1681_v39  ;;  %v1368_v39 = vld [vmem:[#allocation2 + $0xa8] sm:$0xf]  ;;  %v1369_v7 = vld [vmem:[#allocation2 + $0xac] sm:$0xf] }
 0x172   : > { %v1701_v61 = vsel %vm5736_vm11, %v1696_v41, %v1700_v54  ;;  %v1703_v48 = vshrl.u32 %v1368_v39, 16  ;;  %v1706_v47 = vshll.u32 %v1368_v39, 16  ;;  %v286_v41 = vld [vmem:[%s5667_s21 + $0x7c] sm:$0xf] }
 0x173   : > { %7237 = vst [vmem:[#allocation6_spill] sm:$0xff] %v6406_v23  ;;  %5067 = vmatmul.msk.bf16.gmra.mxu1 %vm2610_vm12, %v5334_v17  ;;  %v1686_v25 = vrot.slane %v1685_v60, 4  ;;  %v1176_v17 = vld [vmem:[#allocation2 + $0x9c] sm:$0xe]  ;;  %v1712_v60 = vshll.u32 %v1369_v7, 16  ;;  %v3443_v54 = vunpack.c.l.b16 %v1701_v61 }
 0x174   : > { %v3319_v14 = vpop.f32.mrf.mxu3  ;;  %v4939_v37 = vrot.slane %v1176_v17, 9  ;;  %v1705_v17 = vrot.slane %v1703_v48, 4  ;;  %v721_v23 = vld [vmem:[#allocation2 + $0xc0] sm:$0xf] }
 0x175   : > { %v3390_v4 = vadd.f32 %v3319_v14, %v3152_v63  ;;  %v1691_v1 = vsel %vm5736_vm11, %v1686_v25, %v1690_v40  ;;  %v1325_v14 = vrot.slane %v1323_v42, 4  ;;  %v6429_v39 = vrot.slane %v1712_v60, 5 }
 0x176   : > { %v3442_v40 = vunpack.c.l.b16 %v1691_v1  ;;  %v549_v1 = vshll.u32 %v285_v29, 16 }
 0x177   : > { %v3083_v56 = vpop.f32.mrf.mxu2 }
 0x178   : > { %v3541_v18 = vpop.f32.mrf.mxu0  ;;  %v3153_v44 = vadd.f32 %v3083_v56, %v2894_v62  ;;  %v2898_v21 = vpop.f32.mrf.mxu1  ;;  %v5350_v62 = vld [vmem:[#allocation2 + $0x9c] sm:$0xff]  ;;  %v1716_v56 = vshrl.u32 %v1369_v7, 16 }
 0x179   : > { %v6409_v57 = vadd.f32 %v3541_v18, %v3390_v4  ;;  %v2897_v4 = vadd.f32 %v2896_v8, %v6215_v11  ;;  %v546_v18 = vshrl.u32 %v285_v29, 16  ;;  %v1324_v11 = vsel %vm6139_vm15, %v4939_v37, %v1323_v42  ;;  %v1387_v42 = vld [vmem:[#allocation2 + $0xb0] sm:$0x1] }
 0x17a   : > { %v1327_v8 = vsel %vm6139_vm15, %v1325_v14, %v1326_v2  ;;  %v1718_v32 = vrot.slane %v1716_v56, 4  ;;  %v3462_v37 = vpack.c.b16 %v3443_v54, %v3442_v40  ;;  %v2899_v2 = vadd.f32 %v2898_v21, %v6219_v31  ;;  %v725_v54 = vld [vmem:[#allocation2 + $0xc8] sm:$0x1]  ;;  %v1370_v21 = vld [vmem:[#allocation2 + $0xb4] sm:$0xf] }
 0x17b   : > { %7238 = vst [vmem:[#allocation7_spill] sm:$0xff] %v6409_v57  ;;  %5181 = vmatmul.msk.bf16.gmra.mxu0 %vm2610_vm12, %v3461_v50  ;;  %v5335_v50 = vld [vmem:[#allocation2 + $0x9c] sm:$0xff]  ;;  %v2985_v57 = vunpack.c.l.b16 %v1327_v8  ;;  %v557_v56 = vshll.u32 %v286_v41, 16  ;;  %v5547_v8 = vld [vmem:[#allocation2 + $0xac] sm:$0xf] }
 0x17c   : > { %v3321_v63 = vpop.f32.mrf.mxu3  ;;  %5084 = vmatmul.msk.bf16.gmra.mxu2 %vm2610_vm12, %v3002_v16  ;;  %v1719_v60 = vor.u32 %v1718_v32, %v6429_v39  ;;  %v1330_v31 = vrot.slane %v5547_v8, 5 }
 0x17d   : > { %v3391_v34 = vadd.f32 %v3321_v63, %v3153_v44  ;;  %v1708_v63 = vrot.slane %v1706_v47, 5 }
 0x17f   : > { %v3086_v15 = vpop.f32.mrf.mxu2 }
 0x180   : > { %v3543_v44 = vpop.f32.mrf.mxu0  ;;  %v3154_v16 = vadd.f32 %v3086_v15, %v2897_v4  ;;  %v6420_v25 = vpop.f32.mrf.mxu1  ;;  %v554_v4 = vshrl.u32 %v286_v41, 16  ;;  %v2984_v15 = vunpack.c.l.b16 %v1324_v11 }
 0x181   : > { %5165 = vmatmul.msk.bf16.gmra.mxu3 %vm2610_vm12, %v5350_v62  ;;  %v6427_v45 = vadd.f32 %v3543_v44, %v3391_v34  ;;  %v548_v62 = vrot.slane %v546_v18, 7  ;;  %v1709_v34 = vor.u32 %v1708_v63, %v1705_v17  ;;  %v1722_v44 = vshll.u32 %v1387_v42, 16 }
 0x182   : > { %v556_v48 = vrot.slane %v554_v4, 7  ;;  %v1720_v4 = vrot.slane %v1719_v60, 4  ;;  %v1333_v42 = vrot.slane %v5548_v9, 5 }
 0x183   : > { %7239 = vst [vmem:[#allocation8_spill] sm:$0xff] %v6427_v45  ;;  %5068 = vmatmul.msk.bf16.gmra.mxu1 %vm2610_vm12, %v5335_v50  ;;  %v551_v14 = vor.u32 %v549_v1, %v548_v62  ;;  %v552_v50 = vrot.slane %v548_v62, 4  ;;  %v3003_v45 = vpack.c.b16 %v2985_v57, %v2984_v15  ;;  %v1710_v32 = vrot.slane %v1709_v34, 4  ;;  %v1371_v62 = vld [vmem:[#allocation2 + $0xb8] sm:$0xf]  ;;  %v5351_v1 = vld [vmem:[#allocation2 + $0xa8] sm:$0xff] }
 0x184   : > { %v3324_v7 = vpop.f32.mrf.mxu3  ;;  %v561_v11 = vrot.slane %v556_v48, 4  ;;  %v559_v17 = vor.u32 %v557_v56, %v556_v48  ;;  %v1727_v15 = vshrl.u32 %v1370_v21, 16  ;;  %v2902_v34 = vadd.f32 %v6420_v25, %v6235_v53 }
 0x185   : > { %v3392_v61 = vadd.f32 %v3324_v7, %v3154_v16  ;;  %v722_v40 = vsel %vm5695_vm8, %v551_v14, %v721_v23  ;;  %v1177_v7 = vld [vmem:[#allocation2 + $0xa8] sm:$0xe]  ;;  %v1730_v14 = vshll.u32 %v1370_v21, 16  ;;  %v1736_v10 = vshll.u32 %v1371_v62, 16 }
 0x186   : > { %723 = vst [vmem:[#allocation2 + $0xc0] sm:$0xf] %v722_v40  ;;  %v726_v41 = vsel %vm5679_vm6, %v561_v11, %v725_v54  ;;  %v560_v13 = vsel %vm5687_vm7, %v552_v50, %v559_v17  ;;  %v1740_v48 = vshrl.u32 %v1371_v62, 16  ;;  %v5336_v50 = vld [vmem:[#allocation2 + $0xa8] sm:$0xff] }
 0x187   : > { %v3088_v47 = vpop.f32.mrf.mxu2  ;;  %727 = vst [vmem:[#allocation2 + $0xc8] sm:$0x1] %v726_v41  ;;  %v1732_v11 = vrot.slane %v1730_v14, 5  ;;  %v1738_v54 = vrot.slane %v1736_v10, 5 }
 0x188   : > { %v3546_v18 = vpop.f32.mrf.mxu0  ;;  %v3155_v29 = vadd.f32 %v3088_v47, %v2899_v2  ;;  %v2903_v16 = vpop.f32.mrf.mxu1  ;;  %724 = vst.msk [vmem:[#allocation2 + $0xc4] sm:$0xf] %vm196_vm1, %v560_v13  ;;  %v4940_v2 = vrot.slane %v1177_v7, 9  ;;  %v1742_v8 = vrot.slane %v1740_v48, 4  ;;  %v1388_v7 = vld [vmem:[#allocation2 + $0xbc] sm:$0x1] }
 0x189   : > { %v6436_v63 = vadd.f32 %v3546_v18, %v3392_v61  ;;  %v1724_v61 = vrot.slane %v1722_v44, 5 }
 0x18a   : > { %v1331_v53 = vsel %vm6139_vm15, %v4940_v2, %v1330_v31  ;;  %v1743_v13 = vor.u32 %v1742_v8, %v1738_v54  ;;  %v1178_v2 = vld [vmem:[#allocation2 + $0xb4] sm:$0xe] }
 0x18b   : > { %5182 = vmatmul.msk.bf16.gmra.mxu0 %vm2610_vm12, %v3462_v37  ;;  %v1332_v37 = vrot.slane %v1330_v31, 4  ;;  %v1725_v60 = vsel %vm5736_vm11, %v1720_v4, %v1724_v61  ;;  %v2904_v31 = vadd.f32 %v2903_v16, %v6254_v26  ;;  %v4941_v16 = vrot.slane %v1178_v2, 9  ;;  %v1774_v2 = vld [vmem:[#allocation2 + $0xc] sm:$0xe] }
 0x18c   : > { %v3326_v57 = vpop.f32.mrf.mxu3  ;;  %5085 = vmatmul.msk.bf16.gmra.mxu2 %vm2610_vm12, %v3003_v45  ;;  %v1715_v45 = vsel %vm5736_vm11, %v1710_v32, %v6429_v39  ;;  %v3445_v17 = vunpack.c.l.b16 %v1725_v60  ;;  %v1744_v48 = vrot.slane %v1743_v13, 4  ;;  %v5551_v60 = vld [vmem:[#allocation2 + $0x10] sm:$0xf] }
 0x18d   : > { %v3393_v23 = vadd.f32 %v3326_v57, %v3155_v29  ;;  %v1729_v29 = vrot.slane %v1727_v15, 4  ;;  %v1334_v25 = vsel %vm6139_vm15, %v1332_v37, %v1333_v42  ;;  %v3444_v21 = vunpack.c.l.b16 %v1715_v45  ;;  %v5549_v37 = vld [vmem:[#allocation2 + $0xb8] sm:$0xf] }
 0x18e   : > { %v2986_v57 = vunpack.c.l.b16 %v1331_v53  ;;  %v2987_v32 = vunpack.c.l.b16 %v1334_v25  ;;  %v1337_v14 = vrot.slane %v5549_v37, 5  ;;  %v5352_v53 = vld [vmem:[#allocation2 + $0xb4] sm:$0xff] }
 0x18f   : > { %v3091_v47 = vpop.f32.mrf.mxu2  ;;  %v1733_v62 = vor.u32 %v1732_v11, %v1729_v29  ;;  %v3463_v4 = vpack.c.b16 %v3445_v17, %v3444_v21  ;;  %v1373_v11 = vld [vmem:[#allocation2 + $0xc4] sm:$0xf] }
 0x190   : > { %v3548_v56 = vpop.f32.mrf.mxu0  ;;  %v3156_v44 = vadd.f32 %v3091_v47, %v2902_v34  ;;  %v2906_v18 = vpop.f32.mrf.mxu1  ;;  %v3004_v9 = vpack.c.b16 %v2987_v32, %v2986_v57  ;;  %v1339_v25 = vrot.slane %v1337_v14, 4  ;;  %v5337_v57 = vld [vmem:[#allocation2 + $0xb4] sm:$0xff]  ;;  %v1338_v32 = vsel %vm6139_vm15, %v4941_v16, %v1337_v14 }
 0x191   : > { %5166 = vmatmul.msk.bf16.gmra.mxu3 %vm2610_vm12, %v5351_v1  ;;  %v6457_v40 = vadd.f32 %v3548_v56, %v3393_v23  ;;  %v1746_v1 = vshll.u32 %v1388_v7, 16  ;;  %v1734_v34 = vrot.slane %v1733_v62, 4  ;;  %v5550_v56 = vld [vmem:[#allocation2 + $0xbc] sm:$0x1]  ;;  %v2907_v21 = vadd.f32 %v2906_v18, %v6265_v59 }
 0x192   : > { %v1340_v45 = vrot.slane %v5550_v56, 5  ;;  %v1760_v62 = vshll.u32 %v1373_v11, 16  ;;  %v2988_v14 = vunpack.c.l.b16 %v1338_v32 }
 0x193   : > { %5069 = vmatmul.msk.bf16.gmra.mxu1 %vm2610_vm12, %v5336_v50  ;;  %v1748_v47 = vrot.slane %v1746_v1, 5  ;;  %v1372_v50 = vld [vmem:[#allocation2 + $0xc0] sm:$0xf]  ;;  %v1739_v8 = vsel %vm5736_vm11, %v1734_v34, %v1738_v54  ;;  %v5552_v1 = vld [vmem:[#allocation2 + $0x14] sm:$0x1] }
 0x194   : > { %v3329_v39 = vpop.f32.mrf.mxu3  ;;  %v1754_v7 = vshll.u32 %v1372_v50, 16  ;;  %v1341_v18 = vsel %vm6139_vm15, %v1339_v25, %v1340_v45  ;;  %v1762_v56 = vrot.slane %v1760_v62, 5  ;;  %v1389_v25 = vld [vmem:[#allocation2 + $0xc8] sm:$0x1] }
 0x195   : > { %v3394_v41 = vadd.f32 %v3329_v39, %v3156_v44  ;;  %v1840_v44 = vrot.slane %v5551_v60, 5  ;;  %v1749_v17 = vsel %vm5736_vm11, %v1744_v48, %v1748_v47  ;;  %v1751_v39 = vshrl.u32 %v1372_v50, 16 }
 0x196   : > { %v1756_v48 = vrot.slane %v1754_v7, 5  ;;  %v4942_v47 = vrot.slane %v1774_v2, 9  ;;  %v2989_v50 = vunpack.c.l.b16 %v1341_v18 }
 0x197   : > { %v3093_v61 = vpop.f32.mrf.mxu2  ;;  %v1842_v13 = vrot.slane %v1840_v44, 4  ;;  %v1753_v34 = vrot.slane %v1751_v39, 4 }
 0x198   : > { %v3551_v23 = vpop.f32.mrf.mxu0  ;;  %v3157_v15 = vadd.f32 %v3093_v61, %v2904_v31  ;;  %v6461_v42 = vpop.f32.mrf.mxu1  ;;  %v1764_v31 = vshrl.u32 %v1373_v11, 16  ;;  %v1841_v11 = vsel %vm6139_vm15, %v4942_v47, %v1840_v44  ;;  %v3005_v62 = vpack.c.b16 %v2989_v50, %v2988_v14 }
 0x199   : > { %v6463_v10 = vadd.f32 %v3551_v23, %v3394_v41  ;;  %v1951_v23 = vld [vmem:[#allocation2 + $0x18] sm:$0xf] }
 0x19a   : > { %v1766_v60 = vrot.slane %v1764_v31, 4  ;;  %v1757_v31 = vor.u32 %v1756_v48, %v1753_v34 }
 0x19b   : > { %5183 = vmatmul.msk.bf16.gmra.mxu0 %vm2610_vm12, %v3463_v4  ;;  %v1843_v4 = vrot.slane %v5552_v1, 5  ;;  %v1770_v1 = vshll.u32 %v1389_v25, 16 }
 0x19c   : > { %v3331_v26 = vpop.f32.mrf.mxu3  ;;  %5086 = vmatmul.msk.bf16.gmra.mxu2 %vm2610_vm12, %v3004_v9  ;;  %v3447_v9 = vunpack.c.l.b16 %v1749_v17  ;;  %v1767_v18 = vor.u32 %v1766_v60, %v1762_v56 }
 0x19d   : > { %v3395_v29 = vadd.f32 %v3331_v26, %v3157_v15  ;;  %v3446_v15 = vunpack.c.l.b16 %v1739_v8  ;;  %v6479_v26 = vld [vmem:[#allocation2 + $0x1c] sm:$0xf]  ;;  %v2003_v8 = vshll.u32 %v1951_v23, 16  ;;  %v1772_v34 = vrot.slane %v1770_v1, 5 }
 0x19e   : > { %v2009_v39 = vshll.u32 %v6479_v26, 16  ;;  %v2013_v7 = vshrl.u32 %v6479_v26, 16  ;;  %v1768_v14 = vrot.slane %v1767_v18, 4 }
 0x19f   : > { %v3096_v41 = vpop.f32.mrf.mxu2 }
 0x1a0   : > { %v3553_v61 = vpop.f32.mrf.mxu0  ;;  %v3158_v54 = vadd.f32 %v3096_v41, %v2907_v21  ;;  %v2911_v59 = vpop.f32.mrf.mxu1  ;;  %v3640_v21 = vunpack.c.l.b16 %v1841_v11  ;;  %v3464_v41 = vpack.c.b16 %v3447_v9, %v3446_v15  ;;  %v2011_v2 = vrot.slane %v2009_v39, 5  ;;  %v6492_v11 = vld [vmem:[#allocation2 + $0x20] sm:$0x1] }
 0x1a1   : > { %5167 = vmatmul.msk.bf16.gmra.mxu3 %vm2610_vm12, %v5352_v53  ;;  %v6477_v37 = vadd.f32 %v3553_v61, %v3395_v29  ;;  %v2000_v53 = vshrl.u32 %v1951_v23, 16  ;;  %v1844_v29 = vsel %vm6139_vm15, %v1842_v13, %v1843_v4  ;;  %v2005_v23 = vrot.slane %v2003_v8, 5  ;;  %v5353_v9 = vld [vmem:[#allocation2 + $0xc0] sm:$0xff] }
 0x1a2   : > { %v3641_v17 = vunpack.c.l.b16 %v1844_v29  ;;  %v2015_v47 = vrot.slane %v2013_v7, 4  ;;  %v2019_v60 = vshll.u32 %v6492_v11, 16  ;;  %v1953_v29 = vld [vmem:[#allocation2 + $0x24] sm:$0xf] }
 0x1a3   : > { %5070 = vmatmul.msk.bf16.gmra.mxu1 %vm2610_vm12, %v5337_v57  ;;  %v2909_v57 = vadd.f32 %v6461_v42, %v6283_v28  ;;  %v2002_v4 = vrot.slane %v2000_v53, 4  ;;  %v1758_v42 = vrot.slane %v1757_v31, 4  ;;  %v2912_v53 = vadd.f32 %v2911_v59, %v6300_v3  ;;  %v1775_v59 = vld [vmem:[#allocation2 + $0x18] sm:$0xe] }
 0x1a4   : > { %v3334_v16 = vpop.f32.mrf.mxu3  ;;  %v3672_v61 = vpack.c.b16 %v3641_v17, %v3640_v21  ;;  %v2016_v50 = vor.u32 %v2015_v47, %v2011_v2  ;;  %v1773_v21 = vsel %vm5736_vm11, %v1768_v14, %v1772_v34  ;;  %v2021_v3 = vrot.slane %v2019_v60, 5 }
 0x1a5   : > { %v3396_v45 = vadd.f32 %v3334_v16, %v3158_v54  ;;  %v2006_v48 = vor.u32 %v2005_v23, %v2002_v4  ;;  %v3449_v4 = vunpack.c.l.b16 %v1773_v21  ;;  %v4943_v14 = vrot.slane %v1775_v59, 9 }
 0x1a7   : > { %v3098_v32 = vpop.f32.mrf.mxu2  ;;  %v2007_v7 = vrot.slane %v2006_v48, 4 }
 0x1a8   : > { %v3556_v44 = vpop.f32.mrf.mxu0  ;;  %v3159_v54 = vadd.f32 %v3098_v32, %v2909_v57  ;;  %v2913_v13 = vpop.f32.mrf.mxu1  ;;  %v6503_v32 = vld [vmem:[#allocation2 + $0x28] sm:$0xf] }
 0x1a9   : > { %v6490_v16 = vadd.f32 %v3556_v44, %v3396_v45  ;;  %v1763_v45 = vsel %vm5736_vm11, %v1758_v42, %v1762_v56  ;;  %v5554_v56 = vld [vmem:[#allocation2 + $0x20] sm:$0x1]  ;;  %v2024_v44 = vshrl.u32 %v1953_v29, 16  ;;  %v2033_v47 = vshll.u32 %v6503_v32, 16 }
 0x1aa   : > { %v1850_v1 = vrot.slane %v5554_v56, 5  ;;  %v3448_v18 = vunpack.c.l.b16 %v1763_v45  ;;  %v2914_v48 = vadd.f32 %v2913_v13, %v6311_v33 }
 0x1ab   : > { %5184 = vmatmul.msk.bf16.gmra.mxu0 %vm2610_vm12, %v3464_v41  ;;  %v5553_v41 = vld [vmem:[#allocation2 + $0x1c] sm:$0xf]  ;;  %v2026_v60 = vrot.slane %v2024_v44, 4  ;;  %v2452_v44 = vrot.slane %v6492_v11, 5 }
 0x1ac   : > { %v3336_v28 = vpop.f32.mrf.mxu3  ;;  %5087 = vmatmul.msk.bf16.gmra.mxu2 %vm2610_vm12, %v3005_v62  ;;  %v1847_v57 = vrot.slane %v5553_v41, 5  ;;  %v2017_v62 = vrot.slane %v2016_v50, 4  ;;  %v2449_v50 = vrot.slane %v6479_v26, 5  ;;  %v6520_v26 = vld [vmem:[#allocation2 + $0x2c] sm:$0x1] }
 0x1ad   : > { %v3397_v15 = vadd.f32 %v3336_v28, %v3159_v54  ;;  %v2027_v54 = vshll.u32 %v1953_v29, 16  ;;  %v2037_v28 = vshrl.u32 %v6503_v32, 16  ;;  %v2383_v29 = vld [vmem:[#allocation2 + $0x18] sm:$0xe] }
 0x1ae   : > { %v2022_v34 = vsel %vm5736_vm11, %v2017_v62, %v2021_v3  ;;  %v1848_v62 = vsel %vm6139_vm15, %v4943_v14, %v1847_v57  ;;  %v4958_v3 = vrot.slane %v2383_v29, 9  ;;  %v2451_v56 = vrot.slane %v2449_v50, 4  ;;  %v5555_v29 = vld [vmem:[#allocation2 + $0x28] sm:$0xf] }
 0x1af   : > { %v3101_v25 = vpop.f32.mrf.mxu2  ;;  %v2039_v21 = vrot.slane %v2037_v28, 4 }
 0x1b0   : > { %v3558_v8 = vpop.f32.mrf.mxu0  ;;  %v3160_v17 = vadd.f32 %v3101_v25, %v2912_v53  ;;  %v2916_v39 = vpop.f32.mrf.mxu1  ;;  %v2029_v53 = vrot.slane %v2027_v54, 5  ;;  %v2453_v11 = vsel %vm6139_vm15, %v2451_v56, %v2452_v44 }
 0x1b1   : > { %5168 = vmatmul.msk.bf16.gmra.mxu3 %vm2610_vm12, %v5353_v9  ;;  %v6505_v31 = vadd.f32 %v3558_v8, %v3397_v15  ;;  %v2012_v9 = vsel %vm5736_vm11, %v2007_v7, %v2011_v2  ;;  %v1849_v15 = vrot.slane %v1847_v57, 4  ;;  %v2035_v8 = vrot.slane %v2033_v47, 5  ;;  %v5354_v2 = vld [vmem:[#allocation2 + $0x18] sm:$0xff] }
 0x1b2   : > { %v4100_v25 = vunpack.c.l.b16 %v2012_v9  ;;  %v4101_v7 = vunpack.c.l.b16 %v2022_v34  ;;  %v2030_v54 = vor.u32 %v2029_v53, %v2026_v60  ;;  %v2043_v57 = vshll.u32 %v6520_v26, 16 }
 0x1b3   : > { %5187 = vmatmul.msk.bf16.vlgmr.msra.gmra.mxu1 %vm2610_vm12, %v3672_v61  ;;  %v3465_v61 = vpack.c.b16 %v3449_v4, %v3448_v18  ;;  %v1851_v33 = vsel %vm6139_vm15, %v1849_v15, %v1850_v1  ;;  %v3642_v4 = vunpack.c.l.b16 %v1848_v62  ;;  %v2040_v47 = vor.u32 %v2039_v21, %v2035_v8  ;;  %v1955_v21 = vld [vmem:[#allocation2 + $0x30] sm:$0xf] }
 0x1b4   : > { %v3339_v23 = vpop.f32.mrf.mxu3  ;;  %v4132_v1 = vpack.c.b16 %v4101_v7, %v4100_v25  ;;  %v2450_v9 = vsel %vm6139_vm15, %v4958_v3, %v2449_v50  ;;  %v2031_v34 = vrot.slane %v2030_v54, 4  ;;  %v2045_v60 = vrot.slane %v2043_v57, 5 }
 0x1b5   : > { %v3398_v42 = vadd.f32 %v3339_v23, %v3160_v17  ;;  %v3643_v23 = vunpack.c.l.b16 %v1851_v33  ;;  %v1854_v25 = vrot.slane %v5555_v29, 5  ;;  %v4322_v50 = vunpack.c.l.b16 %v2450_v9 }
 0x1b6   : > { %v2036_v33 = vsel %vm5736_vm11, %v2031_v34, %v2035_v8  ;;  %v2048_v56 = vshrl.u32 %v1955_v21, 16  ;;  %v2456_v8 = vrot.slane %v6503_v32, 5  ;;  %v5355_v34 = vld [vmem:[#allocation2 + $0x24] sm:$0xff] }
 0x1b7   : > { %v3103_v45 = vpop.f32.mrf.mxu2  ;;  %v3673_v15 = vpack.c.b16 %v3643_v23, %v3642_v4  ;;  %v2051_v4 = vshll.u32 %v1955_v21, 16 }
 0x1b8   : > { %v3561_v17 = vpop.f32.mrf.mxu0  ;;  %v3161_v41 = vadd.f32 %v3103_v45, %v2914_v48  ;;  %v2918_v59 = vpop.f32.mrf.mxu1  ;;  %v2041_v48 = vrot.slane %v2040_v47, 4 }
 0x1b9   : > { %v6522_v13 = vadd.f32 %v3561_v17, %v3398_v42  ;;  %v2917_v42 = vadd.f32 %v2916_v39, %v6231_v55  ;;  %v1776_v55 = vld [vmem:[#allocation2 + $0x24] sm:$0xe]  ;;  %v4323_v17 = vunpack.c.l.b16 %v2453_v11  ;;  %v2050_v11 = vrot.slane %v2048_v56, 4 }
 0x1ba   : > { %v2046_v3 = vsel %vm5736_vm11, %v2041_v48, %v2045_v60  ;;  %v4944_v54 = vrot.slane %v1776_v55, 9  ;;  %v2384_v48 = vld [vmem:[#allocation2 + $0x24] sm:$0xe]  ;;  %v2053_v29 = vrot.slane %v2051_v4, 5  ;;  %v6553_v55 = vld [vmem:[#allocation2 + $0x38] sm:$0x1] }
 0x1bb   : > { %5185 = vmatmul.msk.bf16.gmra.mxu0 %vm2610_vm12, %v3465_v61  ;;  %v4354_v57 = vpack.c.b16 %v4323_v17, %v4322_v50  ;;  %v4103_v9 = vunpack.c.l.b16 %v2046_v3  ;;  %v4959_v50 = vrot.slane %v2384_v48, 9  ;;  %v2458_v17 = vrot.slane %v2456_v8, 4 }
 0x1bc   : > { %v3341_v18 = vpop.f32.mrf.mxu3  ;;  %5268 = vmatmul.msk.bf16.vlgmr.msra.gmra.mxu2 %vm2610_vm12, %v5354_v2  ;;  %v5556_v2 = vld [vmem:[#allocation2 + $0x2c] sm:$0x1]  ;;  %v2054_v3 = vor.u32 %v2053_v29, %v2050_v11 }
 0x1bd   : > { %v3399_v28 = vadd.f32 %v3341_v18, %v3161_v41  ;;  %v6536_v41 = vld [vmem:[#allocation2 + $0x34] sm:$0xf]  ;;  %v1857_v7 = vrot.slane %v5556_v2, 5  ;;  %v1856_v18 = vrot.slane %v1854_v25, 4 }
 0x1be   : > { %v2057_v23 = vshll.u32 %v6536_v41, 16  ;;  %v2061_v47 = vshrl.u32 %v6536_v41, 16 }
 0x1bf   : > { %v3106_v14 = vpop.f32.mrf.mxu2 }
 0x1c0   : > { %v3563_v53 = vpop.f32.mrf.mxu0  ;;  %v3162_v61 = vadd.f32 %v3106_v14, %v2917_v42  ;;  %v2921_v45 = vpop.f32.mrf.mxu1  ;;  %v4102_v42 = vunpack.c.l.b16 %v2036_v33  ;;  %v2059_v21 = vrot.slane %v2057_v23, 5 }
 0x1c1   : > { %5285 = vmatmul.msk.bf16.vlgmr.msra.gmra.mxu3 %vm2610_vm12, %v4132_v1  ;;  %v6534_v39 = vadd.f32 %v3563_v53, %v3399_v28  ;;  %v2919_v28 = vadd.f32 %v2918_v59, %v6241_v12  ;;  %v1855_v53 = vsel %vm6139_vm15, %v4944_v54, %v1854_v25  ;;  %v2063_v12 = vrot.slane %v2061_v47, 4  ;;  %v1957_v47 = vld [vmem:[#allocation2 + $0x3c] sm:$0xf] }
 0x1c2   : > { %v3644_v2 = vunpack.c.l.b16 %v1855_v53  ;;  %v4133_v25 = vpack.c.b16 %v4103_v9, %v4102_v42  ;;  %v2922_v54 = vadd.f32 %v2921_v45, %v6259_v0  ;;  %v2055_v42 = vrot.slane %v2054_v3, 4  ;;  %v5557_v9 = vld [vmem:[#allocation2 + $0x34] sm:$0xf] }
 0x1c3   : > { %5188 = vmatmul.msk.bf16.gmra.mxu1 %vm2610_vm12, %v3673_v15  ;;  %v2064_v56 = vor.u32 %v2063_v12, %v2059_v21  ;;  %v1861_v11 = vrot.slane %v5557_v9, 5  ;;  %v2072_v53 = vshrl.u32 %v1957_v47, 16 }
 0x1c4   : > { %v3344_v62 = vpop.f32.mrf.mxu3 }
 0x1c5   : > { %v3400_v44 = vadd.f32 %v3344_v62, %v3162_v61  ;;  %v1858_v61 = vsel %vm6139_vm15, %v1856_v18, %v1857_v7  ;;  %v2459_v7 = vrot.slane %v6520_v26, 5  ;;  %v2457_v18 = vsel %vm6139_vm15, %v4959_v50, %v2456_v8 }
 0x1c6   : > { %v3645_v62 = vunpack.c.l.b16 %v1858_v61  ;;  %v2065_v0 = vrot.slane %v2064_v56, 4  ;;  %v2075_v61 = vshll.u32 %v1957_v47, 16  ;;  %v4324_v29 = vunpack.c.l.b16 %v2457_v18  ;;  %v2385_v47 = vld [vmem:[#allocation2 + $0x30] sm:$0xe] }
 0x1c7   : > { %v3108_v1 = vpop.f32.mrf.mxu2  ;;  %v2463_v56 = vrot.slane %v6536_v41, 5  ;;  %v6582_v41 = vld [vmem:[#allocation2 + $0x44] sm:$0x1] }
 0x1c8   : > { %v3566_v14 = vpop.f32.mrf.mxu0  ;;  %v3163_v15 = vadd.f32 %v3108_v1, %v2919_v28  ;;  %v2923_v60 = vpop.f32.mrf.mxu1  ;;  %v3674_v23 = vpack.c.b16 %v3645_v62, %v3644_v2  ;;  %v2460_v28 = vsel %vm6139_vm15, %v2458_v17, %v2459_v7  ;;  %v2060_v62 = vsel %vm5736_vm11, %v2055_v42, %v2059_v21  ;;  %v5356_v21 = vld [vmem:[#allocation2 + $0x30] sm:$0xff] }
 0x1c9   : > { %v6551_v59 = vadd.f32 %v3566_v14, %v3400_v44  ;;  %v2067_v44 = vshll.u32 %v6553_v55, 16  ;;  %v6565_v14 = vld [vmem:[#allocation2 + $0x40] sm:$0xf]  ;;  %v4325_v12 = vunpack.c.l.b16 %v2460_v28  ;;  %v2924_v3 = vadd.f32 %v2923_v60, %v6278_v43 }
 0x1ca   : > { %v2081_v50 = vshll.u32 %v6565_v14, 16  ;;  %v2085_v17 = vshrl.u32 %v6565_v14, 16 }
 0x1cb   : > { %5302 = vmatmul.msk.bf16.vlgmr.msra.gmra.mxu0 %vm2610_vm12, %v4354_v57  ;;  %v2069_v45 = vrot.slane %v2067_v44, 5  ;;  %v2074_v44 = vrot.slane %v2072_v53, 4  ;;  %v4355_v18 = vpack.c.b16 %v4325_v12, %v4324_v29  ;;  %v2466_v53 = vrot.slane %v6553_v55, 5 }
 0x1cc   : > { %v3346_v32 = vpop.f32.mrf.mxu3  ;;  %5269 = vmatmul.msk.bf16.gmra.mxu2 %vm2610_vm12, %v5355_v34  ;;  %v5558_v34 = vld [vmem:[#allocation2 + $0x38] sm:$0x1]  ;;  %v2087_v28 = vrot.slane %v2085_v17, 4 }
 0x1cd   : > { %v3401_v33 = vadd.f32 %v3346_v32, %v3163_v15  ;;  %v1777_v15 = vld [vmem:[#allocation2 + $0x30] sm:$0xe]  ;;  %v1864_v48 = vrot.slane %v5558_v34, 5  ;;  %v2070_v7 = vsel %vm5736_vm11, %v2065_v0, %v2069_v45  ;;  %v4960_v45 = vrot.slane %v2385_v47, 9  ;;  %v5559_v47 = vld [vmem:[#allocation2 + $0x40] sm:$0xf] }
 0x1ce   : > { %v4105_v42 = vunpack.c.l.b16 %v2070_v7  ;;  %v2465_v34 = vrot.slane %v2463_v56, 4 }
 0x1cf   : > { %v3111_v4 = vpop.f32.mrf.mxu2 }
 0x1d0   : > { %v3568_v57 = vpop.f32.mrf.mxu0  ;;  %v3164_v1 = vadd.f32 %v3111_v4, %v2922_v54  ;;  %v2926_v26 = vpop.f32.mrf.mxu1  ;;  %v2077_v54 = vrot.slane %v2075_v61, 5  ;;  %v2467_v55 = vsel %vm6139_vm15, %v2465_v34, %v2466_v53 }
 0x1d1   : > { %5286 = vmatmul.msk.bf16.gmra.mxu3 %vm2610_vm12, %v4133_v25  ;;  %v6567_v8 = vadd.f32 %v3568_v57, %v3401_v33  ;;  %v4945_v25 = vrot.slane %v1777_v15, 9  ;;  %v1863_v33 = vrot.slane %v1861_v11, 4  ;;  %v2083_v57 = vrot.slane %v2081_v50, 5 }
 0x1d2   : > { %v2078_v61 = vor.u32 %v2077_v54, %v2074_v44 }
 0x1d3   : > { %5189 = vmatmul.msk.bf16.gmra.mxu1 %vm2610_vm12, %v3674_v23  ;;  %v4104_v23 = vunpack.c.l.b16 %v2060_v62  ;;  %v1862_v0 = vsel %vm6139_vm15, %v4945_v25, %v1861_v11  ;;  %v1865_v43 = vsel %vm6139_vm15, %v1863_v33, %v1864_v48  ;;  %v2088_v50 = vor.u32 %v2087_v28, %v2083_v57  ;;  %v1959_v28 = vld [vmem:[#allocation2 + $0x48] sm:$0xf] }
 0x1d4   : > { %v3349_v32 = vpop.f32.mrf.mxu3  ;;  %v3646_v12 = vunpack.c.l.b16 %v1862_v0  ;;  %v2091_v11 = vshll.u32 %v6582_v41, 16  ;;  %v2464_v62 = vsel %vm6139_vm15, %v4960_v45, %v2463_v56  ;;  %v2079_v7 = vrot.slane %v2078_v61, 4 }
 0x1d5   : > { %v3402_v2 = vadd.f32 %v3349_v32, %v3164_v1  ;;  %v3647_v32 = vunpack.c.l.b16 %v1865_v43  ;;  %v4134_v48 = vpack.c.b16 %v4105_v42, %v4104_v23  ;;  %v1868_v23 = vrot.slane %v5559_v47, 5 }
 0x1d6   : > { %v2093_v44 = vrot.slane %v2091_v11, 5  ;;  %v4326_v56 = vunpack.c.l.b16 %v2464_v62  ;;  %v2084_v43 = vsel %vm5736_vm11, %v2079_v7, %v2083_v57  ;;  %v2096_v34 = vshrl.u32 %v1959_v28, 16  ;;  %v5357_v7 = vld [vmem:[#allocation2 + $0x3c] sm:$0xff] }
 0x1d7   : > { %v3113_v4 = vpop.f32.mrf.mxu2  ;;  %v3675_v33 = vpack.c.b16 %v3647_v32, %v3646_v12  ;;  %v2099_v12 = vshll.u32 %v1959_v28, 16  ;;  %v2470_v57 = vrot.slane %v6565_v14, 5 }
 0x1d8   : > { %v3571_v1 = vpop.f32.mrf.mxu0  ;;  %v3165_v9 = vadd.f32 %v3113_v4, %v2924_v3  ;;  %v2928_v15 = vpop.f32.mrf.mxu1  ;;  %v2089_v3 = vrot.slane %v2088_v50, 4 }
 0x1d9   : > { %v6584_v60 = vadd.f32 %v3571_v1, %v3402_v2  ;;  %v2927_v2 = vadd.f32 %v2926_v26, %v6289_v49  ;;  %v1778_v49 = vld [vmem:[#allocation2 + $0x3c] sm:$0xe]  ;;  %v4327_v1 = vunpack.c.l.b16 %v2467_v55  ;;  %v2098_v55 = vrot.slane %v2096_v34, 4 }
 0x1da   : > { %v2094_v45 = vsel %vm5736_vm11, %v2089_v3, %v2093_v44  ;;  %v4946_v61 = vrot.slane %v1778_v49, 9  ;;  %v2386_v3 = vld [vmem:[#allocation2 + $0x3c] sm:$0xe]  ;;  %v2101_v47 = vrot.slane %v2099_v12, 5  ;;  %v6615_v49 = vld [vmem:[#allocation2 + $0x50] sm:$0x1] }
 0x1db   : > { %5303 = vmatmul.msk.bf16.gmra.mxu0 %vm2610_vm12, %v4355_v18  ;;  %v4356_v11 = vpack.c.b16 %v4327_v1, %v4326_v56  ;;  %v4107_v62 = vunpack.c.l.b16 %v2094_v45  ;;  %v4961_v56 = vrot.slane %v2386_v3, 9  ;;  %v2472_v1 = vrot.slane %v2470_v57, 4 }
 0x1dc   : > { %v3351_v29 = vpop.f32.mrf.mxu3  ;;  %5270 = vmatmul.msk.bf16.gmra.mxu2 %vm2610_vm12, %v5356_v21  ;;  %v5560_v21 = vld [vmem:[#allocation2 + $0x44] sm:$0x1]  ;;  %v2102_v45 = vor.u32 %v2101_v47, %v2098_v55 }
 0x1dd   : > { %v3403_v17 = vadd.f32 %v3351_v29, %v3165_v9  ;;  %v6598_v9 = vld [vmem:[#allocation2 + $0x4c] sm:$0xf]  ;;  %v1871_v42 = vrot.slane %v5560_v21, 5  ;;  %v1870_v29 = vrot.slane %v1868_v23, 4 }
 0x1de   : > { %v2105_v32 = vshll.u32 %v6598_v9, 16  ;;  %v2109_v50 = vshrl.u32 %v6598_v9, 16 }
 0x1df   : > { %v3116_v25 = vpop.f32.mrf.mxu2 }
 0x1e0   : > { %v3573_v54 = vpop.f32.mrf.mxu0  ;;  %v3166_v18 = vadd.f32 %v3116_v25, %v2927_v2  ;;  %v2931_v4 = vpop.f32.mrf.mxu1  ;;  %v4106_v2 = vunpack.c.l.b16 %v2084_v43  ;;  %v2107_v28 = vrot.slane %v2105_v32, 5 }
 0x1e1   : > { %5287 = vmatmul.msk.bf16.gmra.mxu3 %vm2610_vm12, %v4134_v48  ;;  %v6596_v26 = vadd.f32 %v3573_v54, %v3403_v17  ;;  %v2929_v17 = vadd.f32 %v2928_v15, %v6309_v22  ;;  %v1869_v54 = vsel %vm6139_vm15, %v4946_v61, %v1868_v23  ;;  %v2111_v22 = vrot.slane %v2109_v50, 4  ;;  %v1961_v50 = vld [vmem:[#allocation2 + $0x54] sm:$0xf] }
 0x1e2   : > { %v3648_v21 = vunpack.c.l.b16 %v1869_v54  ;;  %v4135_v23 = vpack.c.b16 %v4107_v62, %v4106_v2  ;;  %v2932_v61 = vadd.f32 %v2931_v4, %v6319_v52  ;;  %v2103_v2 = vrot.slane %v2102_v45, 4  ;;  %v5561_v62 = vld [vmem:[#allocation2 + $0x4c] sm:$0xf] }
 0x1e3   : > { %5190 = vmatmul.msk.bf16.gmra.mxu1 %vm2610_vm12, %v3675_v33  ;;  %v2112_v34 = vor.u32 %v2111_v22, %v2107_v28  ;;  %v1875_v55 = vrot.slane %v5561_v62, 5  ;;  %v2120_v54 = vshrl.u32 %v1961_v50, 16 }
 0x1e4   : > { %v3354_v0 = vpop.f32.mrf.mxu3 }
 0x1e5   : > { %v3404_v53 = vadd.f32 %v3354_v0, %v3166_v18  ;;  %v1872_v18 = vsel %vm6139_vm15, %v1870_v29, %v1871_v42  ;;  %v2473_v42 = vrot.slane %v6582_v41, 5  ;;  %v2471_v29 = vsel %vm6139_vm15, %v4961_v56, %v2470_v57 }
 0x1e6   : > { %v3649_v0 = vunpack.c.l.b16 %v1872_v18  ;;  %v2113_v52 = vrot.slane %v2112_v34, 4  ;;  %v2123_v18 = vshll.u32 %v1961_v50, 16  ;;  %v4328_v47 = vunpack.c.l.b16 %v2471_v29  ;;  %v2387_v50 = vld [vmem:[#allocation2 + $0x48] sm:$0xe] }
 0x1e7   : > { %v3118_v48 = vpop.f32.mrf.mxu2  ;;  %v2477_v34 = vrot.slane %v6598_v9, 5  ;;  %v6644_v9 = vld [vmem:[#allocation2 + $0x5c] sm:$0x1] }
 0x1e8   : > { %v3576_v25 = vpop.f32.mrf.mxu0  ;;  %v3167_v33 = vadd.f32 %v3118_v48, %v2929_v17  ;;  %v2933_v44 = vpop.f32.mrf.mxu1  ;;  %v3676_v32 = vpack.c.b16 %v3649_v0, %v3648_v21  ;;  %v2474_v17 = vsel %vm6139_vm15, %v2472_v1, %v2473_v42  ;;  %v2108_v0 = vsel %vm5736_vm11, %v2103_v2, %v2107_v28  ;;  %v5358_v28 = vld [vmem:[#allocation2 + $0x48] sm:$0xff] }
 0x1e9   : > { %v6613_v15 = vadd.f32 %v3576_v25, %v3404_v53  ;;  %v2115_v53 = vshll.u32 %v6615_v49, 16  ;;  %v6627_v25 = vld [vmem:[#allocation2 + $0x58] sm:$0xf]  ;;  %v4329_v22 = vunpack.c.l.b16 %v2474_v17  ;;  %v2934_v45 = vadd.f32 %v2933_v44, %v6333_v51 }
 0x1ea   : > { %v2129_v56 = vshll.u32 %v6627_v25, 16  ;;  %v2133_v1 = vshrl.u32 %v6627_v25, 16 }
 0x1eb   : > { %5304 = vmatmul.msk.bf16.gmra.mxu0 %vm2610_vm12, %v4356_v11  ;;  %v2117_v4 = vrot.slane %v2115_v53, 5  ;;  %v2122_v53 = vrot.slane %v2120_v54, 4  ;;  %v4357_v29 = vpack.c.b16 %v4329_v22, %v4328_v47  ;;  %v2480_v54 = vrot.slane %v6615_v49, 5 }
 0x1ec   : > { %v3356_v14 = vpop.f32.mrf.mxu3  ;;  %5271 = vmatmul.msk.bf16.gmra.mxu2 %vm2610_vm12, %v5357_v7  ;;  %v5562_v7 = vld [vmem:[#allocation2 + $0x50] sm:$0x1]  ;;  %v2135_v17 = vrot.slane %v2133_v1, 4 }
 0x1ed   : > { %v3405_v43 = vadd.f32 %v3356_v14, %v3167_v33  ;;  %v1779_v33 = vld [vmem:[#allocation2 + $0x48] sm:$0xe]  ;;  %v1878_v3 = vrot.slane %v5562_v7, 5  ;;  %v2118_v42 = vsel %vm5736_vm11, %v2113_v52, %v2117_v4  ;;  %v4962_v4 = vrot.slane %v2387_v50, 9  ;;  %v5563_v50 = vld [vmem:[#allocation2 + $0x58] sm:$0xf] }
 0x1ee   : > { %v4109_v2 = vunpack.c.l.b16 %v2118_v42  ;;  %v2479_v7 = vrot.slane %v2477_v34, 4 }
 0x1ef   : > { %v3121_v12 = vpop.f32.mrf.mxu2 }
 0x1f0   : > { %v3578_v11 = vpop.f32.mrf.mxu0  ;;  %v3168_v48 = vadd.f32 %v3121_v12, %v2932_v61  ;;  %v2936_v41 = vpop.f32.mrf.mxu1  ;;  %v2125_v61 = vrot.slane %v2123_v18, 5  ;;  %v2481_v49 = vsel %vm6139_vm15, %v2479_v7, %v2480_v54 }
 0x1f1   : > { %5288 = vmatmul.msk.bf16.gmra.mxu3 %vm2610_vm12, %v4135_v23  ;;  %v6629_v57 = vadd.f32 %v3578_v11, %v3405_v43  ;;  %v4947_v23 = vrot.slane %v1779_v33, 9  ;;  %v1877_v43 = vrot.slane %v1875_v55, 4  ;;  %v2131_v11 = vrot.slane %v2129_v56, 5 }
 0x1f2   : > { %v2126_v18 = vor.u32 %v2125_v61, %v2122_v53 }
 0x1f3   : > { %5191 = vmatmul.msk.bf16.gmra.mxu1 %vm2610_vm12, %v3676_v32  ;;  %v4108_v32 = vunpack.c.l.b16 %v2108_v0  ;;  %v1876_v52 = vsel %vm6139_vm15, %v4947_v23, %v1875_v55  ;;  %v1879_v51 = vsel %vm6139_vm15, %v1877_v43, %v1878_v3  ;;  %v2136_v56 = vor.u32 %v2135_v17, %v2131_v11  ;;  %v1963_v17 = vld [vmem:[#allocation2 + $0x60] sm:$0xf] }
 0x1f4   : > { %v3359_v14 = vpop.f32.mrf.mxu3  ;;  %v3650_v22 = vunpack.c.l.b16 %v1876_v52  ;;  %v2139_v55 = vshll.u32 %v6644_v9, 16  ;;  %v2478_v0 = vsel %vm6139_vm15, %v4962_v4, %v2477_v34  ;;  %v2127_v42 = vrot.slane %v2126_v18, 4 }
 0x1f5   : > { %v3406_v21 = vadd.f32 %v3359_v14, %v3168_v48  ;;  %v3651_v14 = vunpack.c.l.b16 %v1879_v51  ;;  %v4136_v3 = vpack.c.b16 %v4109_v2, %v4108_v32  ;;  %v1882_v32 = vrot.slane %v5563_v50, 5 }
 0x1f6   : > { %v2141_v53 = vrot.slane %v2139_v55, 5  ;;  %v4330_v34 = vunpack.c.l.b16 %v2478_v0  ;;  %v2132_v51 = vsel %vm5736_vm11, %v2127_v42, %v2131_v11  ;;  %v2144_v7 = vshrl.u32 %v1963_v17, 16 }
 0x1f7   : > { %v3123_v12 = vpop.f32.mrf.mxu2  ;;  %v3677_v43 = vpack.c.b16 %v3651_v14, %v3650_v22  ;;  %v2147_v22 = vshll.u32 %v1963_v17, 16  ;;  %v2484_v11 = vrot.slane %v6627_v25, 5 }
 0x1f8   : > { %v3581_v48 = vpop.f32.mrf.mxu0  ;;  %v3169_v62 = vadd.f32 %v3123_v12, %v2934_v45  ;;  %v2938_v33 = vpop.f32.mrf.mxu1  ;;  %v2137_v45 = vrot.slane %v2136_v56, 4 }
 0x1f9   : > { %v6646_v44 = vadd.f32 %v3581_v48, %v3406_v21  ;;  %v2937_v21 = vadd.f32 %v2936_v41, %v6233_v58  ;;  %v1780_v58 = vld [vmem:[#allocation2 + $0x54] sm:$0xe]  ;;  %v4331_v48 = vunpack.c.l.b16 %v2481_v49  ;;  %v2149_v50 = vrot.slane %v2147_v22, 5 }
 0x1fa   : > { %v2142_v4 = vsel %vm5736_vm11, %v2137_v45, %v2141_v53  ;;  %v4948_v18 = vrot.slane %v1780_v58, 9  ;;  %v2388_v49 = vld [vmem:[#allocation2 + $0x54] sm:$0xe] }
 0x1fb   : > { %5305 = vmatmul.msk.bf16.gmra.mxu0 %vm2610_vm12, %v4357_v29  ;;  %v4358_v55 = vpack.c.b16 %v4331_v48, %v4330_v34  ;;  %v4111_v0 = vunpack.c.l.b16 %v2142_v4  ;;  %v5359_v45 = vld [vmem:[#allocation2 + $0x54] sm:$0xff]  ;;  %v4963_v58 = vrot.slane %v2388_v49, 9  ;;  %v6677_v34 = vld [vmem:[#allocation2 + $0x68] sm:$0x1]  ;;  %v2486_v48 = vrot.slane %v2484_v11, 4 }
 0x1fc   : > { %v3361_v47 = vpop.f32.mrf.mxu3  ;;  %5272 = vmatmul.msk.bf16.gmra.mxu2 %vm2610_vm12, %v5358_v28  ;;  %v5564_v28 = vld [vmem:[#allocation2 + $0x5c] sm:$0x1]  ;;  %v1965_v49 = vld [vmem:[#allocation2 + $0x6c] sm:$0xf] }
 0x1fd   : > { %v3407_v1 = vadd.f32 %v3361_v47, %v3169_v62  ;;  %v6660_v62 = vld [vmem:[#allocation2 + $0x64] sm:$0xf]  ;;  %v1885_v2 = vrot.slane %v5564_v28, 5  ;;  %v1884_v47 = vrot.slane %v1882_v32, 4  ;;  %v2487_v28 = vrot.slane %v6644_v9, 5 }
 0x1fe   : > { %v2153_v14 = vshll.u32 %v6660_v62, 16  ;;  %v2157_v56 = vshrl.u32 %v6660_v62, 16 }
 0x1ff   : > { %v3126_v23 = vpop.f32.mrf.mxu2  ;;  %v2488_v22 = vsel %vm6139_vm15, %v2486_v48, %v2487_v28 }
 0x200   : > { %v3583_v61 = vpop.f32.mrf.mxu0  ;;  %v3170_v29 = vadd.f32 %v3126_v23, %v2937_v21  ;;  %v2941_v12 = vpop.f32.mrf.mxu1  ;;  %v4110_v21 = vunpack.c.l.b16 %v2132_v51  ;;  %v2146_v23 = vrot.slane %v2144_v7, 4  ;;  %v2155_v17 = vrot.slane %v2153_v14, 5 }
 0x201   : > { %5289 = vmatmul.msk.bf16.gmra.mxu3 %vm2610_vm12, %v4136_v3  ;;  %v6658_v41 = vadd.f32 %v3583_v61, %v3407_v1  ;;  %v2939_v1 = vadd.f32 %v2938_v33, %v6248_v20  ;;  %v1883_v61 = vsel %vm6139_vm15, %v4948_v18, %v1882_v32  ;;  %v2159_v20 = vrot.slane %v2157_v56, 4 }
 0x202   : > { %v2150_v4 = vor.u32 %v2149_v50, %v2146_v23  ;;  %v2942_v18 = vadd.f32 %v2941_v12, %v6262_v35  ;;  %v1781_v35 = vld [vmem:[#allocation2 + $0x60] sm:$0xe] }
 0x203   : > { %5192 = vmatmul.msk.bf16.gmra.mxu1 %vm2610_vm12, %v3677_v43  ;;  %v2160_v7 = vor.u32 %v2159_v20, %v2155_v17  ;;  %v2168_v20 = vshrl.u32 %v1965_v49, 16  ;;  %v4949_v28 = vrot.slane %v1781_v35, 9  ;;  %v6708_v35 = vld [vmem:[#allocation2 + $0x74] sm:$0x1] }
 0x204   : > { %v3364_v52 = vpop.f32.mrf.mxu3 }
 0x205   : > { %v3408_v54 = vadd.f32 %v3364_v52, %v3170_v29  ;;  %v1886_v29 = vsel %vm6139_vm15, %v1884_v47, %v1885_v2  ;;  %v3652_v52 = vunpack.c.l.b16 %v1883_v61  ;;  %v4137_v2 = vpack.c.b16 %v4111_v0, %v4110_v21  ;;  %v5565_v21 = vld [vmem:[#allocation2 + $0x64] sm:$0xf]  ;;  %v5566_v61 = vld [vmem:[#allocation2 + $0x68] sm:$0x1] }
 0x206   : > { %v3653_v51 = vunpack.c.l.b16 %v1886_v29  ;;  %v2485_v47 = vsel %vm6139_vm15, %v4963_v58, %v2484_v11  ;;  %v1889_v0 = vrot.slane %v5565_v21, 5  ;;  %v2161_v23 = vrot.slane %v2160_v7, 4 }
 0x207   : > { %v3128_v3 = vpop.f32.mrf.mxu2  ;;  %v4332_v11 = vunpack.c.l.b16 %v2485_v47  ;;  %v1892_v29 = vrot.slane %v5566_v61, 5  ;;  %v2171_v58 = vshll.u32 %v1965_v49, 16  ;;  %v2491_v47 = vrot.slane %v6660_v62, 5 }
 0x208   : > { %v3586_v43 = vpop.f32.mrf.mxu0  ;;  %v3171_v42 = vadd.f32 %v3128_v3, %v2939_v1  ;;  %v2943_v53 = vpop.f32.mrf.mxu1  ;;  %v3678_v9 = vpack.c.b16 %v3653_v51, %v3652_v52  ;;  %v2151_v3 = vrot.slane %v2150_v4, 4  ;;  %v1891_v52 = vrot.slane %v1889_v0, 4 }
 0x209   : > { %v6675_v33 = vadd.f32 %v3586_v43, %v3408_v54  ;;  %v2163_v54 = vshll.u32 %v6677_v34, 16  ;;  %v2944_v7 = vadd.f32 %v2943_v53, %v6281_v5  ;;  %v1890_v49 = vsel %vm6139_vm15, %v4949_v28, %v1889_v0 }
 0x20a   : > { %v2156_v48 = vsel %vm5736_vm11, %v2151_v3, %v2155_v17  ;;  %v2389_v3 = vld [vmem:[#allocation2 + $0x60] sm:$0xe] }
 0x20b   : > { %5306 = vmatmul.msk.bf16.gmra.mxu0 %vm2610_vm12, %v4358_v55  ;;  %v2165_v43 = vrot.slane %v2163_v54, 5 }
 0x20c   : > { %v3366_v25 = vpop.f32.mrf.mxu3  ;;  %5273 = vmatmul.msk.bf16.gmra.mxu2 %vm2610_vm12, %v5359_v45  ;;  %v6691_v45 = vld [vmem:[#allocation2 + $0x70] sm:$0xf] }
 0x20d   : > { %v3409_v32 = vadd.f32 %v3366_v25, %v3171_v42  ;;  %v4333_v42 = vunpack.c.l.b16 %v2488_v22  ;;  %v2166_v51 = vsel %vm5736_vm11, %v2161_v23, %v2165_v43  ;;  %v2170_v22 = vrot.slane %v2168_v20, 4 }
 0x20e   : > { %v1893_v23 = vsel %vm6139_vm15, %v1891_v52, %v1892_v29  ;;  %v2494_v29 = vrot.slane %v6677_v34, 5 }
 0x20f   : > { %v3131_v14 = vpop.f32.mrf.mxu2  ;;  %v4359_v4 = vpack.c.b16 %v4333_v42, %v4332_v11  ;;  %v4964_v11 = vrot.slane %v2389_v3, 9  ;;  %v3654_v42 = vunpack.c.l.b16 %v1890_v49  ;;  %v3655_v61 = vunpack.c.l.b16 %v1893_v23 }
 0x210   : > { %v3588_v56 = vpop.f32.mrf.mxu0  ;;  %v3172_v55 = vadd.f32 %v3131_v14, %v2942_v18  ;;  %v2946_v1 = vpop.f32.mrf.mxu1  ;;  %v4112_v18 = vunpack.c.l.b16 %v2156_v48  ;;  %v2173_v14 = vrot.slane %v2171_v58, 5  ;;  %v2493_v58 = vrot.slane %v2491_v47, 4 }
 0x211   : > { %5290 = vmatmul.msk.bf16.gmra.mxu3 %vm2610_vm12, %v4137_v2  ;;  %v6689_v12 = vadd.f32 %v3588_v56, %v3409_v32  ;;  %v2177_v32 = vshll.u32 %v6691_v45, 16  ;;  %v2181_v2 = vshrl.u32 %v6691_v45, 16  ;;  %v5360_v56 = vld [vmem:[#allocation2 + $0x60] sm:$0xff]  ;;  %v2947_v28 = vadd.f32 %v2946_v1, %v6293_v38 }
 0x212   : > { %v2492_v52 = vsel %vm6139_vm15, %v4964_v11, %v2491_v47 }
 0x213   : > { %5193 = vmatmul.msk.bf16.gmra.mxu1 %vm2610_vm12, %v3678_v9  ;;  %v2179_v43 = vrot.slane %v2177_v32, 5  ;;  %v2183_v5 = vrot.slane %v2181_v2, 4  ;;  %v3679_v32 = vpack.c.b16 %v3655_v61, %v3654_v42 }
 0x214   : > { %v3369_v50 = vpop.f32.mrf.mxu3 }
 0x215   : > { %v3410_v25 = vadd.f32 %v3369_v50, %v3172_v55  ;;  %v4113_v55 = vunpack.c.l.b16 %v2166_v51  ;;  %v2174_v50 = vor.u32 %v2173_v14, %v2170_v22  ;;  %v2184_v48 = vor.u32 %v2183_v5, %v2179_v43  ;;  %v5567_v22 = vld [vmem:[#allocation2 + $0x70] sm:$0xf] }
 0x216   : > { %v1896_v14 = vrot.slane %v5567_v22, 5  ;;  %v5361_v22 = vld [vmem:[#allocation2 + $0x6c] sm:$0xff] }
 0x217   : > { %v3133_v54 = vpop.f32.mrf.mxu2  ;;  %v4138_v0 = vpack.c.b16 %v4113_v55, %v4112_v18  ;;  %v2175_v2 = vrot.slane %v2174_v50, 4  ;;  %v2185_v38 = vrot.slane %v2184_v48, 4 }
 0x218   : > { %v3591_v9 = vpop.f32.mrf.mxu0  ;;  %v3173_v17 = vadd.f32 %v3133_v54, %v2944_v7  ;;  %v2948_v21 = vpop.f32.mrf.mxu1  ;;  %v2495_v54 = vsel %vm6139_vm15, %v2493_v58, %v2494_v29  ;;  %v1898_v50 = vrot.slane %v1896_v14, 4  ;;  %v7240_v29 = vld [vmem:[#allocation3_spill] sm:$0xff] }
 0x219   : > { %v6706_v53 = vadd.f32 %v3591_v9, %v3410_v25  ;;  %v2187_v25 = vshll.u32 %v6708_v35, 16  ;;  %v6720_v9 = vld [vmem:[#allocation2 + $0x7c] sm:$0xf]  ;;  %v4335_v49 = vunpack.c.l.b16 %v2495_v54  ;;  %v2180_v5 = vsel %vm5736_vm11, %v2175_v2, %v2179_v43  ;;  %v2390_v2 = vld [vmem:[#allocation2 + $0x6c] sm:$0xe] }
 0x21a   : > { %v2205_v11 = vshrl.u32 %v6720_v9, 16  ;;  %v2949_v48 = vadd.f32 %v2948_v21, %v7240_v29 }
 0x21b   : > { %5307 = vmatmul.msk.bf16.gmra.mxu0 %vm2610_vm12, %v4359_v4  ;;  %v1967_v4 = vld [vmem:[#allocation2 + $0x78] sm:$0xf]  ;;  %v2189_v1 = vrot.slane %v2187_v25, 5  ;;  %v2498_v25 = vrot.slane %v6691_v45, 5  ;;  %v6737_v45 = vld [vmem:[#allocation2 + $0x80] sm:$0x1] }
 0x21c   : > { %v3371_v62 = vpop.f32.mrf.mxu3  ;;  %5274 = vmatmul.msk.bf16.gmra.mxu2 %vm2610_vm12, %v5360_v56  ;;  %v4334_v56 = vunpack.c.l.b16 %v2492_v52  ;;  %v2192_v55 = vshrl.u32 %v1967_v4, 16  ;;  %v2195_v3 = vshll.u32 %v1967_v4, 16 }
 0x21d   : > { %v3411_v20 = vadd.f32 %v3371_v62, %v3173_v17  ;;  %v1782_v17 = vld [vmem:[#allocation2 + $0x6c] sm:$0xe]  ;;  %v2201_v62 = vshll.u32 %v6720_v9, 16  ;;  %v2190_v58 = vsel %vm5736_vm11, %v2185_v38, %v2189_v1 }
 0x21e   : > { %v4950_v61 = vrot.slane %v1782_v17, 9  ;;  %v2197_v52 = vrot.slane %v2195_v3, 5  ;;  %v4115_v17 = vunpack.c.l.b16 %v2190_v58  ;;  %v2501_v3 = vrot.slane %v6708_v35, 5 }
 0x21f   : > { %v3136_v51 = vpop.f32.mrf.mxu2  ;;  %v2203_v4 = vrot.slane %v2201_v62, 5 }
 0x220   : > { %v3593_v7 = vpop.f32.mrf.mxu0  ;;  %v3174_v18 = vadd.f32 %v3136_v51, %v2947_v28  ;;  %v2951_v34 = vpop.f32.mrf.mxu1  ;;  %v2194_v28 = vrot.slane %v2192_v55, 4  ;;  %v4360_v51 = vpack.c.b16 %v4335_v49, %v4334_v56  ;;  %v1897_v38 = vsel %vm6139_vm15, %v4950_v61, %v1896_v14 }
 0x221   : > { %5291 = vmatmul.msk.bf16.gmra.mxu3 %vm2610_vm12, %v4138_v0  ;;  %v6722_v47 = vadd.f32 %v3593_v7, %v3411_v20  ;;  %v5568_v0 = vld [vmem:[#allocation2 + $0x74] sm:$0x1]  ;;  %v2207_v7 = vrot.slane %v2205_v11, 4  ;;  %v4965_v56 = vrot.slane %v2390_v2, 9  ;;  %v2500_v55 = vrot.slane %v2498_v25, 4 }
 0x222   : > { %v1899_v20 = vrot.slane %v5568_v0, 5  ;;  %v2198_v49 = vor.u32 %v2197_v52, %v2194_v28  ;;  %v3656_v62 = vunpack.c.l.b16 %v1897_v38  ;;  %v2211_v14 = vshll.u32 %v6737_v45, 16  ;;  %v6753_v38 = vld [vmem:[#allocation2 + $0x88] sm:$0xf] }
 0x223   : > { %5194 = vmatmul.msk.bf16.gmra.mxu1 %vm2610_vm12, %v3679_v32  ;;  %v4114_v32 = vunpack.c.l.b16 %v2180_v5  ;;  %v2208_v0 = vor.u32 %v2207_v7, %v2203_v4  ;;  %v2499_v58 = vsel %vm6139_vm15, %v4965_v56, %v2498_v25  ;;  %v2502_v35 = vsel %vm6139_vm15, %v2500_v55, %v2501_v3 }
 0x224   : > { %v3374_v23 = vpop.f32.mrf.mxu3  ;;  %v1900_v21 = vsel %vm6139_vm15, %v1898_v50, %v1899_v20  ;;  %v7241_v20 = vld [vmem:[#allocation4_spill] sm:$0xff]  ;;  %v2199_v28 = vrot.slane %v2198_v49, 4  ;;  %v4336_v25 = vunpack.c.l.b16 %v2499_v58 }
 0x225   : > { %v3412_v42 = vadd.f32 %v3374_v23, %v3174_v18  ;;  %v3657_v11 = vunpack.c.l.b16 %v1900_v21  ;;  %v4139_v50 = vpack.c.b16 %v4115_v17, %v4114_v32  ;;  %v2209_v52 = vrot.slane %v2208_v0, 4  ;;  %v5570_v0 = vld [vmem:[#allocation2 + $0x80] sm:$0x1] }
 0x226   : > { %v4337_v17 = vunpack.c.l.b16 %v2502_v35  ;;  %v2204_v56 = vsel %vm5736_vm11, %v2199_v28, %v2203_v4 }
 0x227   : > { %v3138_v43 = vpop.f32.mrf.mxu2 }
 0x228   : > { %v3596_v54 = vpop.f32.mrf.mxu0  ;;  %v3175_v18 = vadd.f32 %v3138_v43, %v2949_v48  ;;  %v2953_v23 = vpop.f32.mrf.mxu1  ;;  %v3680_v48 = vpack.c.b16 %v3657_v11, %v3656_v62 }
 0x229   : > { %v6739_v1 = vadd.f32 %v3596_v54, %v3412_v42  ;;  %v2952_v42 = vadd.f32 %v2951_v34, %v7241_v20  ;;  %v5569_v54 = vld [vmem:[#allocation2 + $0x7c] sm:$0xf]  ;;  %v1783_v34 = vld [vmem:[#allocation2 + $0x78] sm:$0xe]  ;;  %v4361_v20 = vpack.c.b16 %v4337_v17, %v4336_v25 }
 0x22a   : > { %v1903_v32 = vrot.slane %v5569_v54, 5  ;;  %v4951_v62 = vrot.slane %v1783_v34, 9 }
 0x22b   : > { %5308 = vmatmul.msk.bf16.gmra.mxu0 %vm2610_vm12, %v4360_v51  ;;  %v2213_v51 = vrot.slane %v2211_v14, 5  ;;  %v1906_v14 = vrot.slane %v5570_v0, 5 }
 0x22c   : > { %v3376_v5 = vpop.f32.mrf.mxu3  ;;  %5275 = vmatmul.msk.bf16.gmra.mxu2 %vm2610_vm12, %v5361_v22  ;;  %v1905_v11 = vrot.slane %v1903_v32, 4 }
 0x22d   : > { %v3413_v61 = vadd.f32 %v3376_v5, %v3175_v18  ;;  %v1969_v18 = vld [vmem:[#allocation2 + $0x84] sm:$0xf]  ;;  %v2214_v55 = vsel %vm5736_vm11, %v2209_v52, %v2213_v51 }
 0x22e   : > { %v2216_v3 = vshrl.u32 %v1969_v18, 16  ;;  %v2219_v49 = vshll.u32 %v1969_v18, 16  ;;  %v4117_v4 = vunpack.c.l.b16 %v2214_v55  ;;  %v1904_v18 = vsel %vm6139_vm15, %v4951_v62, %v1903_v32 }
 0x22f   : > { %v3141_v29 = vpop.f32.mrf.mxu2  ;;  %v1907_v34 = vsel %vm6139_vm15, %v1905_v11, %v1906_v14  ;;  %v3658_v0 = vunpack.c.l.b16 %v1904_v18  ;;  %v2508_v62 = vrot.slane %v6737_v45, 5  ;;  %v1784_v18 = vld [vmem:[#allocation2 + $0x84] sm:$0xe] }
 0x230   : > { %v3598_v43 = vpop.f32.mrf.mxu0  ;;  %v3176_v2 = vadd.f32 %v3141_v29, %v2952_v42  ;;  %v3748_v7 = vpop.f32.mrf.mxu1  ;;  %v7243_v42 = vld [vmem:[#allocation5_spill] sm:$0xff]  ;;  %v4116_v29 = vunpack.c.l.b16 %v2204_v56  ;;  %v2218_v28 = vrot.slane %v2216_v3, 4  ;;  %v2221_v25 = vrot.slane %v2219_v49, 5 }
 0x231   : > { %5292 = vmatmul.msk.bf16.gmra.mxu3 %vm2610_vm12, %v4139_v50  ;;  %v6751_v22 = vadd.f32 %v3598_v43, %v3413_v61  ;;  %v2225_v61 = vshll.u32 %v6753_v38, 16  ;;  %v2229_v50 = vshrl.u32 %v6753_v38, 16  ;;  %v2954_v58 = vadd.f32 %v2953_v23, %v7243_v42  ;;  %v5362_v43 = vld [vmem:[#allocation2 + $0x78] sm:$0xff]  ;;  %v6770_v56 = vld [vmem:[#allocation2 + $0x8c] sm:$0x1] }
 0x232   : > { %v3659_v42 = vunpack.c.l.b16 %v1907_v34  ;;  %v4140_v32 = vpack.c.b16 %v4117_v4, %v4116_v29  ;;  %v2222_v49 = vor.u32 %v2221_v25, %v2218_v28  ;;  %v3828_v14 = vadd.f32 %v3748_v7, %v6355_v30  ;;  %v5571_v28 = vld [vmem:[#allocation2 + $0x88] sm:$0xf] }
 0x233   : > { %7242 = vst [vmem:[#allocation3_spill] sm:$0xff] %v6751_v22  ;;  %5195 = vmatmul.msk.bf16.gmra.mxu1 %vm2610_vm12, %v3680_v48  ;;  %v2505_v48 = vrot.slane %v6720_v9, 5  ;;  %v2227_v17 = vrot.slane %v2225_v61, 5  ;;  %v2231_v23 = vrot.slane %v2229_v50, 4 }
 0x234   : > { %v3379_v21 = vpop.f32.mrf.mxu3  ;;  %v3681_v50 = vpack.c.b16 %v3659_v42, %v3658_v0  ;;  %v2223_v4 = vrot.slane %v2222_v49, 4 }
 0x235   : > { %v3414_v5 = vadd.f32 %v3379_v21, %v3176_v2  ;;  %v2391_v2 = vld [vmem:[#allocation2 + $0x78] sm:$0xe]  ;;  %v2507_v3 = vrot.slane %v2505_v48, 4  ;;  %v2232_v11 = vor.u32 %v2231_v23, %v2227_v17 }
 0x236   : > { %v4966_v55 = vrot.slane %v2391_v2, 9 }
 0x237   : > { %v3143_v35 = vpop.f32.mrf.mxu2  ;;  %v2509_v45 = vsel %vm6139_vm15, %v2507_v3, %v2508_v62  ;;  %v2233_v30 = vrot.slane %v2232_v11, 4  ;;  %v4952_v3 = vrot.slane %v1784_v18, 9  ;;  %v5572_v62 = vld [vmem:[#allocation2 + $0x8c] sm:$0x1]  ;;  %v5363_v18 = vld [vmem:[#allocation2 + $0x84] sm:$0xff] }
 0x238   : > { %v3601_v52 = vpop.f32.mrf.mxu0  ;;  %v3177_v51 = vadd.f32 %v3143_v35, %v2954_v58  ;;  %v3750_v54 = vpop.f32.mrf.mxu1  ;;  %v6777_v35 = vld [vmem:[#allocation2 + $0x94] sm:$0xf]  ;;  %v1913_v49 = vrot.slane %v5572_v62, 5 }
 0x239   : > { %v6768_v21 = vadd.f32 %v3601_v52, %v3414_v5  ;;  %v2235_v5 = vshll.u32 %v6770_v56, 16  ;;  %v2253_v0 = vshrl.u32 %v6777_v35, 16 }
 0x23b   : > { %7244 = vst [vmem:[#allocation4_spill] sm:$0xff] %v6768_v21  ;;  %5309 = vmatmul.msk.bf16.gmra.mxu0 %vm2610_vm12, %v4361_v20  ;;  %v1971_v20 = vld [vmem:[#allocation2 + $0x90] sm:$0xf]  ;;  %v2237_v7 = vrot.slane %v2235_v5, 5 }
 0x23c   : > { %v3381_v9 = vpop.f32.mrf.mxu3  ;;  %5276 = vmatmul.msk.bf16.gmra.mxu2 %vm2610_vm12, %v5362_v43  ;;  %v1910_v43 = vrot.slane %v5571_v28, 5  ;;  %v2240_v25 = vshrl.u32 %v1971_v20, 16  ;;  %v2243_v23 = vshll.u32 %v1971_v20, 16  ;;  %v6799_v28 = vld [vmem:[%s7222_s2] ss:$0 sm:$0xff] }
 0x23d   : > { %v3415_v58 = vadd.f32 %v3381_v9, %v3177_v51  ;;  %v2506_v51 = vsel %vm6139_vm15, %v4966_v55, %v2505_v48  ;;  %v2249_v9 = vshll.u32 %v6777_v35, 16  ;;  %v4339_v55 = vunpack.c.l.b16 %v2509_v45 }
 0x23e   : > { %v4338_v48 = vunpack.c.l.b16 %v2506_v51  ;;  %v2238_v5 = vsel %vm5736_vm11, %v2233_v30, %v2237_v7  ;;  %v2242_v20 = vrot.slane %v2240_v25, 4  ;;  %v2255_v45 = vrot.slane %v2253_v0, 4 }
 0x23f   : > { %v3986_v61 = vpop.f32.mrf.mxu2  ;;  %v6794_v51 = vrot.slane %v2249_v9, 5  ;;  %v4119_v7 = vunpack.c.l.b16 %v2238_v5  ;;  %v1911_v25 = vsel %vm6139_vm15, %v4952_v3, %v1910_v43  ;;  %v6808_v9 = vld [vmem:[#allocation2 + $0x98] sm:$0x1] }
 0x240   : > { %v3603_v52 = vpop.f32.mrf.mxu0  ;;  %v3753_v29 = vpop.f32.mrf.mxu1  ;;  %v4066_v2 = vadd.f32 %v3986_v61, %v3828_v14  ;;  %v2512_v14 = vrot.slane %v6753_v38, 5  ;;  %v2392_v61 = vld [vmem:[#allocation2 + $0x84] sm:$0xe]  ;;  %v3660_v3 = vunpack.c.l.b16 %v1911_v25 }
 0x241   : > { %5293 = vmatmul.msk.bf16.gmra.mxu3 %vm2610_vm12, %v4140_v32  ;;  %v6784_v34 = vadd.f32 %v3603_v52, %v3415_v58  ;;  %v1912_v32 = vrot.slane %v1910_v43, 4  ;;  %v2228_v58 = vsel %vm5736_vm11, %v2223_v4, %v2227_v17  ;;  %v2245_v52 = vrot.slane %v2243_v23, 5 }
 0x242   : > { %v4118_v30 = vunpack.c.l.b16 %v2228_v58  ;;  %v2256_v62 = vor.u32 %v2255_v45, %v6794_v51 }
 0x243   : > { %7245 = vst [vmem:[#allocation5_spill] sm:$0xff] %v6784_v34  ;;  %5196 = vmatmul.msk.bf16.gmra.mxu1 %vm2610_vm12, %v3681_v50  ;;  %v4362_v50 = vpack.c.b16 %v4339_v55, %v4338_v48  ;;  %v1914_v23 = vsel %vm6139_vm15, %v1912_v32, %v1913_v49  ;;  %v4967_v55 = vrot.slane %v2392_v61, 9  ;;  %v2259_v32 = vshll.u32 %v6808_v9, 16 }
 0x244   : > { %v4208_v42 = vpop.f32.mrf.mxu3  ;;  %v3661_v5 = vunpack.c.l.b16 %v1914_v23  ;;  %v4141_v49 = vpack.c.b16 %v4119_v7, %v4118_v30  ;;  %v6825_v30 = vld [vmem:[#allocation2 + $0xa0] sm:$0xf] }
 0x245   : > { %v4288_v11 = vadd.f32 %v4208_v42, %v4066_v2  ;;  %v3829_v2 = vadd.f32 %v3750_v54, %v6370_v27  ;;  %v2514_v42 = vrot.slane %v2512_v14, 4  ;;  %v2515_v27 = vrot.slane %v6770_v56, 5 }
 0x246   : > { %v2246_v54 = vor.u32 %v2245_v52, %v2242_v20  ;;  %v2513_v56 = vsel %vm6139_vm15, %v4967_v55, %v2512_v14  ;;  %v1973_v20 = vld [vmem:[#allocation2 + $0x9c] sm:$0xf]  ;;  %v3830_v52 = vadd.f32 %v3753_v29, %v6375_v19  ;;  %v3682_v25 = vpack.c.b16 %v3661_v5, %v3660_v3  ;;  %v2393_v19 = vld [vmem:[#allocation2 + $0x90] sm:$0xe]  ;;  %v5573_v29 = vld [vmem:[#allocation2 + $0x94] sm:$0xf] }
 0x247   : > { %v3988_v17 = vpop.f32.mrf.mxu2  ;;  %v2516_v45 = vsel %vm6139_vm15, %v2514_v42, %v2515_v27  ;;  %v2261_v23 = vrot.slane %v2259_v32, 5  ;;  %v4340_v14 = vunpack.c.l.b16 %v2513_v56  ;;  %v2264_v55 = vshrl.u32 %v1973_v20, 16 }
 0x248   : > { %v4430_v4 = vpop.f32.mrf.mxu0  ;;  %v6802_v38 = vpop.f32.mrf.mxu1  ;;  %v4067_v48 = vadd.f32 %v3988_v17, %v3829_v2  ;;  %v2257_v2 = vrot.slane %v2256_v62, 4  ;;  %v2267_v62 = vshll.u32 %v1973_v20, 16  ;;  %v2273_v3 = vshll.u32 %v6825_v30, 16 }
 0x249   : > { %v4510_v0 = vadd.f32 %v4430_v4, %v4288_v11  ;;  %v2277_v5 = vshrl.u32 %v6825_v30, 16  ;;  %v2522_v20 = vrot.slane %v6808_v9, 5 }
 0x24a   : > { %v6843_v21 = vrot.slane %v2273_v3, 5 }
 0x24b   : > { %5310 = vmatmul.msk.bf16.gmra.mxu0 %vm2610_vm12, %v4362_v50  ;;  %v6814_v58 = vadd.f32 %v6799_v28, %v4510_v0  ;;  %v2247_v50 = vrot.slane %v2246_v54, 4  ;;  %v1785_v54 = vld [vmem:[#allocation2 + $0x90] sm:$0xe] }
 0x24c   : > { %v4210_v43 = vpop.f32.mrf.mxu3  ;;  %5277 = vmatmul.msk.bf16.gmra.mxu2 %vm2610_vm12, %v5363_v18  ;;  %v2519_v18 = vrot.slane %v6777_v35, 5 }
 0x24d   : > { %v4578_v11 = vsub.f32 0.0, %v6814_v58  ;;  %v4289_v61 = vadd.f32 %v4210_v43, %v4067_v48  ;;  %v1917_v48 = vrot.slane %v5573_v29, 5  ;;  %v4341_v43 = vunpack.c.l.b16 %v2516_v45 }
 0x24e   : > { %v2252_v35 = vsel %vm5736_vm11, %v2247_v50, %v6794_v51  ;;  %v2521_v56 = vrot.slane %v2519_v18, 4  ;;  %v5574_v51 = vld [vmem:[#allocation2 + $0x98] sm:$0x1]  ;;  %v2269_v29 = vrot.slane %v2267_v62, 5 }
 0x24f   : > { %v4610_v17 = vmul.f32 1.442695, %v4578_v11  ;;  %v3991_v4 = vpop.f32.mrf.mxu2  ;;  %v2262_v11 = vsel %vm5736_vm11, %v2257_v2, %v2261_v23  ;;  %v1919_v45 = vrot.slane %v1917_v48, 4  ;;  %v1920_v50 = vrot.slane %v5574_v51, 5  ;;  %v6851_v51 = vld [vmem:[#allocation2 + $0xa4] sm:$0x1] }
 0x250   : > { %v4432_v7 = vpop.f32.mrf.mxu0  ;;  %v6828_v0 = vpop.f32.mrf.mxu1  ;;  %v4068_v27 = vadd.f32 %v3991_v4, %v3830_v52  ;;  %v4953_v52 = vrot.slane %v1785_v54, 9  ;;  %v4120_v34 = vunpack.c.l.b16 %v2252_v35  ;;  %v3831_v23 = vadd.f32 %v6802_v38, %v6389_v46 }
 0x251   : > { %5294 = vmatmul.msk.bf16.gmra.mxu3 %vm2610_vm12, %v4141_v49  ;;  %5399 = vpow2.f32 %v4610_v17  ;;  %v4511_v42 = vadd.f32 %v4432_v7, %v4289_v61  ;;  %v4968_v61 = vrot.slane %v2393_v19, 9  ;;  %v2266_v7 = vrot.slane %v2264_v55, 4 }
 0x252   : > { %v4121_v19 = vunpack.c.l.b16 %v2262_v11  ;;  %v6855_v62 = vsel %vm6139_vm15, %v2521_v56, %v2522_v20  ;;  %v1918_v46 = vsel %vm6139_vm15, %v4953_v52, %v1917_v48  ;;  %v1921_v38 = vsel %vm6139_vm15, %v1919_v45, %v1920_v50  ;;  %v1975_v20 = vld [vmem:[#allocation2 + $0xa8] sm:$0xf] }
 0x253   : > { %v6836_v32 = vadd.f32 %v6799_v28, %v4511_v42  ;;  %5197 = vmatmul.msk.bf16.gmra.mxu1 %vm2610_vm12, %v3682_v25  ;;  %v4363_v42 = vpack.c.b16 %v4341_v43, %v4340_v14  ;;  %v2279_v25 = vrot.slane %v2277_v5, 4  ;;  %v6849_v54 = vsel %vm6139_vm15, %v4968_v61, %v2519_v18  ;;  %v5364_v14 = vld [vmem:[#allocation2 + $0x90] sm:$0xff] }
 0x254   : > { %v4213_v49 = vpop.f32.mrf.mxu3  ;;  %v2270_v3 = vor.u32 %v2269_v29, %v2266_v7  ;;  %v2283_v5 = vshll.u32 %v6851_v51, 16  ;;  %v3662_v61 = vunpack.c.l.b16 %v1918_v46  ;;  %v3663_v48 = vunpack.c.l.b16 %v1921_v38 }
 0x255   : > { %v4579_v17 = vsub.f32 0.0, %v6836_v32  ;;  %v4290_v4 = vadd.f32 %v4213_v49, %v4068_v27  ;;  %v2526_v56 = vrot.slane %v6825_v30, 5  ;;  %v4142_v52 = vpack.c.b16 %v4121_v19, %v4120_v34 }
 0x256   : > { %v4342_v45 = vunpack.c.l.b16 %v6849_v54  ;;  %v4343_v50 = vunpack.c.l.b16 %v6855_v62  ;;  %v3832_v29 = vadd.f32 %v6828_v0, %v6393_v24  ;;  %v2285_v30 = vrot.slane %v2283_v5, 5 }
 0x257   : > { %v5400_v22 = vpop.eup %5399  ;;  %v4612_v2 = vmul.f32 1.442695, %v4579_v17  ;;  %v3993_v9 = vpop.f32.mrf.mxu2  ;;  %v2394_v17 = vld [vmem:[#allocation2 + $0x9c] sm:$0xe]  ;;  %v3683_v54 = vpack.c.b16 %v3663_v48, %v3662_v61  ;;  %v2529_v0 = vrot.slane %v6851_v51, 5 }
 0x258   : > { %v4674_v55 = vadd.f32 1.0, %v5400_v22  ;;  %v4435_v27 = vpop.f32.mrf.mxu0  ;;  %v6857_v43 = vpop.f32.mrf.mxu1  ;;  %v4069_v35 = vadd.f32 %v3993_v9, %v3831_v23  ;;  %v2280_v22 = vor.u32 %v2279_v25, %v6843_v21  ;;  %v6876_v25 = vld [vmem:[#allocation2 + $0xac] sm:$0xf]  ;;  %v2288_v23 = vshrl.u32 %v1975_v20, 16  ;;  %v1786_v61 = vld [vmem:[#allocation2 + $0x9c] sm:$0xe] }
 0x259   : > { %5401 = vpow2.f32 %v4612_v2  ;;  %v4512_v18 = vadd.f32 %v4435_v27, %v4290_v4  ;;  %v2291_v9 = vshll.u32 %v1975_v20, 16  ;;  %v4969_v27 = vrot.slane %v2394_v17, 9 }
 0x25a   : > { %5403 = vrcp.f32 %v4674_v55  ;;  %v2281_v2 = vrot.slane %v2280_v22, 4  ;;  %v2290_v48 = vrot.slane %v2288_v23, 4  ;;  %v2301_v20 = vshrl.u32 %v6876_v25, 16 }
 0x25b   : > { %5311 = vmatmul.msk.bf16.gmra.mxu0 %vm2610_vm12, %v4363_v42  ;;  %v6867_v49 = vadd.f32 %v6799_v28, %v4512_v18  ;;  %v2271_v42 = vrot.slane %v2270_v3, 4  ;;  %v5575_v18 = vld [vmem:[#allocation2 + $0xa0] sm:$0xf]  ;;  %v2297_v3 = vshll.u32 %v6876_v25, 16  ;;  %v2293_v51 = vrot.slane %v2291_v9, 5 }
 0x25c   : > { %v4215_v11 = vpop.f32.mrf.mxu3  ;;  %5278 = vmatmul.msk.bf16.gmra.mxu2 %vm2610_vm12, %v5364_v14  ;;  %v2528_v14 = vrot.slane %v2526_v56, 4  ;;  %v4954_v23 = vrot.slane %v1786_v61, 9 }
 0x25d   : > { %v4580_v4 = vsub.f32 0.0, %v6867_v49  ;;  %v4291_v7 = vadd.f32 %v4215_v11, %v4069_v35  ;;  %v1924_v35 = vrot.slane %v5575_v18, 5 }
 0x25f   : > { %v5402_v55 = vpop.eup %5401  ;;  %v4614_v34 = vmul.f32 1.442695, %v4580_v4  ;;  %v3996_v19 = vpop.f32.mrf.mxu2  ;;  %v2276_v4 = vsel %vm5736_vm11, %v2271_v42, %v6843_v21  ;;  %v1926_v9 = vrot.slane %v1924_v35, 4  ;;  %v2294_v42 = vor.u32 %v2293_v51, %v2290_v48 }
 0x260   : > { %v5404_v62 = vpop.eup %5403  ;;  %v4675_v46 = vadd.f32 1.0, %v5402_v55  ;;  %v4437_v38 = vpop.f32.mrf.mxu0  ;;  %v4070_v11 = vadd.f32 %v3996_v19, %v3832_v29  ;;  %v2527_v29 = vsel %vm6139_vm15, %v4969_v27, %v2526_v56  ;;  %v5576_v55 = vld [vmem:[#allocation2 + $0xa4] sm:$0x1]  ;;  %v4122_v21 = vunpack.c.l.b16 %v2276_v4  ;;  %v7246_v27 = vld [vmem:[#allocation6_spill] sm:$0xff] }
 0x261   : > { %5295 = vmatmul.msk.bf16.gmra.mxu3 %vm2610_vm12, %v4142_v52  ;;  %v6879_v24 = vpop.f32.mrf.mxu1  ;;  %v4738_v22 = vmul.f32 %v5404_v62, %v6814_v58  ;;  %5405 = vpow2.f32 %v4614_v34  ;;  %v4513_v5 = vadd.f32 %v4437_v38, %v4291_v7  ;;  %v2286_v7 = vsel %vm5736_vm11, %v2281_v2, %v2285_v30 }
 0x262   : > { %5407 = vrcp.f32 %v4675_v46  ;;  %v1927_v34 = vrot.slane %v5576_v55, 5  ;;  %v4364_v62 = vpack.c.b16 %v4343_v50, %v4342_v45  ;;  %v2530_v46 = vsel %vm6139_vm15, %v2528_v14, %v2529_v0 }
 0x263   : > { %v4770_v52 = vpack.c.bf16 %v4738_v22, %v4738_v22  ;;  %v6893_v17 = vadd.f32 %v6799_v28, %v4513_v5  ;;  %5198 = vmatmul.msk.bf16.gmra.mxu1 %vm2610_vm12, %v3683_v54  ;;  %v6908_v38 = vrot.slane %v2297_v3, 5  ;;  %v2303_v2 = vrot.slane %v2301_v20, 4 }
 0x264   : > { %v4218_v58 = vpop.f32.mrf.mxu3  ;;  %v3833_v18 = vadd.f32 %v6857_v43, %v7246_v27  ;;  %v4123_v5 = vunpack.c.l.b16 %v2286_v7  ;;  %v4344_v61 = vunpack.c.l.b16 %v2527_v29  ;;  %v4345_v14 = vunpack.c.l.b16 %v2530_v46 }
 0x265   : > { %4802 = vst.msk [vmem:[%s6889_s20] sm:$0xf] %vm196_vm1, %v4770_v52  ;;  %v4581_v19 = vsub.f32 0.0, %v6893_v17  ;;  %v4292_v54 = vadd.f32 %v4218_v58, %v4070_v11  ;;  %v6912_v52 = vld [vmem:[#allocation2 + $0xb0] sm:$0x1]  ;;  %v5365_v58 = vld [vmem:[#allocation2 + $0x9c] sm:$0xff]  ;;  %v1925_v3 = vsel %vm6139_vm15, %v4954_v23, %v1924_v35  ;;  %v1928_v48 = vsel %vm6139_vm15, %v1926_v9, %v1927_v34 }
 0x266   : > { %v2295_v4 = vrot.slane %v2294_v42, 4  ;;  %v2304_v7 = vor.u32 %v2303_v2, %v6908_v38  ;;  %v2307_v29 = vshll.u32 %v6912_v52, 16  ;;  %v3664_v9 = vunpack.c.l.b16 %v1925_v3  ;;  %v1977_v42 = vld [vmem:[#allocation2 + $0xb4] sm:$0xf]  ;;  %v7247_v2 = vld [vmem:[#allocation7_spill] sm:$0xff] }
 0x267   : > { %v5406_v30 = vpop.eup %5405  ;;  %v4616_v56 = vmul.f32 1.442695, %v4581_v19  ;;  %v3998_v22 = vpop.f32.mrf.mxu2  ;;  %v3665_v34 = vunpack.c.l.b16 %v1928_v48  ;;  %v2395_v19 = vld [vmem:[#allocation2 + $0xa8] sm:$0xe] }
 0x268   : > { %v5408_v45 = vpop.eup %5407  ;;  %v4676_v50 = vadd.f32 1.0, %v5406_v30  ;;  %v4440_v11 = vpop.f32.mrf.mxu0  ;;  %v4071_v20 = vadd.f32 %v3998_v22, %v3833_v18  ;;  %v3834_v30 = vadd.f32 %v6879_v24, %v7247_v2  ;;  %v2305_v27 = vrot.slane %v2304_v7, 4  ;;  %v1787_v7 = vld [vmem:[#allocation2 + $0xa8] sm:$0xe] }
 0x269   : > { %v6914_v0 = vpop.f32.mrf.mxu1  ;;  %v4739_v43 = vmul.f32 %v5408_v45, %v6836_v32  ;;  %5409 = vpow2.f32 %v4616_v56  ;;  %v4514_v51 = vadd.f32 %v4440_v11, %v4292_v54  ;;  %v4143_v32 = vpack.c.b16 %v4123_v5, %v4122_v21  ;;  %v6939_v11 = vld [vmem:[#allocation2 + $0xb8] sm:$0xf] }
 0x26a   : > { %5411 = vrcp.f32 %v4676_v50  ;;  %v2300_v56 = vsel %vm5736_vm11, %v2295_v4, %v6908_v38  ;;  %v3684_v5 = vpack.c.b16 %v3665_v34, %v3664_v9  ;;  %v2309_v45 = vrot.slane %v2307_v29, 5 }
 0x26b   : > { %v4771_v55 = vpack.c.bf16 %v4739_v43, %v4739_v43  ;;  %5312 = vmatmul.msk.bf16.gmra.mxu0 %vm2610_vm12, %v4364_v62  ;;  %v6925_v35 = vadd.f32 %v6799_v28, %v4514_v51  ;;  %v6933_v62 = vpack.c.b16 %v4345_v14, %v4344_v61  ;;  %v2533_v50 = vrot.slane %v6876_v25, 5  ;;  %v5577_v14 = vld [vmem:[#allocation2 + $0xac] sm:$0xf] }
 0x26c   : > { %v4220_v23 = vpop.f32.mrf.mxu3  ;;  %5279 = vmatmul.msk.bf16.gmra.mxu2 %vm2610_vm12, %v5365_v58  ;;  %v4970_v61 = vrot.slane %v2395_v19, 9  ;;  %v1931_v38 = vrot.slane %v5577_v14, 5  ;;  %v2312_v43 = vshrl.u32 %v1977_v42, 16  ;;  %v2315_v25 = vshll.u32 %v1977_v42, 16  ;;  %v5578_v42 = vld [vmem:[#allocation2 + $0xb0] sm:$0x1] }
 0x26d   : > { %4803 = vst.msk [vmem:[%s6889_s20 + $0x4] sm:$0xf] %vm196_vm1, %v4771_v55  ;;  %v4582_v54 = vsub.f32 0.0, %v6925_v35  ;;  %v4293_v46 = vadd.f32 %v4220_v23, %v4071_v20  ;;  %v2321_v29 = vshll.u32 %v6939_v11, 16  ;;  %v2325_v55 = vshrl.u32 %v6939_v11, 16 }
 0x26e   : > { %v2310_v19 = vsel %vm5736_vm11, %v2305_v27, %v2309_v45  ;;  %v1934_v2 = vrot.slane %v5578_v42, 5  ;;  %v7248_v45 = vld [vmem:[#allocation8_spill] sm:$0xff] }
 0x26f   : > { %v5410_v18 = vpop.eup %5409  ;;  %v4618_v22 = vmul.f32 1.442695, %v4582_v54  ;;  %v4001_v21 = vpop.f32.mrf.mxu2  ;;  %v4955_v54 = vrot.slane %v1787_v7, 9  ;;  %v3835_v14 = vadd.f32 %v6914_v0, %v7248_v45 }
 0x270   : > { %v5412_v58 = vpop.eup %5411  ;;  %v4677_v3 = vadd.f32 1.0, %v5410_v18  ;;  %v4442_v48 = vpop.f32.mrf.mxu0  ;;  %v4072_v4 = vadd.f32 %v4001_v21, %v3834_v30  ;;  %v2534_v21 = vsel %vm6139_vm15, %v4970_v61, %v2533_v50 }
 0x271   : > { %5296 = vmatmul.msk.bf16.gmra.mxu3 %vm2610_vm12, %v4143_v32  ;;  %v6942_v24 = vpop.f32.mrf.mxu1  ;;  %v4740_v51 = vmul.f32 %v5412_v58, %v6867_v49  ;;  %5413 = vpow2.f32 %v4618_v22  ;;  %v4515_v20 = vadd.f32 %v4442_v48, %v4293_v46  ;;  %v2535_v32 = vrot.slane %v2533_v50, 4 }
 0x272   : > { %5415 = vrcp.f32 %v4677_v3  ;;  %v2536_v49 = vrot.slane %v6912_v52, 5  ;;  %v1933_v46 = vrot.slane %v1931_v38, 4  ;;  %v4124_v22 = vunpack.c.l.b16 %v2300_v56 }
 0x273   : > { %v4772_v23 = vpack.c.bf16 %v4740_v51, %v4740_v51  ;;  %v6948_v9 = vadd.f32 %v6799_v28, %v4515_v20  ;;  %5199 = vmatmul.msk.bf16.gmra.mxu1 %vm2610_vm12, %v3684_v5  ;;  %v2314_v5 = vrot.slane %v2312_v43, 4  ;;  %v2317_v58 = vrot.slane %v2315_v25, 5 }
 0x274   : > { %v4223_v34 = vpop.f32.mrf.mxu3  ;;  %v6959_v3 = vrot.slane %v2321_v29, 5  ;;  %v2327_v52 = vrot.slane %v2325_v55, 4  ;;  %v4125_v20 = vunpack.c.l.b16 %v2310_v19  ;;  %v2537_v7 = vsel %vm6139_vm15, %v2535_v32, %v2536_v49  ;;  %v6972_v32 = vld [vmem:[#allocation2 + $0xbc] sm:$0x1] }
 0x275   : > { %4804 = vst.msk [vmem:[%s6889_s20 + $0x8] sm:$0xf] %vm196_vm1, %v4772_v23  ;;  %v4583_v30 = vsub.f32 0.0, %v6948_v9  ;;  %v4294_v18 = vadd.f32 %v4223_v34, %v4072_v4  ;;  %v5366_v34 = vld [vmem:[#allocation2 + $0xa8] sm:$0xff]  ;;  %v4346_v50 = vunpack.c.l.b16 %v2534_v21  ;;  %v1932_v43 = vsel %vm6139_vm15, %v4955_v54, %v1931_v38 }
 0x276   : > { %v1935_v25 = vsel %vm6139_vm15, %v1933_v46, %v1934_v2  ;;  %v4347_v49 = vunpack.c.l.b16 %v2537_v7  ;;  %v2318_v19 = vor.u32 %v2317_v58, %v2314_v5  ;;  %v2328_v42 = vor.u32 %v2327_v52, %v6959_v3  ;;  %v1979_v58 = vld [vmem:[#allocation2 + $0xc0] sm:$0xf] }
 0x277   : > { %v5414_v48 = vpop.eup %5413  ;;  %v4620_v27 = vmul.f32 1.442695, %v4583_v30  ;;  %v4003_v51 = vpop.f32.mrf.mxu2  ;;  %v3667_v46 = vunpack.c.l.b16 %v1935_v25  ;;  %v4144_v2 = vpack.c.b16 %v4125_v20, %v4124_v22  ;;  %v6989_v22 = vld [vmem:[#allocation2 + $0xc4] sm:$0xf] }
 0x278   : > { %v5416_v4 = vpop.eup %5415  ;;  %v4678_v56 = vadd.f32 1.0, %v5414_v48  ;;  %v4445_v23 = vpop.f32.mrf.mxu0  ;;  %v4073_v55 = vadd.f32 %v4003_v51, %v3835_v14  ;;  %v6987_v52 = vpack.c.b16 %v4347_v49, %v4346_v50  ;;  %v2319_v51 = vrot.slane %v2318_v19, 4 }
 0x279   : > { %v6965_v61 = vpop.f32.mrf.mxu1  ;;  %v4741_v0 = vmul.f32 %v5416_v4, %v6893_v17  ;;  %5417 = vpow2.f32 %v4620_v27  ;;  %v4516_v29 = vadd.f32 %v4445_v23, %v4294_v18  ;;  %v3666_v17 = vunpack.c.l.b16 %v1932_v43  ;;  %v5579_v43 = vld [vmem:[#allocation2 + $0xb8] sm:$0xf] }
 0x27a   : > { %5419 = vrcp.f32 %v4678_v56  ;;  %v2331_v18 = vshll.u32 %v6972_v32, 16  ;;  %v2329_v7 = vrot.slane %v2328_v42, 4  ;;  %v2339_v49 = vshll.u32 %v1979_v58, 16 }
 0x27b   : > { %v4773_v30 = vpack.c.bf16 %v4741_v0, %v4741_v0  ;;  %5313 = vmatmul.msk.bf16.gmra.mxu0 %vm2610_vm12, %v6933_v62  ;;  %v6978_v38 = vadd.f32 %v6799_v28, %v4516_v29  ;;  %v3836_v62 = vadd.f32 %v6942_v24, %v6436_v63  ;;  %v3685_v14 = vpack.c.b16 %v3667_v46, %v3666_v17  ;;  %v1788_v29 = vld [vmem:[#allocation2 + $0xb4] sm:$0xe] }
 0x27c   : > { %v4225_v54 = vpop.f32.mrf.mxu3  ;;  %5280 = vmatmul.msk.bf16.gmra.mxu2 %vm2610_vm12, %v5366_v34  ;;  %v2333_v34 = vrot.slane %v2331_v18, 5  ;;  %v1938_v63 = vrot.slane %v5579_v43, 5  ;;  %v2336_v24 = vshrl.u32 %v1979_v58, 16  ;;  %v2345_v19 = vshll.u32 %v6989_v22, 16 }
 0x27d   : > { %4805 = vst.msk [vmem:[%s6889_s20 + $0xc] sm:$0xf] %vm196_vm1, %v4773_v30  ;;  %v4584_v21 = vsub.f32 0.0, %v6978_v38  ;;  %v4295_v5 = vadd.f32 %v4225_v54, %v4073_v55  ;;  %v2396_v55 = vld [vmem:[#allocation2 + $0xb4] sm:$0xe]  ;;  %v2349_v42 = vshrl.u32 %v6989_v22, 16 }
 0x27e   : > { %v2540_v46 = vrot.slane %v6939_v11, 5  ;;  %v4956_v18 = vrot.slane %v1788_v29, 9 }
 0x27f   : > { %v5418_v48 = vpop.eup %5417  ;;  %v4622_v27 = vmul.f32 1.442695, %v4584_v21  ;;  %v4006_v45 = vpop.f32.mrf.mxu2  ;;  %v1940_v21 = vrot.slane %v1938_v63, 4  ;;  %v2351_v11 = vrot.slane %v2349_v42, 4 }
 0x280   : > { %v5420_v20 = vpop.eup %5419  ;;  %v4679_v4 = vadd.f32 1.0, %v5418_v48  ;;  %v4447_v56 = vpop.f32.mrf.mxu0  ;;  %v4074_v0 = vadd.f32 %v4006_v45, %v3836_v62  ;;  %v2543_v45 = vrot.slane %v6972_v32, 5  ;;  %v2542_v32 = vrot.slane %v2540_v46, 4 }
 0x281   : > { %5297 = vmatmul.msk.bf16.gmra.mxu3 %vm2610_vm12, %v4144_v2  ;;  %v6992_v23 = vpop.f32.mrf.mxu1  ;;  %v4742_v50 = vmul.f32 %v5420_v20, %v6925_v35  ;;  %5421 = vpow2.f32 %v4622_v27  ;;  %v4517_v25 = vadd.f32 %v4447_v56, %v4295_v5  ;;  %v2324_v35 = vsel %vm5736_vm11, %v2319_v51, %v6959_v3  ;;  %v5580_v5 = vld [vmem:[#allocation2 + $0xbc] sm:$0x1] }
 0x282   : > { %5423 = vrcp.f32 %v4679_v4  ;;  %v2334_v2 = vsel %vm5736_vm11, %v2329_v7, %v2333_v34  ;;  %v1941_v58 = vrot.slane %v5580_v5, 5  ;;  %v4971_v27 = vrot.slane %v2396_v55, 9  ;;  %v5367_v55 = vld [vmem:[#allocation2 + $0xb4] sm:$0xff] }
 0x283   : > { %v4774_v30 = vpack.c.bf16 %v4742_v50, %v4742_v50  ;;  %v6998_v54 = vadd.f32 %v6799_v28, %v4517_v25  ;;  %5200 = vmatmul.msk.bf16.gmra.mxu1 %vm2610_vm12, %v3685_v14  ;;  %v2338_v14 = vrot.slane %v2336_v24, 4  ;;  %v2341_v20 = vrot.slane %v2339_v49, 5  ;;  %v7015_v50 = vld [vmem:[#allocation2 + $0xc8] sm:$0x1] }
 0x284   : > { %v4228_v17 = vpop.f32.mrf.mxu3  ;;  %v7011_v3 = vrot.slane %v2345_v19, 5  ;;  %v3837_v7 = vadd.f32 %v6965_v61, %v6457_v40  ;;  %v4126_v34 = vunpack.c.l.b16 %v2324_v35  ;;  %v4127_v43 = vunpack.c.l.b16 %v2334_v2 }
 0x285   : > { %4806 = vst.msk [vmem:[%s6889_s20 + $0x10] sm:$0xf] %vm196_vm1, %v4774_v30  ;;  %v4585_v62 = vsub.f32 0.0, %v6998_v54  ;;  %v4296_v48 = vadd.f32 %v4228_v17, %v4074_v0  ;;  %v1939_v49 = vsel %vm6139_vm15, %v4956_v18, %v1938_v63  ;;  %v1942_v19 = vsel %vm6139_vm15, %v1940_v21, %v1941_v58 }
 0x286   : > { %v2342_v30 = vor.u32 %v2341_v20, %v2338_v14  ;;  %v2352_v17 = vor.u32 %v2351_v11, %v7011_v3  ;;  %v2355_v35 = vshll.u32 %v7015_v50, 16  ;;  %v3668_v21 = vunpack.c.l.b16 %v1939_v49  ;;  %v7044_v49 = vld [vmem:[#allocation2 + $0xd0] sm:$0xf] }
 0x287   : > { %v5422_v51 = vpop.eup %5421  ;;  %v4624_v4 = vmul.f32 1.442695, %v4585_v62  ;;  %v4008_v56 = vpop.f32.mrf.mxu2  ;;  %v4145_v5 = vpack.c.b16 %v4127_v43, %v4126_v34  ;;  %v1981_v43 = vld [vmem:[#allocation2 + $0xcc] sm:$0xf] }
 0x288   : > { %v5424_v25 = vpop.eup %5423  ;;  %v4680_v0 = vadd.f32 1.0, %v5422_v51  ;;  %v4450_v29 = vpop.f32.mrf.mxu0  ;;  %v4075_v42 = vadd.f32 %v4008_v56, %v3837_v7  ;;  %v2343_v14 = vrot.slane %v2342_v30, 4  ;;  %v2353_v20 = vrot.slane %v2352_v17, 4 }
 0x289   : > { %v7017_v24 = vpop.f32.mrf.mxu1  ;;  %v4743_v40 = vmul.f32 %v5424_v25, %v6948_v9  ;;  %5425 = vpow2.f32 %v4624_v4  ;;  %v4518_v61 = vadd.f32 %v4450_v29, %v4296_v48  ;;  %v3669_v9 = vunpack.c.l.b16 %v1942_v19 }
 0x28a   : > { %5427 = vrcp.f32 %v4680_v0  ;;  %v2541_v48 = vsel %vm6139_vm15, %v4971_v27, %v2540_v46  ;;  %v2357_v11 = vrot.slane %v2355_v35, 5  ;;  %v3838_v7 = vadd.f32 %v6992_v23, %v6463_v10 }
 0x28b   : > { %v4775_v2 = vpack.c.bf16 %v4743_v40, %v4743_v40  ;;  %5314 = vmatmul.msk.bf16.gmra.mxu0 %vm2610_vm12, %v6987_v52  ;;  %v7029_v63 = vadd.f32 %v6799_v28, %v4518_v61  ;;  %v2544_v52 = vsel %vm6139_vm15, %v2542_v32, %v2543_v45  ;;  %v3686_v34 = vpack.c.b16 %v3669_v9, %v3668_v21  ;;  %v5581_v45 = vld [vmem:[#allocation2 + $0xc4] sm:$0xf]  ;;  %v1789_v40 = vld [vmem:[#allocation2 + $0xc0] sm:$0xe] }
 0x28c   : > { %v4230_v18 = vpop.f32.mrf.mxu3  ;;  %5281 = vmatmul.msk.bf16.gmra.mxu2 %vm2610_vm12, %v5367_v55  ;;  %v4348_v46 = vunpack.c.l.b16 %v2541_v48  ;;  %v4349_v27 = vunpack.c.l.b16 %v2544_v52  ;;  %v1945_v32 = vrot.slane %v5581_v45, 5  ;;  %v2348_v61 = vsel %vm5736_vm11, %v2343_v14, %v7011_v3 }
 0x28d   : > { %4807 = vst.msk [vmem:[%s6889_s20 + $0x14] sm:$0xf] %vm196_vm1, %v4775_v2  ;;  %v4586_v58 = vsub.f32 0.0, %v7029_v63  ;;  %v4297_v62 = vadd.f32 %v4230_v18, %v4075_v42  ;;  %v2358_v42 = vsel %vm5736_vm11, %v2353_v20, %v2357_v11  ;;  %v2360_v30 = vshrl.u32 %v1981_v43, 16 }
 0x28e   : > { %v2369_v18 = vshll.u32 %v7044_v49, 16  ;;  %v4957_v21 = vrot.slane %v1789_v40, 9  ;;  %v1947_v9 = vrot.slane %v1945_v32, 4  ;;  %v2373_v3 = vshrl.u32 %v7044_v49, 16 }
 0x28f   : > { %v5426_v51 = vpop.eup %5425  ;;  %v4626_v4 = vmul.f32 1.442695, %v4586_v58  ;;  %v4011_v56 = vpop.f32.mrf.mxu2  ;;  %v4367_v48 = vpack.c.b16 %v4349_v27, %v4348_v46  ;;  %v3839_v14 = vadd.f32 %v7017_v24, %v6477_v37  ;;  %v4128_v20 = vunpack.c.l.b16 %v2348_v61  ;;  %v5368_v46 = vld [vmem:[#allocation2 + $0xc0] sm:$0xff]  ;;  %v7071_v61 = vld [vmem:[#allocation2 + $0xd4] sm:$0x1] }
 0x290   : > { %v5428_v25 = vpop.eup %5427  ;;  %v4681_v0 = vadd.f32 1.0, %v5426_v51  ;;  %v4452_v29 = vpop.f32.mrf.mxu0  ;;  %v4076_v23 = vadd.f32 %v4011_v56, %v3838_v7  ;;  %v4129_v11 = vunpack.c.l.b16 %v2358_v42  ;;  %v2397_v51 = vld [vmem:[#allocation2 + $0xc0] sm:$0xe]  ;;  %v1946_v37 = vsel %vm6139_vm15, %v4957_v21, %v1945_v32 }
 0x291   : > { %5298 = vmatmul.msk.bf16.gmra.mxu3 %vm2610_vm12, %v4145_v5  ;;  %v7042_v55 = vpop.f32.mrf.mxu1  ;;  %v4744_v19 = vmul.f32 %v5428_v25, %v6978_v38  ;;  %5429 = vpow2.f32 %v4626_v4  ;;  %v4519_v10 = vadd.f32 %v4452_v29, %v4297_v62  ;;  %v2363_v38 = vshll.u32 %v1981_v43, 16  ;;  %v5582_v5 = vld [vmem:[#allocation2 + $0xc8] sm:$0x1] }
 0x292   : > { %5431 = vrcp.f32 %v4681_v0  ;;  %v1948_v58 = vrot.slane %v5582_v5, 5  ;;  %v2547_v4 = vrot.slane %v6989_v22, 5  ;;  %v2362_v43 = vrot.slane %v2360_v30, 4 }
 0x293   : > { %v4776_v17 = vpack.c.bf16 %v4744_v19, %v4744_v19  ;;  %v7053_v35 = vadd.f32 %v6799_v28, %v4519_v10  ;;  %5201 = vmatmul.msk.bf16.gmra.mxu1 %vm2610_vm12, %v3686_v34  ;;  %v2365_v25 = vrot.slane %v2363_v38, 5  ;;  %v7064_v0 = vrot.slane %v2369_v18, 5 }
 0x294   : > { %v4233_v2 = vpop.f32.mrf.mxu3  ;;  %v1949_v24 = vsel %vm6139_vm15, %v1947_v9, %v1948_v58  ;;  %v2375_v10 = vrot.slane %v2373_v3, 4  ;;  %v4972_v42 = vrot.slane %v2397_v51, 9  ;;  %v2549_v30 = vrot.slane %v2547_v4, 4 }
 0x295   : > { %4808 = vst.msk [vmem:[%s6889_s20 + $0x18] sm:$0xf] %vm196_vm1, %v4776_v17  ;;  %v4587_v62 = vsub.f32 0.0, %v7053_v35  ;;  %v4298_v52 = vadd.f32 %v4233_v2, %v4076_v23  ;;  %v2550_v17 = vrot.slane %v7015_v50, 5  ;;  %v3670_v18 = vunpack.c.l.b16 %v1946_v37 }
 0x296   : > { %v4146_v21 = vpack.c.b16 %v4129_v11, %v4128_v20  ;;  %v2366_v9 = vor.u32 %v2365_v25, %v2362_v43  ;;  %v2376_v5 = vor.u32 %v2375_v10, %v7064_v0  ;;  %v2379_v58 = vshll.u32 %v7071_v61, 16 }
 0x297   : > { %v5430_v7 = vpop.eup %5429  ;;  %v4628_v56 = vmul.f32 1.442695, %v4587_v62  ;;  %v4013_v34 = vpop.f32.mrf.mxu2  ;;  %v2548_v62 = vsel %vm6139_vm15, %v4972_v42, %v2547_v4  ;;  %v2551_v20 = vsel %vm6139_vm15, %v2549_v30, %v2550_v17 }
 0x298   : > { %v5432_v29 = vpop.eup %5431  ;;  %v4682_v45 = vadd.f32 1.0, %v5430_v7  ;;  %v4455_v19 = vpop.f32.mrf.mxu0  ;;  %v4077_v40 = vadd.f32 %v4013_v34, %v3839_v14  ;;  %v3840_v14 = vadd.f32 %v7042_v55, %v6490_v16  ;;  %v2367_v25 = vrot.slane %v2366_v9, 4  ;;  %v5369_v9 = vld [vmem:[#allocation2 + $0xcc] sm:$0xff] }
 0x299   : > { %v3780_v27 = vpop.f32.mrf.mxu1  ;;  %v4745_v22 = vmul.f32 %v5432_v29, %v6998_v54  ;;  %5433 = vpow2.f32 %v4628_v56  ;;  %v4520_v23 = vadd.f32 %v4455_v19, %v4298_v52  ;;  %v3671_v54 = vunpack.c.l.b16 %v1949_v24 }
 0x29a   : > { %5435 = vrcp.f32 %v4682_v45  ;;  %v2377_v29 = vrot.slane %v2376_v5, 4  ;;  %v2381_v4 = vrot.slane %v2379_v58, 5  ;;  %v4350_v37 = vunpack.c.l.b16 %v2548_v62 }
 0x29b   : > { %v4777_v2 = vpack.c.bf16 %v4745_v22, %v4745_v22  ;;  %5315 = vmatmul.msk.bf16.gmra.mxu0 %vm2610_vm12, %v4367_v48  ;;  %v7076_v32 = vadd.f32 %v6799_v28, %v4520_v23  ;;  %v3687_v51 = vpack.c.b16 %v3671_v54, %v3670_v18  ;;  %v4351_v24 = vunpack.c.l.b16 %v2551_v20 }
 0x29c   : > { %v4235_v38 = vpop.f32.mrf.mxu3  ;;  %5282 = vmatmul.msk.bf16.gmra.mxu2 %vm2610_vm12, %v5368_v46 }
 0x29d   : > { %4809 = vst.msk [vmem:[%s6889_s20 + $0x1c] sm:$0xf] %vm196_vm1, %v4777_v2  ;;  %v4588_v50 = vsub.f32 0.0, %v7076_v32  ;;  %v4299_v3 = vadd.f32 %v4235_v38, %v4077_v40  ;;  %v2382_v40 = vsel %vm5736_vm11, %v2377_v29, %v2381_v4  ;;  %v4368_v17 = vpack.c.b16 %v4351_v24, %v4350_v37 }
 0x29e   : > { %v3841_v2 = vadd.f32 %v3780_v27, %v6505_v31  ;;  %v4131_v58 = vunpack.c.l.b16 %v2382_v40 }
 0x29f   : > { %v5434_v48 = vpop.eup %5433  ;;  %v4630_v52 = vmul.f32 1.442695, %v4588_v50  ;;  %v4016_v11 = vpop.f32.mrf.mxu2  ;;  %v2554_v50 = vrot.slane %v7044_v49, 5 }
 0x2a0   : > { %v5436_v7 = vpop.eup %5435  ;;  %v4683_v56 = vadd.f32 1.0, %v5434_v48  ;;  %v4457_v34 = vpop.f32.mrf.mxu0  ;;  %v4078_v16 = vadd.f32 %v4016_v11, %v3840_v14  ;;  %v2398_v48 = vld [vmem:[#allocation2 + $0xcc] sm:$0xe]  ;;  %v2557_v11 = vrot.slane %v7071_v61, 5 }
 0x2a1   : > { %5299 = vmatmul.msk.bf16.gmra.mxu3 %vm2610_vm12, %v4146_v21  ;;  %v3783_v43 = vpop.f32.mrf.mxu1  ;;  %v4746_v45 = vmul.f32 %v5436_v7, %v7029_v63  ;;  %5437 = vpow2.f32 %v4630_v52  ;;  %v4521_v19 = vadd.f32 %v4457_v34, %v4299_v3  ;;  %v2372_v63 = vsel %vm5736_vm11, %v2367_v25, %v7064_v0 }
 0x2a2   : > { %5439 = vrcp.f32 %v4683_v56  ;;  %v4130_v5 = vunpack.c.l.b16 %v2372_v63  ;;  %v4973_v49 = vrot.slane %v2398_v48, 9  ;;  %v2556_v20 = vrot.slane %v2554_v50, 4 }
 0x2a3   : > { %v4778_v55 = vpack.c.bf16 %v4746_v45, %v4746_v45  ;;  %v7093_v46 = vadd.f32 %v6799_v28, %v4521_v19  ;;  %5202 = vmatmul.msk.bf16.gmra.mxu1 %vm2610_vm12, %v3687_v51  ;;  %v3842_v34 = vadd.f32 %v3783_v43, %v6522_v13  ;;  %v7126_v43 = vld [vmem:[%s7222_s2] ss:$0 sm:$0xff] }
 0x2a4   : > { %v4238_v10 = vpop.f32.mrf.mxu3  ;;  %v4147_v14 = vpack.c.b16 %v4131_v58, %v4130_v5  ;;  %v2555_v45 = vsel %vm6139_vm15, %v4973_v49, %v2554_v50  ;;  %v2558_v61 = vsel %vm6139_vm15, %v2556_v20, %v2557_v11 }
 0x2a5   : > { %4810 = vst.msk [vmem:[%s6889_s20 + $0x20] sm:$0xf] %vm196_vm1, %v4778_v55  ;;  %v4589_v22 = vsub.f32 0.0, %v7093_v46  ;;  %v4300_v23 = vadd.f32 %v4238_v10, %v4078_v16  ;;  %v4352_v10 = vunpack.c.l.b16 %v2555_v45 }
 0x2a7   : > { %v5438_v42 = vpop.eup %5437  ;;  %v4632_v30 = vmul.f32 1.442695, %v4589_v22  ;;  %v4018_v38 = vpop.f32.mrf.mxu2  ;;  %v4353_v22 = vunpack.c.l.b16 %v2558_v61 }
 0x2a8   : > { %v5440_v18 = vpop.eup %5439  ;;  %v4684_v54 = vadd.f32 1.0, %v5438_v42  ;;  %v4460_v21 = vpop.f32.mrf.mxu0  ;;  %v4079_v62 = vadd.f32 %v4018_v38, %v3841_v2 }
 0x2a9   : > { %v3785_v3 = vpop.f32.mrf.mxu1  ;;  %v4747_v0 = vmul.f32 %v5440_v18, %v7053_v35  ;;  %5441 = vpow2.f32 %v4632_v30  ;;  %v4522_v36 = vadd.f32 %v4460_v21, %v4300_v23  ;;  %v4369_v42 = vpack.c.b16 %v4353_v22, %v4352_v10 }
 0x2aa   : > { %5443 = vrcp.f32 %v4684_v54  ;;  %v3843_v30 = vadd.f32 %v3785_v3, %v6534_v39 }
 0x2ab   : > { %v4779_v52 = vpack.c.bf16 %v4747_v0, %v4747_v0  ;;  %5316 = vmatmul.msk.bf16.gmra.mxu0 %vm2610_vm12, %v4368_v17  ;;  %v7109_v31 = vadd.f32 %v6799_v28, %v4522_v36 }
 0x2ac   : > { %v4240_v27 = vpop.f32.mrf.mxu3  ;;  %5283 = vmatmul.msk.bf16.gmra.mxu2 %vm2610_vm12, %v5369_v9 }
 0x2ad   : > { %4811 = vst.msk [vmem:[%s6889_s20 + $0x24] sm:$0xf] %vm196_vm1, %v4779_v52  ;;  %v4590_v35 = vsub.f32 0.0, %v7109_v31  ;;  %v4301_v51 = vadd.f32 %v4240_v27, %v4079_v62 }
 0x2af   : > { %v5442_v7 = vpop.eup %5441  ;;  %v4634_v56 = vmul.f32 1.442695, %v4590_v35  ;;  %v4021_v25 = vpop.f32.mrf.mxu2 }
 0x2b0   : > { %v5444_v28 = vpop.eup %5443  ;;  %v4685_v29 = vadd.f32 1.0, %v5442_v7  ;;  %v4462_v4 = vpop.f32.mrf.mxu0  ;;  %v4080_v37 = vadd.f32 %v4021_v25, %v3842_v34 }
 0x2b1   : > { %5300 = vmatmul.msk.bf16.gmra.mxu3 %vm2610_vm12, %v4147_v14  ;;  %v3788_v19 = vpop.f32.mrf.mxu1  ;;  %v4748_v16 = vmul.f32 %v5444_v28, %v7076_v32  ;;  %5445 = vpow2.f32 %v4634_v56  ;;  %v4523_v55 = vadd.f32 %v4462_v4, %v4301_v51 }
 0x2b2   : > { %5447 = vrcp.f32 %v4685_v29  ;;  %v3844_v48 = vadd.f32 %v3788_v19, %v6551_v59 }
 0x2b3   : > { %v4780_v13 = vpack.c.bf16 %v4748_v16, %v4748_v16  ;;  %v4559_v24 = vadd.f32 %v7126_v43, %v4523_v55 }
 0x2b4   : > { %v4243_v23 = vpop.f32.mrf.mxu3 }
 0x2b5   : > { %4812 = vst.msk [vmem:[%s6889_s20 + $0x28] sm:$0xf] %vm196_vm1, %v4780_v13  ;;  %v4591_v6 = vsub.f32 0.0, %v4559_v24  ;;  %v4302_v63 = vadd.f32 %v4243_v23, %v4080_v37 }
 0x2b7   : > { %v5446_v32 = vpop.eup %5445  ;;  %v4636_v40 = vmul.f32 1.442695, %v4591_v6  ;;  %v4023_v17 = vpop.f32.mrf.mxu2 }
 0x2b8   : > { %v5448_v2 = vpop.eup %5447  ;;  %v4686_v38 = vadd.f32 1.0, %v5446_v32  ;;  %v4465_v18 = vpop.f32.mrf.mxu0  ;;  %v4081_v5 = vadd.f32 %v4023_v17, %v3843_v30 }
 0x2b9   : > { %v3790_v54 = vpop.f32.mrf.mxu1  ;;  %v4749_v21 = vmul.f32 %v5448_v2, %v7093_v46  ;;  %5449 = vpow2.f32 %v4636_v40  ;;  %v4524_v9 = vadd.f32 %v4465_v18, %v4302_v63 }
 0x2ba   : > { %5451 = vrcp.f32 %v4686_v38  ;;  %v3845_v29 = vadd.f32 %v3790_v54, %v6567_v8 }
 0x2bb   : > { %v4781_v58 = vpack.c.bf16 %v4749_v21, %v4749_v21  ;;  %5317 = vmatmul.msk.bf16.gmra.mxu0 %vm2610_vm12, %v4369_v42  ;;  %v4560_v50 = vadd.f32 %v7126_v43, %v4524_v9 }
 0x2bc   : > { %v4245_v0 = vpop.f32.mrf.mxu3 }
 0x2bd   : > { %4813 = vst.msk [vmem:[%s6889_s20 + $0x2c] sm:$0xf] %vm196_vm1, %v4781_v58  ;;  %v4592_v39 = vsub.f32 0.0, %v4560_v50  ;;  %v4303_v3 = vadd.f32 %v4245_v0, %v4081_v5 }
 0x2bf   : > { %v5450_v36 = vpop.eup %5449  ;;  %v4638_v62 = vmul.f32 1.442695, %v4592_v39  ;;  %v4026_v46 = vpop.f32.mrf.mxu2 }
 0x2c0   : > { %v5452_v52 = vpop.eup %5451  ;;  %v4687_v27 = vadd.f32 1.0, %v5450_v36  ;;  %v4467_v14 = vpop.f32.mrf.mxu0  ;;  %v4082_v35 = vadd.f32 %v4026_v46, %v3844_v48 }
 0x2c1   : > { %v3793_v49 = vpop.f32.mrf.mxu1  ;;  %v4750_v20 = vmul.f32 %v5452_v52, %v7109_v31  ;;  %5453 = vpow2.f32 %v4638_v62  ;;  %v4525_v11 = vadd.f32 %v4467_v14, %v4303_v3 }
 0x2c2   : > { %5455 = vrcp.f32 %v4687_v27  ;;  %v3846_v32 = vadd.f32 %v3793_v49, %v6584_v60 }
 0x2c3   : > { %v4782_v51 = vpack.c.bf16 %v4750_v20, %v4750_v20  ;;  %v4561_v7 = vadd.f32 %v7126_v43, %v4525_v11 }
 0x2c4   : > { %v4248_v56 = vpop.f32.mrf.mxu3 }
 0x2c5   : > { %4814 = vst.msk [vmem:[%s6889_s20 + $0x30] sm:$0xf] %vm196_vm1, %v4782_v51  ;;  %v4593_v34 = vsub.f32 0.0, %v4561_v7  ;;  %v4304_v25 = vadd.f32 %v4248_v56, %v4082_v35 }
 0x2c7   : > { %v5454_v59 = vpop.eup %5453  ;;  %v4640_v28 = vmul.f32 1.442695, %v4593_v34  ;;  %v4028_v4 = vpop.f32.mrf.mxu2 }
 0x2c8   : > { %v5456_v45 = vpop.eup %5455  ;;  %v4688_v31 = vadd.f32 1.0, %v5454_v59  ;;  %v4470_v61 = vpop.f32.mrf.mxu0  ;;  %v4083_v37 = vadd.f32 %v4028_v4, %v3845_v29 }
 0x2c9   : > { %v3795_v19 = vpop.f32.mrf.mxu1  ;;  %v4751_v16 = vmul.f32 %v5456_v45, %v4559_v24  ;;  %5457 = vpow2.f32 %v4640_v28  ;;  %v4526_v55 = vadd.f32 %v4470_v61, %v4304_v25 }
 0x2ca   : > { %5459 = vrcp.f32 %v4688_v31  ;;  %v3847_v39 = vadd.f32 %v3795_v19, %v6596_v26 }
 0x2cb   : > { %v4783_v13 = vpack.c.bf16 %v4751_v16, %v4751_v16  ;;  %v4562_v10 = vadd.f32 %v7126_v43, %v4526_v55 }
 0x2cc   : > { %v4250_v22 = vpop.f32.mrf.mxu3 }
 0x2cd   : > { %4815 = vst.msk [vmem:[%s6889_s20 + $0x34] sm:$0xf] %vm196_vm1, %v4783_v13  ;;  %v4594_v23 = vsub.f32 0.0, %v4562_v10  ;;  %v4305_v6 = vadd.f32 %v4250_v22, %v4083_v37 }
 0x2cf   : > { %v5458_v63 = vpop.eup %5457  ;;  %v4642_v8 = vmul.f32 1.442695, %v4594_v23  ;;  %v4031_v40 = vpop.f32.mrf.mxu2 }
 0x2d0   : > { %v5460_v42 = vpop.eup %5459  ;;  %v4689_v24 = vadd.f32 1.0, %v5458_v63  ;;  %v4472_v30 = vpop.f32.mrf.mxu0  ;;  %v4084_v18 = vadd.f32 %v4031_v40, %v3846_v32 }
 0x2d1   : > { %v3798_v17 = vpop.f32.mrf.mxu1  ;;  %v4752_v2 = vmul.f32 %v5460_v42, %v4560_v50  ;;  %5461 = vpow2.f32 %v4642_v8  ;;  %v4527_v38 = vadd.f32 %v4472_v30, %v4305_v6 }
 0x2d2   : > { %5463 = vrcp.f32 %v4689_v24  ;;  %v3848_v56 = vadd.f32 %v3798_v17, %v6613_v15 }
 0x2d3   : > { %v4784_v54 = vpack.c.bf16 %v4752_v2, %v4752_v2  ;;  %v4563_v21 = vadd.f32 %v7126_v43, %v4527_v38 }
 0x2d4   : > { %v4253_v9 = vpop.f32.mrf.mxu3 }
 0x2d5   : > { %4816 = vst.msk [vmem:[%s6889_s20 + $0x38] sm:$0xf] %vm196_vm1, %v4784_v54  ;;  %v4595_v5 = vsub.f32 0.0, %v4563_v21  ;;  %v4306_v58 = vadd.f32 %v4253_v9, %v4084_v18 }
 0x2d7   : > { %v5462_v0 = vpop.eup %5461  ;;  %v4644_v60 = vmul.f32 1.442695, %v4595_v5  ;;  %v4033_v3 = vpop.f32.mrf.mxu2 }
 0x2d8   : > { %v5464_v36 = vpop.eup %5463  ;;  %v4690_v50 = vadd.f32 1.0, %v5462_v0  ;;  %v4475_v62 = vpop.f32.mrf.mxu0  ;;  %v4085_v27 = vadd.f32 %v4033_v3, %v3847_v39 }
 0x2d9   : > { %v3800_v48 = vpop.f32.mrf.mxu1  ;;  %v4753_v46 = vmul.f32 %v5464_v36, %v4561_v7  ;;  %5465 = vpow2.f32 %v4644_v60  ;;  %v4528_v52 = vadd.f32 %v4475_v62, %v4306_v58 }
 0x2da   : > { %5467 = vrcp.f32 %v4690_v50  ;;  %v3849_v13 = vadd.f32 %v3800_v48, %v6629_v57 }
 0x2db   : > { %v4785_v14 = vpack.c.bf16 %v4753_v46, %v4753_v46  ;;  %v4564_v49 = vadd.f32 %v7126_v43, %v4528_v52 }
 0x2dc   : > { %v4255_v20 = vpop.f32.mrf.mxu3 }
 0x2dd   : > { %4817 = vst.msk [vmem:[%s6889_s20 + $0x3c] sm:$0xf] %vm196_vm1, %v4785_v14  ;;  %v4596_v11 = vsub.f32 0.0, %v4564_v49  ;;  %v4307_v35 = vadd.f32 %v4255_v20, %v4085_v27 }
 0x2df   : > { %v5466_v51 = vpop.eup %5465  ;;  %v4646_v26 = vmul.f32 1.442695, %v4596_v11  ;;  %v4036_v34 = vpop.f32.mrf.mxu2 }
 0x2e0   : > { %v5468_v25 = vpop.eup %5467  ;;  %v4691_v7 = vadd.f32 1.0, %v5466_v51  ;;  %v4477_v59 = vpop.f32.mrf.mxu0  ;;  %v4086_v45 = vadd.f32 %v4036_v34, %v3848_v56 }
 0x2e1   : > { %v3803_v28 = vpop.f32.mrf.mxu1  ;;  %v4754_v29 = vmul.f32 %v5468_v25, %v4562_v10  ;;  %5469 = vpow2.f32 %v4646_v26  ;;  %v4529_v4 = vadd.f32 %v4477_v59, %v4307_v35 }
 0x2e2   : > { %5471 = vrcp.f32 %v4691_v7  ;;  %v3850_v18 = vadd.f32 %v3803_v28, %v6646_v44 }
 0x2e3   : > { %v4786_v31 = vpack.c.bf16 %v4754_v29, %v4754_v29  ;;  %v4565_v61 = vadd.f32 %v7126_v43, %v4529_v4 }
 0x2e4   : > { %v4258_v19 = vpop.f32.mrf.mxu3 }
 0x2e5   : > { %4818 = vst.msk [vmem:[%s6889_s20 + $0x40] sm:$0xf] %vm196_vm1, %v4786_v31  ;;  %v4597_v16 = vsub.f32 0.0, %v4565_v61  ;;  %v4308_v55 = vadd.f32 %v4258_v19, %v4086_v45 }
 0x2e7   : > { %v5470_v37 = vpop.eup %5469  ;;  %v4648_v15 = vmul.f32 1.442695, %v4597_v16  ;;  %v4038_v22 = vpop.f32.mrf.mxu2 }
 0x2e8   : > { %v5472_v23 = vpop.eup %5471  ;;  %v4692_v10 = vadd.f32 1.0, %v5470_v37  ;;  %v4480_v6 = vpop.f32.mrf.mxu0  ;;  %v4087_v40 = vadd.f32 %v4038_v22, %v3849_v13 }
 0x2e9   : > { %v3805_v63 = vpop.f32.mrf.mxu1  ;;  %v4755_v8 = vmul.f32 %v5472_v23, %v4563_v21  ;;  %5473 = vpow2.f32 %v4648_v15  ;;  %v4530_v32 = vadd.f32 %v4480_v6, %v4308_v55 }
 0x2ea   : > { %5475 = vrcp.f32 %v4692_v10  ;;  %v3851_v52 = vadd.f32 %v3805_v63, %v6658_v41 }
 0x2eb   : > { %v4787_v42 = vpack.c.bf16 %v4755_v8, %v4755_v8  ;;  %v4566_v24 = vadd.f32 %v7126_v43, %v4530_v32 }
 0x2ec   : > { %v4260_v30 = vpop.f32.mrf.mxu3 }
 0x2ed   : > { %4819 = vst.msk [vmem:[%s6889_s20 + $0x44] sm:$0xf] %vm196_vm1, %v4787_v42  ;;  %v4598_v17 = vsub.f32 0.0, %v4566_v24  ;;  %v4309_v2 = vadd.f32 %v4260_v30, %v4087_v40 }
 0x2ef   : > { %v5474_v38 = vpop.eup %5473  ;;  %v4650_v57 = vmul.f32 1.442695, %v4598_v17  ;;  %v4041_v54 = vpop.f32.mrf.mxu2 }
 0x2f0   : > { %v5476_v9 = vpop.eup %5475  ;;  %v4693_v21 = vadd.f32 1.0, %v5474_v38  ;;  %v4482_v5 = vpop.f32.mrf.mxu0  ;;  %v4088_v39 = vadd.f32 %v4041_v54, %v3850_v18 }
 0x2f1   : > { %v3808_v58 = vpop.f32.mrf.mxu1  ;;  %v4756_v0 = vmul.f32 %v5476_v9, %v4564_v49  ;;  %5477 = vpow2.f32 %v4650_v57  ;;  %v4531_v60 = vadd.f32 %v4482_v5, %v4309_v2 }
 0x2f2   : > { %5479 = vrcp.f32 %v4693_v21  ;;  %v3852_v29 = vadd.f32 %v3808_v58, %v6675_v33 }
 0x2f3   : > { %v4788_v3 = vpack.c.bf16 %v4756_v0, %v4756_v0  ;;  %v4567_v36 = vadd.f32 %v7126_v43, %v4531_v60 }
 0x2f4   : > { %v4263_v50 = vpop.f32.mrf.mxu3 }
 0x2f5   : > { %4820 = vst.msk [vmem:[%s6889_s20 + $0x48] sm:$0xf] %vm196_vm1, %v4788_v3  ;;  %v4599_v62 = vsub.f32 0.0, %v4567_v36  ;;  %v4310_v48 = vadd.f32 %v4263_v50, %v4088_v39 }
 0x2f7   : > { %v5478_v46 = vpop.eup %5477  ;;  %v4652_v44 = vmul.f32 1.442695, %v4599_v62  ;;  %v4043_v27 = vpop.f32.mrf.mxu2 }
 0x2f8   : > { %v5480_v14 = vpop.eup %5479  ;;  %v4694_v49 = vadd.f32 1.0, %v5478_v46  ;;  %v4485_v20 = vpop.f32.mrf.mxu0  ;;  %v4089_v26 = vadd.f32 %v4043_v27, %v3851_v52 }
 0x2f9   : > { %v3810_v11 = vpop.f32.mrf.mxu1  ;;  %v4757_v35 = vmul.f32 %v5480_v14, %v4565_v61  ;;  %5481 = vpow2.f32 %v4652_v44  ;;  %v4532_v51 = vadd.f32 %v4485_v20, %v4310_v48 }
 0x2fa   : > { %5483 = vrcp.f32 %v4694_v49  ;;  %v3853_v63 = vadd.f32 %v3810_v11, %v6689_v12 }
 0x2fb   : > { %v4789_v56 = vpack.c.bf16 %v4757_v35, %v4757_v35  ;;  %v4568_v34 = vadd.f32 %v7126_v43, %v4532_v51 }
 0x2fc   : > { %v4265_v25 = vpop.f32.mrf.mxu3 }
 0x2fd   : > { %4821 = vst.msk [vmem:[%s6889_s20 + $0x4c] sm:$0xf] %vm196_vm1, %v4789_v56  ;;  %v4600_v7 = vsub.f32 0.0, %v4568_v34  ;;  %v4311_v59 = vadd.f32 %v4265_v25, %v4089_v26 }
 0x2ff   : > { %v5482_v28 = vpop.eup %5481  ;;  %v4654_v41 = vmul.f32 1.442695, %v4600_v7  ;;  %v4046_v4 = vpop.f32.mrf.mxu2 }
 0x300   : > { %v5484_v45 = vpop.eup %5483  ;;  %v4695_v31 = vadd.f32 1.0, %v5482_v28  ;;  %v4487_v61 = vpop.f32.mrf.mxu0  ;;  %v4090_v55 = vadd.f32 %v4046_v4, %v3852_v29 }
 0x301   : > { %v4758_v19 = vmul.f32 %v5484_v45, %v4566_v24  ;;  %5485 = vpow2.f32 %v4654_v41  ;;  %v4533_v16 = vadd.f32 %v4487_v61, %v4311_v59  ;;  %v3813_v37 = vpop.f32.mrf.mxu1 }
 0x302   : > { %5487 = vrcp.f32 %v4695_v31  ;;  %v3854_v5 = vadd.f32 %v3813_v37, %v6706_v53 }
 0x303   : > { %v4790_v15 = vpack.c.bf16 %v4758_v19, %v4758_v19  ;;  %v4569_v13 = vadd.f32 %v7126_v43, %v4533_v16 }
 0x304   : > { %v4268_v22 = vpop.f32.mrf.mxu3 }
 0x305   : > { %4822 = vst.msk [vmem:[%s6889_s20 + $0x50] sm:$0xf] %vm196_vm1, %v4790_v15  ;;  %v4601_v23 = vsub.f32 0.0, %v4569_v13  ;;  %v4312_v10 = vadd.f32 %v4268_v22, %v4090_v55 }
 0x307   : > { %v5486_v6 = vpop.eup %5485  ;;  %v4656_v33 = vmul.f32 1.442695, %v4601_v23  ;;  %v4048_v8 = vpop.f32.mrf.mxu2 }
 0x308   : > { %v5488_v32 = vpop.eup %5487  ;;  %v4696_v40 = vadd.f32 1.0, %v5486_v6  ;;  %v4490_v42 = vpop.f32.mrf.mxu0  ;;  %v4091_v17 = vadd.f32 %v4048_v8, %v3853_v63  ;;  %v7249_v63 = vld [vmem:[#allocation3_spill] sm:$0xff] }
 0x309   : > { %v4759_v24 = vmul.f32 %v5488_v32, %v4567_v36  ;;  %5489 = vpow2.f32 %v4656_v33  ;;  %v4534_v30 = vadd.f32 %v4490_v42, %v4312_v10  ;;  %v3815_v18 = vpop.f32.mrf.mxu1 }
 0x30a   : > { %5491 = vrcp.f32 %v4696_v40  ;;  %v3855_v49 = vadd.f32 %v3815_v18, %v6722_v47 }
 0x30b   : > { %v4791_v2 = vpack.c.bf16 %v4759_v24, %v4759_v24  ;;  %v4570_v38 = vadd.f32 %v7126_v43, %v4534_v30 }
 0x30c   : > { %v4270_v57 = vpop.f32.mrf.mxu3 }
 0x30d   : > { %4823 = vst.msk [vmem:[%s6889_s20 + $0x54] sm:$0xf] %vm196_vm1, %v4791_v2  ;;  %v4602_v54 = vsub.f32 0.0, %v4570_v38  ;;  %v4313_v9 = vadd.f32 %v4270_v57, %v4091_v17 }
 0x30f   : > { %v5490_v12 = vpop.eup %5489  ;;  %v4658_v21 = vmul.f32 1.442695, %v4602_v54  ;;  %v4051_v58 = vpop.f32.mrf.mxu2 }
 0x310   : > { %v5492_v0 = vpop.eup %5491  ;;  %v4697_v60 = vadd.f32 1.0, %v5490_v12  ;;  %v4492_v39 = vpop.f32.mrf.mxu0  ;;  %v4092_v50 = vadd.f32 %v4051_v58, %v3854_v5  ;;  %v7250_v58 = vld [vmem:[#allocation4_spill] sm:$0xff] }
 0x311   : > { %v4760_v3 = vmul.f32 %v5492_v0, %v4568_v34  ;;  %5493 = vpow2.f32 %v4658_v21  ;;  %v4535_v36 = vadd.f32 %v4492_v39, %v4313_v9  ;;  %v3818_v27 = vpop.f32.mrf.mxu1 }
 0x312   : > { %5495 = vrcp.f32 %v4697_v60  ;;  %v3856_v4 = vadd.f32 %v3818_v27, %v6739_v1 }
 0x313   : > { %v4792_v62 = vpack.c.bf16 %v4760_v3, %v4760_v3  ;;  %v4571_v48 = vadd.f32 %v7126_v43, %v4535_v36 }
 0x314   : > { %v4273_v46 = vpop.f32.mrf.mxu3 }
 0x315   : > { %4824 = vst.msk [vmem:[%s6889_s20 + $0x58] sm:$0xf] %vm196_vm1, %v4792_v62  ;;  %v4603_v44 = vsub.f32 0.0, %v4571_v48  ;;  %v4314_v52 = vadd.f32 %v4273_v46, %v4092_v50 }
 0x317   : > { %v5494_v53 = vpop.eup %5493  ;;  %v4660_v14 = vmul.f32 1.442695, %v4603_v44  ;;  %v4053_v20 = vpop.f32.mrf.mxu2 }
 0x318   : > { %v5496_v11 = vpop.eup %5495  ;;  %v4698_v35 = vadd.f32 1.0, %v5494_v53  ;;  %v4495_v51 = vpop.f32.mrf.mxu0  ;;  %v4093_v34 = vadd.f32 %v4053_v20, %v3855_v49 }
 0x319   : > { %v4761_v26 = vmul.f32 %v5496_v11, %v4569_v13  ;;  %5497 = vpow2.f32 %v4660_v14  ;;  %v4536_v56 = vadd.f32 %v4495_v51, %v4314_v52  ;;  %v3820_v16 = vpop.f32.mrf.mxu1  ;;  %v7251_v11 = vld [vmem:[#allocation5_spill] sm:$0xff] }
 0x31a   : > { %5499 = vrcp.f32 %v4698_v35  ;;  %v3857_v8 = vadd.f32 %v3820_v16, %v7249_v63 }
 0x31b   : > { %v4793_v25 = vpack.c.bf16 %v4761_v26, %v4761_v26  ;;  %v4572_v7 = vadd.f32 %v7126_v43, %v4536_v56 }
 0x31c   : > { %v4275_v59 = vpop.f32.mrf.mxu3 }
 0x31d   : > { %4825 = vst.msk [vmem:[%s6889_s20 + $0x5c] sm:$0xf] %vm196_vm1, %v4793_v25  ;;  %v4604_v28 = vsub.f32 0.0, %v4572_v7  ;;  %v4315_v41 = vadd.f32 %v4275_v59, %v4093_v34 }
 0x31f   : > { %v5498_v29 = vpop.eup %5497  ;;  %v4662_v47 = vmul.f32 1.442695, %v4604_v28  ;;  %v4056_v45 = vpop.f32.mrf.mxu2 }
 0x320   : > { %v5500_v31 = vpop.eup %5499  ;;  %v4699_v61 = vadd.f32 1.0, %v5498_v29  ;;  %v4497_v19 = vpop.f32.mrf.mxu0  ;;  %v4094_v15 = vadd.f32 %v4056_v45, %v3856_v4 }
 0x321   : > { %v4762_v55 = vmul.f32 %v5500_v31, %v4570_v38  ;;  %5501 = vpow2.f32 %v4662_v47  ;;  %v4537_v37 = vadd.f32 %v4497_v19, %v4315_v41  ;;  %v3823_v38 = vpop.f32.mrf.mxu1 }
 0x322   : > { %5503 = vrcp.f32 %v4699_v61  ;;  %v3858_v0 = vadd.f32 %v3823_v38, %v7250_v58 }
 0x323   : > { %v4794_v13 = vpack.c.bf16 %v4762_v55, %v4762_v55  ;;  %v4573_v22 = vadd.f32 %v7126_v43, %v4537_v37 }
 0x324   : > { %v4278_v23 = vpop.f32.mrf.mxu3 }
 0x325   : > { %4826 = vst.msk [vmem:[%s6889_s20 + $0x60] sm:$0xf] %vm196_vm1, %v4794_v13  ;;  %v4605_v10 = vsub.f32 0.0, %v4573_v22  ;;  %v4316_v6 = vadd.f32 %v4278_v23, %v4094_v15 }
 0x327   : > { %v5502_v33 = vpop.eup %5501  ;;  %v4664_v1 = vmul.f32 1.442695, %v4605_v10  ;;  %v4058_v32 = vpop.f32.mrf.mxu2 }
 0x328   : > { %v5504_v40 = vpop.eup %5503  ;;  %v4700_v42 = vadd.f32 1.0, %v5502_v33  ;;  %v4500_v24 = vpop.f32.mrf.mxu0  ;;  %v4095_v2 = vadd.f32 %v4058_v32, %v3857_v8 }
 0x329   : > { %v4763_v30 = vmul.f32 %v5504_v40, %v4571_v48  ;;  %5505 = vpow2.f32 %v4664_v1  ;;  %v4538_v17 = vadd.f32 %v4500_v24, %v4316_v6  ;;  %v3825_v27 = vpop.f32.mrf.mxu1 }
 0x32a   : > { %5507 = vrcp.f32 %v4700_v42  ;;  %v3859_v35 = vadd.f32 %v3825_v27, %v7251_v11 }
 0x32b   : > { %v4795_v57 = vpack.c.bf16 %v4763_v30, %v4763_v30  ;;  %v4574_v18 = vadd.f32 %v7126_v43, %v4538_v17 }
 0x32c   : > { %v4280_v54 = vpop.f32.mrf.mxu3 }
 0x32d   : > { %4827 = vst.msk [vmem:[%s6889_s20 + $0x64] sm:$0xf] %vm196_vm1, %v4795_v57  ;;  %v4606_v9 = vsub.f32 0.0, %v4574_v18  ;;  %v4317_v12 = vadd.f32 %v4280_v54, %v4095_v2 }
 0x32f   : > { %v5506_v21 = vpop.eup %5505  ;;  %v4666_v5 = vmul.f32 1.442695, %v4606_v9  ;;  %v4061_v60 = vpop.f32.mrf.mxu2 }
 0x330   : > { %v5508_v39 = vpop.eup %5507  ;;  %v4701_v3 = vadd.f32 1.0, %v5506_v21  ;;  %v4502_v36 = vpop.f32.mrf.mxu0  ;;  %v4096_v48 = vadd.f32 %v4061_v60, %v3858_v0 }
 0x331   : > { %v4764_v50 = vmul.f32 %v5508_v39, %v4572_v7  ;;  %5509 = vpow2.f32 %v4666_v5  ;;  %v4539_v62 = vadd.f32 %v4502_v36, %v4317_v12 }
 0x332   : > { %5511 = vrcp.f32 %v4701_v3 }
 0x333   : > { %v4796_v46 = vpack.c.bf16 %v4764_v50, %v4764_v50  ;;  %v4575_v44 = vadd.f32 %v7126_v43, %v4539_v62 }
 0x334   : > { %v4283_v52 = vpop.f32.mrf.mxu3 }
 0x335   : > { %4828 = vst.msk [vmem:[%s6889_s20 + $0x68] sm:$0xf] %vm196_vm1, %v4796_v46  ;;  %v4607_v53 = vsub.f32 0.0, %v4575_v44  ;;  %v4318_v14 = vadd.f32 %v4283_v52, %v4096_v48 }
 0x337   : > { %v5510_v49 = vpop.eup %5509  ;;  %v4668_v20 = vmul.f32 1.442695, %v4607_v53  ;;  %v4063_v51 = vpop.f32.mrf.mxu2 }
 0x338   : > { %v5512_v26 = vpop.eup %5511  ;;  %v4702_v56 = vadd.f32 1.0, %v5510_v49  ;;  %v4505_v34 = vpop.f32.mrf.mxu0  ;;  %v4097_v59 = vadd.f32 %v4063_v51, %v3859_v35 }
 0x339   : > { %v4765_v25 = vmul.f32 %v5512_v26, %v4573_v22  ;;  %5513 = vpow2.f32 %v4668_v20  ;;  %v4540_v7 = vadd.f32 %v4505_v34, %v4318_v14 }
 0x33a   : > { %5515 = vrcp.f32 %v4702_v56 }
 0x33b   : > { %v4797_v28 = vpack.c.bf16 %v4765_v25, %v4765_v25  ;;  %v4576_v41 = vadd.f32 %v7126_v43, %v4540_v7 }
 0x33c   : > { %v4285_v29 = vpop.f32.mrf.mxu3 }
 0x33d   : > { %4829 = vst.msk [vmem:[%s6889_s20 + $0x6c] sm:$0xf] %vm196_vm1, %v4797_v28  ;;  %v4608_v47 = vsub.f32 0.0, %v4576_v41  ;;  %v4319_v4 = vadd.f32 %v4285_v29, %v4097_v59 }
 0x33f   : > { %v5514_v45 = vpop.eup %5513  ;;  %v4670_v31 = vmul.f32 1.442695, %v4608_v47 }
 0x340   : > { %v5516_v61 = vpop.eup %5515  ;;  %v4703_v19 = vadd.f32 1.0, %v5514_v45  ;;  %v4507_v16 = vpop.f32.mrf.mxu0 }
 0x341   : > { %v4766_v55 = vmul.f32 %v5516_v61, %v4574_v18  ;;  %5517 = vpow2.f32 %v4670_v31  ;;  %v4541_v37 = vadd.f32 %v4507_v16, %v4319_v4 }
 0x342   : > { %5519 = vrcp.f32 %v4703_v19 }
 0x343   : > { %v4798_v15 = vpack.c.bf16 %v4766_v55, %v4766_v55  ;;  %v4577_v13 = vadd.f32 %v7126_v43, %v4541_v37 }
 0x345   : > { %4830 = vst.msk [vmem:[%s6889_s20 + $0x70] sm:$0xf] %vm196_vm1, %v4798_v15  ;;  %v4609_v22 = vsub.f32 0.0, %v4577_v13 }
 0x347   : > { %v5518_v23 = vpop.eup %5517  ;;  %v4672_v10 = vmul.f32 1.442695, %v4609_v22 }
 0x348   : > { %v5520_v6 = vpop.eup %5519  ;;  %v4704_v33 = vadd.f32 1.0, %v5518_v23 }
 0x349   : > { %v4767_v1 = vmul.f32 %v5520_v6, %v4575_v44  ;;  %5521 = vpow2.f32 %v4672_v10 }
 0x34a   : > { %5523 = vrcp.f32 %v4704_v33 }
 0x34b   : > { %v4799_v63 = vpack.c.bf16 %v4767_v1, %v4767_v1 }
 0x34d   : > { %4831 = vst.msk [vmem:[%s6889_s20 + $0x74] sm:$0xf] %vm196_vm1, %v4799_v63 }
 0x34f   : > { %v5522_v8 = vpop.eup %5521 }
 0x350   : > { %v5524_v32 = vpop.eup %5523  ;;  %v4705_v40 = vadd.f32 1.0, %v5522_v8 }
 0x351   : > { %v4768_v42 = vmul.f32 %v5524_v32, %v4576_v41 }
 0x352   : > { %5525 = vrcp.f32 %v4705_v40 }
 0x353   : > { %v4800_v43 = vpack.c.bf16 %v4768_v42, %v4768_v42 }
 0x355   : > { %4832 = vst.msk [vmem:[%s6889_s20 + $0x78] sm:$0xf] %vm196_vm1, %v4800_v43 }
 0x358   : > { %v5526_v24 = vpop.eup %5525 }
 0x359   : > { %v4769_v30 = vmul.f32 %v5526_v24, %v4577_v13 }
 0x35b   : > { %v4801_v17 = vpack.c.bf16 %v4769_v30, %v4769_v30 }
 0x35d   : > { %4833 = vst.msk [vmem:[%s6889_s20 + $0x7c] sm:$0xf] %vm196_vm1, %v4801_v17 }
 0x35e PF: > { %s13_s14 = sadd.s32 1, %s5606_s14   ;;  %s7252_s12 = smov %s5602_s13 }
 0x35f   : > { %p10_p5 = scmp.ge.s32.totalorder %s13_s14, 4   ;;  %s7253_s13 = smov %s7255_s15 }
 0x361   :  { %12 = sbr.rel (!%p10_p5) target bundleno = 2 (0x2), region = 73 }

</bundles_post_ra>
